<compile_context>
chip_gen: v7x
topology: tpu7x:2x2x1
jax: 0.10.0
libtpu: 0.0.40
codegen_flags: <defaults>
</compile_context>

<pallas_src>
import functools

import jax
import jax.numpy as jnp
from jax import lax
from jax.experimental import pallas as pl
from jax.experimental.pallas import tpu as pltpu

GW = 128          # lane block: every gate / hidden / slab field starts on a 128-lane boundary
NG = 8 * GW       # 8 gate blocks: [i_f f_f g_f o_f | i_b f_b g_b o_b]


def _r8(n):
    return ((n + 7) // 8) * 8


# ----------------------------------------------------------------------------
# Fused kernel
# ----------------------------------------------------------------------------
def _fused_kernel(act_ref, w1_ref, w2_ref, out_ref, gp_scr, lstm_scr, *,
                  B, BP, T, E, H, L, ECOL,
                  R_WIH, R_BIAS, R_WHH, R_BC, R_BOUT, R_START, R_END, R_TRANS):
    f32 = jnp.float32
    TBP = T * BP

    emb = act_ref[:, 0:E]                                   # (T*BP, E)
    oh = act_ref[:, ECOL:ECOL + L]                          # (T*BP, L)  one-hot labels
    mask = act_ref[:, ECOL + GW:ECOL + GW + 1]              # (T*BP, 1)  t=0 rows forced to 1

    # --- Conv2d(1->H, kernel [3,E], padding [1,0]): 3 taps fused into ONE matmul -----
    wc3 = w1_ref[0:E, 0:3 * GW]                             # taps at 128-lane blocks
    y3 = jnp.dot(emb, wc3, preferred_element_type=f32)      # (T*BP, 3*128)
    y_m1 = y3[:, 0:H]                                       # emb[r] @ W_{-1}
    y_0 = y3[:, GW:GW + H]                                  # emb[r] @ W_0
    y_p1 = y3[:, 2 * GW:2 * GW + H]                         # emb[r] @ W_{+1}
    row = lax.broadcasted_iota(jnp.int32, (TBP, H), 0)
    y_m1_s = jnp.where(row >= BP, pltpu.roll(y_m1, shift=BP, axis=0), 0.0)       # t -> t+1
    y_p1_s = jnp.where(row < TBP - BP, pltpu.roll(y_p1, shift=TBP - BP, axis=0), 0.0)
    conv = y_0 + y_m1_s + y_p1_s + w2_ref[R_BC:R_BC + 1, 0:H]                    # (T*BP, H)
    # TODO(synk): nn.Dropout(0.5) is stochastic; applied here as identity (eval semantics).

    # --- BiLSTM: input projections for BOTH directions hoisted (one matmul) ---------
    wih = w1_ref[R_WIH:R_WIH + H, :]                        # (H, 1024), gate-blocked
    gp_scr[...] = (jnp.dot(conv, wih, preferred_element_type=f32) +
                   w1_ref[R_BIAS:R_BIAS + 1, :])            # (T*BP, 1024)

    whh = w1_ref[R_WHH:R_WHH + 2 * GW, :]                   # (256, 1024) block-diagonal

    lane = lax.broadcasted_iota(jnp.int32, (BP, NG), 1)
    g_lane = (((lane >= 2 * GW) & (lane < 3 * GW)) |
              ((lane >= 6 * GW) & (lane < 7 * GW)))         # the two "g" (tanh) gate blocks

    hcat = jnp.zeros((BP, 2 * GW), f32)                     # [h_fwd(128) | h_bwd(128)]
    cf = jnp.zeros((BP, GW), f32)
    cb = jnp.zeros((BP, GW), f32)
    # fully unrolled; fwd + bwd share ONE recurrent MXU push per step, all slices aligned.
    for s in range(T):
        tf = s
        tb = T - 1 - s
        gin = jnp.concatenate(
            [gp_scr[tf * BP:(tf + 1) * BP, 0:4 * GW],
             gp_scr[tb * BP:(tb + 1) * BP, 4 * GW:NG]], axis=1)              # (BP, 1024)
        g = gin + jnp.dot(hcat, whh, preferred_element_type=f32)
        # sigmoid(x) = 0.5*tanh(x/2) + 0.5 -> single EUP pass over the whole gate tile.
        th = jnp.tanh(jnp.where(g_lane, g, 0.5 * g))
        act = jnp.where(g_lane, th, 0.5 * th + 0.5)
        cf = act[:, GW:2 * GW] * cf + act[:, 0:GW] * act[:, 2 * GW:3 * GW]
        hf = act[:, 3 * GW:4 * GW] * jnp.tanh(cf)
        cb = act[:, 5 * GW:6 * GW] * cb + act[:, 4 * GW:5 * GW] * act[:, 6 * GW:7 * GW]
        hb = act[:, 7 * GW:8 * GW] * jnp.tanh(cb)
        hcat = jnp.concatenate([hf, hb], axis=1)            # 128-aligned concat
        lstm_scr[tf * BP:(tf + 1) * BP, 0:GW] = hf
        lstm_scr[tb * BP:(tb + 1) * BP, GW:2 * GW] = hb

    # --- hidden2tag (emissions stay in VMEM) -----------------------------------------
    wout = w2_ref[0:2 * GW, 0:L]                            # zero rows at padded lanes
    em = (jnp.dot(lstm_scr[...], wout, preferred_element_type=f32) +
          w2_ref[R_BOUT:R_BOUT + 1, 0:L])                   # (T*BP, L)

    # --- CRF: emission part of the numerator -----------------------------------------
    num_emit = jnp.sum(jnp.sum(em * oh * mask, axis=1, keepdims=True),
                       axis=0, keepdims=True)               # (1, 1)

    # --- CRF: normalizer (forward algorithm, vectorized over labels) -----------------
    start = w2_ref[R_START:R_START + 1, 0:L]                # (1, L)
    end = w2_ref[R_END:R_END + 1, 0:L]
    transT3 = w2_ref[R_TRANS:R_TRANS + L, 0:L].reshape(1, L, L)   # [0, j, i] = trans[i, j]
    eye3 = (lax.broadcasted_iota(jnp.int32, (1, L, L), 1) ==
            lax.broadcasted_iota(jnp.int32, (1, L, L), 2)).astype(f32)

    alpha = start + em[0:BP, :]                             # (BP, L)
    for t in range(1, T):
        em_t = em[t * BP:(t + 1) * BP, :]                   # (BP, L)
        m_t = mask[t * BP:(t + 1) * BP, :]                  # (BP, 1)
        scores = alpha[:, None, :] + transT3                # (BP, L, L): lanes = previous label i
        mx = jnp.max(scores, axis=2, keepdims=True)
        lse = mx + jnp.log(jnp.sum(jnp.exp(scores - mx), axis=2, keepdims=True))  # (BP, L, 1)
        lse_l = jnp.sum(lse * eye3, axis=1)                 # (BP, L): sublane->lane via eye-mul
        alpha = jnp.where(m_t > 0.0, em_t + lse_l, alpha)

    alpha = alpha + end
    amax = jnp.max(alpha, axis=1, keepdims=True)
    denom = amax + jnp.log(jnp.sum(jnp.exp(alpha - amax), axis=1, keepdims=True))  # (BP, 1)
    bvalid = mask[0:BP, :]                                  # 1 for real batch rows, 0 for pads
    denom_sum = jnp.sum(denom * bvalid, axis=0, keepdims=True)

    # kernel's share of the loss: mean_b(denominator) - mean_b(emission numerator)
    out_ref[...] = (denom_sum - num_emit) * (1.0 / B)


# ----------------------------------------------------------------------------
# Host-side slab packing (parameter-only; would be cached across steps in training)
# ----------------------------------------------------------------------------
def _pack_weights(params, E, H, Hd, L):
    f32 = jnp.float32
    R_WIH = _r8(E)
    R_BIAS = R_WIH + _r8(H)
    R_WHH = R_BIAS + 8
    w1 = jnp.zeros((R_WHH + 2 * GW, NG), f32)
    wc = params["wc"].astype(f32)                           # (3E, H) = [W_-1; W_0; W_+1]
    w1 = w1.at[0:E, 0:H].set(wc[0:E])
    w1 = w1.at[0:E, GW:GW + H].set(wc[E:2 * E])
    w1 = w1.at[0:E, 2 * GW:2 * GW + H].set(wc[2 * E:3 * E])
    for k in range(4):                                      # PyTorch gate order i, f, g, o
        w1 = w1.at[R_WIH:R_WIH + H, k * GW:k * GW + Hd].set(params["wih_f"][:, k * Hd:(k + 1) * Hd])
        w1 = w1.at[R_WIH:R_WIH + H, (4 + k) * GW:(4 + k) * GW + Hd].set(params["wih_b"][:, k * Hd:(k + 1) * Hd])
        w1 = w1.at[R_BIAS, k * GW:k * GW + Hd].set(params["b_f"][0, k * Hd:(k + 1) * Hd])
        w1 = w1.at[R_BIAS, (4 + k) * GW:(4 + k) * GW + Hd].set(params["b_b"][0, k * Hd:(k + 1) * Hd])
        w1 = w1.at[R_WHH:R_WHH + Hd, k * GW:k * GW + Hd].set(params["whh_f"][:, k * Hd:(k + 1) * Hd])
        w1 = w1.at[R_WHH + GW:R_WHH + GW + Hd, (4 + k) * GW:(4 + k) * GW + Hd].set(params["whh_b"][:, k * Hd:(k + 1) * Hd])

    R_BC, R_BOUT, R_START, R_END, R_TRANS = 2 * GW, 2 * GW + 8, 2 * GW + 16, 2 * GW + 24, 2 * GW + 32
    w2 = jnp.zeros((R_TRANS + _r8(L), GW), f32)
    w2 = w2.at[0:Hd, 0:L].set(params["wout"][0:Hd])         # fwd half of hidden2tag
    w2 = w2.at[GW:GW + Hd, 0:L].set(params["wout"][Hd:2 * Hd])
    w2 = w2.at[R_BC, 0:H].set(params["bc"][0])
    w2 = w2.at[R_BOUT, 0:L].set(params["bout"][0])
    w2 = w2.at[R_START, 0:L].set(params["crf_start"][0])
    w2 = w2.at[R_END, 0:L].set(params["crf_end"][0])
    w2 = w2.at[R_TRANS:R_TRANS + L, 0:L].set(params["crf_trans"].T)

    offs = dict(R_WIH=R_WIH, R_BIAS=R_BIAS, R_WHH=R_WHH, R_BC=R_BC,
                R_BOUT=R_BOUT, R_START=R_START, R_END=R_END, R_TRANS=R_TRANS)
    return w1, w2, offs


# ----------------------------------------------------------------------------
# Forward wrapper (glue + non-recurrent CRF numerator terms in plain JAX)
# ----------------------------------------------------------------------------
def forward(params, input_ids, labels, attention_mask):
    f32 = jnp.float32
    B, T = input_ids.shape
    BP = _r8(B)                                             # batch rows padded to sublane tile
    E = params["embedding"].shape[1]
    H = params["wc"].shape[1]
    Hd = H // 2
    L = params["wout"].shape[1]
    ECOL = ((E + GW - 1) // GW) * GW

    w1, w2, offs = _pack_weights(params, E, H, Hd, L)

    emb_tm = jnp.transpose(jnp.take(params["embedding"], input_ids, axis=0), (1, 0, 2))  # (T,B,E)
    oh_tm = jnp.transpose(jax.nn.one_hot(labels, L, dtype=f32), (1, 0, 2))               # (T,B,L)
    maskf = attention_mask.astype(f32)
    mask_num = maskf.at[:, 0].set(1.0)        # torchcrf requires mask[:, 0] == True
    mask_tm = jnp.transpose(mask_num, (1, 0))                                            # (T,B)

    # one activation slab: [emb | one_hot | mask], each field on a 128-lane block
    act = jnp.zeros((T, BP, ECOL + 2 * GW), f32)
    act = act.at[:, :B, 0:E].set(emb_tm)
    act = act.at[:, :B, ECOL:ECOL + L].set(oh_tm)
    act = act.at[:, :B, ECOL + GW].set(mask_tm)
    act = act.reshape(T * BP, ECOL + 2 * GW)

    kernel = functools.partial(_fused_kernel, B=B, BP=BP, T=T, E=E, H=H, L=L,
                               ECOL=ECOL, **offs)
    vspec = pl.BlockSpec(memory_space=pltpu.MemorySpace.VMEM)
    partial_loss = pl.pallas_call(
        kernel,
        out_shape=jax.ShapeDtypeStruct((1, 1), f32),
        in_specs=[vspec, vspec, vspec],
        out_specs=vspec,
        scratch_shapes=[
            pltpu.VMEM((T * BP, NG), f32),        # gate pre-activations, both directions
            pltpu.VMEM((T * BP, 2 * GW), f32),    # BiLSTM hidden states [fwd | bwd]
        ],
        compiler_params=pltpu.CompilerParams(vmem_limit_bytes=32 * 1024 * 1024),
    )(act, w1, w2)

    # numerator terms with no sequential dependence: tiny plain-JAX gathers
    y = labels
    start_sc = params["crf_start"][0, y[:, 0]]
    trans_sc = jnp.sum(maskf[:, 1:] * params["crf_trans"][y[:, :-1], y[:, 1:]], axis=1)
    last_idx = jnp.maximum(jnp.sum(attention_mask, axis=1).astype(jnp.int32) - 1, 0)
    last_tag = y[jnp.arange(B), last_idx]
    end_sc = params["crf_end"][0, last_tag]
    num_rest_mean = jnp.mean(start_sc + trans_sc + end_sc)

    # loss = -mean_b(numerator - denominator)
    return partial_loss[0, 0] - num_rest_mean


# ----------------------------------------------------------------------------
# Pure-JAX reference (same math, PyTorch-module semantics) for a correctness check
# ----------------------------------------------------------------------------
def reference_loss(params, input_ids, labels, attention_mask):
    f32 = jnp.float32
    hp = jax.lax.Precision.HIGHEST
    emb = jnp.take(params["embedding"], input_ids, axis=0)            # (B,T,E)
    B, T, E = emb.shape
    H = params["wc"].shape[1]
    Hd = H // 2
    wc = params["wc"]
    emb_prev = jnp.pad(emb, ((0, 0), (1, 0), (0, 0)))[:, :T]
    emb_next = jnp.pad(emb, ((0, 0), (0, 1), (0, 0)))[:, 1:]
    conv = (jnp.dot(emb_prev, wc[0:E], precision=hp) +
            jnp.dot(emb, wc[E:2 * E], precision=hp) +
            jnp.dot(emb_next, wc[2 * E:3 * E], precision=hp) + params["bc"])

    def run_lstm(x, wih, whh, b):
        def step(carry, xt):
            h, c = carry
            g = jnp.dot(xt, wih, precision=hp) + jnp.dot(h, whh, precision=hp) + b
            i = jax.nn.sigmoid(g[:, 0:Hd]); f = jax.nn.sigmoid(g[:, Hd:2 * Hd])
            gg = jnp.tanh(g[:, 2 * Hd:3 * Hd]); o = jax.nn.sigmoid(g[:, 3 * Hd:4 * Hd])
            c = f * c + i * gg
            h = o * jnp.tanh(c)
            return (h, c), h
        init = (jnp.zeros((B, Hd), f32), jnp.zeros((B, Hd), f32))
        _, hs = lax.scan(step, init, jnp.transpose(x, (1, 0, 2)))
        return jnp.transpose(hs, (1, 0, 2))

    hf = run_lstm(conv, params["wih_f"], params["whh_f"], params["b_f"][0])
    hb = run_lstm(conv[:, ::-1], params["wih_b"], params["whh_b"], params["b_b"][0])[:, ::-1]
    em = jnp.dot(jnp.concatenate([hf, hb], axis=-1), params["wout"], precision=hp) + params["bout"]

    maskf = attention_mask.astype(f32)
    trans = params["crf_trans"]; start = params["crf_start"][0]; end = params["crf_end"][0]
    y = labels
    bidx = jnp.arange(B)
    num = start[y[:, 0]] + em[bidx, 0, y[:, 0]]
    for t in range(1, T):
        num = num + maskf[:, t] * (trans[y[:, t - 1], y[:, t]] + em[bidx, t, y[:, t]])
    last_idx = jnp.maximum(jnp.sum(attention_mask, axis=1).astype(jnp.int32) - 1, 0)
    num = num + end[y[bidx, last_idx]]

    alpha = start[None, :] + em[:, 0]
    for t in range(1, T):
        sc = alpha[:, :, None] + trans[None, :, :] + em[:, t][:, None, :]
        na = jax.nn.logsumexp(sc, axis=1)
        alpha = jnp.where(maskf[:, t:t + 1] > 0, na, alpha)
    denom = jax.nn.logsumexp(alpha + end[None, :], axis=1)
    return jnp.mean(denom - num)


# ----------------------------------------------------------------------------
if __name__ == "__main__":
    B, T = 2, 8
    vocab_size = 50
    E = 32            # embedding_dim
    H = 32            # hidden_dim
    Hd = H // 2       # per-direction LSTM hidden
    L = 5             # label_num

    key = jax.random.PRNGKey(0)
    keys = jax.random.split(key, 16)
    s = 0.1
    params = dict(
        embedding=jax.random.normal(keys[0], (vocab_size, E), jnp.float32) * s,
        # Conv2d weight (H,1,3,E) laid out as (3E, H) = [W_{-1}; W_0; W_{+1}] for right-mult
        wc=jax.random.normal(keys[1], (3 * E, H), jnp.float32) * s,
        bc=jax.random.normal(keys[2], (1, H), jnp.float32) * s,
        # LSTM weights, pre-transposed: W_ih (H,4Hd), W_hh (Hd,4Hd), bias = b_ih+b_hh
        wih_f=jax.random.normal(keys[3], (H, 4 * Hd), jnp.float32) * s,
        whh_f=jax.random.normal(keys[4], (Hd, 4 * Hd), jnp.float32) * s,
        b_f=jax.random.normal(keys[5], (1, 4 * Hd), jnp.float32) * s,
        wih_b=jax.random.normal(keys[6], (H, 4 * Hd), jnp.float32) * s,
        whh_b=jax.random.normal(keys[7], (Hd, 4 * Hd), jnp.float32) * s,
        b_b=jax.random.normal(keys[8], (1, 4 * Hd), jnp.float32) * s,
        # hidden2tag: Linear(H, L), pre-transposed
        wout=jax.random.normal(keys[9], (H, L), jnp.float32) * s,
        bout=jax.random.normal(keys[10], (1, L), jnp.float32) * s,
        # CRF parameters
        crf_start=jax.random.normal(keys[11], (1, L), jnp.float32) * s,
        crf_end=jax.random.normal(keys[12], (1, L), jnp.float32) * s,
        crf_trans=jax.random.normal(keys[13], (L, L), jnp.float32) * s,
    )

    input_ids = jax.random.randint(keys[14], (B, T), 0, vocab_size)
    labels = jax.random.randint(keys[15], (B, T), 0, L)
    attention_mask = jnp.array([[1, 1, 1, 1, 1, 1, 1, 1],
                                [1, 1, 1, 1, 1, 0, 0, 0]], dtype=jnp.int32)

    loss = forward(params, input_ids, labels, attention_mask)
    loss = jax.block_until_ready(loss)
    ref = jax.block_until_ready(reference_loss(params, input_ids, labels, attention_mask))
    assert jnp.isfinite(loss)
    assert abs(float(loss) - float(ref)) < 1e-2 * max(1.0, abs(float(ref))), (float(loss), float(ref))
    print("KERNEL_OK")
</pallas_src>

<mosaic_0001>
module attributes {stable_mosaic.version = 11 : i64} {
  func.func @_fused_kernel(%arg0: memref<64x384xf32, #tpu.memory_space<vmem>>, %arg1: memref<328x1024xf32, #tpu.memory_space<vmem>>, %arg2: memref<296x128xf32, #tpu.memory_space<vmem>>, %arg3: memref<1x1xf32, #tpu.memory_space<vmem>>, %arg4: memref<64x1024xf32, #tpu.memory_space<vmem>>, %arg5: memref<64x256xf32, #tpu.memory_space<vmem>>) attributes {dimension_semantics = [], scalar_prefetch = 0 : i64, scratch_operands = 2 : i64, tpu.core_type = #tpu.core_type<tc>} {
    %c0 = arith.constant 0 : index
    %c0_0 = arith.constant 0 : index
    %0 = vector.load %arg0[%c0, %c0_0] : memref<64x384xf32, #tpu.memory_space<vmem>>, vector<64x32xf32>
    %c0_1 = arith.constant 0 : index
    %c128 = arith.constant 128 : index
    %1 = vector.load %arg0[%c0_1, %c128] : memref<64x384xf32, #tpu.memory_space<vmem>>, vector<64x5xf32>
    %c0_2 = arith.constant 0 : index
    %c256 = arith.constant 256 : index
    %2 = vector.load %arg0[%c0_2, %c256] : memref<64x384xf32, #tpu.memory_space<vmem>>, vector<64x1xf32>
    %c0_3 = arith.constant 0 : index
    %c0_4 = arith.constant 0 : index
    %3 = vector.load %arg1[%c0_3, %c0_4] : memref<328x1024xf32, #tpu.memory_space<vmem>>, vector<32x384xf32>
    %cst = arith.constant dense<0.000000e+00> : vector<64x384xf32>
    %4 = tpu.matmul %0, %3, %cst {dimension_numbers = #tpu.dot_dimension_numbers<[1], [0], [0], [1], [0, 0, 1, 1], [], []>} : vector<64x32xf32>, vector<32x384xf32>, vector<64x384xf32> -> vector<64x384xf32>
    %5 = vector.extract_strided_slice %4 {offsets = [0, 0], sizes = [64, 32], strides = [1, 1]} : vector<64x384xf32> to vector<64x32xf32>
    %6 = vector.extract_strided_slice %4 {offsets = [0, 128], sizes = [64, 32], strides = [1, 1]} : vector<64x384xf32> to vector<64x32xf32>
    %7 = vector.extract_strided_slice %4 {offsets = [0, 256], sizes = [64, 32], strides = [1, 1]} : vector<64x384xf32> to vector<64x32xf32>
    %8 = tpu.iota {dimensions = array<i32: 0>} : vector<64x32xi32>
    %c8_i32 = arith.constant 8 : i32
    %9 = vector.broadcast %c8_i32 : i32 to vector<64x32xi32>
    %10 = arith.cmpi sge, %8, %9 : vector<64x32xi32>
    %c8_i32_5 = arith.constant 8 : i32
    %11 = tpu.dynamic_rotate %5 by %c8_i32_5 dim 0 : vector<64x32xf32>, i32 -> vector<64x32xf32>
    %cst_6 = arith.constant 0.000000e+00 : f32
    %12 = vector.broadcast %cst_6 : f32 to vector<64x32xf32>
    %13 = arith.select %10, %11, %12 : vector<64x32xi1>, vector<64x32xf32>
    %c56_i32 = arith.constant 56 : i32
    %14 = vector.broadcast %c56_i32 : i32 to vector<64x32xi32>
    %15 = arith.cmpi slt, %8, %14 : vector<64x32xi32>
    %c56_i32_7 = arith.constant 56 : i32
    %16 = tpu.dynamic_rotate %7 by %c56_i32_7 dim 0 : vector<64x32xf32>, i32 -> vector<64x32xf32>
    %cst_8 = arith.constant 0.000000e+00 : f32
    %17 = vector.broadcast %cst_8 : f32 to vector<64x32xf32>
    %18 = arith.select %15, %16, %17 : vector<64x32xi1>, vector<64x32xf32>
    %19 = arith.addf %6, %13 : vector<64x32xf32>
    %20 = arith.addf %19, %18 : vector<64x32xf32>
    %c256_9 = arith.constant 256 : index
    %c0_10 = arith.constant 0 : index
    %21 = vector.load %arg2[%c256_9, %c0_10] : memref<296x128xf32, #tpu.memory_space<vmem>>, vector<1x32xf32>
    %22 = vector.broadcast %21 : vector<1x32xf32> to vector<64x32xf32>
    %23 = arith.addf %20, %22 : vector<64x32xf32>
    %c32 = arith.constant 32 : index
    %c0_11 = arith.constant 0 : index
    %24 = vector.load %arg1[%c32, %c0_11] : memref<328x1024xf32, #tpu.memory_space<vmem>>, vector<32x1024xf32>
    %cst_12 = arith.constant dense<0.000000e+00> : vector<64x1024xf32>
    %25 = tpu.matmul %23, %24, %cst_12 {dimension_numbers = #tpu.dot_dimension_numbers<[1], [0], [0], [1], [0, 0, 1, 1], [], []>} : vector<64x32xf32>, vector<32x1024xf32>, vector<64x1024xf32> -> vector<64x1024xf32>
    %c64 = arith.constant 64 : index
    %c0_13 = arith.constant 0 : index
    %26 = vector.load %arg1[%c64, %c0_13] : memref<328x1024xf32, #tpu.memory_space<vmem>>, vector<1x1024xf32>
    %27 = vector.broadcast %26 : vector<1x1024xf32> to vector<64x1024xf32>
    %28 = arith.addf %25, %27 : vector<64x1024xf32>
    %c0_14 = arith.constant 0 : index
    %c0_15 = arith.constant 0 : index
    %29 = vector.load %arg4[%c0_14, %c0_15] : memref<64x1024xf32, #tpu.memory_space<vmem>>, vector<64x1024xf32>
    tpu.vector_store %arg4[%c0_14, %c0_15], %28 {strides = array<i32>} : memref<64x1024xf32, #tpu.memory_space<vmem>>, vector<64x1024xf32>,
    %c72 = arith.constant 72 : index
    %c0_16 = arith.constant 0 : index
    %30 = vector.load %arg1[%c72, %c0_16] : memref<328x1024xf32, #tpu.memory_space<vmem>>, vector<256x1024xf32>
    %31 = tpu.iota {dimensions = array<i32: 1>} : vector<8x1024xi32>
    %c256_i32 = arith.constant 256 : i32
    %32 = vector.broadcast %c256_i32 : i32 to vector<8x1024xi32>
    %33 = arith.cmpi sge, %31, %32 : vector<8x1024xi32>
    %c384_i32 = arith.constant 384 : i32
    %34 = vector.broadcast %c384_i32 : i32 to vector<8x1024xi32>
    %35 = arith.cmpi slt, %31, %34 : vector<8x1024xi32>
    %36 = arith.andi %33, %35 : vector<8x1024xi1>
    %c768_i32 = arith.constant 768 : i32
    %37 = vector.broadcast %c768_i32 : i32 to vector<8x1024xi32>
    %38 = arith.cmpi sge, %31, %37 : vector<8x1024xi32>
    %c896_i32 = arith.constant 896 : i32
    %39 = vector.broadcast %c896_i32 : i32 to vector<8x1024xi32>
    %40 = arith.cmpi slt, %31, %39 : vector<8x1024xi32>
    %41 = arith.andi %38, %40 : vector<8x1024xi1>
    %42 = arith.ori %36, %41 : vector<8x1024xi1>
    %cst_17 = arith.constant 0.000000e+00 : f32
    %43 = vector.broadcast %cst_17 : f32 to vector<8x256xf32>
    %cst_18 = arith.constant 0.000000e+00 : f32
    %44 = vector.broadcast %cst_18 : f32 to vector<8x128xf32>
    %cst_19 = arith.constant 0.000000e+00 : f32
    %45 = vector.broadcast %cst_19 : f32 to vector<8x128xf32>
    %c0_20 = arith.constant 0 : index
    %c0_21 = arith.constant 0 : index
    %46 = vector.load %arg4[%c0_20, %c0_21] : memref<64x1024xf32, #tpu.memory_space<vmem>>, vector<8x512xf32>
    %c56 = arith.constant 56 : index
    %c512 = arith.constant 512 : index
    %47 = vector.load %arg4[%c56, %c512] : memref<64x1024xf32, #tpu.memory_space<vmem>>, vector<8x512xf32>
    %48 = tpu.concatenate %46, %47 in 1 : vector<8x512xf32>, vector<8x512xf32> -> vector<8x1024xf32>
    %cst_22 = arith.constant dense<0.000000e+00> : vector<8x1024xf32>
    %49 = tpu.matmul %43, %30, %cst_22 {dimension_numbers = #tpu.dot_dimension_numbers<[1], [0], [0], [1], [0, 0, 1, 1], [], []>} : vector<8x256xf32>, vector<256x1024xf32>, vector<8x1024xf32> -> vector<8x1024xf32>
    %50 = arith.addf %48, %49 : vector<8x1024xf32>
    %cst_23 = arith.constant 5.000000e-01 : f32
    %51 = vector.broadcast %cst_23 : f32 to vector<8x1024xf32>
    %52 = arith.mulf %51, %50 : vector<8x1024xf32>
    %53 = arith.select %42, %50, %52 : vector<8x1024xi1>, vector<8x1024xf32>
    %54 = math.tanh %53 : vector<8x1024xf32>
    %cst_24 = arith.constant 5.000000e-01 : f32
    %55 = vector.broadcast %cst_24 : f32 to vector<8x1024xf32>
    %56 = arith.mulf %55, %54 : vector<8x1024xf32>
    %cst_25 = arith.constant 5.000000e-01 : f32
    %57 = vector.broadcast %cst_25 : f32 to vector<8x1024xf32>
    %58 = arith.addf %56, %57 : vector<8x1024xf32>
    %59 = arith.select %42, %54, %58 : vector<8x1024xi1>, vector<8x1024xf32>
    %60 = vector.extract_strided_slice %59 {offsets = [0, 128], sizes = [8, 128], strides = [1, 1]} : vector<8x1024xf32> to vector<8x128xf32>
    %61 = arith.mulf %60, %44 : vector<8x128xf32>
    %62 = vector.extract_strided_slice %59 {offsets = [0, 0], sizes = [8, 128], strides = [1, 1]} : vector<8x1024xf32> to vector<8x128xf32>
    %63 = vector.extract_strided_slice %59 {offsets = [0, 256], sizes = [8, 128], strides = [1, 1]} : vector<8x1024xf32> to vector<8x128xf32>
    %64 = arith.mulf %62, %63 : vector<8x128xf32>
    %65 = arith.addf %61, %64 : vector<8x128xf32>
    %66 = vector.extract_strided_slice %59 {offsets = [0, 384], sizes = [8, 128], strides = [1, 1]} : vector<8x1024xf32> to vector<8x128xf32>
    %67 = math.tanh %65 : vector<8x128xf32>
    %68 = arith.mulf %66, %67 : vector<8x128xf32>
    %69 = vector.extract_strided_slice %59 {offsets = [0, 640], sizes = [8, 128], strides = [1, 1]} : vector<8x1024xf32> to vector<8x128xf32>
    %70 = arith.mulf %69, %45 : vector<8x128xf32>
    %71 = vector.extract_strided_slice %59 {offsets = [0, 512], sizes = [8, 128], strides = [1, 1]} : vector<8x1024xf32> to vector<8x128xf32>
    %72 = vector.extract_strided_slice %59 {offsets = [0, 768], sizes = [8, 128], strides = [1, 1]} : vector<8x1024xf32> to vector<8x128xf32>
    %73 = arith.mulf %71, %72 : vector<8x128xf32>
    %74 = arith.addf %70, %73 : vector<8x128xf32>
    %75 = vector.extract_strided_slice %59 {offsets = [0, 896], sizes = [8, 128], strides = [1, 1]} : vector<8x1024xf32> to vector<8x128xf32>
    %76 = math.tanh %74 : vector<8x128xf32>
    %77 = arith.mulf %75, %76 : vector<8x128xf32>
    %78 = tpu.concatenate %68, %77 in 1 : vector<8x128xf32>, vector<8x128xf32> -> vector<8x256xf32>
    %c0_26 = arith.constant 0 : index
    %c0_27 = arith.constant 0 : index
    %79 = vector.load %arg5[%c0_26, %c0_27] : memref<64x256xf32, #tpu.memory_space<vmem>>, vector<8x128xf32>
    tpu.vector_store %arg5[%c0_26, %c0_27], %68 {strides = array<i32>} : memref<64x256xf32, #tpu.memory_space<vmem>>, vector<8x128xf32>,
    %c56_28 = arith.constant 56 : index
    %c128_29 = arith.constant 128 : index
    %80 = vector.load %arg5[%c56_28, %c128_29] : memref<64x256xf32, #tpu.memory_space<vmem>>, vector<8x128xf32>
    tpu.vector_store %arg5[%c56_28, %c128_29], %77 {strides = array<i32>} : memref<64x256xf32, #tpu.memory_space<vmem>>, vector<8x128xf32>,
    %c8 = arith.constant 8 : index
    %c0_30 = arith.constant 0 : index
    %81 = vector.load %arg4[%c8, %c0_30] : memref<64x1024xf32, #tpu.memory_space<vmem>>, vector<8x512xf32>
    %c48 = arith.constant 48 : index
    %c512_31 = arith.constant 512 : index
    %82 = vector.load %arg4[%c48, %c512_31] : memref<64x1024xf32, #tpu.memory_space<vmem>>, vector<8x512xf32>
    %83 = tpu.concatenate %81, %82 in 1 : vector<8x512xf32>, vector<8x512xf32> -> vector<8x1024xf32>
    %cst_32 = arith.constant dense<0.000000e+00> : vector<8x1024xf32>
    %84 = tpu.matmul %78, %30, %cst_32 {dimension_numbers = #tpu.dot_dimension_numbers<[1], [0], [0], [1], [0, 0, 1, 1], [], []>} : vector<8x256xf32>, vector<256x1024xf32>, vector<8x1024xf32> -> vector<8x1024xf32>
    %85 = arith.addf %83, %84 : vector<8x1024xf32>
    %cst_33 = arith.constant 5.000000e-01 : f32
    %86 = vector.broadcast %cst_33 : f32 to vector<8x1024xf32>
    %87 = arith.mulf %86, %85 : vector<8x1024xf32>
    %88 = arith.select %42, %85, %87 : vector<8x1024xi1>, vector<8x1024xf32>
    %89 = math.tanh %88 : vector<8x1024xf32>
    %cst_34 = arith.constant 5.000000e-01 : f32
    %90 = vector.broadcast %cst_34 : f32 to vector<8x1024xf32>
    %91 = arith.mulf %90, %89 : vector<8x1024xf32>
    %cst_35 = arith.constant 5.000000e-01 : f32
    %92 = vector.broadcast %cst_35 : f32 to vector<8x1024xf32>
    %93 = arith.addf %91, %92 : vector<8x1024xf32>
    %94 = arith.select %42, %89, %93 : vector<8x1024xi1>, vector<8x1024xf32>
    %95 = vector.extract_strided_slice %94 {offsets = [0, 128], sizes = [8, 128], strides = [1, 1]} : vector<8x1024xf32> to vector<8x128xf32>
    %96 = arith.mulf %95, %65 : vector<8x128xf32>
    %97 = vector.extract_strided_slice %94 {offsets = [0, 0], sizes = [8, 128], strides = [1, 1]} : vector<8x1024xf32> to vector<8x128xf32>
    %98 = vector.extract_strided_slice %94 {offsets = [0, 256], sizes = [8, 128], strides = [1, 1]} : vector<8x1024xf32> to vector<8x128xf32>
    %99 = arith.mulf %97, %98 : vector<8x128xf32>
    %100 = arith.addf %96, %99 : vector<8x128xf32>
    %101 = vector.extract_strided_slice %94 {offsets = [0, 384], sizes = [8, 128], strides = [1, 1]} : vector<8x1024xf32> to vector<8x128xf32>
    %102 = math.tanh %100 : vector<8x128xf32>
    %103 = arith.mulf %101, %102 : vector<8x128xf32>
    %104 = vector.extract_strided_slice %94 {offsets = [0, 640], sizes = [8, 128], strides = [1, 1]} : vector<8x1024xf32> to vector<8x128xf32>
    %105 = arith.mulf %104, %74 : vector<8x128xf32>
    %106 = vector.extract_strided_slice %94 {offsets = [0, 512], sizes = [8, 128], strides = [1, 1]} : vector<8x1024xf32> to vector<8x128xf32>
    %107 = vector.extract_strided_slice %94 {offsets = [0, 768], sizes = [8, 128], strides = [1, 1]} : vector<8x1024xf32> to vector<8x128xf32>
    %108 = arith.mulf %106, %107 : vector<8x128xf32>
    %109 = arith.addf %105, %108 : vector<8x128xf32>
    %110 = vector.extract_strided_slice %94 {offsets = [0, 896], sizes = [8, 128], strides = [1, 1]} : vector<8x1024xf32> to vector<8x128xf32>
    %111 = math.tanh %109 : vector<8x128xf32>
    %112 = arith.mulf %110, %111 : vector<8x128xf32>
    %113 = tpu.concatenate %103, %112 in 1 : vector<8x128xf32>, vector<8x128xf32> -> vector<8x256xf32>
    %c8_36 = arith.constant 8 : index
    %c0_37 = arith.constant 0 : index
    %114 = vector.load %arg5[%c8_36, %c0_37] : memref<64x256xf32, #tpu.memory_space<vmem>>, vector<8x128xf32>
    tpu.vector_store %arg5[%c8_36, %c0_37], %103 {strides = array<i32>} : memref<64x256xf32, #tpu.memory_space<vmem>>, vector<8x128xf32>,
    %c48_38 = arith.constant 48 : index
    %c128_39 = arith.constant 128 : index
    %115 = vector.load %arg5[%c48_38, %c128_39] : memref<64x256xf32, #tpu.memory_space<vmem>>, vector<8x128xf32>
    tpu.vector_store %arg5[%c48_38, %c128_39], %112 {strides = array<i32>} : memref<64x256xf32, #tpu.memory_space<vmem>>, vector<8x128xf32>,
    %c16 = arith.constant 16 : index
    %c0_40 = arith.constant 0 : index
    %116 = vector.load %arg4[%c16, %c0_40] : memref<64x1024xf32, #tpu.memory_space<vmem>>, vector<8x512xf32>
    %c40 = arith.constant 40 : index
    %c512_41 = arith.constant 512 : index
    %117 = vector.load %arg4[%c40, %c512_41] : memref<64x1024xf32, #tpu.memory_space<vmem>>, vector<8x512xf32>
    %118 = tpu.concatenate %116, %117 in 1 : vector<8x512xf32>, vector<8x512xf32> -> vector<8x1024xf32>
    %cst_42 = arith.constant dense<0.000000e+00> : vector<8x1024xf32>
    %119 = tpu.matmul %113, %30, %cst_42 {dimension_numbers = #tpu.dot_dimension_numbers<[1], [0], [0], [1], [0, 0, 1, 1], [], []>} : vector<8x256xf32>, vector<256x1024xf32>, vector<8x1024xf32> -> vector<8x1024xf32>
    %120 = arith.addf %118, %119 : vector<8x1024xf32>
    %cst_43 = arith.constant 5.000000e-01 : f32
    %121 = vector.broadcast %cst_43 : f32 to vector<8x1024xf32>
    %122 = arith.mulf %121, %120 : vector<8x1024xf32>
    %123 = arith.select %42, %120, %122 : vector<8x1024xi1>, vector<8x1024xf32>
    %124 = math.tanh %123 : vector<8x1024xf32>
    %cst_44 = arith.constant 5.000000e-01 : f32
    %125 = vector.broadcast %cst_44 : f32 to vector<8x1024xf32>
    %126 = arith.mulf %125, %124 : vector<8x1024xf32>
    %cst_45 = arith.constant 5.000000e-01 : f32
    %127 = vector.broadcast %cst_45 : f32 to vector<8x1024xf32>
    %128 = arith.addf %126, %127 : vector<8x1024xf32>
    %129 = arith.select %42, %124, %128 : vector<8x1024xi1>, vector<8x1024xf32>
    %130 = vector.extract_strided_slice %129 {offsets = [0, 128], sizes = [8, 128], strides = [1, 1]} : vector<8x1024xf32> to vector<8x128xf32>
    %131 = arith.mulf %130, %100 : vector<8x128xf32>
    %132 = vector.extract_strided_slice %129 {offsets = [0, 0], sizes = [8, 128], strides = [1, 1]} : vector<8x1024xf32> to vector<8x128xf32>
    %133 = vector.extract_strided_slice %129 {offsets = [0, 256], sizes = [8, 128], strides = [1, 1]} : vector<8x1024xf32> to vector<8x128xf32>
    %134 = arith.mulf %132, %133 : vector<8x128xf32>
    %135 = arith.addf %131, %134 : vector<8x128xf32>
    %136 = vector.extract_strided_slice %129 {offsets = [0, 384], sizes = [8, 128], strides = [1, 1]} : vector<8x1024xf32> to vector<8x128xf32>
    %137 = math.tanh %135 : vector<8x128xf32>
    %138 = arith.mulf %136, %137 : vector<8x128xf32>
    %139 = vector.extract_strided_slice %129 {offsets = [0, 640], sizes = [8, 128], strides = [1, 1]} : vector<8x1024xf32> to vector<8x128xf32>
    %140 = arith.mulf %139, %109 : vector<8x128xf32>
    %141 = vector.extract_strided_slice %129 {offsets = [0, 512], sizes = [8, 128], strides = [1, 1]} : vector<8x1024xf32> to vector<8x128xf32>
    %142 = vector.extract_strided_slice %129 {offsets = [0, 768], sizes = [8, 128], strides = [1, 1]} : vector<8x1024xf32> to vector<8x128xf32>
    %143 = arith.mulf %141, %142 : vector<8x128xf32>
    %144 = arith.addf %140, %143 : vector<8x128xf32>
    %145 = vector.extract_strided_slice %129 {offsets = [0, 896], sizes = [8, 128], strides = [1, 1]} : vector<8x1024xf32> to vector<8x128xf32>
    %146 = math.tanh %144 : vector<8x128xf32>
    %147 = arith.mulf %145, %146 : vector<8x128xf32>
    %148 = tpu.concatenate %138, %147 in 1 : vector<8x128xf32>, vector<8x128xf32> -> vector<8x256xf32>
    %c16_46 = arith.constant 16 : index
    %c0_47 = arith.constant 0 : index
    %149 = vector.load %arg5[%c16_46, %c0_47] : memref<64x256xf32, #tpu.memory_space<vmem>>, vector<8x128xf32>
    tpu.vector_store %arg5[%c16_46, %c0_47], %138 {strides = array<i32>} : memref<64x256xf32, #tpu.memory_space<vmem>>, vector<8x128xf32>,
    %c40_48 = arith.constant 40 : index
    %c128_49 = arith.constant 128 : index
    %150 = vector.load %arg5[%c40_48, %c128_49] : memref<64x256xf32, #tpu.memory_space<vmem>>, vector<8x128xf32>
    tpu.vector_store %arg5[%c40_48, %c128_49], %147 {strides = array<i32>} : memref<64x256xf32, #tpu.memory_space<vmem>>, vector<8x128xf32>,
    %c24 = arith.constant 24 : index
    %c0_50 = arith.constant 0 : index
    %151 = vector.load %arg4[%c24, %c0_50] : memref<64x1024xf32, #tpu.memory_space<vmem>>, vector<8x512xf32>
    %c32_51 = arith.constant 32 : index
    %c512_52 = arith.constant 512 : index
    %152 = vector.load %arg4[%c32_51, %c512_52] : memref<64x1024xf32, #tpu.memory_space<vmem>>, vector<8x512xf32>
    %153 = tpu.concatenate %151, %152 in 1 : vector<8x512xf32>, vector<8x512xf32> -> vector<8x1024xf32>
    %cst_53 = arith.constant dense<0.000000e+00> : vector<8x1024xf32>
    %154 = tpu.matmul %148, %30, %cst_53 {dimension_numbers = #tpu.dot_dimension_numbers<[1], [0], [0], [1], [0, 0, 1, 1], [], []>} : vector<8x256xf32>, vector<256x1024xf32>, vector<8x1024xf32> -> vector<8x1024xf32>
    %155 = arith.addf %153, %154 : vector<8x1024xf32>
    %cst_54 = arith.constant 5.000000e-01 : f32
    %156 = vector.broadcast %cst_54 : f32 to vector<8x1024xf32>
    %157 = arith.mulf %156, %155 : vector<8x1024xf32>
    %158 = arith.select %42, %155, %157 : vector<8x1024xi1>, vector<8x1024xf32>
    %159 = math.tanh %158 : vector<8x1024xf32>
    %cst_55 = arith.constant 5.000000e-01 : f32
    %160 = vector.broadcast %cst_55 : f32 to vector<8x1024xf32>
    %161 = arith.mulf %160, %159 : vector<8x1024xf32>
    %cst_56 = arith.constant 5.000000e-01 : f32
    %162 = vector.broadcast %cst_56 : f32 to vector<8x1024xf32>
    %163 = arith.addf %161, %162 : vector<8x1024xf32>
    %164 = arith.select %42, %159, %163 : vector<8x1024xi1>, vector<8x1024xf32>
    %165 = vector.extract_strided_slice %164 {offsets = [0, 128], sizes = [8, 128], strides = [1, 1]} : vector<8x1024xf32> to vector<8x128xf32>
    %166 = arith.mulf %165, %135 : vector<8x128xf32>
    %167 = vector.extract_strided_slice %164 {offsets = [0, 0], sizes = [8, 128], strides = [1, 1]} : vector<8x1024xf32> to vector<8x128xf32>
    %168 = vector.extract_strided_slice %164 {offsets = [0, 256], sizes = [8, 128], strides = [1, 1]} : vector<8x1024xf32> to vector<8x128xf32>
    %169 = arith.mulf %167, %168 : vector<8x128xf32>
    %170 = arith.addf %166, %169 : vector<8x128xf32>
    %171 = vector.extract_strided_slice %164 {offsets = [0, 384], sizes = [8, 128], strides = [1, 1]} : vector<8x1024xf32> to vector<8x128xf32>
    %172 = math.tanh %170 : vector<8x128xf32>
    %173 = arith.mulf %171, %172 : vector<8x128xf32>
    %174 = vector.extract_strided_slice %164 {offsets = [0, 640], sizes = [8, 128], strides = [1, 1]} : vector<8x1024xf32> to vector<8x128xf32>
    %175 = arith.mulf %174, %144 : vector<8x128xf32>
    %176 = vector.extract_strided_slice %164 {offsets = [0, 512], sizes = [8, 128], strides = [1, 1]} : vector<8x1024xf32> to vector<8x128xf32>
    %177 = vector.extract_strided_slice %164 {offsets = [0, 768], sizes = [8, 128], strides = [1, 1]} : vector<8x1024xf32> to vector<8x128xf32>
    %178 = arith.mulf %176, %177 : vector<8x128xf32>
    %179 = arith.addf %175, %178 : vector<8x128xf32>
    %180 = vector.extract_strided_slice %164 {offsets = [0, 896], sizes = [8, 128], strides = [1, 1]} : vector<8x1024xf32> to vector<8x128xf32>
    %181 = math.tanh %179 : vector<8x128xf32>
    %182 = arith.mulf %180, %181 : vector<8x128xf32>
    %183 = tpu.concatenate %173, %182 in 1 : vector<8x128xf32>, vector<8x128xf32> -> vector<8x256xf32>
    %c24_57 = arith.constant 24 : index
    %c0_58 = arith.constant 0 : index
    %184 = vector.load %arg5[%c24_57, %c0_58] : memref<64x256xf32, #tpu.memory_space<vmem>>, vector<8x128xf32>
    tpu.vector_store %arg5[%c24_57, %c0_58], %173 {strides = array<i32>} : memref<64x256xf32, #tpu.memory_space<vmem>>, vector<8x128xf32>,
    %c32_59 = arith.constant 32 : index
    %c128_60 = arith.constant 128 : index
    %185 = vector.load %arg5[%c32_59, %c128_60] : memref<64x256xf32, #tpu.memory_space<vmem>>, vector<8x128xf32>
    tpu.vector_store %arg5[%c32_59, %c128_60], %182 {strides = array<i32>} : memref<64x256xf32, #tpu.memory_space<vmem>>, vector<8x128xf32>,
    %c32_61 = arith.constant 32 : index
    %c0_62 = arith.constant 0 : index
    %186 = vector.load %arg4[%c32_61, %c0_62] : memref<64x1024xf32, #tpu.memory_space<vmem>>, vector<8x512xf32>
    %c24_63 = arith.constant 24 : index
    %c512_64 = arith.constant 512 : index
    %187 = vector.load %arg4[%c24_63, %c512_64] : memref<64x1024xf32, #tpu.memory_space<vmem>>, vector<8x512xf32>
    %188 = tpu.concatenate %186, %187 in 1 : vector<8x512xf32>, vector<8x512xf32> -> vector<8x1024xf32>
    %cst_65 = arith.constant dense<0.000000e+00> : vector<8x1024xf32>
    %189 = tpu.matmul %183, %30, %cst_65 {dimension_numbers = #tpu.dot_dimension_numbers<[1], [0], [0], [1], [0, 0, 1, 1], [], []>} : vector<8x256xf32>, vector<256x1024xf32>, vector<8x1024xf32> -> vector<8x1024xf32>
    %190 = arith.addf %188, %189 : vector<8x1024xf32>
    %cst_66 = arith.constant 5.000000e-01 : f32
    %191 = vector.broadcast %cst_66 : f32 to vector<8x1024xf32>
    %192 = arith.mulf %191, %190 : vector<8x1024xf32>
    %193 = arith.select %42, %190, %192 : vector<8x1024xi1>, vector<8x1024xf32>
    %194 = math.tanh %193 : vector<8x1024xf32>
    %cst_67 = arith.constant 5.000000e-01 : f32
    %195 = vector.broadcast %cst_67 : f32 to vector<8x1024xf32>
    %196 = arith.mulf %195, %194 : vector<8x1024xf32>
    %cst_68 = arith.constant 5.000000e-01 : f32
    %197 = vector.broadcast %cst_68 : f32 to vector<8x1024xf32>
    %198 = arith.addf %196, %197 : vector<8x1024xf32>
    %199 = arith.select %42, %194, %198 : vector<8x1024xi1>, vector<8x1024xf32>
    %200 = vector.extract_strided_slice %199 {offsets = [0, 128], sizes = [8, 128], strides = [1, 1]} : vector<8x1024xf32> to vector<8x128xf32>
    %201 = arith.mulf %200, %170 : vector<8x128xf32>
    %202 = vector.extract_strided_slice %199 {offsets = [0, 0], sizes = [8, 128], strides = [1, 1]} : vector<8x1024xf32> to vector<8x128xf32>
    %203 = vector.extract_strided_slice %199 {offsets = [0, 256], sizes = [8, 128], strides = [1, 1]} : vector<8x1024xf32> to vector<8x128xf32>
    %204 = arith.mulf %202, %203 : vector<8x128xf32>
    %205 = arith.addf %201, %204 : vector<8x128xf32>
    %206 = vector.extract_strided_slice %199 {offsets = [0, 384], sizes = [8, 128], strides = [1, 1]} : vector<8x1024xf32> to vector<8x128xf32>
    %207 = math.tanh %205 : vector<8x128xf32>
    %208 = arith.mulf %206, %207 : vector<8x128xf32>
    %209 = vector.extract_strided_slice %199 {offsets = [0, 640], sizes = [8, 128], strides = [1, 1]} : vector<8x1024xf32> to vector<8x128xf32>
    %210 = arith.mulf %209, %179 : vector<8x128xf32>
    %211 = vector.extract_strided_slice %199 {offsets = [0, 512], sizes = [8, 128], strides = [1, 1]} : vector<8x1024xf32> to vector<8x128xf32>
    %212 = vector.extract_strided_slice %199 {offsets = [0, 768], sizes = [8, 128], strides = [1, 1]} : vector<8x1024xf32> to vector<8x128xf32>
    %213 = arith.mulf %211, %212 : vector<8x128xf32>
    %214 = arith.addf %210, %213 : vector<8x128xf32>
    %215 = vector.extract_strided_slice %199 {offsets = [0, 896], sizes = [8, 128], strides = [1, 1]} : vector<8x1024xf32> to vector<8x128xf32>
    %216 = math.tanh %214 : vector<8x128xf32>
    %217 = arith.mulf %215, %216 : vector<8x128xf32>
    %218 = tpu.concatenate %208, %217 in 1 : vector<8x128xf32>, vector<8x128xf32> -> vector<8x256xf32>
    %c32_69 = arith.constant 32 : index
    %c0_70 = arith.constant 0 : index
    %219 = vector.load %arg5[%c32_69, %c0_70] : memref<64x256xf32, #tpu.memory_space<vmem>>, vector<8x128xf32>
    tpu.vector_store %arg5[%c32_69, %c0_70], %208 {strides = array<i32>} : memref<64x256xf32, #tpu.memory_space<vmem>>, vector<8x128xf32>,
    %c24_71 = arith.constant 24 : index
    %c128_72 = arith.constant 128 : index
    %220 = vector.load %arg5[%c24_71, %c128_72] : memref<64x256xf32, #tpu.memory_space<vmem>>, vector<8x128xf32>
    tpu.vector_store %arg5[%c24_71, %c128_72], %217 {strides = array<i32>} : memref<64x256xf32, #tpu.memory_space<vmem>>, vector<8x128xf32>,
    %c40_73 = arith.constant 40 : index
    %c0_74 = arith.constant 0 : index
    %221 = vector.load %arg4[%c40_73, %c0_74] : memref<64x1024xf32, #tpu.memory_space<vmem>>, vector<8x512xf32>
    %c16_75 = arith.constant 16 : index
    %c512_76 = arith.constant 512 : index
    %222 = vector.load %arg4[%c16_75, %c512_76] : memref<64x1024xf32, #tpu.memory_space<vmem>>, vector<8x512xf32>
    %223 = tpu.concatenate %221, %222 in 1 : vector<8x512xf32>, vector<8x512xf32> -> vector<8x1024xf32>
    %cst_77 = arith.constant dense<0.000000e+00> : vector<8x1024xf32>
    %224 = tpu.matmul %218, %30, %cst_77 {dimension_numbers = #tpu.dot_dimension_numbers<[1], [0], [0], [1], [0, 0, 1, 1], [], []>} : vector<8x256xf32>, vector<256x1024xf32>, vector<8x1024xf32> -> vector<8x1024xf32>
    %225 = arith.addf %223, %224 : vector<8x1024xf32>
    %cst_78 = arith.constant 5.000000e-01 : f32
    %226 = vector.broadcast %cst_78 : f32 to vector<8x1024xf32>
    %227 = arith.mulf %226, %225 : vector<8x1024xf32>
    %228 = arith.select %42, %225, %227 : vector<8x1024xi1>, vector<8x1024xf32>
    %229 = math.tanh %228 : vector<8x1024xf32>
    %cst_79 = arith.constant 5.000000e-01 : f32
    %230 = vector.broadcast %cst_79 : f32 to vector<8x1024xf32>
    %231 = arith.mulf %230, %229 : vector<8x1024xf32>
    %cst_80 = arith.constant 5.000000e-01 : f32
    %232 = vector.broadcast %cst_80 : f32 to vector<8x1024xf32>
    %233 = arith.addf %231, %232 : vector<8x1024xf32>
    %234 = arith.select %42, %229, %233 : vector<8x1024xi1>, vector<8x1024xf32>
    %235 = vector.extract_strided_slice %234 {offsets = [0, 128], sizes = [8, 128], strides = [1, 1]} : vector<8x1024xf32> to vector<8x128xf32>
    %236 = arith.mulf %235, %205 : vector<8x128xf32>
    %237 = vector.extract_strided_slice %234 {offsets = [0, 0], sizes = [8, 128], strides = [1, 1]} : vector<8x1024xf32> to vector<8x128xf32>
    %238 = vector.extract_strided_slice %234 {offsets = [0, 256], sizes = [8, 128], strides = [1, 1]} : vector<8x1024xf32> to vector<8x128xf32>
    %239 = arith.mulf %237, %238 : vector<8x128xf32>
    %240 = arith.addf %236, %239 : vector<8x128xf32>
    %241 = vector.extract_strided_slice %234 {offsets = [0, 384], sizes = [8, 128], strides = [1, 1]} : vector<8x1024xf32> to vector<8x128xf32>
    %242 = math.tanh %240 : vector<8x128xf32>
    %243 = arith.mulf %241, %242 : vector<8x128xf32>
    %244 = vector.extract_strided_slice %234 {offsets = [0, 640], sizes = [8, 128], strides = [1, 1]} : vector<8x1024xf32> to vector<8x128xf32>
    %245 = arith.mulf %244, %214 : vector<8x128xf32>
    %246 = vector.extract_strided_slice %234 {offsets = [0, 512], sizes = [8, 128], strides = [1, 1]} : vector<8x1024xf32> to vector<8x128xf32>
    %247 = vector.extract_strided_slice %234 {offsets = [0, 768], sizes = [8, 128], strides = [1, 1]} : vector<8x1024xf32> to vector<8x128xf32>
    %248 = arith.mulf %246, %247 : vector<8x128xf32>
    %249 = arith.addf %245, %248 : vector<8x128xf32>
    %250 = vector.extract_strided_slice %234 {offsets = [0, 896], sizes = [8, 128], strides = [1, 1]} : vector<8x1024xf32> to vector<8x128xf32>
    %251 = math.tanh %249 : vector<8x128xf32>
    %252 = arith.mulf %250, %251 : vector<8x128xf32>
    %253 = tpu.concatenate %243, %252 in 1 : vector<8x128xf32>, vector<8x128xf32> -> vector<8x256xf32>
    %c40_81 = arith.constant 40 : index
    %c0_82 = arith.constant 0 : index
    %254 = vector.load %arg5[%c40_81, %c0_82] : memref<64x256xf32, #tpu.memory_space<vmem>>, vector<8x128xf32>
    tpu.vector_store %arg5[%c40_81, %c0_82], %243 {strides = array<i32>} : memref<64x256xf32, #tpu.memory_space<vmem>>, vector<8x128xf32>,
    %c16_83 = arith.constant 16 : index
    %c128_84 = arith.constant 128 : index
    %255 = vector.load %arg5[%c16_83, %c128_84] : memref<64x256xf32, #tpu.memory_space<vmem>>, vector<8x128xf32>
    tpu.vector_store %arg5[%c16_83, %c128_84], %252 {strides = array<i32>} : memref<64x256xf32, #tpu.memory_space<vmem>>, vector<8x128xf32>,
    %c48_85 = arith.constant 48 : index
    %c0_86 = arith.constant 0 : index
    %256 = vector.load %arg4[%c48_85, %c0_86] : memref<64x1024xf32, #tpu.memory_space<vmem>>, vector<8x512xf32>
    %c8_87 = arith.constant 8 : index
    %c512_88 = arith.constant 512 : index
    %257 = vector.load %arg4[%c8_87, %c512_88] : memref<64x1024xf32, #tpu.memory_space<vmem>>, vector<8x512xf32>
    %258 = tpu.concatenate %256, %257 in 1 : vector<8x512xf32>, vector<8x512xf32> -> vector<8x1024xf32>
    %cst_89 = arith.constant dense<0.000000e+00> : vector<8x1024xf32>
    %259 = tpu.matmul %253, %30, %cst_89 {dimension_numbers = #tpu.dot_dimension_numbers<[1], [0], [0], [1], [0, 0, 1, 1], [], []>} : vector<8x256xf32>, vector<256x1024xf32>, vector<8x1024xf32> -> vector<8x1024xf32>
    %260 = arith.addf %258, %259 : vector<8x1024xf32>
    %cst_90 = arith.constant 5.000000e-01 : f32
    %261 = vector.broadcast %cst_90 : f32 to vector<8x1024xf32>
    %262 = arith.mulf %261, %260 : vector<8x1024xf32>
    %263 = arith.select %42, %260, %262 : vector<8x1024xi1>, vector<8x1024xf32>
    %264 = math.tanh %263 : vector<8x1024xf32>
    %cst_91 = arith.constant 5.000000e-01 : f32
    %265 = vector.broadcast %cst_91 : f32 to vector<8x1024xf32>
    %266 = arith.mulf %265, %264 : vector<8x1024xf32>
    %cst_92 = arith.constant 5.000000e-01 : f32
    %267 = vector.broadcast %cst_92 : f32 to vector<8x1024xf32>
    %268 = arith.addf %266, %267 : vector<8x1024xf32>
    %269 = arith.select %42, %264, %268 : vector<8x1024xi1>, vector<8x1024xf32>
    %270 = vector.extract_strided_slice %269 {offsets = [0, 128], sizes = [8, 128], strides = [1, 1]} : vector<8x1024xf32> to vector<8x128xf32>
    %271 = arith.mulf %270, %240 : vector<8x128xf32>
    %272 = vector.extract_strided_slice %269 {offsets = [0, 0], sizes = [8, 128], strides = [1, 1]} : vector<8x1024xf32> to vector<8x128xf32>
    %273 = vector.extract_strided_slice %269 {offsets = [0, 256], sizes = [8, 128], strides = [1, 1]} : vector<8x1024xf32> to vector<8x128xf32>
    %274 = arith.mulf %272, %273 : vector<8x128xf32>
    %275 = arith.addf %271, %274 : vector<8x128xf32>
    %276 = vector.extract_strided_slice %269 {offsets = [0, 384], sizes = [8, 128], strides = [1, 1]} : vector<8x1024xf32> to vector<8x128xf32>
    %277 = math.tanh %275 : vector<8x128xf32>
    %278 = arith.mulf %276, %277 : vector<8x128xf32>
    %279 = vector.extract_strided_slice %269 {offsets = [0, 640], sizes = [8, 128], strides = [1, 1]} : vector<8x1024xf32> to vector<8x128xf32>
    %280 = arith.mulf %279, %249 : vector<8x128xf32>
    %281 = vector.extract_strided_slice %269 {offsets = [0, 512], sizes = [8, 128], strides = [1, 1]} : vector<8x1024xf32> to vector<8x128xf32>
    %282 = vector.extract_strided_slice %269 {offsets = [0, 768], sizes = [8, 128], strides = [1, 1]} : vector<8x1024xf32> to vector<8x128xf32>
    %283 = arith.mulf %281, %282 : vector<8x128xf32>
    %284 = arith.addf %280, %283 : vector<8x128xf32>
    %285 = vector.extract_strided_slice %269 {offsets = [0, 896], sizes = [8, 128], strides = [1, 1]} : vector<8x1024xf32> to vector<8x128xf32>
    %286 = math.tanh %284 : vector<8x128xf32>
    %287 = arith.mulf %285, %286 : vector<8x128xf32>
    %288 = tpu.concatenate %278, %287 in 1 : vector<8x128xf32>, vector<8x128xf32> -> vector<8x256xf32>
    %c48_93 = arith.constant 48 : index
    %c0_94 = arith.constant 0 : index
    %289 = vector.load %arg5[%c48_93, %c0_94] : memref<64x256xf32, #tpu.memory_space<vmem>>, vector<8x128xf32>
    tpu.vector_store %arg5[%c48_93, %c0_94], %278 {strides = array<i32>} : memref<64x256xf32, #tpu.memory_space<vmem>>, vector<8x128xf32>,
    %c8_95 = arith.constant 8 : index
    %c128_96 = arith.constant 128 : index
    %290 = vector.load %arg5[%c8_95, %c128_96] : memref<64x256xf32, #tpu.memory_space<vmem>>, vector<8x128xf32>
    tpu.vector_store %arg5[%c8_95, %c128_96], %287 {strides = array<i32>} : memref<64x256xf32, #tpu.memory_space<vmem>>, vector<8x128xf32>,
    %c56_97 = arith.constant 56 : index
    %c0_98 = arith.constant 0 : index
    %291 = vector.load %arg4[%c56_97, %c0_98] : memref<64x1024xf32, #tpu.memory_space<vmem>>, vector<8x512xf32>
    %c0_99 = arith.constant 0 : index
    %c512_100 = arith.constant 512 : index
    %292 = vector.load %arg4[%c0_99, %c512_100] : memref<64x1024xf32, #tpu.memory_space<vmem>>, vector<8x512xf32>
    %293 = tpu.concatenate %291, %292 in 1 : vector<8x512xf32>, vector<8x512xf32> -> vector<8x1024xf32>
    %cst_101 = arith.constant dense<0.000000e+00> : vector<8x1024xf32>
    %294 = tpu.matmul %288, %30, %cst_101 {dimension_numbers = #tpu.dot_dimension_numbers<[1], [0], [0], [1], [0, 0, 1, 1], [], []>} : vector<8x256xf32>, vector<256x1024xf32>, vector<8x1024xf32> -> vector<8x1024xf32>
    %295 = arith.addf %293, %294 : vector<8x1024xf32>
    %cst_102 = arith.constant 5.000000e-01 : f32
    %296 = vector.broadcast %cst_102 : f32 to vector<8x1024xf32>
    %297 = arith.mulf %296, %295 : vector<8x1024xf32>
    %298 = arith.select %42, %295, %297 : vector<8x1024xi1>, vector<8x1024xf32>
    %299 = math.tanh %298 : vector<8x1024xf32>
    %cst_103 = arith.constant 5.000000e-01 : f32
    %300 = vector.broadcast %cst_103 : f32 to vector<8x1024xf32>
    %301 = arith.mulf %300, %299 : vector<8x1024xf32>
    %cst_104 = arith.constant 5.000000e-01 : f32
    %302 = vector.broadcast %cst_104 : f32 to vector<8x1024xf32>
    %303 = arith.addf %301, %302 : vector<8x1024xf32>
    %304 = arith.select %42, %299, %303 : vector<8x1024xi1>, vector<8x1024xf32>
    %305 = vector.extract_strided_slice %304 {offsets = [0, 128], sizes = [8, 128], strides = [1, 1]} : vector<8x1024xf32> to vector<8x128xf32>
    %306 = arith.mulf %305, %275 : vector<8x128xf32>
    %307 = vector.extract_strided_slice %304 {offsets = [0, 0], sizes = [8, 128], strides = [1, 1]} : vector<8x1024xf32> to vector<8x128xf32>
    %308 = vector.extract_strided_slice %304 {offsets = [0, 256], sizes = [8, 128], strides = [1, 1]} : vector<8x1024xf32> to vector<8x128xf32>
    %309 = arith.mulf %307, %308 : vector<8x128xf32>
    %310 = arith.addf %306, %309 : vector<8x128xf32>
    %311 = vector.extract_strided_slice %304 {offsets = [0, 384], sizes = [8, 128], strides = [1, 1]} : vector<8x1024xf32> to vector<8x128xf32>
    %312 = math.tanh %310 : vector<8x128xf32>
    %313 = arith.mulf %311, %312 : vector<8x128xf32>
    %314 = vector.extract_strided_slice %304 {offsets = [0, 640], sizes = [8, 128], strides = [1, 1]} : vector<8x1024xf32> to vector<8x128xf32>
    %315 = arith.mulf %314, %284 : vector<8x128xf32>
    %316 = vector.extract_strided_slice %304 {offsets = [0, 512], sizes = [8, 128], strides = [1, 1]} : vector<8x1024xf32> to vector<8x128xf32>
    %317 = vector.extract_strided_slice %304 {offsets = [0, 768], sizes = [8, 128], strides = [1, 1]} : vector<8x1024xf32> to vector<8x128xf32>
    %318 = arith.mulf %316, %317 : vector<8x128xf32>
    %319 = arith.addf %315, %318 : vector<8x128xf32>
    %320 = vector.extract_strided_slice %304 {offsets = [0, 896], sizes = [8, 128], strides = [1, 1]} : vector<8x1024xf32> to vector<8x128xf32>
    %321 = math.tanh %319 : vector<8x128xf32>
    %322 = arith.mulf %320, %321 : vector<8x128xf32>
    %c56_105 = arith.constant 56 : index
    %c0_106 = arith.constant 0 : index
    %323 = vector.load %arg5[%c56_105, %c0_106] : memref<64x256xf32, #tpu.memory_space<vmem>>, vector<8x128xf32>
    tpu.vector_store %arg5[%c56_105, %c0_106], %313 {strides = array<i32>} : memref<64x256xf32, #tpu.memory_space<vmem>>, vector<8x128xf32>,
    %c0_107 = arith.constant 0 : index
    %c128_108 = arith.constant 128 : index
    %324 = vector.load %arg5[%c0_107, %c128_108] : memref<64x256xf32, #tpu.memory_space<vmem>>, vector<8x128xf32>
    tpu.vector_store %arg5[%c0_107, %c128_108], %322 {strides = array<i32>} : memref<64x256xf32, #tpu.memory_space<vmem>>, vector<8x128xf32>,
    %c0_109 = arith.constant 0 : index
    %c0_110 = arith.constant 0 : index
    %325 = vector.load %arg2[%c0_109, %c0_110] : memref<296x128xf32, #tpu.memory_space<vmem>>, vector<256x5xf32>
    %c0_111 = arith.constant 0 : index
    %c0_112 = arith.constant 0 : index
    %326 = vector.load %arg5[%c0_111, %c0_112] : memref<64x256xf32, #tpu.memory_space<vmem>>, vector<64x256xf32>
    %cst_113 = arith.constant dense<0.000000e+00> : vector<64x5xf32>
    %327 = tpu.matmul %326, %325, %cst_113 {dimension_numbers = #tpu.dot_dimension_numbers<[1], [0], [0], [1], [0, 0, 1, 1], [], []>} : vector<64x256xf32>, vector<256x5xf32>, vector<64x5xf32> -> vector<64x5xf32>
    %c264 = arith.constant 264 : index
    %c0_114 = arith.constant 0 : index
    %328 = vector.load %arg2[%c264, %c0_114] : memref<296x128xf32, #tpu.memory_space<vmem>>, vector<1x5xf32>
    %329 = vector.broadcast %328 : vector<1x5xf32> to vector<64x5xf32>
    %330 = arith.addf %327, %329 : vector<64x5xf32>
    %331 = arith.mulf %330, %1 : vector<64x5xf32>
    %332 = vector.broadcast %2 : vector<64x1xf32> to vector<64x5xf32>
    %333 = arith.mulf %331, %332 : vector<64x5xf32>
    %cst_115 = arith.constant dense<0.000000e+00> : vector<64xf32>
    %334 = vector.multi_reduction <add>, %333, %cst_115 [1] : vector<64x5xf32> to vector<64xf32>
    %335 = vector.shape_cast %334 : vector<64xf32> to vector<64x1xf32>
    %cst_116 = arith.constant dense<0.000000e+00> : vector<1xf32>
    %336 = vector.multi_reduction <add>, %335, %cst_116 [0] : vector<64x1xf32> to vector<1xf32>
    %337 = vector.shape_cast %336 : vector<1xf32> to vector<1x1xf32>
    %c272 = arith.constant 272 : index
    %c0_117 = arith.constant 0 : index
    %338 = vector.load %arg2[%c272, %c0_117] : memref<296x128xf32, #tpu.memory_space<vmem>>, vector<1x5xf32>
    %c280 = arith.constant 280 : index
    %c0_118 = arith.constant 0 : index
    %339 = vector.load %arg2[%c280, %c0_118] : memref<296x128xf32, #tpu.memory_space<vmem>>, vector<1x5xf32>
    %c288 = arith.constant 288 : index
    %c0_119 = arith.constant 0 : index
    %340 = vector.load %arg2[%c288, %c0_119] : memref<296x128xf32, #tpu.memory_space<vmem>>, vector<5x5xf32>
    %341 = vector.shape_cast %340 : vector<5x5xf32> to vector<1x5x5xf32>
    %342 = tpu.iota {dimensions = array<i32: 1>} : vector<1x5x5xi32>
    %343 = tpu.iota {dimensions = array<i32: 2>} : vector<1x5x5xi32>
    %344 = arith.cmpi eq, %342, %343 : vector<1x5x5xi32>
    %345 = arith.extui %344 : vector<1x5x5xi1> to vector<1x5x5xi32>
    %346 = arith.sitofp %345 : vector<1x5x5xi32> to vector<1x5x5xf32>
    %347 = vector.extract_strided_slice %330 {offsets = [0, 0], sizes = [8, 5], strides = [1, 1]} : vector<64x5xf32> to vector<8x5xf32>
    %348 = vector.broadcast %338 : vector<1x5xf32> to vector<8x5xf32>
    %349 = arith.addf %348, %347 : vector<8x5xf32>
    %350 = vector.extract_strided_slice %330 {offsets = [8, 0], sizes = [8, 5], strides = [1, 1]} : vector<64x5xf32> to vector<8x5xf32>
    %351 = vector.extract_strided_slice %2 {offsets = [8, 0], sizes = [8, 1], strides = [1, 1]} : vector<64x1xf32> to vector<8x1xf32>
    %352 = vector.shape_cast %349 : vector<8x5xf32> to vector<8x1x5xf32>
    %353 = vector.broadcast %352 : vector<8x1x5xf32> to vector<8x5x5xf32>
    %354 = vector.broadcast %341 : vector<1x5x5xf32> to vector<8x5x5xf32>
    %355 = arith.addf %353, %354 : vector<8x5x5xf32>
    %cst_120 = arith.constant dense<0xFF800000> : vector<8x5xf32>
    %356 = vector.multi_reduction <maximumf>, %355, %cst_120 [2] : vector<8x5x5xf32> to vector<8x5xf32>
    %357 = vector.shape_cast %356 : vector<8x5xf32> to vector<8x5x1xf32>
    %358 = vector.broadcast %357 : vector<8x5x1xf32> to vector<8x5x5xf32>
    %359 = arith.subf %355, %358 : vector<8x5x5xf32>
    %360 = math.exp %359 : vector<8x5x5xf32>
    %cst_121 = arith.constant dense<0.000000e+00> : vector<8x5xf32>
    %361 = vector.multi_reduction <add>, %360, %cst_121 [2] : vector<8x5x5xf32> to vector<8x5xf32>
    %362 = vector.shape_cast %361 : vector<8x5xf32> to vector<8x5x1xf32>
    %363 = math.log %362 : vector<8x5x1xf32>
    %364 = arith.addf %357, %363 : vector<8x5x1xf32>
    %365 = vector.broadcast %364 : vector<8x5x1xf32> to vector<8x5x5xf32>
    %366 = vector.broadcast %346 : vector<1x5x5xf32> to vector<8x5x5xf32>
    %367 = arith.mulf %365, %366 : vector<8x5x5xf32>
    %cst_122 = arith.constant dense<0.000000e+00> : vector<8x5xf32>
    %368 = vector.multi_reduction <add>, %367, %cst_122 [1] : vector<8x5x5xf32> to vector<8x5xf32>
    %cst_123 = arith.constant 0.000000e+00 : f32
    %369 = vector.broadcast %cst_123 : f32 to vector<8x1xf32>
    %370 = arith.cmpf ogt, %351, %369 : vector<8x1xf32>
    %371 = arith.addf %350, %368 : vector<8x5xf32>
    %372 = vector.shape_cast %370 : vector<8x1xi1> to vector<8x1xi1>
    %373 = vector.broadcast %372 : vector<8x1xi1> to vector<8x5xi1>
    %374 = arith.select %373, %371, %349 : vector<8x5xi1>, vector<8x5xf32>
    %375 = vector.extract_strided_slice %330 {offsets = [16, 0], sizes = [8, 5], strides = [1, 1]} : vector<64x5xf32> to vector<8x5xf32>
    %376 = vector.extract_strided_slice %2 {offsets = [16, 0], sizes = [8, 1], strides = [1, 1]} : vector<64x1xf32> to vector<8x1xf32>
    %377 = vector.shape_cast %374 : vector<8x5xf32> to vector<8x1x5xf32>
    %378 = vector.broadcast %377 : vector<8x1x5xf32> to vector<8x5x5xf32>
    %379 = vector.broadcast %341 : vector<1x5x5xf32> to vector<8x5x5xf32>
    %380 = arith.addf %378, %379 : vector<8x5x5xf32>
    %cst_124 = arith.constant dense<0xFF800000> : vector<8x5xf32>
    %381 = vector.multi_reduction <maximumf>, %380, %cst_124 [2] : vector<8x5x5xf32> to vector<8x5xf32>
    %382 = vector.shape_cast %381 : vector<8x5xf32> to vector<8x5x1xf32>
    %383 = vector.broadcast %382 : vector<8x5x1xf32> to vector<8x5x5xf32>
    %384 = arith.subf %380, %383 : vector<8x5x5xf32>
    %385 = math.exp %384 : vector<8x5x5xf32>
    %cst_125 = arith.constant dense<0.000000e+00> : vector<8x5xf32>
    %386 = vector.multi_reduction <add>, %385, %cst_125 [2] : vector<8x5x5xf32> to vector<8x5xf32>
    %387 = vector.shape_cast %386 : vector<8x5xf32> to vector<8x5x1xf32>
    %388 = math.log %387 : vector<8x5x1xf32>
    %389 = arith.addf %382, %388 : vector<8x5x1xf32>
    %390 = vector.broadcast %389 : vector<8x5x1xf32> to vector<8x5x5xf32>
    %391 = vector.broadcast %346 : vector<1x5x5xf32> to vector<8x5x5xf32>
    %392 = arith.mulf %390, %391 : vector<8x5x5xf32>
    %cst_126 = arith.constant dense<0.000000e+00> : vector<8x5xf32>
    %393 = vector.multi_reduction <add>, %392, %cst_126 [1] : vector<8x5x5xf32> to vector<8x5xf32>
    %cst_127 = arith.constant 0.000000e+00 : f32
    %394 = vector.broadcast %cst_127 : f32 to vector<8x1xf32>
    %395 = arith.cmpf ogt, %376, %394 : vector<8x1xf32>
    %396 = arith.addf %375, %393 : vector<8x5xf32>
    %397 = vector.shape_cast %395 : vector<8x1xi1> to vector<8x1xi1>
    %398 = vector.broadcast %397 : vector<8x1xi1> to vector<8x5xi1>
    %399 = arith.select %398, %396, %374 : vector<8x5xi1>, vector<8x5xf32>
    %400 = vector.extract_strided_slice %330 {offsets = [24, 0], sizes = [8, 5], strides = [1, 1]} : vector<64x5xf32> to vector<8x5xf32>
    %401 = vector.extract_strided_slice %2 {offsets = [24, 0], sizes = [8, 1], strides = [1, 1]} : vector<64x1xf32> to vector<8x1xf32>
    %402 = vector.shape_cast %399 : vector<8x5xf32> to vector<8x1x5xf32>
    %403 = vector.broadcast %402 : vector<8x1x5xf32> to vector<8x5x5xf32>
    %404 = vector.broadcast %341 : vector<1x5x5xf32> to vector<8x5x5xf32>
    %405 = arith.addf %403, %404 : vector<8x5x5xf32>
    %cst_128 = arith.constant dense<0xFF800000> : vector<8x5xf32>
    %406 = vector.multi_reduction <maximumf>, %405, %cst_128 [2] : vector<8x5x5xf32> to vector<8x5xf32>
    %407 = vector.shape_cast %406 : vector<8x5xf32> to vector<8x5x1xf32>
    %408 = vector.broadcast %407 : vector<8x5x1xf32> to vector<8x5x5xf32>
    %409 = arith.subf %405, %408 : vector<8x5x5xf32>
    %410 = math.exp %409 : vector<8x5x5xf32>
    %cst_129 = arith.constant dense<0.000000e+00> : vector<8x5xf32>
    %411 = vector.multi_reduction <add>, %410, %cst_129 [2] : vector<8x5x5xf32> to vector<8x5xf32>
    %412 = vector.shape_cast %411 : vector<8x5xf32> to vector<8x5x1xf32>
    %413 = math.log %412 : vector<8x5x1xf32>
    %414 = arith.addf %407, %413 : vector<8x5x1xf32>
    %415 = vector.broadcast %414 : vector<8x5x1xf32> to vector<8x5x5xf32>
    %416 = vector.broadcast %346 : vector<1x5x5xf32> to vector<8x5x5xf32>
    %417 = arith.mulf %415, %416 : vector<8x5x5xf32>
    %cst_130 = arith.constant dense<0.000000e+00> : vector<8x5xf32>
    %418 = vector.multi_reduction <add>, %417, %cst_130 [1] : vector<8x5x5xf32> to vector<8x5xf32>
    %cst_131 = arith.constant 0.000000e+00 : f32
    %419 = vector.broadcast %cst_131 : f32 to vector<8x1xf32>
    %420 = arith.cmpf ogt, %401, %419 : vector<8x1xf32>
    %421 = arith.addf %400, %418 : vector<8x5xf32>
    %422 = vector.shape_cast %420 : vector<8x1xi1> to vector<8x1xi1>
    %423 = vector.broadcast %422 : vector<8x1xi1> to vector<8x5xi1>
    %424 = arith.select %423, %421, %399 : vector<8x5xi1>, vector<8x5xf32>
    %425 = vector.extract_strided_slice %330 {offsets = [32, 0], sizes = [8, 5], strides = [1, 1]} : vector<64x5xf32> to vector<8x5xf32>
    %426 = vector.extract_strided_slice %2 {offsets = [32, 0], sizes = [8, 1], strides = [1, 1]} : vector<64x1xf32> to vector<8x1xf32>
    %427 = vector.shape_cast %424 : vector<8x5xf32> to vector<8x1x5xf32>
    %428 = vector.broadcast %427 : vector<8x1x5xf32> to vector<8x5x5xf32>
    %429 = vector.broadcast %341 : vector<1x5x5xf32> to vector<8x5x5xf32>
    %430 = arith.addf %428, %429 : vector<8x5x5xf32>
    %cst_132 = arith.constant dense<0xFF800000> : vector<8x5xf32>
    %431 = vector.multi_reduction <maximumf>, %430, %cst_132 [2] : vector<8x5x5xf32> to vector<8x5xf32>
    %432 = vector.shape_cast %431 : vector<8x5xf32> to vector<8x5x1xf32>
    %433 = vector.broadcast %432 : vector<8x5x1xf32> to vector<8x5x5xf32>
    %434 = arith.subf %430, %433 : vector<8x5x5xf32>
    %435 = math.exp %434 : vector<8x5x5xf32>
    %cst_133 = arith.constant dense<0.000000e+00> : vector<8x5xf32>
    %436 = vector.multi_reduction <add>, %435, %cst_133 [2] : vector<8x5x5xf32> to vector<8x5xf32>
    %437 = vector.shape_cast %436 : vector<8x5xf32> to vector<8x5x1xf32>
    %438 = math.log %437 : vector<8x5x1xf32>
    %439 = arith.addf %432, %438 : vector<8x5x1xf32>
    %440 = vector.broadcast %439 : vector<8x5x1xf32> to vector<8x5x5xf32>
    %441 = vector.broadcast %346 : vector<1x5x5xf32> to vector<8x5x5xf32>
    %442 = arith.mulf %440, %441 : vector<8x5x5xf32>
    %cst_134 = arith.constant dense<0.000000e+00> : vector<8x5xf32>
    %443 = vector.multi_reduction <add>, %442, %cst_134 [1] : vector<8x5x5xf32> to vector<8x5xf32>
    %cst_135 = arith.constant 0.000000e+00 : f32
    %444 = vector.broadcast %cst_135 : f32 to vector<8x1xf32>
    %445 = arith.cmpf ogt, %426, %444 : vector<8x1xf32>
    %446 = arith.addf %425, %443 : vector<8x5xf32>
    %447 = vector.shape_cast %445 : vector<8x1xi1> to vector<8x1xi1>
    %448 = vector.broadcast %447 : vector<8x1xi1> to vector<8x5xi1>
    %449 = arith.select %448, %446, %424 : vector<8x5xi1>, vector<8x5xf32>
    %450 = vector.extract_strided_slice %330 {offsets = [40, 0], sizes = [8, 5], strides = [1, 1]} : vector<64x5xf32> to vector<8x5xf32>
    %451 = vector.extract_strided_slice %2 {offsets = [40, 0], sizes = [8, 1], strides = [1, 1]} : vector<64x1xf32> to vector<8x1xf32>
    %452 = vector.shape_cast %449 : vector<8x5xf32> to vector<8x1x5xf32>
    %453 = vector.broadcast %452 : vector<8x1x5xf32> to vector<8x5x5xf32>
    %454 = vector.broadcast %341 : vector<1x5x5xf32> to vector<8x5x5xf32>
    %455 = arith.addf %453, %454 : vector<8x5x5xf32>
    %cst_136 = arith.constant dense<0xFF800000> : vector<8x5xf32>
    %456 = vector.multi_reduction <maximumf>, %455, %cst_136 [2] : vector<8x5x5xf32> to vector<8x5xf32>
    %457 = vector.shape_cast %456 : vector<8x5xf32> to vector<8x5x1xf32>
    %458 = vector.broadcast %457 : vector<8x5x1xf32> to vector<8x5x5xf32>
    %459 = arith.subf %455, %458 : vector<8x5x5xf32>
    %460 = math.exp %459 : vector<8x5x5xf32>
    %cst_137 = arith.constant dense<0.000000e+00> : vector<8x5xf32>
    %461 = vector.multi_reduction <add>, %460, %cst_137 [2] : vector<8x5x5xf32> to vector<8x5xf32>
    %462 = vector.shape_cast %461 : vector<8x5xf32> to vector<8x5x1xf32>
    %463 = math.log %462 : vector<8x5x1xf32>
    %464 = arith.addf %457, %463 : vector<8x5x1xf32>
    %465 = vector.broadcast %464 : vector<8x5x1xf32> to vector<8x5x5xf32>
    %466 = vector.broadcast %346 : vector<1x5x5xf32> to vector<8x5x5xf32>
    %467 = arith.mulf %465, %466 : vector<8x5x5xf32>
    %cst_138 = arith.constant dense<0.000000e+00> : vector<8x5xf32>
    %468 = vector.multi_reduction <add>, %467, %cst_138 [1] : vector<8x5x5xf32> to vector<8x5xf32>
    %cst_139 = arith.constant 0.000000e+00 : f32
    %469 = vector.broadcast %cst_139 : f32 to vector<8x1xf32>
    %470 = arith.cmpf ogt, %451, %469 : vector<8x1xf32>
    %471 = arith.addf %450, %468 : vector<8x5xf32>
    %472 = vector.shape_cast %470 : vector<8x1xi1> to vector<8x1xi1>
    %473 = vector.broadcast %472 : vector<8x1xi1> to vector<8x5xi1>
    %474 = arith.select %473, %471, %449 : vector<8x5xi1>, vector<8x5xf32>
    %475 = vector.extract_strided_slice %330 {offsets = [48, 0], sizes = [8, 5], strides = [1, 1]} : vector<64x5xf32> to vector<8x5xf32>
    %476 = vector.extract_strided_slice %2 {offsets = [48, 0], sizes = [8, 1], strides = [1, 1]} : vector<64x1xf32> to vector<8x1xf32>
    %477 = vector.shape_cast %474 : vector<8x5xf32> to vector<8x1x5xf32>
    %478 = vector.broadcast %477 : vector<8x1x5xf32> to vector<8x5x5xf32>
    %479 = vector.broadcast %341 : vector<1x5x5xf32> to vector<8x5x5xf32>
    %480 = arith.addf %478, %479 : vector<8x5x5xf32>
    %cst_140 = arith.constant dense<0xFF800000> : vector<8x5xf32>
    %481 = vector.multi_reduction <maximumf>, %480, %cst_140 [2] : vector<8x5x5xf32> to vector<8x5xf32>
    %482 = vector.shape_cast %481 : vector<8x5xf32> to vector<8x5x1xf32>
    %483 = vector.broadcast %482 : vector<8x5x1xf32> to vector<8x5x5xf32>
    %484 = arith.subf %480, %483 : vector<8x5x5xf32>
    %485 = math.exp %484 : vector<8x5x5xf32>
    %cst_141 = arith.constant dense<0.000000e+00> : vector<8x5xf32>
    %486 = vector.multi_reduction <add>, %485, %cst_141 [2] : vector<8x5x5xf32> to vector<8x5xf32>
    %487 = vector.shape_cast %486 : vector<8x5xf32> to vector<8x5x1xf32>
    %488 = math.log %487 : vector<8x5x1xf32>
    %489 = arith.addf %482, %488 : vector<8x5x1xf32>
    %490 = vector.broadcast %489 : vector<8x5x1xf32> to vector<8x5x5xf32>
    %491 = vector.broadcast %346 : vector<1x5x5xf32> to vector<8x5x5xf32>
    %492 = arith.mulf %490, %491 : vector<8x5x5xf32>
    %cst_142 = arith.constant dense<0.000000e+00> : vector<8x5xf32>
    %493 = vector.multi_reduction <add>, %492, %cst_142 [1] : vector<8x5x5xf32> to vector<8x5xf32>
    %cst_143 = arith.constant 0.000000e+00 : f32
    %494 = vector.broadcast %cst_143 : f32 to vector<8x1xf32>
    %495 = arith.cmpf ogt, %476, %494 : vector<8x1xf32>
    %496 = arith.addf %475, %493 : vector<8x5xf32>
    %497 = vector.shape_cast %495 : vector<8x1xi1> to vector<8x1xi1>
    %498 = vector.broadcast %497 : vector<8x1xi1> to vector<8x5xi1>
    %499 = arith.select %498, %496, %474 : vector<8x5xi1>, vector<8x5xf32>
    %500 = vector.extract_strided_slice %330 {offsets = [56, 0], sizes = [8, 5], strides = [1, 1]} : vector<64x5xf32> to vector<8x5xf32>
    %501 = vector.extract_strided_slice %2 {offsets = [56, 0], sizes = [8, 1], strides = [1, 1]} : vector<64x1xf32> to vector<8x1xf32>
    %502 = vector.shape_cast %499 : vector<8x5xf32> to vector<8x1x5xf32>
    %503 = vector.broadcast %502 : vector<8x1x5xf32> to vector<8x5x5xf32>
    %504 = vector.broadcast %341 : vector<1x5x5xf32> to vector<8x5x5xf32>
    %505 = arith.addf %503, %504 : vector<8x5x5xf32>
    %cst_144 = arith.constant dense<0xFF800000> : vector<8x5xf32>
    %506 = vector.multi_reduction <maximumf>, %505, %cst_144 [2] : vector<8x5x5xf32> to vector<8x5xf32>
    %507 = vector.shape_cast %506 : vector<8x5xf32> to vector<8x5x1xf32>
    %508 = vector.broadcast %507 : vector<8x5x1xf32> to vector<8x5x5xf32>
    %509 = arith.subf %505, %508 : vector<8x5x5xf32>
    %510 = math.exp %509 : vector<8x5x5xf32>
    %cst_145 = arith.constant dense<0.000000e+00> : vector<8x5xf32>
    %511 = vector.multi_reduction <add>, %510, %cst_145 [2] : vector<8x5x5xf32> to vector<8x5xf32>
    %512 = vector.shape_cast %511 : vector<8x5xf32> to vector<8x5x1xf32>
    %513 = math.log %512 : vector<8x5x1xf32>
    %514 = arith.addf %507, %513 : vector<8x5x1xf32>
    %515 = vector.broadcast %514 : vector<8x5x1xf32> to vector<8x5x5xf32>
    %516 = vector.broadcast %346 : vector<1x5x5xf32> to vector<8x5x5xf32>
    %517 = arith.mulf %515, %516 : vector<8x5x5xf32>
    %cst_146 = arith.constant dense<0.000000e+00> : vector<8x5xf32>
    %518 = vector.multi_reduction <add>, %517, %cst_146 [1] : vector<8x5x5xf32> to vector<8x5xf32>
    %cst_147 = arith.constant 0.000000e+00 : f32
    %519 = vector.broadcast %cst_147 : f32 to vector<8x1xf32>
    %520 = arith.cmpf ogt, %501, %519 : vector<8x1xf32>
    %521 = arith.addf %500, %518 : vector<8x5xf32>
    %522 = vector.shape_cast %520 : vector<8x1xi1> to vector<8x1xi1>
    %523 = vector.broadcast %522 : vector<8x1xi1> to vector<8x5xi1>
    %524 = arith.select %523, %521, %499 : vector<8x5xi1>, vector<8x5xf32>
    %525 = vector.broadcast %339 : vector<1x5xf32> to vector<8x5xf32>
    %526 = arith.addf %524, %525 : vector<8x5xf32>
    %cst_148 = arith.constant dense<0xFF800000> : vector<8xf32>
    %527 = vector.multi_reduction <maximumf>, %526, %cst_148 [1] : vector<8x5xf32> to vector<8xf32>
    %528 = vector.shape_cast %527 : vector<8xf32> to vector<8x1xf32>
    %529 = vector.broadcast %528 : vector<8x1xf32> to vector<8x5xf32>
    %530 = arith.subf %526, %529 : vector<8x5xf32>
    %531 = math.exp %530 : vector<8x5xf32>
    %cst_149 = arith.constant dense<0.000000e+00> : vector<8xf32>
    %532 = vector.multi_reduction <add>, %531, %cst_149 [1] : vector<8x5xf32> to vector<8xf32>
    %533 = vector.shape_cast %532 : vector<8xf32> to vector<8x1xf32>
    %534 = math.log %533 : vector<8x1xf32>
    %535 = arith.addf %528, %534 : vector<8x1xf32>
    %536 = vector.extract_strided_slice %2 {offsets = [0, 0], sizes = [8, 1], strides = [1, 1]} : vector<64x1xf32> to vector<8x1xf32>
    %537 = arith.mulf %535, %536 : vector<8x1xf32>
    %cst_150 = arith.constant dense<0.000000e+00> : vector<1xf32>
    %538 = vector.multi_reduction <add>, %537, %cst_150 [0] : vector<8x1xf32> to vector<1xf32>
    %539 = vector.shape_cast %538 : vector<1xf32> to vector<1x1xf32>
    %540 = arith.subf %539, %337 : vector<1x1xf32>
    %cst_151 = arith.constant 5.000000e-01 : f32
    %541 = vector.broadcast %cst_151 : f32 to vector<1x1xf32>
    %542 = arith.mulf %540, %541 : vector<1x1xf32>
    %c0_152 = arith.constant 0 : index
    %c0_153 = arith.constant 0 : index
    %543 = vector.load %arg3[%c0_152, %c0_153] : memref<1x1xf32, #tpu.memory_space<vmem>>, vector<1x1xf32>
    tpu.vector_store %arg3[%c0_152, %c0_153], %542 {strides = array<i32>} : memref<1x1xf32, #tpu.memory_space<vmem>>, vector<1x1xf32>,
    return
  }
}

</mosaic_0001>

<bundles_post_ra>
// kernel: tpu_custom_call.1
= control target key start
LH: loop header
LB: loop body
LE: loop exit
PB: predicated region body
PF: predicated region fallthrough
CT: control target
= control target key end

     0   :  { %8 = vsyncpa [#allocation5], 0  ;;  %s11998_s0 = inlined_call_operand.hbm [shape: f32[64,384], index: 0, kind: input, shape index: {}]   ;;  %s11999_s1 = inlined_call_operand.hbm [shape: f32[328,1024], index: 1, kind: input, shape index: {}]   ;;  %s12000_s2 = inlined_call_operand.hbm [shape: f32[296,128], index: 2, kind: input, shape index: {}]   ;;  %s12001_s3 = inlined_call_operand.hbm [shape: f32[1,1], index: 3, kind: output, shape index: {}]  }
   0x1   :  { %9 = vsyncpa [#allocation8], 0 }
   0x2   :  { %10 = vsyncpa [#allocation6], 0  ;;  %s9418_s12 = smov [#allocation7]   ;;  %s9324_s16 = scalar_lea.hbm %s11999_s1, 41984 }
   0x3   :  { %s28_s13 = sshll.u32 %s9418_s12, 4  ;;  %p9325_p0 = scmp.ne.s32.totalorder %s11999_s1, %s9324_s16  ;;  %s29_s13 = int_to_ptr.vmem [resolvable:$true] %s28_s13 }
   0x4   :  { %p9328_p1 = scmp.lt.u32.totalorder %s9324_s16, %s11999_s1 }
   0x6   :  { %p9330_p2 = pnand %p9328_p1, %p9325_p0 }
   0x8   :  { %9333 = shalt.err (!%p9330_p2)
}
   0x9   :  { %s9334_s21 = scalar_lea.vmem %s29_s13, 41984  ;;  %p9339_p4 = scmp.lt.s32.totalorder %s29_s13, %s29_s13 }
   0xa   :  { %p9335_p3 = scmp.ne.s32.totalorder %s29_s13, %s9334_s21  ;;  %p9340_p5 = scmp.lt.s32.totalorder %s9334_s21, %s9334_s21 }
   0xc   :  { %p9341_p6 = por %p9340_p5, %p9339_p4 }
   0xe   :  { %p9342_p7 = pnand %p9341_p6, %p9335_p3 }
  0x10   :  { %9345 = shalt.err (!%p9342_p7)
}
  0x11   :  { %s9419_s22 = smov 1024   ;;  %s9420_s23 = smov 64  }
  0x12   :  { %34 = dma.hbm_to_vmem [thread:$0]  %s11999_s1, 41984, %s29_s13, [#allocation8], %s9419_s22, %s9419_s22, %s9420_s23  }
  0x13   :  { %s9421_s26 = smov [#allocation4]   ;;  %s9346_s30 = scalar_lea.hbm %s11998_s0, 3072 }
  0x14   :  { %s16_s27 = sshll.u32 %s9421_s26, 4  ;;  %p9347_p8 = scmp.ne.s32.totalorder %s11998_s0, %s9346_s30  ;;  %s17_s27 = int_to_ptr.vmem [resolvable:$true] %s16_s27 }
  0x15   :  { %p9350_p9 = scmp.lt.u32.totalorder %s9346_s30, %s11998_s0 }
  0x17   :  { %p9352_p10 = pnand %p9350_p9, %p9347_p8 }
  0x19   :  { %9355 = shalt.err (!%p9352_p10)
}
  0x1a   :  { %s9356_s8 = scalar_lea.vmem %s17_s27, 3072  ;;  %p9361_p12 = scmp.lt.s32.totalorder %s17_s27, %s17_s27 }
  0x1b   :  { %p9357_p11 = scmp.ne.s32.totalorder %s17_s27, %s9356_s8  ;;  %p9362_p13 = scmp.lt.s32.totalorder %s9356_s8, %s9356_s8 }
  0x1d   :  { %p9363_p0 = por %p9362_p13, %p9361_p12 }
  0x1f   :  { %p9364_p1 = pnand %p9363_p0, %p9357_p11 }
  0x21   :  { %9367 = shalt.err (!%p9364_p1)
}
  0x22   :  { %s9422_s1 = smov 384   ;;  %s9423_s9 = smov 24  }
  0x23   :  { %22 = dma.hbm_to_vmem [thread:$0]  %s11998_s0, 3072, %s17_s27, [#allocation5], %s9422_s1, %s9422_s1, %s9423_s9  }
  0x24   :  { %s9424_s12 = smov [#allocation9]   ;;  %s9368_s16 = scalar_lea.hbm %s12000_s2, 4736 }
  0x25   :  { %s40_s13 = sshll.u32 %s9424_s12, 4  ;;  %p9369_p2 = scmp.ne.s32.totalorder %s12000_s2, %s9368_s16  ;;  %s41_s13 = int_to_ptr.vmem [resolvable:$true] %s40_s13 }
  0x26   :  { %p9372_p3 = scmp.lt.u32.totalorder %s9368_s16, %s12000_s2 }
  0x28   :  { %p9374_p4 = pnand %p9372_p3, %p9369_p2 }
  0x2a   :  { %9377 = shalt.err (!%p9374_p4)
}
  0x2b   :  { %s9378_s21 = scalar_lea.vmem %s41_s13, 4736  ;;  %p9383_p6 = scmp.lt.s32.totalorder %s41_s13, %s41_s13 }
  0x2c   :  { %p9379_p5 = scmp.ne.s32.totalorder %s41_s13, %s9378_s21  ;;  %p9384_p7 = scmp.lt.s32.totalorder %s9378_s21, %s9378_s21 }
  0x2e   :  { %p9385_p8 = por %p9384_p7, %p9383_p6 }
  0x30   :  { %p9386_p9 = pnand %p9385_p8, %p9379_p5 }
  0x32   :  { %9389 = shalt.err (!%p9386_p9)
}
  0x33   :  { %s9425_s0 = smov 128   ;;  %s9426_s22 = smov 8  }
  0x34   :  { %46 = dma.hbm_to_vmem [thread:$0]  %s12000_s2, 4736, %s41_s13, [#allocation8], %s9425_s0, %s9425_s0, %s9426_s22  }
  0x35   :  { %9412 = dma.done.wait [#allocation5], 3072  }
  0x36   :  { %9413 = vsyncadd [#allocation5], 4294964224 }
  0x37   :  { %9414 = dma.done.wait [#allocation8], 46720  }
  0x38   :  { %9415 = vsyncadd [#allocation8], 4294920576  ;;  %v12002_v0 = vmov 0.0   ;;  %v81_v1 = vld [vmem:[#allocation7 + $0x8] sm:$0xff]  ;;  %v80_v3 = vld [vmem:[#allocation7] sm:$0xff]  ;;  %vm92_vm0 = vcmask 261120  }
  0x39   :  { %181 = vmatprep.mubr.f32.mxu0 %v12002_v0  ;;  %v84_v2 = vld [vmem:[#allocation7 + $0x48] sm:$0xff]  ;;  %v83_v5 = vld [vmem:[#allocation7 + $0x40] sm:$0xff]  ;;  %v82_v6 = vld [vmem:[#allocation7 + $0x10] sm:$0xff]  ;;  %vm4584_vm1 = vcmask 36864   ;;  %vm4754_vm4 = vcmask 1041409   ;;  %vm4756_vm5 = vcmask 1042434  }
  0x3a   :  { %v6655_v4 = vpack.c.bf16 %v84_v2, %v81_v1  ;;  %v85_v7 = vld [vmem:[#allocation7 + $0x50] sm:$0xff]  ;;  %v6657_v8 = vpack.c.bf16 %v83_v5, %v80_v3  ;;  %v87_v10 = vld [vmem:[#allocation7 + $0x88] sm:$0xff]  ;;  %v86_v12 = vld [vmem:[#allocation7 + $0x80] sm:$0xff]  ;;  %vm4758_vm6 = vcmask 1043459   ;;  %vm4760_vm7 = vcmask 1044484   ;;  %s9430_s2 = smov [#allocation10]  }
  0x3b   :  { %v6663_v9 = vpack.c.bf16 %v85_v7, %v82_v6  ;;  %v90_v11 = vld [vmem:[#allocation7 + $0xc8] sm:$0xff]  ;;  %v89_v14 = vld [vmem:[#allocation7 + $0xc0] sm:$0xff]  ;;  %v88_v15 = vld [vmem:[#allocation7 + $0x90] sm:$0xff]  ;;  %vm4762_vm8 = vcmask 1045509   ;;  %vm4764_vm9 = vcmask 1046534   ;;  %vm4766_vm10 = vcmask 1047559  }
  0x3c   :  { %6656 = vmatprep.subr.bf16.mxu0 %v6655_v4  ;;  %v6659_v13 = vpack.c.bf16 %v90_v11, %v87_v10  ;;  %v91_v16 = vld [vmem:[#allocation7 + $0xd0] sm:$0xff]  ;;  %v6661_v17 = vpack.c.bf16 %v89_v14, %v86_v12  ;;  %v56_v19 = vld [vmem:[#allocation4] sm:$0xff]  ;;  %v406_v20 = vld [vmem:[#allocation7 + $0x108] sm:$0xff]  ;;  %s6504_s25 = sshll.u32 %s9430_s2, 4  ;;  %s6505_s25 = int_to_ptr.vmem [resolvable:$true] %s6504_s25 }
  0x3d   :  { %6658 = vmatpush1.bf16.msra.mxu0 %v6657_v8  ;;  %6664 = vmatprep.subr.bf16.mxu1 %v6663_v9  ;;  %v6667_v18 = vpack.c.bf16 %v91_v16, %v88_v15  ;;  %v414_v21 = vld [vmem:[#allocation7 + $0x148] sm:$0xff]  ;;  %v405_v22 = vld [vmem:[#allocation7 + $0x100] sm:$0xff]  ;;  %v57_v27 = vld [vmem:[#allocation4 + $0x18] sm:$0xff]  ;;  %s9390_s26 = scalar_lea.vmem %s6505_s25, 16  ;;  %s9394_s27 = scalar_lea.vmem %s6505_s25, 32 }
  0x3e   :  { %6666 = vmatpush3.bf16.msra.mxu1 %v6663_v9  ;;  %6660 = vmatprep.subr.bf16.mxu0 %v6659_v13  ;;  %v413_v23 = vld [vmem:[#allocation7 + $0x140] sm:$0xff]  ;;  %v6671_v24 = vpack.c.bf16 %v414_v21, %v406_v20  ;;  %v422_v25 = vld [vmem:[#allocation7 + $0x188] sm:$0xff]  ;;  %v58_v29 = vld [vmem:[#allocation4 + $0x30] sm:$0xff]  ;;  %p9391_p10 = scmp.ne.s32.totalorder %s6505_s25, %s9390_s26  ;;  %p9395_p11 = scmp.lt.s32.totalorder %s6505_s25, %s6505_s25 }
  0x3f   :  { %6668 = vmatprep.subr.bf16.mxu1 %v6667_v18  ;;  %6643 = vmatprep.mubr.msk.f32.mxu1 %vm92_vm0, %v56_v19  ;;  %v430_v26 = vld [vmem:[#allocation7 + $0x1c8] sm:$0xff]  ;;  %v6673_v28 = vpack.c.bf16 %v413_v23, %v405_v22  ;;  %v421_v31 = vld [vmem:[#allocation7 + $0x180] sm:$0xff]  ;;  %v61_v36 = vld [vmem:[#allocation4 + $0x78] sm:$0xff]  ;;  %p9396_p12 = scmp.lt.s32.totalorder %s9394_s27, %s9390_s26 }
  0x40   :  { %v6675_v30 = vpack.c.bf16 %v430_v26, %v422_v25  ;;  %v429_v32 = vld [vmem:[#allocation7 + $0x1c0] sm:$0xff]  ;;  %v59_v33 = vld [vmem:[#allocation4 + $0x48] sm:$0xff]  ;;  %v62_v37 = vld [vmem:[#allocation4 + $0x90] sm:$0xff] }
  0x41   :  { %6662 = vmatpush1.bf16.msra.mxu0 %v6661_v17  ;;  %v6677_v34 = vpack.c.bf16 %v429_v32, %v421_v31  ;;  %v60_v35 = vld [vmem:[#allocation4 + $0x60] sm:$0xff]  ;;  %v63_v38 = vld [vmem:[#allocation4 + $0xa8] sm:$0xff]  ;;  %v408_v39 = vld [vmem:[#allocation7 + $0x118] sm:$0xff]  ;;  %p9397_p13 = por %p9396_p12, %p9395_p11 }
  0x42   :  { %6670 = vmatpush3.bf16.msra.mxu1 %v6667_v18  ;;  %6672 = vmatprep.subr.bf16.mxu0 %v6671_v24  ;;  %v416_v40 = vld [vmem:[#allocation7 + $0x158] sm:$0xff]  ;;  %v410_v42 = vld [vmem:[#allocation7 + $0x128] sm:$0xff]  ;;  %v407_v46 = vld [vmem:[#allocation7 + $0x110] sm:$0xff] }
  0x43   :  { %8783 = vmatprep.subr.bf16.mxu1 %v6671_v24  ;;  %v6679_v41 = vpack.c.bf16 %v416_v40, %v408_v39  ;;  %v418_v43 = vld [vmem:[#allocation7 + $0x168] sm:$0xff]  ;;  %v415_v47 = vld [vmem:[#allocation7 + $0x150] sm:$0xff]  ;;  %v9513_v50 = vld [vmem:[#allocation9 + $0x100] ss:$0 sm:$0xff]  ;;  %p9398_p0 = pnand %p9397_p13, %p9391_p10 }
  0x44   :  { %6514 = vmatmul.mubr.msk.f32.vlgmr.msra.gmra.mrb[0].mxu0 %vm92_vm0, %v56_v19  ;;  %v6687_v44 = vpack.c.bf16 %v418_v43, %v410_v42  ;;  %v424_v51 = vld [vmem:[#allocation7 + $0x198] sm:$0xff]  ;;  %v6681_v55 = vpack.c.bf16 %v415_v47, %v407_v46  ;;  %v423_v59 = vld [vmem:[#allocation7 + $0x190] sm:$0xff]  ;;  %v426_v39 = vld [vmem:[#allocation7 + $0x1a8] sm:$0xff] }
  0x45   :  { %6644 = vmatmul.mubr.msk.f32.vlgmr.msra.gmra.mrb[0].mxu1 %vm92_vm0, %v57_v27  ;;  %187 = vmatprep.mubr.f32.mxu0 %v12002_v0  ;;  %v432_v52 = vld [vmem:[#allocation7 + $0x1d8] sm:$0xff]  ;;  %v431_v60 = vld [vmem:[#allocation7 + $0x1d0] sm:$0xff]  ;;  %v434_v42 = vld [vmem:[#allocation7 + $0x1e8] sm:$0xff] }
  0x46   :  { %6646 = vmatprep.mubr.msk.f32.mxu1 %vm92_vm0, %v58_v29  ;;  %6674 = vmatpush1.bf16.msra.mxu0 %v6673_v28  ;;  %v6683_v58 = vpack.c.bf16 %v432_v52, %v424_v51  ;;  %v412_v63 = vld [vmem:[#allocation7 + $0x138] sm:$0xff]  ;;  %v6685_v4 = vpack.c.bf16 %v431_v60, %v423_v59  ;;  %v425_v51 = vld [vmem:[#allocation7 + $0x1a0] sm:$0xff]  ;;  %v427_v59 = vld [vmem:[#allocation7 + $0x1b0] sm:$0xff] }
  0x47   :  { %6676 = vmatprep.subr.bf16.mxu0 %v6675_v30  ;;  %8785 = vmatpush1.bf16.msra.mxu1 %v6673_v28  ;;  %v420_v1 = vld [vmem:[#allocation7 + $0x178] sm:$0xff]  ;;  %v433_v52 = vld [vmem:[#allocation7 + $0x1e0] sm:$0xff]  ;;  %v435_v60 = vld [vmem:[#allocation7 + $0x1f0] sm:$0xff] }
  0x48   :  { %6515 = vmatmul.mubr.msk.f32.gmra.mrb[2].mxu0 %vm92_vm0, %v57_v27  ;;  %8784 = vmatprep.subr.bf16.mxu1 %v6675_v30  ;;  %v6695_v7 = vpack.c.bf16 %v420_v1, %v412_v63  ;;  %v428_v43 = vld [vmem:[#allocation7 + $0x1b8] sm:$0xff]  ;;  %v1022_v63 = vld [vmem:[#allocation7 + $0x240] sm:$0xff]  ;;  %v1039_v1 = vld [vmem:[#allocation7 + $0x2c8] sm:$0xff] }
  0x49   :  { %6647 = vmatmul.mubr.msk.f32.gmra.mrb[2].mxu1 %vm92_vm0, %v59_v33  ;;  %193 = vmatprep.mubr.f32.mxu0 %v12002_v0 }
  0x4a   :  { %6649 = vmatprep.mubr.msk.f32.mxu1 %vm92_vm0, %v60_v35  ;;  %6678 = vmatpush1.bf16.msra.mxu0 %v6677_v34 }
  0x4b   :  { %8786 = vmatpush1.bf16.msra.mxu1 %v6677_v34  ;;  %6680 = vmatprep.subr.bf16.mxu0 %v6679_v41 }
  0x4c   :  { %6516 = vmatmul.mubr.msk.f32.gmra.mrb[4].mxu0 %vm92_vm0, %v58_v29  ;;  %6688 = vmatprep.subr.bf16.mxu1 %v6687_v44  ;;  %v436_v44 = vld [vmem:[#allocation7 + $0x1f8] sm:$0xff] }
  0x4d   :  { %199 = vmatprep.mubr.f32.mxu0 %v12002_v0  ;;  %6650 = vmatmul.mubr.msk.f32.gmra.mrb[4].mxu1 %vm92_vm0, %v61_v36 }
  0x4e   :  { %6652 = vmatprep.mubr.msk.f32.mxu1 %vm92_vm0, %v62_v37 }
  0x50   :  { %6517 = vmatmul.mubr.msk.f32.gmra.mrb[6].mxu0 %vm92_vm0, %v59_v33  ;;  %v409_v33 = vld [vmem:[#allocation7 + $0x120] sm:$0xff] }
  0x51   :  { %205 = vmatprep.mubr.f32.mxu0 %v12002_v0  ;;  %6653 = vmatmul.mubr.msk.f32.gmra.mrb[6].mxu1 %vm92_vm0, %v63_v38 }
  0x52   :  { %606 = vmatprep.mubr.f32.mxu1 %v12002_v0 }
  0x54   :  { %6518 = vmatmul.mubr.msk.f32.gmra.mrb[8].mxu0 %vm92_vm0, %v60_v35 }
  0x55   :  { %211 = vmatprep.mubr.f32.mxu0 %v12002_v0 }
  0x58   :  { %6519 = vmatmul.mubr.msk.f32.gmra.mrb[10].mxu0 %vm92_vm0, %v61_v36  ;;  %v417_v36 = vld [vmem:[#allocation7 + $0x160] sm:$0xff] }
  0x59   :  { %217 = vmatprep.mubr.f32.mxu0 %v12002_v0  ;;  %v6689_v46 = vpack.c.bf16 %v417_v36, %v409_v33  ;;  %v1103_v33 = vld [vmem:[#allocation7 + $0x4c8] sm:$0xff] }
  0x5c   :  { %6520 = vmatmul.mubr.msk.f32.gmra.mrb[12].mxu0 %vm92_vm0, %v62_v37  ;;  %v411_v37 = vld [vmem:[#allocation7 + $0x130] sm:$0xff] }
  0x5d   :  { %223 = vmatprep.mubr.f32.mxu0 %v12002_v0 }
  0x60   :  { %6521 = vmatmul.mubr.msk.f32.gmra.mrb[14].mxu0 %vm92_vm0, %v63_v38  ;;  %v419_v38 = vld [vmem:[#allocation7 + $0x170] sm:$0xff] }
  0x61   :  { %570 = vmatprep.mubr.f32.mxu0 %v12002_v0  ;;  %v6697_v47 = vpack.c.bf16 %v419_v38, %v411_v37  ;;  %v1102_v38 = vld [vmem:[#allocation7 + $0x4c0] sm:$0xff] }
 0x117   :  { %v183_v45 = vpop.f32.mrb[0].mxu0 }
 0x118   :  { %v185_v48 = vpop.f32.mrb[1].mxu0  ;;  %v6645_v49 = vpop.f32.mrb[0].mxu1 }
 0x119   :  { %v384_v53 = vadd.f32 %v6645_v49, %v185_v48  ;;  %v296_v54 = vpop.f32.mrb[1].mxu1 }
 0x11a   :  { %v1023_v54 = vld [vmem:[#allocation7 + $0x248] sm:$0xff] }
 0x11b   :  { %v9516_v56 = vadd.f32 %v9513_v50, %v384_v53  ;;  %v189_v57 = vpop.f32.mrb[2].mxu0  ;;  %v6691_v53 = vpack.c.bf16 %v434_v42, %v426_v39  ;;  %v1110_v39 = vld [vmem:[#allocation7 + $0x500] sm:$0xff] }
 0x11c   :  { %v191_v61 = vpop.f32.mrb[3].mxu0  ;;  %v6648_v62 = vpop.f32.mrb[2].mxu1  ;;  %v9633_v42 = vpack.c.bf16 %v1110_v39, %v1102_v38  ;;  %v1183_v39 = vld [vmem:[#allocation7 + $0x748] sm:$0xff] }
 0x11d   :  { %v377_v2 = vadd.f32 %v191_v61, %v183_v45  ;;  %v306_v3 = vpop.f32.mrb[3].mxu1  ;;  %6531 = vmatmul.mubr.msk.f32.vlgmr.msra.gmra.mrb[16].mxu0 %vm92_vm0, %v9516_v56  ;;  %v6693_v61 = vpack.c.bf16 %v433_v52, %v425_v51  ;;  %v1143_v51 = vld [vmem:[#allocation7 + $0x608] sm:$0xff]  ;;  %v1041_v52 = vld [vmem:[#allocation7 + $0x2d8] sm:$0xff] }
 0x11e   :  { %6682 = vmatpush1.bf16.msra.mxu0 %v6681_v55  ;;  %576 = vmatprep.mubr.f32.mxu0 %v12002_v0  ;;  %v1031_v55 = vld [vmem:[#allocation7 + $0x288] sm:$0xff]  ;;  %12324 = vst [vmem:[#allocation26_spill] sm:$0xff] %v9633_v42 }
 0x11f   :  { %v385_v5 = vadd.f32 %v377_v2, %v306_v3  ;;  %v195_v6 = vpop.f32.mrb[4].mxu0  ;;  %6684 = vmatprep.subr.bf16.mxu0 %v6683_v58  ;;  %v1047_v2 = vld [vmem:[#allocation7 + $0x308] sm:$0xff]  ;;  %v6701_v3 = vpack.c.bf16 %v435_v60, %v427_v59  ;;  %v1142_v59 = vld [vmem:[#allocation7 + $0x600] sm:$0xff]  ;;  %v1040_v60 = vld [vmem:[#allocation7 + $0x2d0] sm:$0xff] }
 0x120   :  { %v197_v8 = vpop.f32.mrb[5].mxu0  ;;  %v6651_v9 = vpop.f32.mrb[4].mxu1 }
 0x121   :  { %v9522_v10 = vadd.f32 %v9513_v50, %v385_v5  ;;  %v378_v11 = vadd.f32 %v197_v8, %v189_v57  ;;  %v316_v12 = vpop.f32.mrb[5].mxu1  ;;  %v6699_v57 = vpack.c.bf16 %v436_v44, %v428_v43  ;;  %v1033_v5 = vld [vmem:[#allocation7 + $0x298] sm:$0xff]  ;;  %v1038_v8 = vld [vmem:[#allocation7 + $0x2c0] sm:$0xff] }
 0x122   :  { %6686 = vmatpush1.bf16.msra.mxu0 %v6685_v4  ;;  %v1025_v4 = vld [vmem:[#allocation7 + $0x258] sm:$0xff]  ;;  %v1118_v43 = vld [vmem:[#allocation7 + $0x540] sm:$0xff] }
 0x123   :  { %v386_v13 = vadd.f32 %v6648_v62, %v378_v11  ;;  %v201_v14 = vpop.f32.mrb[6].mxu0  ;;  %6532 = vmatmul.mubr.msk.f32.gmra.mrb[18].mxu0 %vm92_vm0, %v9522_v10  ;;  %6696 = vmatprep.subr.bf16.mxu0 %v6695_v7  ;;  %v9563_v62 = vpack.c.bf16 %v1031_v55, %v1023_v54  ;;  %v9574_v7 = vpack.c.bf16 %v1047_v2, %v1039_v1  ;;  %v1055_v11 = vld [vmem:[#allocation7 + $0x348] sm:$0xff] }
 0x124   :  { %v203_v15 = vpop.f32.mrb[7].mxu0  ;;  %582 = vmatprep.mubr.f32.mxu0 %v12002_v0  ;;  %v6654_v16 = vpop.f32.mrb[6].mxu1  ;;  %v1151_v1 = vld [vmem:[#allocation7 + $0x648] sm:$0xff] }
 0x125   :  { %v9528_v17 = vadd.f32 %v9513_v50, %v386_v13  ;;  %v379_v18 = vadd.f32 %v203_v15, %v195_v6  ;;  %v326_v19 = vpop.f32.mrb[7].mxu1  ;;  %12312 = vst [vmem:[#allocation14_spill] sm:$0xff] %v9563_v62  ;;  %12314 = vst [vmem:[#allocation16_spill] sm:$0xff] %v9574_v7  ;;  %v9576_v13 = vpack.c.bf16 %v1033_v5, %v1025_v4  ;;  %v1159_v2 = vld [vmem:[#allocation7 + $0x688] sm:$0xff]  ;;  %v1065_v4 = vld [vmem:[#allocation7 + $0x398] sm:$0xff] }
 0x127   :  { %v387_v20 = vadd.f32 %v379_v18, %v316_v12  ;;  %v207_v21 = vpop.f32.mrb[8].mxu0  ;;  %6533 = vmatmul.mubr.msk.f32.gmra.mrb[20].mxu0 %vm92_vm0, %v9528_v17  ;;  %v1063_v12 = vld [vmem:[#allocation7 + $0x388] sm:$0xff]  ;;  %12315 = vst [vmem:[#allocation17_spill] sm:$0xff] %v9576_v13  ;;  %v1062_v18 = vld [vmem:[#allocation7 + $0x380] sm:$0xff] }
 0x128   :  { %v209_v22 = vpop.f32.mrb[9].mxu0  ;;  %588 = vmatprep.mubr.f32.mxu0 %v12002_v0  ;;  %v9588_v15 = vpack.c.bf16 %v1063_v12, %v1055_v11  ;;  %v9667_v11 = vpack.c.bf16 %v1159_v2, %v1151_v1  ;;  %v1158_v12 = vld [vmem:[#allocation7 + $0x680] sm:$0xff] }
 0x129   :  { %v9534_v23 = vadd.f32 %v9513_v50, %v387_v20  ;;  %v380_v24 = vadd.f32 %v209_v22, %v201_v14  ;;  %v1079_v20 = vld [vmem:[#allocation7 + $0x408] sm:$0xff] }
 0x12a   :  { %12317 = vst [vmem:[#allocation19_spill] sm:$0xff] %v9588_v15  ;;  %12332 = vst [vmem:[#allocation34_spill] sm:$0xff] %v9667_v11 }
 0x12b   :  { %v388_v25 = vadd.f32 %v6651_v9, %v380_v24  ;;  %v213_v26 = vpop.f32.mrb[10].mxu0  ;;  %6534 = vmatmul.mubr.msk.f32.gmra.mrb[22].mxu0 %vm92_vm0, %v9534_v23  ;;  %v1046_v9 = vld [vmem:[#allocation7 + $0x300] sm:$0xff] }
 0x12c   :  { %v215_v27 = vpop.f32.mrb[11].mxu0  ;;  %594 = vmatprep.mubr.f32.mxu0 %v12002_v0  ;;  %v9584_v14 = vpack.c.bf16 %v1046_v9, %v1038_v8  ;;  %v1070_v24 = vld [vmem:[#allocation7 + $0x3c0] sm:$0xff] }
 0x12d   :  { %v9540_v28 = vadd.f32 %v9513_v50, %v388_v25  ;;  %v381_v29 = vadd.f32 %v215_v27, %v207_v21  ;;  %v1078_v25 = vld [vmem:[#allocation7 + $0x400] sm:$0xff]  ;;  %v1095_v27 = vld [vmem:[#allocation7 + $0x488] sm:$0xff] }
 0x12e   :  { %12316 = vst [vmem:[#allocation18_spill] sm:$0xff] %v9584_v14  ;;  %v1150_v9 = vld [vmem:[#allocation7 + $0x640] sm:$0xff] }
 0x12f   :  { %v389_v30 = vadd.f32 %v381_v29, %v326_v19  ;;  %v219_v31 = vpop.f32.mrb[12].mxu0  ;;  %6535 = vmatmul.mubr.msk.f32.gmra.mrb[24].mxu0 %vm92_vm0, %v9540_v28  ;;  %v1071_v19 = vld [vmem:[#allocation7 + $0x3c8] sm:$0xff]  ;;  %v9609_v29 = vpack.c.bf16 %v1078_v25, %v1070_v24  ;;  %v1073_v24 = vld [vmem:[#allocation7 + $0x3d8] sm:$0xff] }
 0x130   :  { %v221_v32 = vpop.f32.mrb[13].mxu0  ;;  %600 = vmatprep.mubr.f32.mxu0 %v12002_v0  ;;  %v9601_v22 = vpack.c.bf16 %v1079_v20, %v1071_v19  ;;  %v1167_v19 = vld [vmem:[#allocation7 + $0x6c8] sm:$0xff]  ;;  %v1081_v25 = vld [vmem:[#allocation7 + $0x418] sm:$0xff] }
 0x131   :  { %v9546_v34 = vadd.f32 %v9513_v50, %v389_v30  ;;  %v382_v35 = vadd.f32 %v221_v32, %v213_v26  ;;  %v1087_v26 = vld [vmem:[#allocation7 + $0x448] sm:$0xff]  ;;  %12320 = vst [vmem:[#allocation22_spill] sm:$0xff] %v9609_v29  ;;  %v1094_v32 = vld [vmem:[#allocation7 + $0x480] sm:$0xff]  ;;  %v9688_v38 = vpack.c.bf16 %v1081_v25, %v1073_v24  ;;  %v1129_v24 = vld [vmem:[#allocation7 + $0x598] sm:$0xff] }
 0x132   :  { %12319 = vst [vmem:[#allocation21_spill] sm:$0xff] %v9601_v22  ;;  %v9613_v30 = vpack.c.bf16 %v1095_v27, %v1087_v26  ;;  %v1175_v20 = vld [vmem:[#allocation7 + $0x708] sm:$0xff]  ;;  %v9679_v26 = vpack.c.bf16 %v1158_v12, %v1150_v9  ;;  %v1206_v9 = vld [vmem:[#allocation7 + $0x800] sm:$0xff]  ;;  %v1104_v12 = vld [vmem:[#allocation7 + $0x4d0] sm:$0xff] }
 0x133   :  { %v390_v40 = vadd.f32 %v6654_v16, %v382_v35  ;;  %6536 = vmatmul.mubr.msk.f32.gmra.mrb[26].mxu0 %vm92_vm0, %v9546_v34  ;;  %v225_v41 = vpop.f32.mrb[14].mxu0  ;;  %v1054_v16 = vld [vmem:[#allocation7 + $0x340] sm:$0xff]  ;;  %v1111_v35 = vld [vmem:[#allocation7 + $0x508] sm:$0xff]  ;;  %12337 = vst [vmem:[#allocation39_spill] sm:$0xff] %v9688_v38 }
 0x134   :  { %v227_v45 = vpop.f32.mrb[15].mxu0  ;;  %683 = vmatprep.mubr.f32.mxu0 %v12002_v0  ;;  %v9597_v21 = vpack.c.bf16 %v1062_v18, %v1054_v16  ;;  %12321 = vst [vmem:[#allocation23_spill] sm:$0xff] %v9613_v30  ;;  %v9625_v37 = vpack.c.bf16 %v1111_v35, %v1103_v33  ;;  %v1127_v41 = vld [vmem:[#allocation7 + $0x588] sm:$0xff]  ;;  %v1056_v16 = vld [vmem:[#allocation7 + $0x350] sm:$0xff]  ;;  %12334 = vst [vmem:[#allocation36_spill] sm:$0xff] %v9679_v26 }
 0x135   :  { %v9552_v48 = vadd.f32 %v9513_v50, %v390_v40  ;;  %v383_v49 = vadd.f32 %v227_v45, %v219_v31  ;;  %v1086_v31 = vld [vmem:[#allocation7 + $0x440] sm:$0xff]  ;;  %v1119_v40 = vld [vmem:[#allocation7 + $0x548] sm:$0xff]  ;;  %v1072_v35 = vld [vmem:[#allocation7 + $0x3d0] sm:$0xff] }
 0x136   :  { %12318 = vst [vmem:[#allocation20_spill] sm:$0xff] %v9597_v21  ;;  %v9621_v36 = vpack.c.bf16 %v1094_v32, %v1086_v31  ;;  %12323 = vst [vmem:[#allocation25_spill] sm:$0xff] %v9625_v37  ;;  %v9637_v44 = vpack.c.bf16 %v1127_v41, %v1119_v40  ;;  %v1126_v45 = vld [vmem:[#allocation7 + $0x580] sm:$0xff]  ;;  %v9685_v32 = vpack.c.bf16 %v1175_v20, %v1167_v19  ;;  %v1191_v40 = vld [vmem:[#allocation7 + $0x788] sm:$0xff] }
 0x137   :  { %v9555_v58 = vadd.f32 %v9513_v50, %v383_v49  ;;  %6537 = vmatmul.mubr.msk.f32.vlgmr.msra.gmra.mrb[8].mxu1 %vm92_vm0, %v9552_v48  ;;  %6539 = vmatmul.mubr.msk.f32.vlgmr.msra.gmra.mrb[28].mxu0 %vm92_vm0, %v9516_v56  ;;  %v1030_v50 = vld [vmem:[#allocation7 + $0x280] sm:$0xff]  ;;  %v1135_v49 = vld [vmem:[#allocation7 + $0x5c8] sm:$0xff]  ;;  %v9645_v54 = vpack.c.bf16 %v1126_v45, %v1118_v43  ;;  %v1089_v41 = vld [vmem:[#allocation7 + $0x458] sm:$0xff] }
 0x138   :  { %6690 = vmatpush1.bf16.msra.mxu1 %v6689_v46  ;;  %6698 = vmatpush1.bf16.msra.mxu0 %v6697_v47  ;;  %v9570_v6 = vpack.c.bf16 %v1030_v50, %v1022_v63  ;;  %12322 = vst [vmem:[#allocation24_spill] sm:$0xff] %v9621_v36  ;;  %12325 = vst [vmem:[#allocation27_spill] sm:$0xff] %v9637_v44  ;;  %v1024_v46 = vld [vmem:[#allocation7 + $0x250] sm:$0xff]  ;;  %v9651_v63 = vpack.c.bf16 %v1143_v51, %v1135_v49  ;;  %v1166_v31 = vld [vmem:[#allocation7 + $0x6c0] sm:$0xff] }
 0x139   :  { %612 = vmatprep.mubr.f32.mxu1 %v12002_v0  ;;  %689 = vmatprep.mubr.f32.mxu0 %v12002_v0  ;;  %v1032_v47 = vld [vmem:[#allocation7 + $0x290] sm:$0xff]  ;;  %12326 = vst [vmem:[#allocation28_spill] sm:$0xff] %v9645_v54  ;;  %12336 = vst [vmem:[#allocation38_spill] sm:$0xff] %v9685_v32  ;;  %v1174_v33 = vld [vmem:[#allocation7 + $0x700] sm:$0xff]  ;;  %v9701_v49 = vpack.c.bf16 %v1191_v40, %v1183_v39 }
 0x13a   :  { %6692 = vmatprep.subr.bf16.mxu1 %v6691_v53  ;;  %6700 = vmatprep.subr.bf16.mxu0 %v6699_v57  ;;  %12313 = vst [vmem:[#allocation15_spill] sm:$0xff] %v9570_v6  ;;  %v1049_v53 = vld [vmem:[#allocation7 + $0x318] sm:$0xff]  ;;  %v9647_v55 = vpack.c.bf16 %v1032_v47, %v1024_v46  ;;  %v1134_v57 = vld [vmem:[#allocation7 + $0x5c0] sm:$0xff]  ;;  %12328 = vst [vmem:[#allocation30_spill] sm:$0xff] %v9651_v63  ;;  %v9695_v45 = vpack.c.bf16 %v1174_v33, %v1166_v31 }
 0x13b   :  { %6538 = vmatmul.mubr.msk.f32.gmra.mrb[10].mxu1 %vm92_vm0, %v9555_v58  ;;  %6540 = vmatmul.mubr.msk.f32.gmra.mrb[30].mxu0 %vm92_vm0, %v9522_v10  ;;  %v9653_v50 = vpack.c.bf16 %v1049_v53, %v1041_v52  ;;  %v9661_v5 = vpack.c.bf16 %v1142_v59, %v1134_v57  ;;  %v1097_v43 = vld [vmem:[#allocation7 + $0x498] sm:$0xff]  ;;  %v1182_v47 = vld [vmem:[#allocation7 + $0x740] sm:$0xff]  ;;  %12340 = vst [vmem:[#allocation42_spill] sm:$0xff] %v9701_v49  ;;  %v1088_v52 = vld [vmem:[#allocation7 + $0x450] sm:$0xff] }
 0x13c   :  { %6694 = vmatpush1.bf16.msra.mxu1 %v6693_v61  ;;  %695 = vmatprep.mubr.f32.mxu0 %v12002_v0  ;;  %12327 = vst [vmem:[#allocation29_spill] sm:$0xff] %v9647_v55  ;;  %v1048_v61 = vld [vmem:[#allocation7 + $0x310] sm:$0xff]  ;;  %12338 = vst [vmem:[#allocation40_spill] sm:$0xff] %v9695_v45  ;;  %v1190_v51 = vld [vmem:[#allocation7 + $0x780] sm:$0xff]  ;;  %v9704_v53 = vpack.c.bf16 %v1097_v43, %v1089_v41 }
 0x13d   :  { %796 = vmatprep.mubr.f32.mxu1 %v12002_v0  ;;  %6704 = vmatprep.subr.bf16.mxu1 %v9563_v62  ;;  %12329 = vst [vmem:[#allocation31_spill] sm:$0xff] %v9653_v50  ;;  %12330 = vst [vmem:[#allocation32_spill] sm:$0xff] %v9661_v5  ;;  %v9663_v8 = vpack.c.bf16 %v1048_v61, %v1040_v60  ;;  %v1199_v57 = vld [vmem:[#allocation7 + $0x7c8] sm:$0xff]  ;;  %v1105_v60 = vld [vmem:[#allocation7 + $0x4d8] sm:$0xff]  ;;  %v9710_v1 = vpack.c.bf16 %v1190_v51, %v1182_v47 }
 0x13e   :  { %6702 = vmatpush1.bf16.msra.mxu0 %v6701_v3  ;;  %v1057_v3 = vld [vmem:[#allocation7 + $0x358] sm:$0xff]  ;;  %12341 = vst [vmem:[#allocation43_spill] sm:$0xff] %v9704_v53  ;;  %v1207_v59 = vld [vmem:[#allocation7 + $0x808] sm:$0xff]  ;;  %v1214_v33 = vld [vmem:[#allocation7 + $0x840] sm:$0xff] }
 0x13f   :  { %6541 = vmatmul.mubr.msk.f32.gmra.mrb[32].mxu0 %vm92_vm0, %v9528_v17  ;;  %6547 = vmatmul.mubr.msk.f32.vlgmr.msra.gmra.mrb[12].mxu1 %vm92_vm0, %v9516_v56  ;;  %12331 = vst [vmem:[#allocation33_spill] sm:$0xff] %v9663_v8  ;;  %v9671_v18 = vpack.c.bf16 %v1065_v4, %v1057_v3  ;;  %v1113_v61 = vld [vmem:[#allocation7 + $0x518] sm:$0xff]  ;;  %12342 = vst [vmem:[#allocation44_spill] sm:$0xff] %v9710_v1  ;;  %v1198_v3 = vld [vmem:[#allocation7 + $0x7c0] sm:$0xff]  ;;  %v9716_v4 = vpack.c.bf16 %v1207_v59, %v1199_v57 }
 0x140   :  { %6706 = vmatpush1.bf16.msra.mxu1 %v9570_v6  ;;  %701 = vmatprep.mubr.f32.mxu0 %v12002_v0  ;;  %v1223_v19 = vld [vmem:[#allocation7 + $0x888] sm:$0xff]  ;;  %v1121_v20 = vld [vmem:[#allocation7 + $0x558] sm:$0xff]  ;;  %v9725_v25 = vpack.c.bf16 %v1206_v9, %v1198_v3  ;;  %v1120_v39 = vld [vmem:[#allocation7 + $0x550] sm:$0xff] }
 0x141   :  { %802 = vmatprep.mubr.f32.mxu1 %v12002_v0  ;;  %6708 = vmatprep.subr.bf16.mxu1 %v9574_v7  ;;  %12333 = vst [vmem:[#allocation35_spill] sm:$0xff] %v9671_v18  ;;  %12344 = vst [vmem:[#allocation46_spill] sm:$0xff] %v9716_v4  ;;  %v9734_v40 = vpack.c.bf16 %v1129_v24, %v1121_v20  ;;  %v1231_v41 = vld [vmem:[#allocation7 + $0x8c8] sm:$0xff]  ;;  %v1137_v47 = vld [vmem:[#allocation7 + $0x5d8] sm:$0xff] }
 0x142   :  { %6768 = vmatprep.subr.bf16.mxu0 %v9576_v13  ;;  %12346 = vst [vmem:[#allocation48_spill] sm:$0xff] %v9725_v25  ;;  %v1239_v43 = vld [vmem:[#allocation7 + $0x908] sm:$0xff]  ;;  %v1145_v51 = vld [vmem:[#allocation7 + $0x618] sm:$0xff]  ;;  %v1230_v57 = vld [vmem:[#allocation7 + $0x8c0] sm:$0xff] }
 0x143   :  { %6542 = vmatmul.mubr.msk.f32.gmra.mrb[34].mxu0 %vm92_vm0, %v9534_v23  ;;  %6548 = vmatmul.mubr.msk.f32.gmra.mrb[14].mxu1 %vm92_vm0, %v9522_v10  ;;  %12349 = vst [vmem:[#allocation51_spill] sm:$0xff] %v9734_v40  ;;  %v1238_v59 = vld [vmem:[#allocation7 + $0x900] sm:$0xff]  ;;  %v1247_v3 = vld [vmem:[#allocation7 + $0x948] sm:$0xff]  ;;  %v9749_v9 = vpack.c.bf16 %v1145_v51, %v1137_v47  ;;  %v1169_v47 = vld [vmem:[#allocation7 + $0x6d8] sm:$0xff] }
 0x144   :  { %6710 = vmatpush1.bf16.msra.mxu1 %v9584_v14  ;;  %707 = vmatprep.mubr.f32.mxu0 %v12002_v0  ;;  %v1246_v24 = vld [vmem:[#allocation7 + $0x940] sm:$0xff]  ;;  %v1177_v51 = vld [vmem:[#allocation7 + $0x718] sm:$0xff] }
 0x145   :  { %808 = vmatprep.mubr.f32.mxu1 %v12002_v0  ;;  %6712 = vmatprep.subr.bf16.mxu1 %v9588_v15  ;;  %12353 = vst [vmem:[#allocation55_spill] sm:$0xff] %v9749_v9 }
 0x147   :  { %6543 = vmatmul.mubr.msk.f32.gmra.mrb[36].mxu0 %vm92_vm0, %v9540_v28  ;;  %6549 = vmatmul.mubr.msk.f32.gmra.mrb[16].mxu1 %vm92_vm0, %v9528_v17 }
 0x148   :  { %6714 = vmatpush1.bf16.msra.mxu1 %v9597_v21  ;;  %713 = vmatprep.mubr.f32.mxu0 %v12002_v0 }
 0x149   :  { %814 = vmatprep.mubr.f32.mxu1 %v12002_v0  ;;  %6716 = vmatprep.subr.bf16.mxu1 %v9601_v22 }
 0x14b   :  { %6544 = vmatmul.mubr.msk.f32.gmra.mrb[38].mxu0 %vm92_vm0, %v9546_v34  ;;  %6550 = vmatmul.mubr.msk.f32.gmra.mrb[18].mxu1 %vm92_vm0, %v9534_v23 }
 0x14c   :  { %6718 = vmatpush1.bf16.msra.mxu1 %v9609_v29  ;;  %719 = vmatprep.mubr.f32.mxu0 %v12002_v0 }
 0x14d   :  { %820 = vmatprep.mubr.f32.mxu1 %v12002_v0  ;;  %6720 = vmatprep.subr.bf16.mxu1 %v9613_v30 }
 0x14f   :  { %6545 = vmatmul.mubr.msk.f32.gmra.mrb[40].mxu0 %vm92_vm0, %v9552_v48  ;;  %6551 = vmatmul.mubr.msk.f32.gmra.mrb[20].mxu1 %vm92_vm0, %v9540_v28 }
 0x150   :  { %6722 = vmatpush1.bf16.msra.mxu1 %v9621_v36  ;;  %725 = vmatprep.mubr.f32.mxu0 %v12002_v0 }
 0x151   :  { %826 = vmatprep.mubr.f32.mxu1 %v12002_v0  ;;  %6724 = vmatprep.subr.bf16.mxu1 %v9625_v37 }
 0x153   :  { %6546 = vmatmul.mubr.msk.f32.gmra.mrb[42].mxu0 %vm92_vm0, %v9555_v58  ;;  %6552 = vmatmul.mubr.msk.f32.gmra.mrb[22].mxu1 %vm92_vm0, %v9546_v34 }
 0x154   :  { %6726 = vmatpush1.bf16.msra.mxu1 %v9633_v42  ;;  %832 = vmatprep.mubr.f32.mxu1 %v12002_v0 }
 0x155   :  { %909 = vmatprep.mubr.f32.mxu0 %v12002_v0  ;;  %6728 = vmatprep.subr.bf16.mxu1 %v9637_v44 }
 0x157   :  { %6553 = vmatmul.mubr.msk.f32.gmra.mrb[24].mxu1 %vm92_vm0, %v9552_v48  ;;  %6555 = vmatmul.mubr.msk.f32.vlgmr.msra.gmra.mrb[44].mxu0 %vm92_vm0, %v9516_v56  ;;  %v1064_v56 = vld [vmem:[#allocation7 + $0x390] sm:$0xff] }
 0x158   :  { %6730 = vmatpush1.bf16.msra.mxu1 %v9645_v54  ;;  %6770 = vmatpush1.bf16.msra.mxu0 %v9647_v55  ;;  %v9681_v27 = vpack.c.bf16 %v1064_v56, %v1056_v16  ;;  %v9719_v16 = vpack.c.bf16 %v1113_v61, %v1105_v60  ;;  %v1215_v56 = vld [vmem:[#allocation7 + $0x848] sm:$0xff]  ;;  %v9746_v60 = vpack.c.bf16 %v1239_v43, %v1231_v41  ;;  %v1136_v61 = vld [vmem:[#allocation7 + $0x5d0] sm:$0xff] }
 0x159   :  { %838 = vmatprep.mubr.f32.mxu1 %v12002_v0  ;;  %915 = vmatprep.mubr.f32.mxu0 %v12002_v0  ;;  %v1263_v41 = vld [vmem:[#allocation7 + $0x9c8] sm:$0xff] }
 0x15a   :  { %6732 = vmatprep.subr.bf16.mxu1 %v9651_v63  ;;  %6772 = vmatprep.subr.bf16.mxu0 %v9653_v50  ;;  %12335 = vst [vmem:[#allocation37_spill] sm:$0xff] %v9681_v27  ;;  %12345 = vst [vmem:[#allocation47_spill] sm:$0xff] %v9719_v16  ;;  %v1271_v43 = vld [vmem:[#allocation7 + $0xa08] sm:$0xff] }
 0x15b   :  { %6554 = vmatmul.mubr.msk.f32.gmra.mrb[26].mxu1 %vm92_vm0, %v9555_v58  ;;  %6556 = vmatmul.mubr.msk.f32.gmra.mrb[46].mxu0 %vm92_vm0, %v9522_v10  ;;  %v1080_v10 = vld [vmem:[#allocation7 + $0x410] sm:$0xff]  ;;  %12352 = vst [vmem:[#allocation54_spill] sm:$0xff] %v9746_v60 }
 0x15c   :  { %6734 = vmatpush1.bf16.msra.mxu1 %v9661_v5  ;;  %6774 = vmatpush1.bf16.msra.mxu0 %v9663_v8  ;;  %v9697_v46 = vpack.c.bf16 %v1080_v10, %v1072_v35  ;;  %v9731_v35 = vpack.c.bf16 %v1223_v19, %v1215_v56  ;;  %v1222_v10 = vld [vmem:[#allocation7 + $0x880] sm:$0xff]  ;;  %v1161_v56 = vld [vmem:[#allocation7 + $0x698] sm:$0xff]  ;;  %v9755_v19 = vpack.c.bf16 %v1238_v59, %v1230_v57 }
 0x15d   :  { %921 = vmatprep.mubr.f32.mxu0 %v12002_v0  ;;  %6736 = vmatprep.subr.bf16.mxu1 %v9667_v11 }
 0x15e   :  { %6776 = vmatprep.subr.bf16.mxu0 %v9671_v18  ;;  %1415 = vmatprep.mubr.f32.mxu1 %v12002_v0  ;;  %12339 = vst [vmem:[#allocation41_spill] sm:$0xff] %v9697_v46  ;;  %12348 = vst [vmem:[#allocation50_spill] sm:$0xff] %v9731_v35 }
 0x15f   :  { %6557 = vmatmul.mubr.msk.f32.gmra.mrb[48].mxu0 %vm92_vm0, %v9528_v17  ;;  %v1096_v17 = vld [vmem:[#allocation7 + $0x490] sm:$0xff]  ;;  %12354 = vst [vmem:[#allocation56_spill] sm:$0xff] %v9755_v19 }
 0x160   :  { %6738 = vmatpush1.bf16.msra.mxu1 %v9679_v26  ;;  %6778 = vmatpush1.bf16.msra.mxu0 %v9681_v27  ;;  %v9712_v2 = vpack.c.bf16 %v1096_v17, %v1088_v52  ;;  %v9740_v52 = vpack.c.bf16 %v1222_v10, %v1214_v33  ;;  %v1254_v33 = vld [vmem:[#allocation7 + $0x980] sm:$0xff] }
 0x161   :  { %927 = vmatprep.mubr.f32.mxu0 %v12002_v0  ;;  %6740 = vmatprep.subr.bf16.mxu1 %v9685_v32  ;;  %v9770_v57 = vpack.c.bf16 %v1254_v33, %v1246_v24  ;;  %v12362_v24 = vmov 0.0  }
 0x162   :  { %6780 = vmatprep.subr.bf16.mxu0 %v9688_v38  ;;  %12343 = vst [vmem:[#allocation45_spill] sm:$0xff] %v9712_v2  ;;  %12350 = vst [vmem:[#allocation52_spill] sm:$0xff] %v9740_v52 }
 0x163   :  { %6558 = vmatmul.mubr.msk.f32.gmra.mrb[50].mxu0 %vm92_vm0, %v9534_v23  ;;  %v1112_v23 = vld [vmem:[#allocation7 + $0x510] sm:$0xff]  ;;  %12358 = vst [vmem:[#allocation60_spill] sm:$0xff] %v9770_v57 }
 0x164   :  { %6742 = vmatpush1.bf16.msra.mxu1 %v9695_v45  ;;  %6782 = vmatpush1.bf16.msra.mxu0 %v9697_v46  ;;  %v9727_v31 = vpack.c.bf16 %v1112_v23, %v1104_v12  ;;  %v1255_v12 = vld [vmem:[#allocation7 + $0x988] sm:$0xff]  ;;  %v1153_v23 = vld [vmem:[#allocation7 + $0x658] sm:$0xff] }
 0x165   :  { %933 = vmatprep.mubr.f32.mxu0 %v12002_v0  ;;  %6744 = vmatprep.subr.bf16.mxu1 %v9701_v49  ;;  %v9761_v10 = vpack.c.bf16 %v1255_v12, %v1247_v3  ;;  %v9776_v3 = vpack.c.bf16 %v1271_v43, %v1263_v41  ;;  %v9778_v12 = vpack.c.bf16 %v1177_v51, %v1169_v47  ;;  %v1192_v41 = vld [vmem:[#allocation7 + $0x790] sm:$0xff]  ;;  %v1026_v51 = vld [vmem:[#allocation7 + $0x260] sm:$0xff] }
 0x166   :  { %6784 = vmatprep.subr.bf16.mxu0 %v9704_v53  ;;  %12347 = vst [vmem:[#allocation49_spill] sm:$0xff] %v9727_v31 }
 0x167   :  { %6559 = vmatmul.mubr.msk.f32.gmra.mrb[52].mxu0 %vm92_vm0, %v9540_v28  ;;  %v1128_v28 = vld [vmem:[#allocation7 + $0x590] sm:$0xff]  ;;  %12356 = vst [vmem:[#allocation58_spill] sm:$0xff] %v9761_v10  ;;  %12360 = vst [vmem:[#allocation62_spill] sm:$0xff] %v9776_v3 }
 0x168   :  { %6746 = vmatpush1.bf16.msra.mxu1 %v9710_v1  ;;  %6786 = vmatpush1.bf16.msra.mxu0 %v9712_v2  ;;  %v9742_v17 = vpack.c.bf16 %v1128_v28, %v1120_v39  ;;  %v9763_v39 = vpack.c.bf16 %v1161_v56, %v1153_v23  ;;  %v1152_v28 = vld [vmem:[#allocation7 + $0x650] sm:$0xff]  ;;  %12361 = vst [vmem:[#allocation63_spill] sm:$0xff] %v9778_v12  ;;  %v1185_v56 = vld [vmem:[#allocation7 + $0x758] sm:$0xff] }
 0x169   :  { %939 = vmatprep.mubr.f32.mxu0 %v12002_v0  ;;  %6748 = vmatprep.subr.bf16.mxu1 %v9716_v4  ;;  %v1168_v23 = vld [vmem:[#allocation7 + $0x6d0] sm:$0xff] }
 0x16a   :  { %6788 = vmatprep.subr.bf16.mxu0 %v9719_v16  ;;  %12351 = vst [vmem:[#allocation53_spill] sm:$0xff] %v9742_v17  ;;  %12357 = vst [vmem:[#allocation59_spill] sm:$0xff] %v9763_v39 }
 0x16b   :  { %6560 = vmatmul.mubr.msk.f32.gmra.mrb[54].mxu0 %vm92_vm0, %v9546_v34  ;;  %v1144_v34 = vld [vmem:[#allocation7 + $0x610] sm:$0xff] }
 0x16c   :  { %6750 = vmatpush1.bf16.msra.mxu1 %v9725_v25  ;;  %6790 = vmatpush1.bf16.msra.mxu0 %v9727_v31  ;;  %v9757_v20 = vpack.c.bf16 %v1144_v34, %v1136_v61  ;;  %v1262_v61 = vld [vmem:[#allocation7 + $0x9c0] sm:$0xff] }
 0x16d   :  { %945 = vmatprep.mubr.f32.mxu0 %v12002_v0  ;;  %6752 = vmatprep.subr.bf16.mxu1 %v9731_v35  ;;  %v1270_v34 = vld [vmem:[#allocation7 + $0xa00] sm:$0xff] }
 0x16e   :  { %6792 = vmatprep.subr.bf16.mxu0 %v9734_v40  ;;  %12355 = vst [vmem:[#allocation57_spill] sm:$0xff] %v9757_v20  ;;  %v9783_v33 = vpack.c.bf16 %v1270_v34, %v1262_v61 }
 0x16f   :  { %6561 = vmatmul.mubr.msk.f32.gmra.mrb[56].mxu0 %vm92_vm0, %v9552_v48  ;;  %v1160_v48 = vld [vmem:[#allocation7 + $0x690] sm:$0xff] }
 0x170   :  { %6754 = vmatpush1.bf16.msra.mxu1 %v9740_v52  ;;  %6794 = vmatpush1.bf16.msra.mxu0 %v9742_v17  ;;  %v9772_v59 = vpack.c.bf16 %v1160_v48, %v1152_v28  ;;  %12363 = vst [vmem:[#allocation64_spill] sm:$0xff] %v9783_v33  ;;  %v1184_v48 = vld [vmem:[#allocation7 + $0x750] sm:$0xff] }
 0x171   :  { %951 = vmatprep.mubr.f32.mxu0 %v12002_v0  ;;  %6756 = vmatprep.subr.bf16.mxu1 %v9746_v60  ;;  %v1193_v0 = vld [vmem:[#allocation7 + $0x798] sm:$0xff]  ;;  %v1043_v60 = vld [vmem:[#allocation7 + $0x2e8] sm:$0xff]  ;;  %v9795_v61 = vpack.c.bf16 %v1192_v41, %v1184_v48  ;;  %v1058_v41 = vld [vmem:[#allocation7 + $0x360] sm:$0xff] }
 0x172   :  { %6796 = vmatprep.subr.bf16.mxu0 %v9749_v9  ;;  %12359 = vst [vmem:[#allocation61_spill] sm:$0xff] %v9772_v59  ;;  %v9789_v43 = vpack.c.bf16 %v1193_v0, %v1185_v56  ;;  %v1050_v56 = vld [vmem:[#allocation7 + $0x320] sm:$0xff] }
 0x173   :  { %6562 = vmatmul.mubr.msk.f32.gmra.mrb[58].mxu0 %vm92_vm0, %v9555_v58  ;;  %v1176_v58 = vld [vmem:[#allocation7 + $0x710] sm:$0xff]  ;;  %12367 = vst [vmem:[#allocation68_spill] sm:$0xff] %v9795_v61 }
 0x174   :  { %6758 = vmatpush1.bf16.msra.mxu1 %v9755_v19  ;;  %6798 = vmatpush1.bf16.msra.mxu0 %v9757_v20  ;;  %v1027_v19 = vld [vmem:[#allocation7 + $0x268] sm:$0xff]  ;;  %v9785_v28 = vpack.c.bf16 %v1176_v58, %v1168_v23  ;;  %12365 = vst [vmem:[#allocation66_spill] sm:$0xff] %v9789_v43  ;;  %v1200_v23 = vld [vmem:[#allocation7 + $0x7d0] sm:$0xff] }
 0x175   :  { %6760 = vmatprep.subr.bf16.mxu1 %v9761_v10  ;;  %6800 = vmatprep.subr.bf16.mxu0 %v9763_v39  ;;  %v1035_v20 = vld [vmem:[#allocation7 + $0x2a8] sm:$0xff]  ;;  %v1034_v10 = vld [vmem:[#allocation7 + $0x2a0] sm:$0xff]  ;;  %v1201_v39 = vld [vmem:[#allocation7 + $0x7d8] sm:$0xff] }
 0x176   :  { %1486 = vmatprep.mubr.f32.mxu0 %v12362_v24  ;;  %12364 = vst [vmem:[#allocation65_spill] sm:$0xff] %v9785_v28  ;;  %v9791_v47 = vpack.c.bf16 %v1035_v20, %v1027_v19  ;;  %v9797_v34 = vpack.c.bf16 %v1034_v10, %v1026_v51  ;;  %v1208_v58 = vld [vmem:[#allocation7 + $0x810] sm:$0xff]  ;;  %v1042_v20 = vld [vmem:[#allocation7 + $0x2e0] sm:$0xff] }
 0x177   :  { %v9808_v10 = vpack.c.bf16 %v1208_v58, %v1200_v23  ;;  %v9810_v48 = vpack.c.bf16 %v1050_v56, %v1042_v20  ;;  %v1066_v51 = vld [vmem:[#allocation7 + $0x3a0] sm:$0xff] }
 0x178   :  { %6762 = vmatpush1.bf16.msra.mxu1 %v9770_v57  ;;  %6802 = vmatpush1.bf16.msra.mxu0 %v9772_v59  ;;  %12366 = vst [vmem:[#allocation67_spill] sm:$0xff] %v9791_v47  ;;  %v1209_v57 = vld [vmem:[#allocation7 + $0x818] sm:$0xff]  ;;  %v1051_v59 = vld [vmem:[#allocation7 + $0x328] sm:$0xff]  ;;  %12368 = vst [vmem:[#allocation69_spill] sm:$0xff] %v9797_v34  ;;  %v9823_v58 = vpack.c.bf16 %v1066_v51, %v1058_v41 }
 0x179   :  { %6764 = vmatprep.subr.bf16.mxu1 %v9776_v3  ;;  %6804 = vmatprep.subr.bf16.mxu0 %v9778_v12  ;;  %v9801_v0 = vpack.c.bf16 %v1209_v57, %v1201_v39  ;;  %v9803_v19 = vpack.c.bf16 %v1051_v59, %v1043_v60  ;;  %v1217_v3 = vld [vmem:[#allocation7 + $0x858] sm:$0xff]  ;;  %v1059_v12 = vld [vmem:[#allocation7 + $0x368] sm:$0xff]  ;;  %12371 = vst [vmem:[#allocation72_spill] sm:$0xff] %v9808_v10  ;;  %12372 = vst [vmem:[#allocation73_spill] sm:$0xff] %v9810_v48 }
 0x17a   :  { %v1216_v39 = vld [vmem:[#allocation7 + $0x850] sm:$0xff]  ;;  %12376 = vst [vmem:[#allocation77_spill] sm:$0xff] %v9823_v58  ;;  %v1074_v20 = vld [vmem:[#allocation7 + $0x3e0] sm:$0xff] }
 0x17b   :  { %12369 = vst [vmem:[#allocation70_spill] sm:$0xff] %v9801_v0  ;;  %12370 = vst [vmem:[#allocation71_spill] sm:$0xff] %v9803_v19  ;;  %v1224_v57 = vld [vmem:[#allocation7 + $0x890] sm:$0xff]  ;;  %v1082_v56 = vld [vmem:[#allocation7 + $0x420] sm:$0xff] }
 0x17c   :  { %6766 = vmatpush1.bf16.msra.mxu1 %v9783_v33  ;;  %6806 = vmatpush1.bf16.msra.mxu0 %v9785_v28  ;;  %v1225_v33 = vld [vmem:[#allocation7 + $0x898] sm:$0xff]  ;;  %v1067_v28 = vld [vmem:[#allocation7 + $0x3a8] sm:$0xff]  ;;  %v9821_v23 = vpack.c.bf16 %v1224_v57, %v1216_v39  ;;  %v9835_v57 = vpack.c.bf16 %v1082_v56, %v1074_v20  ;;  %v1248_v41 = vld [vmem:[#allocation7 + $0x950] sm:$0xff] }
 0x17d   :  { %6808 = vmatprep.subr.bf16.mxu0 %v9789_v43  ;;  %6832 = vmatprep.subr.bf16.mxu1 %v9791_v47  ;;  %v9814_v60 = vpack.c.bf16 %v1225_v33, %v1217_v3  ;;  %v9816_v59 = vpack.c.bf16 %v1067_v28, %v1059_v12  ;;  %v1233_v47 = vld [vmem:[#allocation7 + $0x8d8] sm:$0xff]  ;;  %v1075_v43 = vld [vmem:[#allocation7 + $0x3e8] sm:$0xff]  ;;  %v1232_v3 = vld [vmem:[#allocation7 + $0x8d0] sm:$0xff] }
 0x17e   :  { %12375 = vst [vmem:[#allocation76_spill] sm:$0xff] %v9821_v23  ;;  %v1240_v33 = vld [vmem:[#allocation7 + $0x910] sm:$0xff]  ;;  %12380 = vst [vmem:[#allocation81_spill] sm:$0xff] %v9835_v57 }
 0x17f   :  { %1416 = vmatmul.mubr.f32.vlgmr.msra.gmra.mrb[28].mxu1 %v12362_v24  ;;  %12373 = vst [vmem:[#allocation74_spill] sm:$0xff] %v9814_v60  ;;  %12374 = vst [vmem:[#allocation75_spill] sm:$0xff] %v9816_v59  ;;  %v9833_v39 = vpack.c.bf16 %v1240_v33, %v1232_v3  ;;  %v1256_v51 = vld [vmem:[#allocation7 + $0x990] sm:$0xff] }
 0x180   :  { %6810 = vmatpush1.bf16.msra.mxu0 %v9795_v61  ;;  %6834 = vmatpush1.bf16.msra.mxu1 %v9797_v34  ;;  %v1241_v61 = vld [vmem:[#allocation7 + $0x918] sm:$0xff]  ;;  %v1083_v34 = vld [vmem:[#allocation7 + $0x428] sm:$0xff]  ;;  %v9845_v3 = vpack.c.bf16 %v1256_v51, %v1248_v41  ;;  %v1264_v20 = vld [vmem:[#allocation7 + $0x9d0] sm:$0xff] }
 0x181   :  { %6812 = vmatprep.subr.bf16.mxu0 %v9801_v0  ;;  %6836 = vmatprep.subr.bf16.mxu1 %v9803_v19  ;;  %v9827_v12 = vpack.c.bf16 %v1241_v61, %v1233_v47  ;;  %v9829_v28 = vpack.c.bf16 %v1083_v34, %v1075_v43  ;;  %v1249_v19 = vld [vmem:[#allocation7 + $0x958] sm:$0xff]  ;;  %v1091_v0 = vld [vmem:[#allocation7 + $0x468] sm:$0xff]  ;;  %12379 = vst [vmem:[#allocation80_spill] sm:$0xff] %v9833_v39  ;;  %v1090_v61 = vld [vmem:[#allocation7 + $0x460] sm:$0xff] }
 0x182   :  { %1557 = vmatprep.mubr.f32.mxu1 %v12362_v24  ;;  %v1098_v34 = vld [vmem:[#allocation7 + $0x4a0] sm:$0xff]  ;;  %12383 = vst [vmem:[#allocation84_spill] sm:$0xff] %v9845_v3  ;;  %v1272_v56 = vld [vmem:[#allocation7 + $0xa10] sm:$0xff] }
 0x183   :  { %12377 = vst [vmem:[#allocation78_spill] sm:$0xff] %v9827_v12  ;;  %12378 = vst [vmem:[#allocation79_spill] sm:$0xff] %v9829_v28  ;;  %v9847_v33 = vpack.c.bf16 %v1098_v34, %v1090_v61  ;;  %v9857_v41 = vpack.c.bf16 %v1272_v56, %v1264_v20  ;;  %v1122_v61 = vld [vmem:[#allocation7 + $0x560] sm:$0xff] }
 0x184   :  { %6814 = vmatpush1.bf16.msra.mxu0 %v9808_v10  ;;  %6838 = vmatpush1.bf16.msra.mxu1 %v9810_v48  ;;  %v1257_v10 = vld [vmem:[#allocation7 + $0x998] sm:$0xff]  ;;  %v1099_v48 = vld [vmem:[#allocation7 + $0x4a8] sm:$0xff]  ;;  %v1130_v34 = vld [vmem:[#allocation7 + $0x5a0] sm:$0xff] }
 0x185   :  { %6816 = vmatprep.subr.bf16.mxu0 %v9814_v60  ;;  %6840 = vmatprep.subr.bf16.mxu1 %v9816_v59  ;;  %v9839_v43 = vpack.c.bf16 %v1257_v10, %v1249_v19  ;;  %v9841_v47 = vpack.c.bf16 %v1099_v48, %v1091_v0  ;;  %v1265_v59 = vld [vmem:[#allocation7 + $0x9d8] sm:$0xff]  ;;  %v1107_v60 = vld [vmem:[#allocation7 + $0x4e8] sm:$0xff]  ;;  %12384 = vst [vmem:[#allocation85_spill] sm:$0xff] %v9847_v33  ;;  %v1106_v10 = vld [vmem:[#allocation7 + $0x4e0] sm:$0xff] }
 0x186   :  { %v1114_v48 = vld [vmem:[#allocation7 + $0x520] sm:$0xff]  ;;  %12387 = vst [vmem:[#allocation88_spill] sm:$0xff] %v9857_v41  ;;  %v9869_v20 = vpack.c.bf16 %v1130_v34, %v1122_v61 }
 0x187   :  { %12381 = vst [vmem:[#allocation82_spill] sm:$0xff] %v9839_v43  ;;  %12382 = vst [vmem:[#allocation83_spill] sm:$0xff] %v9841_v47  ;;  %v9859_v51 = vpack.c.bf16 %v1114_v48, %v1106_v10  ;;  %v1138_v10 = vld [vmem:[#allocation7 + $0x5e0] sm:$0xff] }
 0x188   :  { %6818 = vmatpush1.bf16.msra.mxu0 %v9821_v23  ;;  %6842 = vmatpush1.bf16.msra.mxu1 %v9823_v58  ;;  %v1273_v23 = vld [vmem:[#allocation7 + $0xa18] sm:$0xff]  ;;  %v1115_v58 = vld [vmem:[#allocation7 + $0x528] sm:$0xff]  ;;  %12391 = vst [vmem:[#allocation92_spill] sm:$0xff] %v9869_v20  ;;  %v1146_v48 = vld [vmem:[#allocation7 + $0x620] sm:$0xff] }
 0x189   :  { %6820 = vmatprep.subr.bf16.mxu0 %v9827_v12  ;;  %6844 = vmatprep.subr.bf16.mxu1 %v9829_v28  ;;  %v9851_v0 = vpack.c.bf16 %v1273_v23, %v1265_v59  ;;  %v9853_v19 = vpack.c.bf16 %v1115_v58, %v1107_v60  ;;  %v1123_v28 = vld [vmem:[#allocation7 + $0x568] sm:$0xff]  ;;  %v1029_v12 = vld [vmem:[#allocation7 + $0x278] sm:$0xff]  ;;  %12388 = vst [vmem:[#allocation89_spill] sm:$0xff] %v9859_v51  ;;  %v1028_v23 = vld [vmem:[#allocation7 + $0x270] sm:$0xff] }
 0x18a   :  { %v1036_v58 = vld [vmem:[#allocation7 + $0x2b0] sm:$0xff]  ;;  %v9882_v61 = vpack.c.bf16 %v1146_v48, %v1138_v10 }
 0x18b   :  { %12385 = vst [vmem:[#allocation86_spill] sm:$0xff] %v9851_v0  ;;  %12386 = vst [vmem:[#allocation87_spill] sm:$0xff] %v9853_v19  ;;  %v9871_v56 = vpack.c.bf16 %v1036_v58, %v1028_v23  ;;  %v1060_v23 = vld [vmem:[#allocation7 + $0x370] sm:$0xff] }
 0x18c   :  { %6822 = vmatpush1.bf16.msra.mxu0 %v9833_v39  ;;  %6846 = vmatpush1.bf16.msra.mxu1 %v9835_v57  ;;  %v1131_v39 = vld [vmem:[#allocation7 + $0x5a8] sm:$0xff]  ;;  %v1037_v57 = vld [vmem:[#allocation7 + $0x2b8] sm:$0xff]  ;;  %12395 = vst [vmem:[#allocation96_spill] sm:$0xff] %v9882_v61  ;;  %v1068_v58 = vld [vmem:[#allocation7 + $0x3b0] sm:$0xff] }
 0x18d   :  { %6824 = vmatprep.subr.bf16.mxu0 %v9839_v43  ;;  %6848 = vmatprep.subr.bf16.mxu1 %v9841_v47  ;;  %v9863_v60 = vpack.c.bf16 %v1131_v39, %v1123_v28  ;;  %v9865_v59 = vpack.c.bf16 %v1037_v57, %v1029_v12  ;;  %v1139_v47 = vld [vmem:[#allocation7 + $0x5e8] sm:$0xff]  ;;  %v1045_v43 = vld [vmem:[#allocation7 + $0x2f8] sm:$0xff]  ;;  %12392 = vst [vmem:[#allocation93_spill] sm:$0xff] %v9871_v56  ;;  %v1044_v39 = vld [vmem:[#allocation7 + $0x2f0] sm:$0xff] }
 0x18e   :  { %v1052_v57 = vld [vmem:[#allocation7 + $0x330] sm:$0xff]  ;;  %v9897_v48 = vpack.c.bf16 %v1068_v58, %v1060_v23  ;;  %v1186_v23 = vld [vmem:[#allocation7 + $0x760] sm:$0xff] }
 0x18f   :  { %12389 = vst [vmem:[#allocation90_spill] sm:$0xff] %v9863_v60  ;;  %12390 = vst [vmem:[#allocation91_spill] sm:$0xff] %v9865_v59  ;;  %v9884_v34 = vpack.c.bf16 %v1052_v57, %v1044_v39  ;;  %v1076_v39 = vld [vmem:[#allocation7 + $0x3f0] sm:$0xff]  ;;  %v1194_v58 = vld [vmem:[#allocation7 + $0x7a0] sm:$0xff] }
 0x190   :  { %6826 = vmatpush1.bf16.msra.mxu0 %v9845_v3  ;;  %6850 = vmatpush1.bf16.msra.mxu1 %v9847_v33  ;;  %v1147_v3 = vld [vmem:[#allocation7 + $0x628] sm:$0xff]  ;;  %v1053_v33 = vld [vmem:[#allocation7 + $0x338] sm:$0xff]  ;;  %12400 = vst [vmem:[#allocation101_spill] sm:$0xff] %v9897_v48  ;;  %v1084_v57 = vld [vmem:[#allocation7 + $0x430] sm:$0xff] }
 0x191   :  { %6828 = vmatprep.subr.bf16.mxu0 %v9851_v0  ;;  %6852 = vmatprep.subr.bf16.mxu1 %v9853_v19  ;;  %v9875_v12 = vpack.c.bf16 %v1147_v3, %v1139_v47  ;;  %v9877_v28 = vpack.c.bf16 %v1053_v33, %v1045_v43  ;;  %v1155_v19 = vld [vmem:[#allocation7 + $0x668] sm:$0xff]  ;;  %v1061_v0 = vld [vmem:[#allocation7 + $0x378] sm:$0xff]  ;;  %12396 = vst [vmem:[#allocation97_spill] sm:$0xff] %v9884_v34  ;;  %v1154_v47 = vld [vmem:[#allocation7 + $0x660] sm:$0xff] }
 0x192   :  { %v1162_v3 = vld [vmem:[#allocation7 + $0x6a0] sm:$0xff] }
 0x193   :  { %12393 = vst [vmem:[#allocation94_spill] sm:$0xff] %v9875_v12  ;;  %12394 = vst [vmem:[#allocation95_spill] sm:$0xff] %v9877_v28  ;;  %v9895_v10 = vpack.c.bf16 %v1162_v3, %v1154_v47  ;;  %v9909_v3 = vpack.c.bf16 %v1084_v57, %v1076_v39  ;;  %v1202_v39 = vld [vmem:[#allocation7 + $0x7e0] sm:$0xff] }
 0x194   :  { %6830 = vmatpush1.bf16.msra.mxu0 %v9857_v41  ;;  %6854 = vmatpush1.bf16.msra.mxu1 %v9859_v51  ;;  %v1163_v41 = vld [vmem:[#allocation7 + $0x6a8] sm:$0xff]  ;;  %v1069_v51 = vld [vmem:[#allocation7 + $0x3b8] sm:$0xff]  ;;  %v1210_v57 = vld [vmem:[#allocation7 + $0x820] sm:$0xff] }
 0x195   :  { %6856 = vmatprep.subr.bf16.mxu1 %v9863_v60  ;;  %6896 = vmatprep.subr.bf16.mxu0 %v9865_v59  ;;  %v9888_v43 = vpack.c.bf16 %v1163_v41, %v1155_v19  ;;  %v9890_v33 = vpack.c.bf16 %v1069_v51, %v1061_v0  ;;  %v1171_v60 = vld [vmem:[#allocation7 + $0x6e8] sm:$0xff]  ;;  %v1077_v59 = vld [vmem:[#allocation7 + $0x3f8] sm:$0xff]  ;;  %12399 = vst [vmem:[#allocation100_spill] sm:$0xff] %v9895_v10  ;;  %v1170_v19 = vld [vmem:[#allocation7 + $0x6e0] sm:$0xff] }
 0x196   :  { %v1178_v41 = vld [vmem:[#allocation7 + $0x720] sm:$0xff]  ;;  %12404 = vst [vmem:[#allocation105_spill] sm:$0xff] %v9909_v3 }
 0x197   :  { %1487 = vmatmul.mubr.f32.vlgmr.msra.gmra.mrb[28].mxu0 %v12362_v24  ;;  %12397 = vst [vmem:[#allocation98_spill] sm:$0xff] %v9888_v43  ;;  %12398 = vst [vmem:[#allocation99_spill] sm:$0xff] %v9890_v33  ;;  %v9907_v47 = vpack.c.bf16 %v1178_v41, %v1170_v19  ;;  %v9919_v19 = vpack.c.bf16 %v1194_v58, %v1186_v23  ;;  %v9931_v23 = vpack.c.bf16 %v1210_v57, %v1202_v39 }
 0x198   :  { %6858 = vmatpush1.bf16.msra.mxu1 %v9869_v20  ;;  %6898 = vmatpush1.bf16.msra.mxu0 %v9871_v56  ;;  %v1179_v20 = vld [vmem:[#allocation7 + $0x728] sm:$0xff]  ;;  %v1085_v56 = vld [vmem:[#allocation7 + $0x438] sm:$0xff] }
 0x199   :  { %6860 = vmatprep.subr.bf16.mxu1 %v9875_v12  ;;  %6900 = vmatprep.subr.bf16.mxu0 %v9877_v28  ;;  %v9901_v0 = vpack.c.bf16 %v1179_v20, %v1171_v60  ;;  %v9903_v51 = vpack.c.bf16 %v1085_v56, %v1077_v59  ;;  %v1187_v12 = vld [vmem:[#allocation7 + $0x768] sm:$0xff]  ;;  %v1093_v28 = vld [vmem:[#allocation7 + $0x478] sm:$0xff]  ;;  %12403 = vst [vmem:[#allocation104_spill] sm:$0xff] %v9907_v47  ;;  %v1092_v20 = vld [vmem:[#allocation7 + $0x470] sm:$0xff] }
 0x19a   :  { %1628 = vmatprep.mubr.f32.mxu0 %v12362_v24  ;;  %v1100_v56 = vld [vmem:[#allocation7 + $0x4b0] sm:$0xff]  ;;  %12407 = vst [vmem:[#allocation108_spill] sm:$0xff] %v9919_v19  ;;  %12411 = vst [vmem:[#allocation112_spill] sm:$0xff] %v9931_v23 }
 0x19b   :  { %12401 = vst [vmem:[#allocation102_spill] sm:$0xff] %v9901_v0  ;;  %12402 = vst [vmem:[#allocation103_spill] sm:$0xff] %v9903_v51  ;;  %v9921_v41 = vpack.c.bf16 %v1100_v56, %v1092_v20  ;;  %v1218_v20 = vld [vmem:[#allocation7 + $0x860] sm:$0xff] }
 0x19c   :  { %6862 = vmatpush1.bf16.msra.mxu1 %v9882_v61  ;;  %6902 = vmatpush1.bf16.msra.mxu0 %v9884_v34  ;;  %v1195_v61 = vld [vmem:[#allocation7 + $0x7a8] sm:$0xff]  ;;  %v1101_v34 = vld [vmem:[#allocation7 + $0x4b8] sm:$0xff]  ;;  %v1226_v56 = vld [vmem:[#allocation7 + $0x8a0] sm:$0xff] }
 0x19d   :  { %6864 = vmatprep.subr.bf16.mxu1 %v9888_v43  ;;  %6904 = vmatprep.subr.bf16.mxu0 %v9890_v33  ;;  %v9913_v60 = vpack.c.bf16 %v1195_v61, %v1187_v12  ;;  %v9915_v59 = vpack.c.bf16 %v1101_v34, %v1093_v28  ;;  %v1203_v43 = vld [vmem:[#allocation7 + $0x7e8] sm:$0xff]  ;;  %v1109_v33 = vld [vmem:[#allocation7 + $0x4f8] sm:$0xff]  ;;  %12408 = vst [vmem:[#allocation109_spill] sm:$0xff] %v9921_v41  ;;  %v1108_v61 = vld [vmem:[#allocation7 + $0x4f0] sm:$0xff] }
 0x19e   :  { %v1116_v34 = vld [vmem:[#allocation7 + $0x530] sm:$0xff]  ;;  %v9943_v39 = vpack.c.bf16 %v1226_v56, %v1218_v20 }
 0x19f   :  { %12405 = vst [vmem:[#allocation106_spill] sm:$0xff] %v9913_v60  ;;  %12406 = vst [vmem:[#allocation107_spill] sm:$0xff] %v9915_v59  ;;  %v9933_v58 = vpack.c.bf16 %v1116_v34, %v1108_v61  ;;  %v1234_v61 = vld [vmem:[#allocation7 + $0x8e0] sm:$0xff] }
 0x1a0   :  { %6866 = vmatpush1.bf16.msra.mxu1 %v9895_v10  ;;  %6906 = vmatpush1.bf16.msra.mxu0 %v9897_v48  ;;  %v1211_v10 = vld [vmem:[#allocation7 + $0x828] sm:$0xff]  ;;  %v1117_v48 = vld [vmem:[#allocation7 + $0x538] sm:$0xff]  ;;  %12415 = vst [vmem:[#allocation116_spill] sm:$0xff] %v9943_v39  ;;  %v1242_v34 = vld [vmem:[#allocation7 + $0x920] sm:$0xff] }
 0x1a1   :  { %6868 = vmatprep.subr.bf16.mxu1 %v9901_v0  ;;  %6908 = vmatprep.subr.bf16.mxu0 %v9903_v51  ;;  %v9925_v12 = vpack.c.bf16 %v1211_v10, %v1203_v43  ;;  %v9927_v28 = vpack.c.bf16 %v1117_v48, %v1109_v33  ;;  %v1219_v0 = vld [vmem:[#allocation7 + $0x868] sm:$0xff]  ;;  %v1125_v51 = vld [vmem:[#allocation7 + $0x578] sm:$0xff]  ;;  %12412 = vst [vmem:[#allocation113_spill] sm:$0xff] %v9933_v58  ;;  %v1124_v10 = vld [vmem:[#allocation7 + $0x570] sm:$0xff] }
 0x1a2   :  { %v1132_v48 = vld [vmem:[#allocation7 + $0x5b0] sm:$0xff]  ;;  %v9955_v20 = vpack.c.bf16 %v1242_v34, %v1234_v61 }
 0x1a3   :  { %12409 = vst [vmem:[#allocation110_spill] sm:$0xff] %v9925_v12  ;;  %12410 = vst [vmem:[#allocation111_spill] sm:$0xff] %v9927_v28  ;;  %v9945_v57 = vpack.c.bf16 %v1132_v48, %v1124_v10  ;;  %v1250_v10 = vld [vmem:[#allocation7 + $0x960] sm:$0xff] }
 0x1a4   :  { %6870 = vmatpush1.bf16.msra.mxu1 %v9907_v47  ;;  %6910 = vmatpush1.bf16.msra.mxu0 %v9909_v3  ;;  %v1227_v47 = vld [vmem:[#allocation7 + $0x8a8] sm:$0xff]  ;;  %v1133_v3 = vld [vmem:[#allocation7 + $0x5b8] sm:$0xff]  ;;  %12419 = vst [vmem:[#allocation120_spill] sm:$0xff] %v9955_v20  ;;  %v1258_v48 = vld [vmem:[#allocation7 + $0x9a0] sm:$0xff] }
 0x1a5   :  { %6872 = vmatprep.subr.bf16.mxu1 %v9913_v60  ;;  %6912 = vmatprep.subr.bf16.mxu0 %v9915_v59  ;;  %v9937_v43 = vpack.c.bf16 %v1227_v47, %v1219_v0  ;;  %v9939_v33 = vpack.c.bf16 %v1133_v3, %v1125_v51  ;;  %v1235_v60 = vld [vmem:[#allocation7 + $0x8e8] sm:$0xff]  ;;  %v1141_v59 = vld [vmem:[#allocation7 + $0x5f8] sm:$0xff]  ;;  %12416 = vst [vmem:[#allocation117_spill] sm:$0xff] %v9945_v57  ;;  %v1140_v47 = vld [vmem:[#allocation7 + $0x5f0] sm:$0xff] }
 0x1a6   :  { %v1148_v3 = vld [vmem:[#allocation7 + $0x630] sm:$0xff]  ;;  %v9967_v61 = vpack.c.bf16 %v1258_v48, %v1250_v10 }
 0x1a7   :  { %12413 = vst [vmem:[#allocation114_spill] sm:$0xff] %v9937_v43  ;;  %12414 = vst [vmem:[#allocation115_spill] sm:$0xff] %v9939_v33  ;;  %v9957_v56 = vpack.c.bf16 %v1148_v3, %v1140_v47  ;;  %v1266_v47 = vld [vmem:[#allocation7 + $0x9e0] sm:$0xff]  ;;  %v1180_v3 = vld [vmem:[#allocation7 + $0x730] sm:$0xff] }
 0x1a8   :  { %6874 = vmatpush1.bf16.msra.mxu1 %v9919_v19  ;;  %6914 = vmatpush1.bf16.msra.mxu0 %v9921_v41  ;;  %v1243_v19 = vld [vmem:[#allocation7 + $0x928] sm:$0xff]  ;;  %v1149_v41 = vld [vmem:[#allocation7 + $0x638] sm:$0xff]  ;;  %12423 = vst [vmem:[#allocation124_spill] sm:$0xff] %v9967_v61 }
 0x1a9   :  { %6876 = vmatprep.subr.bf16.mxu1 %v9925_v12  ;;  %6916 = vmatprep.subr.bf16.mxu0 %v9927_v28  ;;  %v9949_v0 = vpack.c.bf16 %v1243_v19, %v1235_v60  ;;  %v9951_v51 = vpack.c.bf16 %v1149_v41, %v1141_v59  ;;  %v1251_v12 = vld [vmem:[#allocation7 + $0x968] sm:$0xff]  ;;  %v1157_v28 = vld [vmem:[#allocation7 + $0x678] sm:$0xff]  ;;  %12420 = vst [vmem:[#allocation121_spill] sm:$0xff] %v9957_v56  ;;  %v1156_v19 = vld [vmem:[#allocation7 + $0x670] sm:$0xff] }
 0x1aa   :  { %v1164_v41 = vld [vmem:[#allocation7 + $0x6b0] sm:$0xff] }
 0x1ab   :  { %12417 = vst [vmem:[#allocation118_spill] sm:$0xff] %v9949_v0  ;;  %12418 = vst [vmem:[#allocation119_spill] sm:$0xff] %v9951_v51  ;;  %v9969_v34 = vpack.c.bf16 %v1164_v41, %v1156_v19  ;;  %v1213_v19 = vld [vmem:[#allocation7 + $0x838] sm:$0xff] }
 0x1ac   :  { %6878 = vmatpush1.bf16.msra.mxu1 %v9931_v23  ;;  %6918 = vmatpush1.bf16.msra.mxu0 %v9933_v58  ;;  %v1259_v23 = vld [vmem:[#allocation7 + $0x9a8] sm:$0xff]  ;;  %v1165_v58 = vld [vmem:[#allocation7 + $0x6b8] sm:$0xff] }
 0x1ad   :  { %6880 = vmatprep.subr.bf16.mxu1 %v9937_v43  ;;  %6920 = vmatprep.subr.bf16.mxu0 %v9939_v33  ;;  %v9961_v60 = vpack.c.bf16 %v1259_v23, %v1251_v12  ;;  %v9963_v59 = vpack.c.bf16 %v1165_v58, %v1157_v28  ;;  %v1267_v43 = vld [vmem:[#allocation7 + $0x9e8] sm:$0xff]  ;;  %v1173_v33 = vld [vmem:[#allocation7 + $0x6f8] sm:$0xff]  ;;  %12424 = vst [vmem:[#allocation125_spill] sm:$0xff] %v9969_v34  ;;  %v1274_v23 = vld [vmem:[#allocation7 + $0xa20] sm:$0xff] }
 0x1ae   :  { %v1172_v58 = vld [vmem:[#allocation7 + $0x6f0] sm:$0xff]  ;;  %v9979_v10 = vpack.c.bf16 %v1274_v23, %v1266_v47 }
 0x1af   :  { %12421 = vst [vmem:[#allocation122_spill] sm:$0xff] %v9961_v60  ;;  %12422 = vst [vmem:[#allocation123_spill] sm:$0xff] %v9963_v59  ;;  %v9981_v48 = vpack.c.bf16 %v1180_v3, %v1172_v58  ;;  %v1204_v23 = vld [vmem:[#allocation7 + $0x7f0] sm:$0xff] }
 0x1b0   :  { %6882 = vmatpush1.bf16.msra.mxu1 %v9943_v39  ;;  %6922 = vmatpush1.bf16.msra.mxu0 %v9945_v57  ;;  %v1275_v39 = vld [vmem:[#allocation7 + $0xa28] sm:$0xff]  ;;  %v1181_v57 = vld [vmem:[#allocation7 + $0x738] sm:$0xff]  ;;  %12427 = vst [vmem:[#allocation128_spill] sm:$0xff] %v9979_v10  ;;  %v1212_v58 = vld [vmem:[#allocation7 + $0x830] sm:$0xff] }
 0x1b1   :  { %6884 = vmatprep.subr.bf16.mxu1 %v9949_v0  ;;  %6924 = vmatprep.subr.bf16.mxu0 %v9951_v51  ;;  %v9973_v12 = vpack.c.bf16 %v1275_v39, %v1267_v43  ;;  %v9975_v28 = vpack.c.bf16 %v1181_v57, %v1173_v33  ;;  %v1189_v0 = vld [vmem:[#allocation7 + $0x778] sm:$0xff]  ;;  %12428 = vst [vmem:[#allocation129_spill] sm:$0xff] %v9981_v48  ;;  %v1188_v33 = vld [vmem:[#allocation7 + $0x770] sm:$0xff] }
 0x1b2   :  { %v1196_v39 = vld [vmem:[#allocation7 + $0x7b0] sm:$0xff]  ;;  %v1205_v57 = vld [vmem:[#allocation7 + $0x7f8] sm:$0xff]  ;;  %v9997_v3 = vpack.c.bf16 %v1212_v58, %v1204_v23 }
 0x1b3   :  { %12425 = vst [vmem:[#allocation126_spill] sm:$0xff] %v9973_v12  ;;  %12426 = vst [vmem:[#allocation127_spill] sm:$0xff] %v9975_v28  ;;  %v9989_v41 = vpack.c.bf16 %v1196_v39, %v1188_v33  ;;  %v9992_v47 = vpack.c.bf16 %v1213_v19, %v1205_v57  ;;  %v1220_v39 = vld [vmem:[#allocation7 + $0x870] sm:$0xff]  ;;  %v1237_v19 = vld [vmem:[#allocation7 + $0x8f8] sm:$0xff] }
 0x1b4   :  { %6886 = vmatpush1.bf16.msra.mxu1 %v9955_v20  ;;  %6926 = vmatpush1.bf16.msra.mxu0 %v9957_v56  ;;  %v1197_v20 = vld [vmem:[#allocation7 + $0x7b8] sm:$0xff]  ;;  %12432 = vst [vmem:[#allocation133_spill] sm:$0xff] %v9997_v3  ;;  %v1228_v57 = vld [vmem:[#allocation7 + $0x8b0] sm:$0xff] }
 0x1b5   :  { %6888 = vmatprep.subr.bf16.mxu1 %v9961_v60  ;;  %6928 = vmatprep.subr.bf16.mxu0 %v9963_v59  ;;  %v9985_v43 = vpack.c.bf16 %v1197_v20, %v1189_v0  ;;  %12430 = vst [vmem:[#allocation131_spill] sm:$0xff] %v9989_v41  ;;  %12431 = vst [vmem:[#allocation132_spill] sm:$0xff] %v9992_v47  ;;  %v1221_v0 = vld [vmem:[#allocation7 + $0x878] sm:$0xff]  ;;  %v1236_v58 = vld [vmem:[#allocation7 + $0x8f0] sm:$0xff] }
 0x1b6   :  { %v1229_v20 = vld [vmem:[#allocation7 + $0x8b8] sm:$0xff] }
 0x1b7   :  { %12429 = vst [vmem:[#allocation130_spill] sm:$0xff] %v9985_v43  ;;  %v10001_v33 = vpack.c.bf16 %v1229_v20, %v1221_v0  ;;  %v1253_v0 = vld [vmem:[#allocation7 + $0x978] sm:$0xff] }
 0x1b8   :  { %6890 = vmatpush1.bf16.msra.mxu1 %v9967_v61  ;;  %6930 = vmatpush1.bf16.msra.mxu0 %v9969_v34  ;;  %v1261_v20 = vld [vmem:[#allocation7 + $0x9b8] sm:$0xff] }
 0x1b9   :  { %6892 = vmatprep.subr.bf16.mxu1 %v9973_v12  ;;  %6932 = vmatprep.subr.bf16.mxu0 %v9975_v28  ;;  %12433 = vst [vmem:[#allocation134_spill] sm:$0xff] %v10001_v33 }
 0x1bc   :  { %6894 = vmatpush1.bf16.msra.mxu1 %v9979_v10  ;;  %6934 = vmatpush1.bf16.msra.mxu0 %v9981_v48  ;;  %v10005_v10 = vpack.c.bf16 %v1228_v57, %v1220_v39  ;;  %v10017_v39 = vpack.c.bf16 %v1261_v20, %v1253_v0  ;;  %v1252_v57 = vld [vmem:[#allocation7 + $0x970] sm:$0xff] }
 0x1bd   :  { %6936 = vmatprep.subr.bf16.mxu0 %v9985_v43  ;;  %6960 = vmatprep.subr.bf16.mxu1 %v9563_v62  ;;  %v1245_v62 = vld [vmem:[#allocation7 + $0x938] sm:$0xff]  ;;  %v12441_v20 = vld [vmem:[#allocation54_spill] sm:$0xff] }
 0x1be   :  { %12434 = vst [vmem:[#allocation135_spill] sm:$0xff] %v10005_v10  ;;  %v10009_v23 = vpack.c.bf16 %v1245_v62, %v1237_v19  ;;  %12437 = vst [vmem:[#allocation138_spill] sm:$0xff] %v10017_v39  ;;  %v1269_v62 = vld [vmem:[#allocation7 + $0x9f8] sm:$0xff] }
 0x1bf   :  { %1558 = vmatmul.mubr.f32.vlgmr.msra.gmra.mrb[26].mxu1 %v12362_v24  ;;  %v1277_v19 = vld [vmem:[#allocation7 + $0xa38] sm:$0xff] }
 0x1c0   :  { %6938 = vmatpush1.bf16.msra.mxu0 %v9989_v41  ;;  %6962 = vmatpush1.bf16.msra.mxu1 %v9570_v6  ;;  %12435 = vst [vmem:[#allocation136_spill] sm:$0xff] %v10009_v23  ;;  %v1244_v6 = vld [vmem:[#allocation7 + $0x930] sm:$0xff] }
 0x1c1   :  { %6940 = vmatprep.subr.bf16.mxu0 %v9992_v47  ;;  %6964 = vmatprep.subr.bf16.mxu1 %v9574_v7  ;;  %v10013_v7 = vpack.c.bf16 %v1244_v6, %v1236_v58  ;;  %v10025_v6 = vpack.c.bf16 %v1277_v19, %v1269_v62  ;;  %v1268_v58 = vld [vmem:[#allocation7 + $0x9f0] sm:$0xff]  ;;  %v12443_v62 = vld [vmem:[#allocation56_spill] sm:$0xff] }
 0x1c2   :  { %v12444_v19 = vld [vmem:[#allocation59_spill] sm:$0xff] }
 0x1c3   :  { %12436 = vst [vmem:[#allocation137_spill] sm:$0xff] %v10013_v7  ;;  %12439 = vst [vmem:[#allocation140_spill] sm:$0xff] %v10025_v6 }
 0x1c4   :  { %6942 = vmatpush1.bf16.msra.mxu0 %v9997_v3  ;;  %6966 = vmatpush1.bf16.msra.mxu1 %v9584_v14  ;;  %v1260_v14 = vld [vmem:[#allocation7 + $0x9b0] sm:$0xff] }
 0x1c5   :  { %6944 = vmatprep.subr.bf16.mxu0 %v10001_v33  ;;  %6968 = vmatprep.subr.bf16.mxu1 %v9588_v15  ;;  %v10021_v15 = vpack.c.bf16 %v1260_v14, %v1252_v57  ;;  %v12442_v57 = vld [vmem:[#allocation57_spill] sm:$0xff] }
 0x1c7   :  { %12438 = vst [vmem:[#allocation139_spill] sm:$0xff] %v10021_v15 }
 0x1c8   :  { %6946 = vmatpush1.bf16.msra.mxu0 %v10005_v10  ;;  %6970 = vmatpush1.bf16.msra.mxu1 %v9597_v21  ;;  %v1276_v21 = vld [vmem:[#allocation7 + $0xa30] sm:$0xff] }
 0x1c9   :  { %6948 = vmatprep.subr.bf16.mxu0 %v10009_v23  ;;  %6972 = vmatprep.subr.bf16.mxu1 %v9601_v22  ;;  %v10029_v0 = vpack.c.bf16 %v1276_v21, %v1268_v58  ;;  %v12445_v58 = vld [vmem:[#allocation58_spill] sm:$0xff] }
 0x1cb   :  { %12440 = vst [vmem:[#allocation141_spill] sm:$0xff] %v10029_v0 }
 0x1cc   :  { %6950 = vmatpush1.bf16.msra.mxu0 %v10013_v7  ;;  %6974 = vmatpush1.bf16.msra.mxu1 %v9609_v29 }
 0x1cd   :  { %6952 = vmatprep.subr.bf16.mxu0 %v10017_v39  ;;  %6976 = vmatprep.subr.bf16.mxu1 %v9613_v30 }
 0x1d0   :  { %6954 = vmatpush1.bf16.msra.mxu0 %v10021_v15  ;;  %6978 = vmatpush1.bf16.msra.mxu1 %v9621_v36 }
 0x1d1   :  { %6956 = vmatprep.subr.bf16.mxu0 %v10025_v6  ;;  %6980 = vmatprep.subr.bf16.mxu1 %v9625_v37 }
 0x1d4   :  { %6958 = vmatpush1.bf16.msra.mxu0 %v10029_v0  ;;  %6982 = vmatpush1.bf16.msra.mxu1 %v9633_v42 }
 0x1d5   :  { %7024 = vmatprep.subr.bf16.mxu0 %v9576_v13  ;;  %6984 = vmatprep.subr.bf16.mxu1 %v9637_v44 }
 0x1d7   :  { %1629 = vmatmul.mubr.f32.vlgmr.msra.gmra.mrb[58].mxu0 %v12362_v24 }
 0x1d8   :  { %7026 = vmatpush1.bf16.msra.mxu0 %v9647_v55  ;;  %6986 = vmatpush1.bf16.msra.mxu1 %v9645_v54 }
 0x1d9   :  { %7028 = vmatprep.subr.bf16.mxu0 %v9653_v50  ;;  %6988 = vmatprep.subr.bf16.mxu1 %v9651_v63 }
 0x1dc   :  { %7030 = vmatpush1.bf16.msra.mxu0 %v9663_v8  ;;  %6990 = vmatpush1.bf16.msra.mxu1 %v9661_v5 }
 0x1dd   :  { %7032 = vmatprep.subr.bf16.mxu0 %v9671_v18  ;;  %6992 = vmatprep.subr.bf16.mxu1 %v9667_v11 }
 0x1e0   :  { %7034 = vmatpush1.bf16.msra.mxu0 %v9681_v27  ;;  %6994 = vmatpush1.bf16.msra.mxu1 %v9679_v26 }
 0x1e1   :  { %7036 = vmatprep.subr.bf16.mxu0 %v9688_v38  ;;  %6996 = vmatprep.subr.bf16.mxu1 %v9685_v32 }
 0x1e4   :  { %7038 = vmatpush1.bf16.msra.mxu0 %v9697_v46  ;;  %6998 = vmatpush1.bf16.msra.mxu1 %v9695_v45  ;;  %v12455_v45 = vld [vmem:[#allocation64_spill] sm:$0xff] }
 0x1e5   :  { %7040 = vmatprep.subr.bf16.mxu0 %v9704_v53  ;;  %7000 = vmatprep.subr.bf16.mxu1 %v9701_v49 }
 0x1e8   :  { %7042 = vmatpush1.bf16.msra.mxu0 %v9712_v2  ;;  %7002 = vmatpush1.bf16.msra.mxu1 %v9710_v1  ;;  %v12451_v1 = vld [vmem:[#allocation62_spill] sm:$0xff] }
 0x1e9   :  { %7044 = vmatprep.subr.bf16.mxu0 %v9719_v16  ;;  %7004 = vmatprep.subr.bf16.mxu1 %v9716_v4  ;;  %v12450_v4 = vld [vmem:[#allocation63_spill] sm:$0xff] }
 0x1ec   :  { %7046 = vmatpush1.bf16.msra.mxu0 %v9727_v31  ;;  %7006 = vmatpush1.bf16.msra.mxu1 %v9725_v25  ;;  %v12448_v25 = vld [vmem:[#allocation61_spill] sm:$0xff] }
 0x1ed   :  { %7048 = vmatprep.subr.bf16.mxu0 %v9734_v40  ;;  %7008 = vmatprep.subr.bf16.mxu1 %v9731_v35 }
 0x1f0   :  { %v572_v14 = vpop.f32.mrb[16].mxu0  ;;  %7050 = vmatpush1.bf16.msra.mxu0 %v9742_v17  ;;  %7010 = vmatpush1.bf16.msra.mxu1 %v9740_v52  ;;  %v12449_v52 = vld [vmem:[#allocation60_spill] sm:$0xff] }
 0x1f1   :  { %v574_v21 = vpop.f32.mrb[17].mxu0  ;;  %7052 = vmatprep.subr.bf16.mxu0 %v9749_v9  ;;  %7012 = vmatprep.subr.bf16.mxu1 %v12441_v20 }
 0x1f4   :  { %7054 = vmatpush1.bf16.msra.mxu0 %v12442_v57  ;;  %7014 = vmatpush1.bf16.msra.mxu1 %v12443_v62  ;;  %v12454_v62 = vld [vmem:[#allocation65_spill] sm:$0xff] }
 0x1f5   :  { %7056 = vmatprep.subr.bf16.mxu0 %v12444_v19  ;;  %7016 = vmatprep.subr.bf16.mxu1 %v12445_v58  ;;  %v12456_v58 = vld [vmem:[#allocation66_spill] sm:$0xff] }
 0x1f6   :  { %v10071_v24 = vpop.f32.mrb[18].mxu0 }
 0x1f7   :  { %12446 = vst [vmem:[#allocation142_spill] sm:$0xff] %v10071_v24  ;;  %v10073_v35 = vpop.f32.mrb[19].mxu0  ;;  %v12457_v24 = vld [vmem:[#allocation67_spill] sm:$0xff] }
 0x1f8   :  { %12447 = vst [vmem:[#allocation143_spill] sm:$0xff] %v10073_v35  ;;  %7058 = vmatpush1.bf16.msra.mxu0 %v12448_v25  ;;  %7018 = vmatpush1.bf16.msra.mxu1 %v12449_v52  ;;  %v12460_v52 = vld [vmem:[#allocation68_spill] sm:$0xff] }
 0x1f9   :  { %7060 = vmatprep.subr.bf16.mxu0 %v12450_v4  ;;  %7020 = vmatprep.subr.bf16.mxu1 %v12451_v1  ;;  %v12461_v4 = vld [vmem:[#allocation70_spill] sm:$0xff] }
 0x1fa   :  { %v10079_v20 = vpop.f32.mrb[20].mxu0 }
 0x1fb   :  { %12452 = vst [vmem:[#allocation144_spill] sm:$0xff] %v10079_v20  ;;  %v10081_v49 = vpop.f32.mrb[21].mxu0 }
 0x1fc   :  { %12453 = vst [vmem:[#allocation145_spill] sm:$0xff] %v10081_v49  ;;  %7062 = vmatpush1.bf16.msra.mxu0 %v12454_v62  ;;  %7022 = vmatpush1.bf16.msra.mxu1 %v12455_v45  ;;  %v12464_v49 = vld [vmem:[#allocation72_spill] sm:$0xff]  ;;  %v12465_v62 = vld [vmem:[#allocation74_spill] sm:$0xff] }
 0x1fd   :  { %7064 = vmatprep.subr.bf16.mxu0 %v12456_v58  ;;  %7088 = vmatprep.subr.bf16.mxu1 %v12457_v24  ;;  %v12468_v24 = vld [vmem:[#allocation76_spill] sm:$0xff] }
 0x1fe   :  { %v10087_v35 = vpop.f32.mrb[22].mxu0 }
 0x1ff   :  { %12458 = vst [vmem:[#allocation146_spill] sm:$0xff] %v10087_v35  ;;  %v10089_v32 = vpop.f32.mrb[23].mxu0  ;;  %v12469_v35 = vld [vmem:[#allocation78_spill] sm:$0xff] }
 0x200   :  { %12459 = vst [vmem:[#allocation147_spill] sm:$0xff] %v10089_v32  ;;  %7066 = vmatpush1.bf16.msra.mxu0 %v12460_v52  ;;  %v12470_v32 = vld [vmem:[#allocation80_spill] sm:$0xff]  ;;  %v12471_v52 = vld [vmem:[#allocation82_spill] sm:$0xff] }
 0x201   :  { %7068 = vmatprep.subr.bf16.mxu0 %v12461_v4  ;;  %v12472_v4 = vld [vmem:[#allocation84_spill] sm:$0xff] }
 0x202   :  { %v10093_v1 = vpop.f32.mrb[24].mxu0 }
 0x203   :  { %12462 = vst [vmem:[#allocation148_spill] sm:$0xff] %v10093_v1  ;;  %v10095_v20 = vpop.f32.mrb[25].mxu0  ;;  %v12473_v1 = vld [vmem:[#allocation86_spill] sm:$0xff] }
 0x204   :  { %12463 = vst [vmem:[#allocation149_spill] sm:$0xff] %v10095_v20  ;;  %7070 = vmatpush1.bf16.msra.mxu0 %v12464_v49  ;;  %v12474_v20 = vld [vmem:[#allocation88_spill] sm:$0xff]  ;;  %v12475_v49 = vld [vmem:[#allocation91_spill] sm:$0xff] }
 0x205   :  { %7072 = vmatprep.subr.bf16.mxu0 %v12465_v62  ;;  %v12165_v62 = vlaneseq }
 0x206   :  { %v10099_v45 = vpop.f32.mrb[26].mxu0 }
 0x207   :  { %12466 = vst [vmem:[#allocation150_spill] sm:$0xff] %v10099_v45  ;;  %v10101_v58 = vpop.f32.mrb[27].mxu0  ;;  %v10112_v45 = vshrl.u32 %v12165_v62, 7 }
 0x208   :  { %12467 = vst [vmem:[#allocation151_spill] sm:$0xff] %v10101_v58  ;;  %7074 = vmatpush1.bf16.msra.mxu0 %v12468_v24  ;;  %v438_v58 = vld [vmem:[#allocation7 + $0x200] ss:$8 sm:$0xf] }
 0x209   :  { %7076 = vmatprep.subr.bf16.mxu0 %v12469_v35  ;;  %12476 = vst [vmem:[#allocation152_spill] sm:$0xff] %v10112_v45  ;;  %v439_v24 = vld [vmem:[#allocation7 + $0x200] ss:$8 sm:$0xf0]  ;;  %v10115_v35 = vsub.s32 0, %v10112_v45 }
 0x20a   :  { %v440_v25 = vor.u32 %v439_v24, %v438_v58  ;;  %v452_v58 = vsub.s32 2, %v10112_v45 }
 0x20b   :  { %12477 = vst [vmem:[#allocation153_spill] sm:$0xff] %v10115_v35 }
 0x20c   :  { %7078 = vmatpush1.bf16.msra.mxu0 %v12470_v32  ;;  %v10126_v57 = vrot.slane %v440_v25, %v452_v58 }
 0x20d   :  { %7080 = vmatprep.subr.bf16.mxu0 %v12471_v52  ;;  %v448_v52 = vsub.s32 1, %v10112_v45 }
 0x20e   :  { %12480 = vst [vmem:[#allocation156_spill] sm:$0xff] %v10126_v57 }
 0x210   :  { %7082 = vmatpush1.bf16.msra.mxu0 %v12472_v4  ;;  %v10119_v4 = vrot.slane %v440_v25, %v10115_v35 }
 0x211   :  { %7084 = vmatprep.subr.bf16.mxu0 %v12473_v1  ;;  %v10121_v1 = vrot.slane %v440_v25, %v448_v52 }
 0x212   :  { %12478 = vst [vmem:[#allocation154_spill] sm:$0xff] %v10119_v4 }
 0x213   :  { %12479 = vst [vmem:[#allocation155_spill] sm:$0xff] %v10121_v1 }
 0x214   :  { %7086 = vmatpush1.bf16.msra.mxu0 %v12474_v20  ;;  %v573_v20 = vadd.f32 %v572_v14, %v10119_v4  ;;  %v460_v4 = vsub.s32 4, %v10112_v45 }
 0x215   :  { %7152 = vmatprep.subr.bf16.mxu0 %v12475_v49  ;;  %v575_v49 = vadd.f32 %v574_v21, %v10121_v1 }
 0x252   :  { %v1417_v32 = vpop.f32.mrb[28].mxu1 }
 0x253   :  { %v1635_v62 = vadd.f32 %v1417_v32, %v573_v20  ;;  %v1419_v26 = vpop.f32.mrb[29].mxu1 }
 0x254   :  { %v1636_v19 = vadd.f32 %v1419_v26, %v575_v49 }
 0x255   :  { %v1643_v24 = vmul.f32 0.5, %v1635_v62 }
 0x256   :  { %v1644_v11 = vmul.f32 0.5, %v1636_v19 }
 0x258   :  { %8930 = vtanh.f32 %v1644_v11 }
 0x259   :  { %8932 = vtanh.f32 %v1643_v24  ;;  %v464_v24 = vsub.s32 5, %v10112_v45 }
 0x262   :  { %v8931_v9 = vpop.eup %8930 }
 0x263   :  { %v8933_v14 = vpop.eup %8932  ;;  %v1668_v21 = vmul.f32 0.5, %v8931_v9 }
 0x264   :  { %v1667_v1 = vmul.f32 0.5, %v8933_v14 }
 0x265   :  { %v1676_v32 = vadd.f32 0.5, %v1668_v21  ;;  %v468_v21 = vsub.s32 6, %v10112_v45 }
 0x266   :  { %v1675_v20 = vadd.f32 0.5, %v1667_v1 }
 0x267   :  { %v1691_v49 = vmul.f32 0.0, %v1676_v32  ;;  %v472_v32 = vsub.s32 7, %v10112_v45 }
 0x26a   :  { %v1488_v35 = vpop.f32.mrb[28].mxu0 }
 0x26b   :  { %v8815_v52 = vadd.f32 %v1488_v35, %v10126_v57  ;;  %v1490_v5 = vpop.f32.mrb[29].mxu0  ;;  %v10133_v35 = vrot.slane %v440_v25, %v464_v24  ;;  %v10135_v57 = vrot.slane %v440_v25, %v460_v4 }
 0x26d   :  { %8934 = vtanh.f32 %v8815_v52  ;;  %12481 = vst [vmem:[#allocation157_spill] sm:$0xff] %v10133_v35  ;;  %12482 = vst [vmem:[#allocation158_spill] sm:$0xff] %v10135_v57 }
 0x277   :  { %v8935_v26 = vpop.eup %8934 }
 0x278   :  { %v1692_v62 = vmul.f32 %v8935_v26, %v1675_v20  ;;  %v456_v20 = vsub.s32 3, %v10112_v45  ;;  %v10142_v26 = vrot.slane %v440_v25, %v468_v21 }
 0x27a   :  { %v10129_v11 = vadd.f32 %v1692_v62, %v1691_v49  ;;  %v10144_v49 = vrot.slane %v440_v25, %v472_v32  ;;  %v10146_v4 = vrot.slane %v440_v25, %v456_v20 }
 0x292   :  { %v1559_v19 = vpop.f32.mrb[26].mxu1 }
 0x293   :  { %v1561_v58 = vpop.f32.mrb[27].mxu1  ;;  %v8845_v52 = vadd.f32 %v1559_v19, %v10135_v57 }
 0x294   :  { %v8846_v9 = vadd.f32 %v1561_v58, %v10133_v35 }
 0x295   :  { %v1647_v14 = vmul.f32 0.5, %v8845_v52  ;;  %v8816_v52 = vadd.f32 %v1490_v5, %v10146_v4 }
 0x296   :  { %v1648_v1 = vmul.f32 0.5, %v8846_v9 }
 0x298   :  { %8936 = vtanh.f32 %v1648_v1 }
 0x299   :  { %8938 = vtanh.f32 %v1647_v14  ;;  %v1646_v14 = vmul.f32 0.5, %v8816_v52 }
 0x2a2   :  { %v8937_v9 = vpop.eup %8936 }
 0x2a3   :  { %v8939_v1 = vpop.eup %8938  ;;  %v1672_v35 = vmul.f32 0.5, %v8937_v9 }
 0x2a4   :  { %v1671_v21 = vmul.f32 0.5, %v8939_v1 }
 0x2a5   :  { %v1680_v57 = vadd.f32 0.5, %v1672_v35 }
 0x2a6   :  { %v1679_v25 = vadd.f32 0.5, %v1671_v21  ;;  %v12487_v21 = vld [vmem:[#allocation71_spill] sm:$0xff] }
 0x2a7   :  { %v1696_v20 = vmul.f32 0.0, %v1680_v57  ;;  %v12486_v57 = vld [vmem:[#allocation93_spill] sm:$0xff] }
 0x2aa   :  { %v1630_v62 = vpop.f32.mrb[58].mxu0 }
 0x2ab   :  { %v8861_v24 = vadd.f32 %v1630_v62, %v10142_v26  ;;  %v1632_v19 = vpop.f32.mrb[59].mxu0 }
 0x2ac   :  { %v8862_v58 = vadd.f32 %v1632_v19, %v10144_v49 }
 0x2ad   :  { %8940 = vtanh.f32 %v8861_v24 }
 0x2ae   :  { %v1650_v45 = vmul.f32 0.5, %v8862_v58 }
 0x2b0   :  { %8942 = vtanh.f32 %v1650_v45 }
 0x2b1   :  { %8944 = vtanh.f32 %v1646_v14 }
 0x2b2   :  { %8946 = vtanh.f32 %v10129_v11 }
 0x2b7   :  { %v8941_v32 = vpop.eup %8940 }
 0x2b8   :  { %v1697_v63 = vmul.f32 %v8941_v32, %v1679_v25  ;;  %v12488_v25 = vld [vmem:[#allocation95_spill] sm:$0xff]  ;;  %v12489_v32 = vld [vmem:[#allocation73_spill] sm:$0xff] }
 0x2ba   :  { %v10151_v62 = vadd.f32 %v1697_v63, %v1696_v20  ;;  %v8943_v5 = vpop.eup %8942  ;;  %v12485_v63 = vld [vmem:[#allocation69_spill] sm:$0xff] }
 0x2bb   :  { %v8945_v24 = vpop.eup %8944  ;;  %v1674_v19 = vmul.f32 0.5, %v8943_v5  ;;  %v12490_v20 = vld [vmem:[#allocation97_spill] sm:$0xff]  ;;  %v12491_v5 = vld [vmem:[#allocation75_spill] sm:$0xff] }
 0x2bc   :  { %8948 = vtanh.f32 %v10151_v62  ;;  %v1670_v9 = vmul.f32 0.5, %v8945_v24  ;;  %v8947_v58 = vpop.eup %8946  ;;  %v12492_v24 = vld [vmem:[#allocation99_spill] sm:$0xff] }
 0x2bd   :  { %v1682_v52 = vadd.f32 0.5, %v1674_v19  ;;  %v12493_v19 = vld [vmem:[#allocation77_spill] sm:$0xff] }
 0x2be   :  { %v1678_v35 = vadd.f32 0.5, %v1670_v9  ;;  %v12494_v9 = vld [vmem:[#allocation101_spill] sm:$0xff] }
 0x2c0   :  { %v10157_v14 = vmul.f32 %v8947_v58, %v1678_v35  ;;  %v12495_v58 = vld [vmem:[#allocation79_spill] sm:$0xff]  ;;  %v12498_v35 = vld [vmem:[#allocation105_spill] sm:$0xff] }
 0x2c2   :  { %12484 = vst [vmem:[#allocation160_spill] sm:$0xff] %v10157_v14 }
 0x2c6   :  { %v8949_v1 = vpop.eup %8948 }
 0x2c7   :  { %v10155_v45 = vmul.f32 %v8949_v1, %v1682_v52  ;;  %v12496_v52 = vld [vmem:[#allocation103_spill] sm:$0xff]  ;;  %v12497_v1 = vld [vmem:[#allocation81_spill] sm:$0xff] }
 0x2c9   :  { %12483 = vst [vmem:[#allocation159_spill] sm:$0xff] %v10155_v45  ;;  %1775 = vmatprep.mubr.f32.mxu1 %v10155_v45  ;;  %1846 = vmatprep.mubr.f32.mxu0 %v10155_v45 }
 0x2ca   :  { %1776 = vmatmul.mubr.f32.vlgmr.msra.gmra.mrb[30].mxu1 %v10157_v14  ;;  %1847 = vmatmul.mubr.f32.vlgmr.msra.gmra.mrb[30].mxu0 %v10157_v14 }
 0x2cb   :  { %7090 = vmatpush1.bf16.msra.mxu1 %v12485_v63  ;;  %7154 = vmatpush1.bf16.msra.mxu0 %v12486_v57 }
 0x2cc   :  { %1917 = vmatprep.mubr.f32.mxu1 %v10155_v45  ;;  %1988 = vmatprep.mubr.f32.mxu0 %v10155_v45  ;;  %v12499_v45 = vld [vmem:[#allocation83_spill] sm:$0xff] }
 0x2cd   :  { %7092 = vmatprep.subr.bf16.mxu1 %v12487_v21  ;;  %7156 = vmatprep.subr.bf16.mxu0 %v12488_v25 }
 0x2cf   :  { %7094 = vmatpush1.bf16.msra.mxu1 %v12489_v32  ;;  %7158 = vmatpush1.bf16.msra.mxu0 %v12490_v20  ;;  %v12500_v32 = vld [vmem:[#allocation107_spill] sm:$0xff]  ;;  %v12501_v20 = vld [vmem:[#allocation85_spill] sm:$0xff] }
 0x2d0   :  { %7096 = vmatprep.subr.bf16.mxu1 %v12491_v5  ;;  %7160 = vmatprep.subr.bf16.mxu0 %v12492_v24  ;;  %v12502_v5 = vld [vmem:[#allocation109_spill] sm:$0xff]  ;;  %v12503_v24 = vld [vmem:[#allocation87_spill] sm:$0xff] }
 0x2d3   :  { %7098 = vmatpush1.bf16.msra.mxu1 %v12493_v19  ;;  %7162 = vmatpush1.bf16.msra.mxu0 %v12494_v9  ;;  %v12504_v19 = vld [vmem:[#allocation111_spill] sm:$0xff]  ;;  %v12505_v9 = vld [vmem:[#allocation89_spill] sm:$0xff] }
 0x2d4   :  { %7100 = vmatprep.subr.bf16.mxu1 %v12495_v58  ;;  %7164 = vmatprep.subr.bf16.mxu0 %v12496_v52  ;;  %v12506_v58 = vld [vmem:[#allocation113_spill] sm:$0xff]  ;;  %v12507_v52 = vld [vmem:[#allocation90_spill] sm:$0xff] }
 0x2d7   :  { %7102 = vmatpush1.bf16.msra.mxu1 %v12497_v1  ;;  %7166 = vmatpush1.bf16.msra.mxu0 %v12498_v35  ;;  %v12508_v1 = vld [vmem:[#allocation115_spill] sm:$0xff]  ;;  %v12509_v35 = vld [vmem:[#allocation92_spill] sm:$0xff] }
 0x2d8   :  { %7104 = vmatprep.subr.bf16.mxu1 %v12499_v45  ;;  %7168 = vmatprep.subr.bf16.mxu0 %v12500_v32  ;;  %v12510_v45 = vld [vmem:[#allocation117_spill] sm:$0xff]  ;;  %v12511_v32 = vld [vmem:[#allocation94_spill] sm:$0xff] }
 0x2db   :  { %7106 = vmatpush1.bf16.msra.mxu1 %v12501_v20  ;;  %7170 = vmatpush1.bf16.msra.mxu0 %v12502_v5  ;;  %v12512_v5 = vld [vmem:[#allocation96_spill] sm:$0xff] }
 0x2dc   :  { %7108 = vmatprep.subr.bf16.mxu1 %v12503_v24  ;;  %7172 = vmatprep.subr.bf16.mxu0 %v12504_v19  ;;  %v12513_v19 = vld [vmem:[#allocation98_spill] sm:$0xff] }
 0x2df   :  { %7110 = vmatpush1.bf16.msra.mxu1 %v12505_v9  ;;  %7174 = vmatpush1.bf16.msra.mxu0 %v12506_v58  ;;  %v12514_v58 = vld [vmem:[#allocation100_spill] sm:$0xff] }
 0x2e0   :  { %7112 = vmatprep.subr.bf16.mxu1 %v12507_v52  ;;  %7176 = vmatprep.subr.bf16.mxu0 %v12508_v1  ;;  %v12515_v1 = vld [vmem:[#allocation102_spill] sm:$0xff] }
 0x2e3   :  { %7114 = vmatpush1.bf16.msra.mxu1 %v12509_v35  ;;  %7178 = vmatpush1.bf16.msra.mxu0 %v12510_v45  ;;  %v12516_v45 = vld [vmem:[#allocation104_spill] sm:$0xff] }
 0x2e4   :  { %7116 = vmatprep.subr.bf16.mxu1 %v12511_v32  ;;  %7180 = vmatprep.subr.bf16.mxu0 %v9951_v51  ;;  %v12517_v51 = vld [vmem:[#allocation106_spill] sm:$0xff] }
 0x2e7   :  { %7118 = vmatpush1.bf16.msra.mxu1 %v12512_v5  ;;  %7182 = vmatpush1.bf16.msra.mxu0 %v9957_v56  ;;  %v12518_v56 = vld [vmem:[#allocation108_spill] sm:$0xff] }
 0x2e8   :  { %7120 = vmatprep.subr.bf16.mxu1 %v12513_v19  ;;  %7184 = vmatprep.subr.bf16.mxu0 %v9963_v59  ;;  %v12519_v59 = vld [vmem:[#allocation110_spill] sm:$0xff] }
 0x2eb   :  { %7122 = vmatpush1.bf16.msra.mxu1 %v12514_v58  ;;  %7186 = vmatpush1.bf16.msra.mxu0 %v9969_v34  ;;  %v12520_v34 = vld [vmem:[#allocation112_spill] sm:$0xff] }
 0x2ec   :  { %7124 = vmatprep.subr.bf16.mxu1 %v12515_v1  ;;  %7188 = vmatprep.subr.bf16.mxu0 %v9975_v28  ;;  %v12521_v28 = vld [vmem:[#allocation114_spill] sm:$0xff] }
 0x2ef   :  { %7126 = vmatpush1.bf16.msra.mxu1 %v12516_v45  ;;  %7190 = vmatpush1.bf16.msra.mxu0 %v9981_v48  ;;  %v12522_v48 = vld [vmem:[#allocation116_spill] sm:$0xff] }
 0x2f0   :  { %7128 = vmatprep.subr.bf16.mxu1 %v12517_v51  ;;  %7192 = vmatprep.subr.bf16.mxu0 %v9985_v43  ;;  %v12523_v43 = vld [vmem:[#allocation118_spill] sm:$0xff] }
 0x2f3   :  { %7130 = vmatpush1.bf16.msra.mxu1 %v12518_v56  ;;  %7194 = vmatpush1.bf16.msra.mxu0 %v9989_v41  ;;  %v12524_v41 = vld [vmem:[#allocation120_spill] sm:$0xff] }
 0x2f4   :  { %7132 = vmatprep.subr.bf16.mxu1 %v12519_v59  ;;  %7196 = vmatprep.subr.bf16.mxu0 %v9992_v47 }
 0x2f7   :  { %7134 = vmatpush1.bf16.msra.mxu1 %v12520_v34  ;;  %7198 = vmatpush1.bf16.msra.mxu0 %v9997_v3 }
 0x2f8   :  { %7136 = vmatprep.subr.bf16.mxu1 %v12521_v28  ;;  %7200 = vmatprep.subr.bf16.mxu0 %v10001_v33 }
 0x2fb   :  { %7138 = vmatpush1.bf16.msra.mxu1 %v12522_v48  ;;  %7202 = vmatpush1.bf16.msra.mxu0 %v10005_v10  ;;  %v12525_v10 = vld [vmem:[#allocation128_spill] sm:$0xff] }
 0x2fc   :  { %7140 = vmatprep.subr.bf16.mxu1 %v12523_v43  ;;  %7204 = vmatprep.subr.bf16.mxu0 %v10009_v23  ;;  %v12526_v23 = vld [vmem:[#allocation14_spill] sm:$0xff] }
 0x2ff   :  { %7142 = vmatpush1.bf16.msra.mxu1 %v12524_v41  ;;  %7206 = vmatpush1.bf16.msra.mxu0 %v10013_v7 }
 0x300   :  { %7144 = vmatprep.subr.bf16.mxu1 %v9961_v60  ;;  %7208 = vmatprep.subr.bf16.mxu0 %v10017_v39  ;;  %v12527_v39 = vld [vmem:[#allocation15_spill] sm:$0xff] }
 0x303   :  { %7146 = vmatpush1.bf16.msra.mxu1 %v9967_v61  ;;  %7210 = vmatpush1.bf16.msra.mxu0 %v10021_v15  ;;  %v12528_v15 = vld [vmem:[#allocation16_spill] sm:$0xff] }
 0x304   :  { %7148 = vmatprep.subr.bf16.mxu1 %v9973_v12  ;;  %7212 = vmatprep.subr.bf16.mxu0 %v10025_v6  ;;  %v12529_v6 = vld [vmem:[#allocation18_spill] sm:$0xff] }
 0x307   :  { %7150 = vmatpush1.bf16.msra.mxu1 %v12525_v10  ;;  %7214 = vmatpush1.bf16.msra.mxu0 %v10029_v0  ;;  %v12530_v0 = vld [vmem:[#allocation19_spill] sm:$0xff] }
 0x308   :  { %7216 = vmatprep.subr.bf16.mxu1 %v12526_v23  ;;  %7280 = vmatprep.subr.bf16.mxu0 %v9576_v13  ;;  %v12531_v13 = vld [vmem:[#allocation20_spill] sm:$0xff] }
 0x30a   :  { %1918 = vmatmul.mubr.f32.vlgmr.msra.gmra.mrb[24].mxu1 %v10157_v14  ;;  %1989 = vmatmul.mubr.f32.vlgmr.msra.gmra.mrb[56].mxu0 %v10157_v14  ;;  %v12532_v14 = vld [vmem:[#allocation30_spill] sm:$0xff] }
 0x30b   :  { %7218 = vmatpush1.bf16.msra.mxu1 %v12527_v39  ;;  %7282 = vmatpush1.bf16.msra.mxu0 %v9647_v55 }
 0x30c   :  { %7220 = vmatprep.subr.bf16.mxu1 %v12528_v15  ;;  %7284 = vmatprep.subr.bf16.mxu0 %v9653_v50 }
 0x30f   :  { %7222 = vmatpush1.bf16.msra.mxu1 %v12529_v6  ;;  %7286 = vmatpush1.bf16.msra.mxu0 %v9663_v8 }
 0x310   :  { %7224 = vmatprep.subr.bf16.mxu1 %v12530_v0  ;;  %7288 = vmatprep.subr.bf16.mxu0 %v9671_v18 }
 0x313   :  { %7226 = vmatpush1.bf16.msra.mxu1 %v12531_v13  ;;  %7290 = vmatpush1.bf16.msra.mxu0 %v9681_v27 }
 0x314   :  { %7228 = vmatprep.subr.bf16.mxu1 %v9601_v22  ;;  %7292 = vmatprep.subr.bf16.mxu0 %v9688_v38 }
 0x317   :  { %7230 = vmatpush1.bf16.msra.mxu1 %v9609_v29  ;;  %7294 = vmatpush1.bf16.msra.mxu0 %v9697_v46 }
 0x318   :  { %7232 = vmatprep.subr.bf16.mxu1 %v9613_v30  ;;  %7296 = vmatprep.subr.bf16.mxu0 %v9704_v53  ;;  %v12573_v30 = vld [vmem:[#allocation143_spill] sm:$0xff] }
 0x31b   :  { %7234 = vmatpush1.bf16.msra.mxu1 %v9621_v36  ;;  %7298 = vmatpush1.bf16.msra.mxu0 %v9712_v2  ;;  %v12533_v36 = vld [vmem:[#allocation55_spill] sm:$0xff]  ;;  %v12534_v2 = vld [vmem:[#allocation32_spill] sm:$0xff] }
 0x31c   :  { %7236 = vmatprep.subr.bf16.mxu1 %v9625_v37  ;;  %7300 = vmatprep.subr.bf16.mxu0 %v9719_v16  ;;  %v12535_v37 = vld [vmem:[#allocation57_spill] sm:$0xff]  ;;  %v12536_v16 = vld [vmem:[#allocation34_spill] sm:$0xff] }
 0x31f   :  { %7238 = vmatpush1.bf16.msra.mxu1 %v9633_v42  ;;  %7302 = vmatpush1.bf16.msra.mxu0 %v9727_v31  ;;  %v12537_v42 = vld [vmem:[#allocation59_spill] sm:$0xff]  ;;  %v12538_v31 = vld [vmem:[#allocation36_spill] sm:$0xff] }
 0x320   :  { %7240 = vmatprep.subr.bf16.mxu1 %v9637_v44  ;;  %7304 = vmatprep.subr.bf16.mxu0 %v9734_v40  ;;  %v12539_v44 = vld [vmem:[#allocation61_spill] sm:$0xff]  ;;  %v12540_v40 = vld [vmem:[#allocation38_spill] sm:$0xff] }
 0x323   :  { %7242 = vmatpush1.bf16.msra.mxu1 %v9645_v54  ;;  %7306 = vmatpush1.bf16.msra.mxu0 %v9742_v17  ;;  %v12541_v54 = vld [vmem:[#allocation63_spill] sm:$0xff]  ;;  %v12542_v17 = vld [vmem:[#allocation40_spill] sm:$0xff] }
 0x324   :  { %7244 = vmatprep.subr.bf16.mxu1 %v12532_v14  ;;  %7308 = vmatprep.subr.bf16.mxu0 %v12533_v36  ;;  %v12543_v14 = vld [vmem:[#allocation65_spill] sm:$0xff]  ;;  %v12544_v36 = vld [vmem:[#allocation42_spill] sm:$0xff] }
 0x327   :  { %7246 = vmatpush1.bf16.msra.mxu1 %v12534_v2  ;;  %7310 = vmatpush1.bf16.msra.mxu0 %v12535_v37  ;;  %v12545_v2 = vld [vmem:[#allocation66_spill] sm:$0xff]  ;;  %v12546_v37 = vld [vmem:[#allocation44_spill] sm:$0xff] }
 0x328   :  { %7248 = vmatprep.subr.bf16.mxu1 %v12536_v16  ;;  %7312 = vmatprep.subr.bf16.mxu0 %v12537_v42  ;;  %v12547_v16 = vld [vmem:[#allocation68_spill] sm:$0xff]  ;;  %v12548_v42 = vld [vmem:[#allocation46_spill] sm:$0xff] }
 0x32b   :  { %7250 = vmatpush1.bf16.msra.mxu1 %v12538_v31  ;;  %7314 = vmatpush1.bf16.msra.mxu0 %v12539_v44  ;;  %v12549_v31 = vld [vmem:[#allocation70_spill] sm:$0xff]  ;;  %v12550_v44 = vld [vmem:[#allocation48_spill] sm:$0xff] }
 0x32c   :  { %7252 = vmatprep.subr.bf16.mxu1 %v12540_v40  ;;  %7316 = vmatprep.subr.bf16.mxu0 %v12541_v54  ;;  %v12551_v40 = vld [vmem:[#allocation72_spill] sm:$0xff]  ;;  %v12552_v54 = vld [vmem:[#allocation50_spill] sm:$0xff] }
 0x32f   :  { %7254 = vmatpush1.bf16.msra.mxu1 %v12542_v17  ;;  %7318 = vmatpush1.bf16.msra.mxu0 %v12543_v14  ;;  %v12553_v17 = vld [vmem:[#allocation74_spill] sm:$0xff]  ;;  %v12554_v14 = vld [vmem:[#allocation52_spill] sm:$0xff] }
 0x330   :  { %7256 = vmatprep.subr.bf16.mxu1 %v12544_v36  ;;  %7320 = vmatprep.subr.bf16.mxu0 %v12545_v2  ;;  %v12555_v36 = vld [vmem:[#allocation76_spill] sm:$0xff]  ;;  %v12556_v2 = vld [vmem:[#allocation54_spill] sm:$0xff] }
 0x333   :  { %7258 = vmatpush1.bf16.msra.mxu1 %v12546_v37  ;;  %7322 = vmatpush1.bf16.msra.mxu0 %v12547_v16  ;;  %v12557_v37 = vld [vmem:[#allocation78_spill] sm:$0xff]  ;;  %v12558_v16 = vld [vmem:[#allocation56_spill] sm:$0xff] }
 0x334   :  { %7260 = vmatprep.subr.bf16.mxu1 %v12548_v42  ;;  %7324 = vmatprep.subr.bf16.mxu0 %v12549_v31  ;;  %v12559_v42 = vld [vmem:[#allocation80_spill] sm:$0xff]  ;;  %v12560_v31 = vld [vmem:[#allocation58_spill] sm:$0xff] }
 0x337   :  { %7262 = vmatpush1.bf16.msra.mxu1 %v12550_v44  ;;  %7326 = vmatpush1.bf16.msra.mxu0 %v12551_v40  ;;  %v12561_v44 = vld [vmem:[#allocation82_spill] sm:$0xff]  ;;  %v12562_v40 = vld [vmem:[#allocation60_spill] sm:$0xff] }
 0x338   :  { %7264 = vmatprep.subr.bf16.mxu1 %v12552_v54  ;;  %7328 = vmatprep.subr.bf16.mxu0 %v12553_v17  ;;  %v12563_v54 = vld [vmem:[#allocation84_spill] sm:$0xff]  ;;  %v12564_v17 = vld [vmem:[#allocation62_spill] sm:$0xff] }
 0x33b   :  { %7266 = vmatpush1.bf16.msra.mxu1 %v12554_v14  ;;  %7330 = vmatpush1.bf16.msra.mxu0 %v12555_v36  ;;  %v12565_v14 = vld [vmem:[#allocation86_spill] sm:$0xff]  ;;  %v12566_v36 = vld [vmem:[#allocation64_spill] sm:$0xff] }
 0x33c   :  { %7268 = vmatprep.subr.bf16.mxu1 %v12556_v2  ;;  %7332 = vmatprep.subr.bf16.mxu0 %v12557_v37  ;;  %v12567_v2 = vld [vmem:[#allocation88_spill] sm:$0xff]  ;;  %v12568_v37 = vld [vmem:[#allocation67_spill] sm:$0xff] }
 0x33f   :  { %7270 = vmatpush1.bf16.msra.mxu1 %v12558_v16  ;;  %7334 = vmatpush1.bf16.msra.mxu0 %v12559_v42  ;;  %v12569_v16 = vld [vmem:[#allocation91_spill] sm:$0xff]  ;;  %v12570_v42 = vld [vmem:[#allocation154_spill] sm:$0xff] }
 0x340   :  { %7272 = vmatprep.subr.bf16.mxu1 %v12560_v31  ;;  %7336 = vmatprep.subr.bf16.mxu0 %v12561_v44  ;;  %v12571_v31 = vld [vmem:[#allocation142_spill] sm:$0xff]  ;;  %v12572_v44 = vld [vmem:[#allocation155_spill] sm:$0xff] }
 0x341   :  { %v579_v53 = vadd.f32 %v12571_v31, %v12570_v42 }
 0x343   :  { %7274 = vmatpush1.bf16.msra.mxu1 %v12562_v40  ;;  %7338 = vmatpush1.bf16.msra.mxu0 %v12563_v54  ;;  %v581_v40 = vadd.f32 %v12573_v30, %v12572_v44 }
 0x344   :  { %7276 = vmatprep.subr.bf16.mxu1 %v12564_v17  ;;  %7340 = vmatprep.subr.bf16.mxu0 %v12565_v14 }
 0x347   :  { %7278 = vmatpush1.bf16.msra.mxu1 %v12566_v36  ;;  %7342 = vmatpush1.bf16.msra.mxu0 %v12567_v2  ;;  %v12574_v2 = vld [vmem:[#allocation156_spill] sm:$0xff] }
 0x348   :  { %7344 = vmatprep.subr.bf16.mxu1 %v12568_v37  ;;  %7408 = vmatprep.subr.bf16.mxu0 %v12569_v16 }
 0x39d   :  { %v1777_v46 = vpop.f32.mrb[30].mxu1  ;;  %v1848_v54 = vpop.f32.mrb[30].mxu0 }
 0x39e   :  { %v1995_v29 = vadd.f32 %v1777_v46, %v579_v53  ;;  %v1779_v17 = vpop.f32.mrb[31].mxu1  ;;  %v1850_v38 = vpop.f32.mrb[31].mxu0  ;;  %v8817_v27 = vadd.f32 %v1848_v54, %v12574_v2 }
 0x39f   :  { %v1996_v14 = vadd.f32 %v1779_v17, %v581_v40  ;;  %v12575_v17 = vld [vmem:[#allocation158_spill] sm:$0xff] }
 0x3a0   :  { %v2003_v22 = vmul.f32 0.5, %v1995_v29 }
 0x3a1   :  { %v2004_v36 = vmul.f32 0.5, %v1996_v14 }
 0x3a2   :  { %8950 = vtanh.f32 %v2003_v22 }
 0x3a3   :  { %8952 = vtanh.f32 %v2004_v36  ;;  %v12576_v36 = vld [vmem:[#allocation157_spill] sm:$0xff] }
 0x3a4   :  { %8954 = vtanh.f32 %v8817_v27 }
 0x3ac   :  { %v8951_v16 = vpop.eup %8950 }
 0x3ad   :  { %v8953_v37 = vpop.eup %8952  ;;  %v2027_v13 = vmul.f32 0.5, %v8951_v16 }
 0x3ae   :  { %v2028_v31 = vmul.f32 0.5, %v8953_v37  ;;  %v8955_v18 = vpop.eup %8954 }
 0x3af   :  { %v2035_v42 = vadd.f32 0.5, %v2027_v13 }
 0x3b0   :  { %v2036_v30 = vadd.f32 0.5, %v2028_v31 }
 0x3b1   :  { %v2052_v44 = vmul.f32 %v8955_v18, %v2035_v42  ;;  %v8818_v42 = vadd.f32 %v1850_v38, %v10146_v4 }
 0x3b2   :  { %v2051_v46 = vmul.f32 %v2036_v30, %v10129_v11 }
 0x3b3   :  { %v2006_v18 = vmul.f32 0.5, %v8818_v42 }
 0x3b4   :  { %v10301_v53 = vadd.f32 %v2052_v44, %v2051_v46 }
 0x3dd   :  { %v1919_v40 = vpop.f32.mrb[24].mxu1  ;;  %v1990_v29 = vpop.f32.mrb[56].mxu0 }
 0x3de   :  { %v8843_v22 = vadd.f32 %v1919_v40, %v12575_v17  ;;  %v1921_v14 = vpop.f32.mrb[25].mxu1  ;;  %v1992_v54 = vpop.f32.mrb[57].mxu0  ;;  %v8859_v13 = vadd.f32 %v1990_v29, %v10142_v26 }
 0x3df   :  { %v8844_v27 = vadd.f32 %v1921_v14, %v12576_v36  ;;  %v8860_v37 = vadd.f32 %v1992_v54, %v10144_v49 }
 0x3e0   :  { %v2007_v2 = vmul.f32 0.5, %v8843_v22 }
 0x3e1   :  { %v2008_v0 = vmul.f32 0.5, %v8844_v27  ;;  %v2010_v44 = vmul.f32 0.5, %v8860_v37 }
 0x3e2   :  { %8956 = vtanh.f32 %v2007_v2 }
 0x3e3   :  { %8958 = vtanh.f32 %v2008_v0 }
 0x3e4   :  { %8960 = vtanh.f32 %v8859_v13 }
 0x3e5   :  { %8962 = vtanh.f32 %v2010_v44 }
 0x3e6   :  { %8964 = vtanh.f32 %v2006_v18 }
 0x3e7   :  { %8966 = vtanh.f32 %v10301_v53 }
 0x3ec   :  { %v8957_v16 = vpop.eup %8956 }
 0x3ed   :  { %v8959_v11 = vpop.eup %8958  ;;  %v2031_v31 = vmul.f32 0.5, %v8957_v16 }
 0x3ee   :  { %v2032_v30 = vmul.f32 0.5, %v8959_v11  ;;  %v8961_v40 = vpop.eup %8960  ;;  %v12580_v11 = vld [vmem:[#allocation97_spill] sm:$0xff] }
 0x3ef   :  { %v2039_v46 = vadd.f32 0.5, %v2031_v31  ;;  %v8963_v38 = vpop.eup %8962  ;;  %v12581_v31 = vld [vmem:[#allocation75_spill] sm:$0xff] }
 0x3f0   :  { %v2040_v22 = vadd.f32 0.5, %v2032_v30  ;;  %v8965_v14 = vpop.eup %8964  ;;  %v2034_v54 = vmul.f32 0.5, %v8963_v38  ;;  %v12582_v30 = vld [vmem:[#allocation99_spill] sm:$0xff]  ;;  %v12588_v38 = vld [vmem:[#allocation105_spill] sm:$0xff] }
 0x3f1   :  { %v2057_v2 = vmul.f32 %v8961_v40, %v2039_v46  ;;  %v2030_v27 = vmul.f32 0.5, %v8965_v14  ;;  %v8967_v13 = vpop.eup %8966  ;;  %v12583_v46 = vld [vmem:[#allocation77_spill] sm:$0xff]  ;;  %v12589_v14 = vld [vmem:[#allocation83_spill] sm:$0xff] }
 0x3f2   :  { %v2056_v29 = vmul.f32 %v2040_v22, %v10151_v62  ;;  %v2042_v37 = vadd.f32 0.5, %v2034_v54  ;;  %v12579_v62 = vld [vmem:[#allocation73_spill] sm:$0xff]  ;;  %v12585_v22 = vld [vmem:[#allocation79_spill] sm:$0xff] }
 0x3f3   :  { %v2038_v44 = vadd.f32 0.5, %v2030_v27  ;;  %v12584_v40 = vld [vmem:[#allocation101_spill] sm:$0xff]  ;;  %v12590_v54 = vld [vmem:[#allocation107_spill] sm:$0xff] }
 0x3f4   :  { %v10309_v0 = vadd.f32 %v2057_v2, %v2056_v29  ;;  %v12586_v2 = vld [vmem:[#allocation103_spill] sm:$0xff]  ;;  %v12587_v29 = vld [vmem:[#allocation81_spill] sm:$0xff] }
 0x3f5   :  { %v10315_v16 = vmul.f32 %v8967_v13, %v2038_v44  ;;  %v12591_v27 = vld [vmem:[#allocation109_spill] sm:$0xff]  ;;  %v12592_v13 = vld [vmem:[#allocation111_spill] sm:$0xff] }
 0x3f6   :  { %8968 = vtanh.f32 %v10309_v0  ;;  %v12595_v44 = vld [vmem:[#allocation117_spill] sm:$0xff] }
 0x3f7   :  { %12578 = vst [vmem:[#allocation93_spill] sm:$0xff] %v10315_v16 }
 0x400   :  { %v8969_v42 = vpop.eup %8968 }
 0x401   :  { %v10313_v18 = vmul.f32 %v8969_v42, %v2042_v37  ;;  %v12593_v37 = vld [vmem:[#allocation113_spill] sm:$0xff]  ;;  %v12594_v42 = vld [vmem:[#allocation115_spill] sm:$0xff] }
 0x403   :  { %12577 = vst [vmem:[#allocation69_spill] sm:$0xff] %v10313_v18  ;;  %2135 = vmatprep.mubr.f32.mxu1 %v10313_v18  ;;  %2206 = vmatprep.mubr.f32.mxu0 %v10313_v18 }
 0x404   :  { %2136 = vmatmul.mubr.f32.vlgmr.msra.gmra.mrb[32].mxu1 %v10315_v16  ;;  %2207 = vmatmul.mubr.f32.vlgmr.msra.gmra.mrb[32].mxu0 %v10315_v16 }
 0x405   :  { %7346 = vmatpush1.bf16.msra.mxu1 %v12485_v63  ;;  %7410 = vmatpush1.bf16.msra.mxu0 %v12486_v57 }
 0x406   :  { %2277 = vmatprep.mubr.f32.mxu1 %v10313_v18  ;;  %2348 = vmatprep.mubr.f32.mxu0 %v10313_v18  ;;  %v12596_v18 = vld [vmem:[#allocation119_spill] sm:$0xff] }
 0x407   :  { %7348 = vmatprep.subr.bf16.mxu1 %v12487_v21  ;;  %7412 = vmatprep.subr.bf16.mxu0 %v12488_v25 }
 0x409   :  { %7350 = vmatpush1.bf16.msra.mxu1 %v12579_v62  ;;  %7414 = vmatpush1.bf16.msra.mxu0 %v12580_v11 }
 0x40a   :  { %7352 = vmatprep.subr.bf16.mxu1 %v12581_v31  ;;  %7416 = vmatprep.subr.bf16.mxu0 %v12582_v30 }
 0x40d   :  { %7354 = vmatpush1.bf16.msra.mxu1 %v12583_v46  ;;  %7418 = vmatpush1.bf16.msra.mxu0 %v12584_v40 }
 0x40e   :  { %7356 = vmatprep.subr.bf16.mxu1 %v12585_v22  ;;  %7420 = vmatprep.subr.bf16.mxu0 %v12586_v2 }
 0x411   :  { %7358 = vmatpush1.bf16.msra.mxu1 %v12587_v29  ;;  %7422 = vmatpush1.bf16.msra.mxu0 %v12588_v38 }
 0x412   :  { %7360 = vmatprep.subr.bf16.mxu1 %v12589_v14  ;;  %7424 = vmatprep.subr.bf16.mxu0 %v12590_v54 }
 0x415   :  { %7362 = vmatpush1.bf16.msra.mxu1 %v12501_v20  ;;  %7426 = vmatpush1.bf16.msra.mxu0 %v12591_v27 }
 0x416   :  { %7364 = vmatprep.subr.bf16.mxu1 %v12503_v24  ;;  %7428 = vmatprep.subr.bf16.mxu0 %v12592_v13  ;;  %v12597_v24 = vld [vmem:[#allocation121_spill] sm:$0xff] }
 0x419   :  { %7366 = vmatpush1.bf16.msra.mxu1 %v12505_v9  ;;  %7430 = vmatpush1.bf16.msra.mxu0 %v12593_v37  ;;  %v12598_v9 = vld [vmem:[#allocation123_spill] sm:$0xff] }
 0x41a   :  { %7368 = vmatprep.subr.bf16.mxu1 %v12507_v52  ;;  %7432 = vmatprep.subr.bf16.mxu0 %v12594_v42  ;;  %v12599_v52 = vld [vmem:[#allocation125_spill] sm:$0xff] }
 0x41d   :  { %7370 = vmatpush1.bf16.msra.mxu1 %v12509_v35  ;;  %7434 = vmatpush1.bf16.msra.mxu0 %v12595_v44  ;;  %v12600_v35 = vld [vmem:[#allocation127_spill] sm:$0xff] }
 0x41e   :  { %7372 = vmatprep.subr.bf16.mxu1 %v12511_v32  ;;  %7436 = vmatprep.subr.bf16.mxu0 %v12596_v18  ;;  %v12601_v32 = vld [vmem:[#allocation129_spill] sm:$0xff] }
 0x421   :  { %7374 = vmatpush1.bf16.msra.mxu1 %v12512_v5  ;;  %7438 = vmatpush1.bf16.msra.mxu0 %v12597_v24  ;;  %v12602_v5 = vld [vmem:[#allocation130_spill] sm:$0xff] }
 0x422   :  { %7376 = vmatprep.subr.bf16.mxu1 %v12513_v19  ;;  %7440 = vmatprep.subr.bf16.mxu0 %v12598_v9  ;;  %v12603_v19 = vld [vmem:[#allocation131_spill] sm:$0xff] }
 0x425   :  { %7378 = vmatpush1.bf16.msra.mxu1 %v12514_v58  ;;  %7442 = vmatpush1.bf16.msra.mxu0 %v12599_v52 }
 0x426   :  { %7380 = vmatprep.subr.bf16.mxu1 %v12515_v1  ;;  %7444 = vmatprep.subr.bf16.mxu0 %v12600_v35 }
 0x429   :  { %7382 = vmatpush1.bf16.msra.mxu1 %v12516_v45  ;;  %7446 = vmatpush1.bf16.msra.mxu0 %v12601_v32 }
 0x42a   :  { %7384 = vmatprep.subr.bf16.mxu1 %v12517_v51  ;;  %7448 = vmatprep.subr.bf16.mxu0 %v12602_v5  ;;  %v12604_v51 = vld [vmem:[#allocation135_spill] sm:$0xff] }
 0x42d   :  { %7386 = vmatpush1.bf16.msra.mxu1 %v12518_v56  ;;  %7450 = vmatpush1.bf16.msra.mxu0 %v12603_v19  ;;  %v12605_v56 = vld [vmem:[#allocation136_spill] sm:$0xff] }
 0x42e   :  { %7388 = vmatprep.subr.bf16.mxu1 %v12519_v59  ;;  %7452 = vmatprep.subr.bf16.mxu0 %v9992_v47 }
 0x431   :  { %7390 = vmatpush1.bf16.msra.mxu1 %v12520_v34  ;;  %7454 = vmatpush1.bf16.msra.mxu0 %v9997_v3  ;;  %v12606_v34 = vld [vmem:[#allocation138_spill] sm:$0xff] }
 0x432   :  { %7392 = vmatprep.subr.bf16.mxu1 %v12521_v28  ;;  %7456 = vmatprep.subr.bf16.mxu0 %v10001_v33  ;;  %v12607_v28 = vld [vmem:[#allocation139_spill] sm:$0xff] }
 0x435   :  { %7394 = vmatpush1.bf16.msra.mxu1 %v12522_v48  ;;  %7458 = vmatpush1.bf16.msra.mxu0 %v12604_v51  ;;  %v12608_v48 = vld [vmem:[#allocation140_spill] sm:$0xff] }
 0x436   :  { %7396 = vmatprep.subr.bf16.mxu1 %v12523_v43  ;;  %7460 = vmatprep.subr.bf16.mxu0 %v12605_v56  ;;  %v12609_v43 = vld [vmem:[#allocation141_spill] sm:$0xff] }
 0x439   :  { %7398 = vmatpush1.bf16.msra.mxu1 %v12524_v41  ;;  %7462 = vmatpush1.bf16.msra.mxu0 %v10013_v7  ;;  %v12610_v41 = vld [vmem:[#allocation17_spill] sm:$0xff] }
 0x43a   :  { %7400 = vmatprep.subr.bf16.mxu1 %v9961_v60  ;;  %7464 = vmatprep.subr.bf16.mxu0 %v12606_v34 }
 0x43d   :  { %7402 = vmatpush1.bf16.msra.mxu1 %v9967_v61  ;;  %7466 = vmatpush1.bf16.msra.mxu0 %v12607_v28 }
 0x43e   :  { %7404 = vmatprep.subr.bf16.mxu1 %v9973_v12  ;;  %7468 = vmatprep.subr.bf16.mxu0 %v12608_v48  ;;  %v12672_v12 = vld [vmem:[#allocation145_spill] sm:$0xff] }
 0x441   :  { %7406 = vmatpush1.bf16.msra.mxu1 %v12525_v10  ;;  %7470 = vmatpush1.bf16.msra.mxu0 %v12609_v43  ;;  %v12611_v43 = vld [vmem:[#allocation19_spill] sm:$0xff]  ;;  %v12614_v10 = vld [vmem:[#allocation37_spill] sm:$0xff] }
 0x442   :  { %7472 = vmatprep.subr.bf16.mxu1 %v12526_v23  ;;  %7536 = vmatprep.subr.bf16.mxu0 %v12610_v41  ;;  %v12612_v23 = vld [vmem:[#allocation35_spill] sm:$0xff]  ;;  %v12613_v41 = vld [vmem:[#allocation20_spill] sm:$0xff] }
 0x444   :  { %2278 = vmatmul.mubr.f32.vlgmr.msra.gmra.mrb[22].mxu1 %v10315_v16  ;;  %2349 = vmatmul.mubr.f32.vlgmr.msra.gmra.mrb[54].mxu0 %v10315_v16  ;;  %v12615_v16 = vld [vmem:[#allocation21_spill] sm:$0xff] }
 0x445   :  { %7474 = vmatpush1.bf16.msra.mxu1 %v12527_v39  ;;  %7538 = vmatpush1.bf16.msra.mxu0 %v9647_v55  ;;  %v12616_v39 = vld [vmem:[#allocation39_spill] sm:$0xff]  ;;  %v12617_v55 = vld [vmem:[#allocation22_spill] sm:$0xff] }
 0x446   :  { %7476 = vmatprep.subr.bf16.mxu1 %v12528_v15  ;;  %7540 = vmatprep.subr.bf16.mxu0 %v9653_v50  ;;  %v12618_v15 = vld [vmem:[#allocation41_spill] sm:$0xff]  ;;  %v12619_v50 = vld [vmem:[#allocation23_spill] sm:$0xff] }
 0x449   :  { %7478 = vmatpush1.bf16.msra.mxu1 %v12529_v6  ;;  %7542 = vmatpush1.bf16.msra.mxu0 %v9663_v8  ;;  %v12620_v6 = vld [vmem:[#allocation43_spill] sm:$0xff]  ;;  %v12621_v8 = vld [vmem:[#allocation24_spill] sm:$0xff] }
 0x44a   :  { %7480 = vmatprep.subr.bf16.mxu1 %v12611_v43  ;;  %7544 = vmatprep.subr.bf16.mxu0 %v12612_v23  ;;  %v12622_v43 = vld [vmem:[#allocation45_spill] sm:$0xff] }
 0x44b   :  { %v12623_v23 = vld [vmem:[#allocation25_spill] sm:$0xff] }
 0x44d   :  { %7482 = vmatpush1.bf16.msra.mxu1 %v12613_v41  ;;  %7546 = vmatpush1.bf16.msra.mxu0 %v12614_v10  ;;  %v12624_v41 = vld [vmem:[#allocation47_spill] sm:$0xff]  ;;  %v12625_v10 = vld [vmem:[#allocation26_spill] sm:$0xff] }
 0x44e   :  { %7484 = vmatprep.subr.bf16.mxu1 %v12615_v16  ;;  %7548 = vmatprep.subr.bf16.mxu0 %v12616_v39  ;;  %v12626_v16 = vld [vmem:[#allocation49_spill] sm:$0xff]  ;;  %v12627_v39 = vld [vmem:[#allocation27_spill] sm:$0xff] }
 0x451   :  { %7486 = vmatpush1.bf16.msra.mxu1 %v12617_v55  ;;  %7550 = vmatpush1.bf16.msra.mxu0 %v12618_v15  ;;  %v12628_v55 = vld [vmem:[#allocation51_spill] sm:$0xff]  ;;  %v12629_v15 = vld [vmem:[#allocation28_spill] sm:$0xff] }
 0x452   :  { %7488 = vmatprep.subr.bf16.mxu1 %v12619_v50  ;;  %7552 = vmatprep.subr.bf16.mxu0 %v12620_v6  ;;  %v12630_v50 = vld [vmem:[#allocation53_spill] sm:$0xff]  ;;  %v12631_v6 = vld [vmem:[#allocation30_spill] sm:$0xff] }
 0x455   :  { %7490 = vmatpush1.bf16.msra.mxu1 %v12621_v8  ;;  %7554 = vmatpush1.bf16.msra.mxu0 %v12622_v43  ;;  %v12632_v8 = vld [vmem:[#allocation55_spill] sm:$0xff]  ;;  %v12633_v43 = vld [vmem:[#allocation32_spill] sm:$0xff] }
 0x456   :  { %7492 = vmatprep.subr.bf16.mxu1 %v12623_v23  ;;  %7556 = vmatprep.subr.bf16.mxu0 %v12624_v41  ;;  %v12634_v23 = vld [vmem:[#allocation57_spill] sm:$0xff]  ;;  %v12635_v41 = vld [vmem:[#allocation34_spill] sm:$0xff] }
 0x459   :  { %7494 = vmatpush1.bf16.msra.mxu1 %v12625_v10  ;;  %7558 = vmatpush1.bf16.msra.mxu0 %v12626_v16  ;;  %v12636_v10 = vld [vmem:[#allocation59_spill] sm:$0xff]  ;;  %v12637_v16 = vld [vmem:[#allocation36_spill] sm:$0xff] }
 0x45a   :  { %7496 = vmatprep.subr.bf16.mxu1 %v12627_v39  ;;  %7560 = vmatprep.subr.bf16.mxu0 %v12628_v55  ;;  %v12638_v39 = vld [vmem:[#allocation61_spill] sm:$0xff]  ;;  %v12639_v55 = vld [vmem:[#allocation38_spill] sm:$0xff] }
 0x45d   :  { %7498 = vmatpush1.bf16.msra.mxu1 %v12629_v15  ;;  %7562 = vmatpush1.bf16.msra.mxu0 %v12630_v50  ;;  %v12640_v15 = vld [vmem:[#allocation63_spill] sm:$0xff]  ;;  %v12641_v50 = vld [vmem:[#allocation40_spill] sm:$0xff] }
 0x45e   :  { %7500 = vmatprep.subr.bf16.mxu1 %v12631_v6  ;;  %7564 = vmatprep.subr.bf16.mxu0 %v12632_v8  ;;  %v12642_v6 = vld [vmem:[#allocation65_spill] sm:$0xff]  ;;  %v12643_v8 = vld [vmem:[#allocation42_spill] sm:$0xff] }
 0x461   :  { %7502 = vmatpush1.bf16.msra.mxu1 %v12633_v43  ;;  %7566 = vmatpush1.bf16.msra.mxu0 %v12634_v23  ;;  %v12644_v43 = vld [vmem:[#allocation66_spill] sm:$0xff]  ;;  %v12645_v23 = vld [vmem:[#allocation44_spill] sm:$0xff] }
 0x462   :  { %7504 = vmatprep.subr.bf16.mxu1 %v12635_v41  ;;  %7568 = vmatprep.subr.bf16.mxu0 %v12636_v10  ;;  %v12646_v41 = vld [vmem:[#allocation68_spill] sm:$0xff]  ;;  %v12647_v10 = vld [vmem:[#allocation46_spill] sm:$0xff] }
 0x465   :  { %7506 = vmatpush1.bf16.msra.mxu1 %v12637_v16  ;;  %7570 = vmatpush1.bf16.msra.mxu0 %v12638_v39  ;;  %v12648_v16 = vld [vmem:[#allocation70_spill] sm:$0xff]  ;;  %v12649_v39 = vld [vmem:[#allocation48_spill] sm:$0xff] }
 0x466   :  { %7508 = vmatprep.subr.bf16.mxu1 %v12639_v55  ;;  %7572 = vmatprep.subr.bf16.mxu0 %v12640_v15  ;;  %v12650_v55 = vld [vmem:[#allocation72_spill] sm:$0xff]  ;;  %v12651_v15 = vld [vmem:[#allocation50_spill] sm:$0xff] }
 0x469   :  { %7510 = vmatpush1.bf16.msra.mxu1 %v12641_v50  ;;  %7574 = vmatpush1.bf16.msra.mxu0 %v12642_v6  ;;  %v12652_v50 = vld [vmem:[#allocation74_spill] sm:$0xff]  ;;  %v12653_v6 = vld [vmem:[#allocation52_spill] sm:$0xff] }
 0x46a   :  { %7512 = vmatprep.subr.bf16.mxu1 %v12643_v8  ;;  %7576 = vmatprep.subr.bf16.mxu0 %v12644_v43  ;;  %v12654_v8 = vld [vmem:[#allocation76_spill] sm:$0xff]  ;;  %v12655_v43 = vld [vmem:[#allocation54_spill] sm:$0xff] }
 0x46d   :  { %7514 = vmatpush1.bf16.msra.mxu1 %v12645_v23  ;;  %7578 = vmatpush1.bf16.msra.mxu0 %v12646_v41  ;;  %v12656_v23 = vld [vmem:[#allocation78_spill] sm:$0xff]  ;;  %v12657_v41 = vld [vmem:[#allocation56_spill] sm:$0xff] }
 0x46e   :  { %7516 = vmatprep.subr.bf16.mxu1 %v12647_v10  ;;  %7580 = vmatprep.subr.bf16.mxu0 %v12648_v16  ;;  %v12658_v10 = vld [vmem:[#allocation80_spill] sm:$0xff]  ;;  %v12659_v16 = vld [vmem:[#allocation58_spill] sm:$0xff] }
 0x471   :  { %7518 = vmatpush1.bf16.msra.mxu1 %v12649_v39  ;;  %7582 = vmatpush1.bf16.msra.mxu0 %v12650_v55  ;;  %v12660_v39 = vld [vmem:[#allocation82_spill] sm:$0xff]  ;;  %v12661_v55 = vld [vmem:[#allocation60_spill] sm:$0xff] }
 0x472   :  { %7520 = vmatprep.subr.bf16.mxu1 %v12651_v15  ;;  %7584 = vmatprep.subr.bf16.mxu0 %v12652_v50  ;;  %v12662_v15 = vld [vmem:[#allocation84_spill] sm:$0xff]  ;;  %v12663_v50 = vld [vmem:[#allocation62_spill] sm:$0xff] }
 0x475   :  { %7522 = vmatpush1.bf16.msra.mxu1 %v12653_v6  ;;  %7586 = vmatpush1.bf16.msra.mxu0 %v12654_v8  ;;  %v12664_v6 = vld [vmem:[#allocation86_spill] sm:$0xff]  ;;  %v12665_v8 = vld [vmem:[#allocation64_spill] sm:$0xff] }
 0x476   :  { %7524 = vmatprep.subr.bf16.mxu1 %v12655_v43  ;;  %7588 = vmatprep.subr.bf16.mxu0 %v12656_v23  ;;  %v12666_v43 = vld [vmem:[#allocation88_spill] sm:$0xff]  ;;  %v12667_v23 = vld [vmem:[#allocation67_spill] sm:$0xff] }
 0x479   :  { %7526 = vmatpush1.bf16.msra.mxu1 %v12657_v41  ;;  %7590 = vmatpush1.bf16.msra.mxu0 %v12658_v10  ;;  %v12668_v41 = vld [vmem:[#allocation91_spill] sm:$0xff]  ;;  %v12669_v10 = vld [vmem:[#allocation154_spill] sm:$0xff] }
 0x47a   :  { %7528 = vmatprep.subr.bf16.mxu1 %v12659_v16  ;;  %7592 = vmatprep.subr.bf16.mxu0 %v12660_v39  ;;  %v12670_v16 = vld [vmem:[#allocation144_spill] sm:$0xff]  ;;  %v12671_v39 = vld [vmem:[#allocation155_spill] sm:$0xff] }
 0x47b   :  { %v585_v48 = vadd.f32 %v12670_v16, %v12669_v10 }
 0x47d   :  { %7530 = vmatpush1.bf16.msra.mxu1 %v12661_v55  ;;  %7594 = vmatpush1.bf16.msra.mxu0 %v12662_v15  ;;  %v587_v55 = vadd.f32 %v12672_v12, %v12671_v39 }
 0x47e   :  { %7532 = vmatprep.subr.bf16.mxu1 %v12663_v50  ;;  %7596 = vmatprep.subr.bf16.mxu0 %v12664_v6 }
 0x481   :  { %7534 = vmatpush1.bf16.msra.mxu1 %v12665_v8  ;;  %7598 = vmatpush1.bf16.msra.mxu0 %v12666_v43  ;;  %v12673_v43 = vld [vmem:[#allocation156_spill] sm:$0xff] }
 0x482   :  { %7600 = vmatprep.subr.bf16.mxu1 %v12667_v23  ;;  %7664 = vmatprep.subr.bf16.mxu0 %v12668_v41 }
 0x4d7   :  { %v2137_v28 = vpop.f32.mrb[32].mxu1  ;;  %v2208_v15 = vpop.f32.mrb[32].mxu0 }
 0x4d8   :  { %v2355_v61 = vadd.f32 %v2137_v28, %v585_v48  ;;  %v2139_v50 = vpop.f32.mrb[33].mxu1  ;;  %v2210_v34 = vpop.f32.mrb[33].mxu0  ;;  %v8819_v7 = vadd.f32 %v2208_v15, %v12673_v43 }
 0x4d9   :  { %v2356_v6 = vadd.f32 %v2139_v50, %v587_v55 }
 0x4da   :  { %v2363_v60 = vmul.f32 0.5, %v2355_v61 }
 0x4db   :  { %v2364_v8 = vmul.f32 0.5, %v2356_v6 }
 0x4dc   :  { %8970 = vtanh.f32 %v2363_v60 }
 0x4dd   :  { %8972 = vtanh.f32 %v2364_v8 }
 0x4de   :  { %8974 = vtanh.f32 %v8819_v7 }
 0x4e6   :  { %v8971_v41 = vpop.eup %8970 }
 0x4e7   :  { %v8973_v23 = vpop.eup %8972  ;;  %v2387_v56 = vmul.f32 0.5, %v8971_v41 }
 0x4e8   :  { %v2388_v16 = vmul.f32 0.5, %v8973_v23  ;;  %v8975_v51 = vpop.eup %8974 }
 0x4e9   :  { %v2395_v10 = vadd.f32 0.5, %v2387_v56 }
 0x4ea   :  { %v2396_v12 = vadd.f32 0.5, %v2388_v16 }
 0x4eb   :  { %v2412_v39 = vmul.f32 %v8975_v51, %v2395_v10  ;;  %v8820_v10 = vadd.f32 %v2210_v34, %v10146_v4 }
 0x4ec   :  { %v2411_v28 = vmul.f32 %v2396_v12, %v10301_v53 }
 0x4ed   :  { %v2366_v23 = vmul.f32 0.5, %v8820_v10 }
 0x4ee   :  { %v10459_v48 = vadd.f32 %v2412_v39, %v2411_v28 }
 0x517   :  { %v2279_v55 = vpop.f32.mrb[22].mxu1  ;;  %v2350_v50 = vpop.f32.mrb[54].mxu0 }
 0x518   :  { %v8841_v60 = vadd.f32 %v2279_v55, %v12575_v17  ;;  %v2281_v61 = vpop.f32.mrb[23].mxu1  ;;  %v2352_v15 = vpop.f32.mrb[55].mxu0  ;;  %v8857_v56 = vadd.f32 %v2350_v50, %v10142_v26 }
 0x519   :  { %v8842_v7 = vadd.f32 %v2281_v61, %v12576_v36  ;;  %v8858_v51 = vadd.f32 %v2352_v15, %v10144_v49 }
 0x51a   :  { %v2367_v8 = vmul.f32 0.5, %v8841_v60 }
 0x51b   :  { %v2368_v6 = vmul.f32 0.5, %v8842_v7  ;;  %v2370_v41 = vmul.f32 0.5, %v8858_v51 }
 0x51c   :  { %8976 = vtanh.f32 %v2367_v8 }
 0x51d   :  { %8978 = vtanh.f32 %v2368_v6 }
 0x51e   :  { %8980 = vtanh.f32 %v8857_v56 }
 0x51f   :  { %8982 = vtanh.f32 %v2370_v41 }
 0x520   :  { %8984 = vtanh.f32 %v2366_v23 }
 0x521   :  { %8986 = vtanh.f32 %v10459_v48 }
 0x526   :  { %v8977_v39 = vpop.eup %8976 }
 0x527   :  { %v8979_v53 = vpop.eup %8978  ;;  %v2391_v16 = vmul.f32 0.5, %v8977_v39 }
 0x528   :  { %v2392_v12 = vmul.f32 0.5, %v8979_v53  ;;  %v8981_v55 = vpop.eup %8980  ;;  %v12677_v53 = vld [vmem:[#allocation89_spill] sm:$0xff] }
 0x529   :  { %v2399_v28 = vadd.f32 0.5, %v2391_v16  ;;  %v8983_v34 = vpop.eup %8982  ;;  %v12678_v16 = vld [vmem:[#allocation90_spill] sm:$0xff] }
 0x52a   :  { %v2400_v60 = vadd.f32 0.5, %v2392_v12  ;;  %v8985_v15 = vpop.eup %8984  ;;  %v2394_v8 = vmul.f32 0.5, %v8983_v34  ;;  %v12679_v12 = vld [vmem:[#allocation92_spill] sm:$0xff] }
 0x52b   :  { %v2417_v61 = vmul.f32 %v8981_v55, %v2399_v28  ;;  %v2390_v6 = vmul.f32 0.5, %v8985_v15  ;;  %v8987_v56 = vpop.eup %8986  ;;  %v12680_v28 = vld [vmem:[#allocation94_spill] sm:$0xff]  ;;  %v12681_v55 = vld [vmem:[#allocation96_spill] sm:$0xff] }
 0x52c   :  { %v2416_v50 = vmul.f32 %v2400_v60, %v10309_v0  ;;  %v2402_v51 = vadd.f32 0.5, %v2394_v8  ;;  %v12676_v0 = vld [vmem:[#allocation87_spill] sm:$0xff]  ;;  %v12682_v60 = vld [vmem:[#allocation98_spill] sm:$0xff]  ;;  %v12685_v34 = vld [vmem:[#allocation112_spill] sm:$0xff] }
 0x52d   :  { %v2398_v41 = vadd.f32 0.5, %v2390_v6  ;;  %v12686_v15 = vld [vmem:[#allocation114_spill] sm:$0xff]  ;;  %v12687_v8 = vld [vmem:[#allocation116_spill] sm:$0xff]  ;;  %v12688_v6 = vld [vmem:[#allocation135_spill] sm:$0xff] }
 0x52e   :  { %v10467_v7 = vadd.f32 %v2417_v61, %v2416_v50  ;;  %v12683_v61 = vld [vmem:[#allocation106_spill] sm:$0xff]  ;;  %v12684_v50 = vld [vmem:[#allocation108_spill] sm:$0xff] }
 0x52f   :  { %v10473_v39 = vmul.f32 %v8987_v56, %v2398_v41  ;;  %v12689_v56 = vld [vmem:[#allocation118_spill] sm:$0xff]  ;;  %v12692_v41 = vld [vmem:[#allocation137_spill] sm:$0xff] }
 0x530   :  { %8988 = vtanh.f32 %v10467_v7 }
 0x531   :  { %12675 = vst [vmem:[#allocation95_spill] sm:$0xff] %v10473_v39 }
 0x53a   :  { %v8989_v10 = vpop.eup %8988 }
 0x53b   :  { %v10471_v23 = vmul.f32 %v8989_v10, %v2402_v51  ;;  %v12690_v51 = vld [vmem:[#allocation136_spill] sm:$0xff] }
 0x53c   :  { %v12691_v10 = vld [vmem:[#allocation120_spill] sm:$0xff] }
 0x53d   :  { %12674 = vst [vmem:[#allocation71_spill] sm:$0xff] %v10471_v23  ;;  %2495 = vmatprep.mubr.f32.mxu1 %v10471_v23  ;;  %2566 = vmatprep.mubr.f32.mxu0 %v10471_v23 }
 0x53e   :  { %2496 = vmatmul.mubr.f32.vlgmr.msra.gmra.mrb[34].mxu1 %v10473_v39  ;;  %2567 = vmatmul.mubr.f32.vlgmr.msra.gmra.mrb[34].mxu0 %v10473_v39 }
 0x53f   :  { %7602 = vmatpush1.bf16.msra.mxu1 %v12485_v63  ;;  %7666 = vmatpush1.bf16.msra.mxu0 %v12486_v57 }
 0x540   :  { %2637 = vmatprep.mubr.f32.mxu1 %v10471_v23  ;;  %2708 = vmatprep.mubr.f32.mxu0 %v10471_v23  ;;  %v12693_v23 = vld [vmem:[#allocation122_spill] sm:$0xff] }
 0x541   :  { %7604 = vmatprep.subr.bf16.mxu1 %v12487_v21  ;;  %7668 = vmatprep.subr.bf16.mxu0 %v12488_v25 }
 0x543   :  { %7606 = vmatpush1.bf16.msra.mxu1 %v12579_v62  ;;  %7670 = vmatpush1.bf16.msra.mxu0 %v12580_v11 }
 0x544   :  { %7608 = vmatprep.subr.bf16.mxu1 %v12581_v31  ;;  %7672 = vmatprep.subr.bf16.mxu0 %v12582_v30 }
 0x547   :  { %7610 = vmatpush1.bf16.msra.mxu1 %v12583_v46  ;;  %7674 = vmatpush1.bf16.msra.mxu0 %v12584_v40 }
 0x548   :  { %7612 = vmatprep.subr.bf16.mxu1 %v12585_v22  ;;  %7676 = vmatprep.subr.bf16.mxu0 %v12586_v2 }
 0x54b   :  { %7614 = vmatpush1.bf16.msra.mxu1 %v12587_v29  ;;  %7678 = vmatpush1.bf16.msra.mxu0 %v12588_v38 }
 0x54c   :  { %7616 = vmatprep.subr.bf16.mxu1 %v12589_v14  ;;  %7680 = vmatprep.subr.bf16.mxu0 %v12590_v54 }
 0x54f   :  { %7618 = vmatpush1.bf16.msra.mxu1 %v12501_v20  ;;  %7682 = vmatpush1.bf16.msra.mxu0 %v12591_v27 }
 0x550   :  { %7620 = vmatprep.subr.bf16.mxu1 %v12676_v0  ;;  %7684 = vmatprep.subr.bf16.mxu0 %v12592_v13 }
 0x553   :  { %7622 = vmatpush1.bf16.msra.mxu1 %v12677_v53  ;;  %7686 = vmatpush1.bf16.msra.mxu0 %v12593_v37 }
 0x554   :  { %7624 = vmatprep.subr.bf16.mxu1 %v12678_v16  ;;  %7688 = vmatprep.subr.bf16.mxu0 %v12594_v42 }
 0x557   :  { %7626 = vmatpush1.bf16.msra.mxu1 %v12679_v12  ;;  %7690 = vmatpush1.bf16.msra.mxu0 %v12595_v44 }
 0x558   :  { %7628 = vmatprep.subr.bf16.mxu1 %v12680_v28  ;;  %7692 = vmatprep.subr.bf16.mxu0 %v12596_v18 }
 0x55b   :  { %7630 = vmatpush1.bf16.msra.mxu1 %v12681_v55  ;;  %7694 = vmatpush1.bf16.msra.mxu0 %v12597_v24 }
 0x55c   :  { %7632 = vmatprep.subr.bf16.mxu1 %v12682_v60  ;;  %7696 = vmatprep.subr.bf16.mxu0 %v12598_v9 }
 0x55f   :  { %7634 = vmatpush1.bf16.msra.mxu1 %v12514_v58  ;;  %7698 = vmatpush1.bf16.msra.mxu0 %v12599_v52 }
 0x560   :  { %7636 = vmatprep.subr.bf16.mxu1 %v12515_v1  ;;  %7700 = vmatprep.subr.bf16.mxu0 %v12600_v35 }
 0x563   :  { %7638 = vmatpush1.bf16.msra.mxu1 %v12516_v45  ;;  %7702 = vmatpush1.bf16.msra.mxu0 %v12601_v32 }
 0x564   :  { %7640 = vmatprep.subr.bf16.mxu1 %v12683_v61  ;;  %7704 = vmatprep.subr.bf16.mxu0 %v12602_v5 }
 0x567   :  { %7642 = vmatpush1.bf16.msra.mxu1 %v12684_v50  ;;  %7706 = vmatpush1.bf16.msra.mxu0 %v12603_v19 }
 0x568   :  { %7644 = vmatprep.subr.bf16.mxu1 %v12519_v59  ;;  %7708 = vmatprep.subr.bf16.mxu0 %v9992_v47  ;;  %v12770_v47 = vld [vmem:[#allocation147_spill] sm:$0xff] }
 0x56b   :  { %7646 = vmatpush1.bf16.msra.mxu1 %v12685_v34  ;;  %7710 = vmatpush1.bf16.msra.mxu0 %v9997_v3  ;;  %v12694_v34 = vld [vmem:[#allocation138_spill] sm:$0xff]  ;;  %v12695_v3 = vld [vmem:[#allocation124_spill] sm:$0xff] }
 0x56c   :  { %7648 = vmatprep.subr.bf16.mxu1 %v12686_v15  ;;  %7712 = vmatprep.subr.bf16.mxu0 %v10001_v33  ;;  %v12696_v15 = vld [vmem:[#allocation139_spill] sm:$0xff]  ;;  %v12697_v33 = vld [vmem:[#allocation126_spill] sm:$0xff] }
 0x56f   :  { %7650 = vmatpush1.bf16.msra.mxu1 %v12687_v8  ;;  %7714 = vmatpush1.bf16.msra.mxu0 %v12688_v6  ;;  %v12698_v8 = vld [vmem:[#allocation140_spill] sm:$0xff] }
 0x570   :  { %7652 = vmatprep.subr.bf16.mxu1 %v12689_v56  ;;  %7716 = vmatprep.subr.bf16.mxu0 %v12690_v51  ;;  %v12699_v6 = vld [vmem:[#allocation128_spill] sm:$0xff]  ;;  %v12700_v56 = vld [vmem:[#allocation141_spill] sm:$0xff]  ;;  %v12701_v51 = vld [vmem:[#allocation14_spill] sm:$0xff] }
 0x573   :  { %7654 = vmatpush1.bf16.msra.mxu1 %v12691_v10  ;;  %7718 = vmatpush1.bf16.msra.mxu0 %v12692_v41  ;;  %v12702_v10 = vld [vmem:[#allocation17_spill] sm:$0xff] }
 0x574   :  { %7656 = vmatprep.subr.bf16.mxu1 %v12693_v23  ;;  %7720 = vmatprep.subr.bf16.mxu0 %v12694_v34  ;;  %v12703_v34 = vld [vmem:[#allocation15_spill] sm:$0xff]  ;;  %v12712_v23 = vld [vmem:[#allocation37_spill] sm:$0xff] }
 0x577   :  { %7658 = vmatpush1.bf16.msra.mxu1 %v12695_v3  ;;  %7722 = vmatpush1.bf16.msra.mxu0 %v12696_v15  ;;  %v12704_v3 = vld [vmem:[#allocation29_spill] sm:$0xff]  ;;  %v12705_v15 = vld [vmem:[#allocation16_spill] sm:$0xff] }
 0x578   :  { %7660 = vmatprep.subr.bf16.mxu1 %v12697_v33  ;;  %7724 = vmatprep.subr.bf16.mxu0 %v12698_v8  ;;  %v12706_v33 = vld [vmem:[#allocation31_spill] sm:$0xff]  ;;  %v12707_v8 = vld [vmem:[#allocation18_spill] sm:$0xff] }
 0x57b   :  { %7662 = vmatpush1.bf16.msra.mxu1 %v12699_v6  ;;  %7726 = vmatpush1.bf16.msra.mxu0 %v12700_v56  ;;  %v12708_v6 = vld [vmem:[#allocation33_spill] sm:$0xff]  ;;  %v12709_v56 = vld [vmem:[#allocation19_spill] sm:$0xff] }
 0x57c   :  { %7728 = vmatprep.subr.bf16.mxu1 %v12701_v51  ;;  %7792 = vmatprep.subr.bf16.mxu0 %v12702_v10  ;;  %v12710_v51 = vld [vmem:[#allocation35_spill] sm:$0xff]  ;;  %v12711_v10 = vld [vmem:[#allocation20_spill] sm:$0xff] }
 0x57e   :  { %2638 = vmatmul.mubr.f32.vlgmr.msra.gmra.mrb[20].mxu1 %v10473_v39  ;;  %2709 = vmatmul.mubr.f32.vlgmr.msra.gmra.mrb[52].mxu0 %v10473_v39  ;;  %v12713_v39 = vld [vmem:[#allocation21_spill] sm:$0xff] }
 0x57f   :  { %7730 = vmatpush1.bf16.msra.mxu1 %v12703_v34  ;;  %7794 = vmatpush1.bf16.msra.mxu0 %v12704_v3  ;;  %v12714_v34 = vld [vmem:[#allocation39_spill] sm:$0xff]  ;;  %v12715_v3 = vld [vmem:[#allocation22_spill] sm:$0xff] }
 0x580   :  { %7732 = vmatprep.subr.bf16.mxu1 %v12705_v15  ;;  %7796 = vmatprep.subr.bf16.mxu0 %v12706_v33  ;;  %v12716_v15 = vld [vmem:[#allocation41_spill] sm:$0xff]  ;;  %v12717_v33 = vld [vmem:[#allocation23_spill] sm:$0xff] }
 0x583   :  { %7734 = vmatpush1.bf16.msra.mxu1 %v12707_v8  ;;  %7798 = vmatpush1.bf16.msra.mxu0 %v12708_v6  ;;  %v12718_v8 = vld [vmem:[#allocation43_spill] sm:$0xff]  ;;  %v12719_v6 = vld [vmem:[#allocation24_spill] sm:$0xff] }
 0x584   :  { %7736 = vmatprep.subr.bf16.mxu1 %v12709_v56  ;;  %7800 = vmatprep.subr.bf16.mxu0 %v12710_v51  ;;  %v12720_v56 = vld [vmem:[#allocation45_spill] sm:$0xff] }
 0x585   :  { %v12721_v51 = vld [vmem:[#allocation25_spill] sm:$0xff] }
 0x587   :  { %7738 = vmatpush1.bf16.msra.mxu1 %v12711_v10  ;;  %7802 = vmatpush1.bf16.msra.mxu0 %v12712_v23  ;;  %v12722_v10 = vld [vmem:[#allocation47_spill] sm:$0xff]  ;;  %v12723_v23 = vld [vmem:[#allocation26_spill] sm:$0xff] }
 0x588   :  { %7740 = vmatprep.subr.bf16.mxu1 %v12713_v39  ;;  %7804 = vmatprep.subr.bf16.mxu0 %v12714_v34  ;;  %v12724_v39 = vld [vmem:[#allocation49_spill] sm:$0xff]  ;;  %v12725_v34 = vld [vmem:[#allocation27_spill] sm:$0xff] }
 0x58b   :  { %7742 = vmatpush1.bf16.msra.mxu1 %v12715_v3  ;;  %7806 = vmatpush1.bf16.msra.mxu0 %v12716_v15  ;;  %v12726_v3 = vld [vmem:[#allocation51_spill] sm:$0xff]  ;;  %v12727_v15 = vld [vmem:[#allocation28_spill] sm:$0xff] }
 0x58c   :  { %7744 = vmatprep.subr.bf16.mxu1 %v12717_v33  ;;  %7808 = vmatprep.subr.bf16.mxu0 %v12718_v8  ;;  %v12728_v33 = vld [vmem:[#allocation53_spill] sm:$0xff]  ;;  %v12729_v8 = vld [vmem:[#allocation30_spill] sm:$0xff] }
 0x58f   :  { %7746 = vmatpush1.bf16.msra.mxu1 %v12719_v6  ;;  %7810 = vmatpush1.bf16.msra.mxu0 %v12720_v56  ;;  %v12730_v6 = vld [vmem:[#allocation55_spill] sm:$0xff]  ;;  %v12731_v56 = vld [vmem:[#allocation32_spill] sm:$0xff] }
 0x590   :  { %7748 = vmatprep.subr.bf16.mxu1 %v12721_v51  ;;  %7812 = vmatprep.subr.bf16.mxu0 %v12722_v10  ;;  %v12732_v51 = vld [vmem:[#allocation57_spill] sm:$0xff]  ;;  %v12733_v10 = vld [vmem:[#allocation34_spill] sm:$0xff] }
 0x593   :  { %7750 = vmatpush1.bf16.msra.mxu1 %v12723_v23  ;;  %7814 = vmatpush1.bf16.msra.mxu0 %v12724_v39  ;;  %v12734_v23 = vld [vmem:[#allocation59_spill] sm:$0xff]  ;;  %v12735_v39 = vld [vmem:[#allocation36_spill] sm:$0xff] }
 0x594   :  { %7752 = vmatprep.subr.bf16.mxu1 %v12725_v34  ;;  %7816 = vmatprep.subr.bf16.mxu0 %v12726_v3  ;;  %v12736_v34 = vld [vmem:[#allocation61_spill] sm:$0xff]  ;;  %v12737_v3 = vld [vmem:[#allocation38_spill] sm:$0xff] }
 0x597   :  { %7754 = vmatpush1.bf16.msra.mxu1 %v12727_v15  ;;  %7818 = vmatpush1.bf16.msra.mxu0 %v12728_v33  ;;  %v12738_v15 = vld [vmem:[#allocation63_spill] sm:$0xff]  ;;  %v12739_v33 = vld [vmem:[#allocation40_spill] sm:$0xff] }
 0x598   :  { %7756 = vmatprep.subr.bf16.mxu1 %v12729_v8  ;;  %7820 = vmatprep.subr.bf16.mxu0 %v12730_v6  ;;  %v12740_v8 = vld [vmem:[#allocation65_spill] sm:$0xff]  ;;  %v12741_v6 = vld [vmem:[#allocation42_spill] sm:$0xff] }
 0x59b   :  { %7758 = vmatpush1.bf16.msra.mxu1 %v12731_v56  ;;  %7822 = vmatpush1.bf16.msra.mxu0 %v12732_v51  ;;  %v12742_v56 = vld [vmem:[#allocation66_spill] sm:$0xff]  ;;  %v12743_v51 = vld [vmem:[#allocation44_spill] sm:$0xff] }
 0x59c   :  { %7760 = vmatprep.subr.bf16.mxu1 %v12733_v10  ;;  %7824 = vmatprep.subr.bf16.mxu0 %v12734_v23  ;;  %v12744_v10 = vld [vmem:[#allocation68_spill] sm:$0xff]  ;;  %v12745_v23 = vld [vmem:[#allocation46_spill] sm:$0xff] }
 0x59f   :  { %7762 = vmatpush1.bf16.msra.mxu1 %v12735_v39  ;;  %7826 = vmatpush1.bf16.msra.mxu0 %v12736_v34  ;;  %v12746_v39 = vld [vmem:[#allocation70_spill] sm:$0xff]  ;;  %v12747_v34 = vld [vmem:[#allocation48_spill] sm:$0xff] }
 0x5a0   :  { %7764 = vmatprep.subr.bf16.mxu1 %v12737_v3  ;;  %7828 = vmatprep.subr.bf16.mxu0 %v12738_v15  ;;  %v12748_v3 = vld [vmem:[#allocation72_spill] sm:$0xff]  ;;  %v12749_v15 = vld [vmem:[#allocation50_spill] sm:$0xff] }
 0x5a3   :  { %7766 = vmatpush1.bf16.msra.mxu1 %v12739_v33  ;;  %7830 = vmatpush1.bf16.msra.mxu0 %v12740_v8  ;;  %v12750_v33 = vld [vmem:[#allocation74_spill] sm:$0xff]  ;;  %v12751_v8 = vld [vmem:[#allocation52_spill] sm:$0xff] }
 0x5a4   :  { %7768 = vmatprep.subr.bf16.mxu1 %v12741_v6  ;;  %7832 = vmatprep.subr.bf16.mxu0 %v12742_v56  ;;  %v12752_v6 = vld [vmem:[#allocation76_spill] sm:$0xff]  ;;  %v12753_v56 = vld [vmem:[#allocation54_spill] sm:$0xff] }
 0x5a7   :  { %7770 = vmatpush1.bf16.msra.mxu1 %v12743_v51  ;;  %7834 = vmatpush1.bf16.msra.mxu0 %v12744_v10  ;;  %v12754_v51 = vld [vmem:[#allocation78_spill] sm:$0xff]  ;;  %v12755_v10 = vld [vmem:[#allocation56_spill] sm:$0xff] }
 0x5a8   :  { %7772 = vmatprep.subr.bf16.mxu1 %v12745_v23  ;;  %7836 = vmatprep.subr.bf16.mxu0 %v12746_v39  ;;  %v12756_v23 = vld [vmem:[#allocation80_spill] sm:$0xff]  ;;  %v12757_v39 = vld [vmem:[#allocation58_spill] sm:$0xff] }
 0x5ab   :  { %7774 = vmatpush1.bf16.msra.mxu1 %v12747_v34  ;;  %7838 = vmatpush1.bf16.msra.mxu0 %v12748_v3  ;;  %v12758_v34 = vld [vmem:[#allocation82_spill] sm:$0xff]  ;;  %v12759_v3 = vld [vmem:[#allocation60_spill] sm:$0xff] }
 0x5ac   :  { %7776 = vmatprep.subr.bf16.mxu1 %v12749_v15  ;;  %7840 = vmatprep.subr.bf16.mxu0 %v12750_v33  ;;  %v12760_v15 = vld [vmem:[#allocation84_spill] sm:$0xff]  ;;  %v12761_v33 = vld [vmem:[#allocation62_spill] sm:$0xff] }
 0x5af   :  { %7778 = vmatpush1.bf16.msra.mxu1 %v12751_v8  ;;  %7842 = vmatpush1.bf16.msra.mxu0 %v12752_v6  ;;  %v12762_v8 = vld [vmem:[#allocation86_spill] sm:$0xff]  ;;  %v12763_v6 = vld [vmem:[#allocation64_spill] sm:$0xff] }
 0x5b0   :  { %7780 = vmatprep.subr.bf16.mxu1 %v12753_v56  ;;  %7844 = vmatprep.subr.bf16.mxu0 %v12754_v51  ;;  %v12764_v56 = vld [vmem:[#allocation88_spill] sm:$0xff]  ;;  %v12765_v51 = vld [vmem:[#allocation67_spill] sm:$0xff] }
 0x5b3   :  { %7782 = vmatpush1.bf16.msra.mxu1 %v12755_v10  ;;  %7846 = vmatpush1.bf16.msra.mxu0 %v12756_v23  ;;  %v12766_v10 = vld [vmem:[#allocation91_spill] sm:$0xff]  ;;  %v12767_v23 = vld [vmem:[#allocation154_spill] sm:$0xff] }
 0x5b4   :  { %7784 = vmatprep.subr.bf16.mxu1 %v12757_v39  ;;  %7848 = vmatprep.subr.bf16.mxu0 %v12758_v34  ;;  %v12768_v39 = vld [vmem:[#allocation146_spill] sm:$0xff]  ;;  %v12769_v34 = vld [vmem:[#allocation155_spill] sm:$0xff] }
 0x5b5   :  { %v591_v41 = vadd.f32 %v12768_v39, %v12767_v23 }
 0x5b7   :  { %7786 = vmatpush1.bf16.msra.mxu1 %v12759_v3  ;;  %7850 = vmatpush1.bf16.msra.mxu0 %v12760_v15  ;;  %v593_v3 = vadd.f32 %v12770_v47, %v12769_v34 }
 0x5b8   :  { %7788 = vmatprep.subr.bf16.mxu1 %v12761_v33  ;;  %7852 = vmatprep.subr.bf16.mxu0 %v12762_v8 }
 0x5bb   :  { %7790 = vmatpush1.bf16.msra.mxu1 %v12763_v6  ;;  %7854 = vmatpush1.bf16.msra.mxu0 %v12764_v56 }
 0x5bc   :  { %7856 = vmatprep.subr.bf16.mxu1 %v12765_v51  ;;  %7920 = vmatprep.subr.bf16.mxu0 %v12766_v10 }
 0x611   :  { %v2497_v59 = vpop.f32.mrb[34].mxu1  ;;  %v2568_v15 = vpop.f32.mrb[34].mxu0 }
 0x612   :  { %v2715_v19 = vadd.f32 %v2497_v59, %v591_v41  ;;  %v2499_v33 = vpop.f32.mrb[35].mxu1  ;;  %v2570_v50 = vpop.f32.mrb[35].mxu0  ;;  %v8821_v56 = vadd.f32 %v2568_v15, %v12673_v43 }
 0x613   :  { %v2716_v8 = vadd.f32 %v2499_v33, %v593_v3 }
 0x614   :  { %v2723_v5 = vmul.f32 0.5, %v2715_v19 }
 0x615   :  { %v2724_v6 = vmul.f32 0.5, %v2716_v8 }
 0x616   :  { %8990 = vtanh.f32 %v2723_v5 }
 0x617   :  { %8992 = vtanh.f32 %v2724_v6 }
 0x618   :  { %8994 = vtanh.f32 %v8821_v56 }
 0x620   :  { %v8991_v10 = vpop.eup %8990 }
 0x621   :  { %v8993_v51 = vpop.eup %8992  ;;  %v2747_v61 = vmul.f32 0.5, %v8991_v10 }
 0x622   :  { %v2748_v39 = vmul.f32 0.5, %v8993_v51  ;;  %v8995_v32 = vpop.eup %8994 }
 0x623   :  { %v2755_v23 = vadd.f32 0.5, %v2747_v61 }
 0x624   :  { %v2756_v47 = vadd.f32 0.5, %v2748_v39 }
 0x625   :  { %v2772_v34 = vmul.f32 %v8995_v32, %v2755_v23 }
 0x626   :  { %v2771_v59 = vmul.f32 %v2756_v47, %v10459_v48  ;;  %v8822_v48 = vadd.f32 %v2570_v50, %v10146_v4 }
 0x628   :  { %v10617_v41 = vadd.f32 %v2772_v34, %v2771_v59  ;;  %v2726_v34 = vmul.f32 0.5, %v8822_v48 }
 0x651   :  { %v2639_v3 = vpop.f32.mrb[20].mxu1  ;;  %v2710_v33 = vpop.f32.mrb[52].mxu0 }
 0x652   :  { %v8839_v5 = vadd.f32 %v2639_v3, %v12575_v17  ;;  %v2641_v19 = vpop.f32.mrb[21].mxu1  ;;  %v2712_v15 = vpop.f32.mrb[53].mxu0  ;;  %v8855_v61 = vadd.f32 %v2710_v33, %v10142_v26 }
 0x653   :  { %v8840_v8 = vadd.f32 %v2641_v19, %v12576_v36  ;;  %v8856_v32 = vadd.f32 %v2712_v15, %v10144_v49 }
 0x654   :  { %v2727_v6 = vmul.f32 0.5, %v8839_v5 }
 0x655   :  { %v2728_v56 = vmul.f32 0.5, %v8840_v8  ;;  %v2730_v23 = vmul.f32 0.5, %v8856_v32 }
 0x656   :  { %8996 = vtanh.f32 %v2727_v6 }
 0x657   :  { %8998 = vtanh.f32 %v2728_v56 }
 0x658   :  { %9000 = vtanh.f32 %v8855_v61 }
 0x659   :  { %9002 = vtanh.f32 %v2730_v23 }
 0x65a   :  { %9004 = vtanh.f32 %v2726_v34 }
 0x65b   :  { %9006 = vtanh.f32 %v10617_v41 }
 0x660   :  { %v8997_v51 = vpop.eup %8996 }
 0x661   :  { %v8999_v10 = vpop.eup %8998  ;;  %v2751_v39 = vmul.f32 0.5, %v8997_v51 }
 0x662   :  { %v2752_v47 = vmul.f32 0.5, %v8999_v10  ;;  %v9001_v3 = vpop.eup %9000  ;;  %v12774_v10 = vld [vmem:[#allocation106_spill] sm:$0xff] }
 0x663   :  { %v2759_v59 = vadd.f32 0.5, %v2751_v39  ;;  %v9003_v50 = vpop.eup %9002  ;;  %v12775_v39 = vld [vmem:[#allocation130_spill] sm:$0xff] }
 0x664   :  { %v2760_v5 = vadd.f32 0.5, %v2752_v47  ;;  %v9005_v15 = vpop.eup %9004  ;;  %v2754_v6 = vmul.f32 0.5, %v9003_v50  ;;  %v12776_v47 = vld [vmem:[#allocation108_spill] sm:$0xff]  ;;  %v12782_v50 = vld [vmem:[#allocation114_spill] sm:$0xff] }
 0x665   :  { %v2777_v19 = vmul.f32 %v9001_v3, %v2759_v59  ;;  %v2750_v56 = vmul.f32 0.5, %v9005_v15  ;;  %v9007_v61 = vpop.eup %9006  ;;  %v12777_v59 = vld [vmem:[#allocation131_spill] sm:$0xff]  ;;  %v12778_v3 = vld [vmem:[#allocation110_spill] sm:$0xff] }
 0x666   :  { %v2776_v33 = vmul.f32 %v2760_v5, %v10467_v7  ;;  %v2762_v32 = vadd.f32 0.5, %v2754_v6  ;;  %v12773_v7 = vld [vmem:[#allocation129_spill] sm:$0xff]  ;;  %v12779_v5 = vld [vmem:[#allocation132_spill] sm:$0xff]  ;;  %v12783_v15 = vld [vmem:[#allocation134_spill] sm:$0xff] }
 0x667   :  { %v2758_v23 = vadd.f32 0.5, %v2750_v56  ;;  %v12784_v6 = vld [vmem:[#allocation116_spill] sm:$0xff]  ;;  %v12785_v56 = vld [vmem:[#allocation135_spill] sm:$0xff] }
 0x668   :  { %v10625_v8 = vadd.f32 %v2777_v19, %v2776_v33  ;;  %v12780_v19 = vld [vmem:[#allocation112_spill] sm:$0xff]  ;;  %v12781_v33 = vld [vmem:[#allocation133_spill] sm:$0xff] }
 0x669   :  { %v10631_v51 = vmul.f32 %v9007_v61, %v2758_v23  ;;  %v12786_v61 = vld [vmem:[#allocation118_spill] sm:$0xff]  ;;  %v12789_v23 = vld [vmem:[#allocation137_spill] sm:$0xff] }
 0x66a   :  { %9008 = vtanh.f32 %v10625_v8 }
 0x66b   :  { %12772 = vst [vmem:[#allocation100_spill] sm:$0xff] %v10631_v51 }
 0x674   :  { %v9009_v48 = vpop.eup %9008 }
 0x675   :  { %v10629_v34 = vmul.f32 %v9009_v48, %v2762_v32  ;;  %v12787_v32 = vld [vmem:[#allocation136_spill] sm:$0xff] }
 0x676   :  { %v12788_v48 = vld [vmem:[#allocation120_spill] sm:$0xff] }
 0x677   :  { %12771 = vst [vmem:[#allocation85_spill] sm:$0xff] %v10629_v34  ;;  %2855 = vmatprep.mubr.f32.mxu1 %v10629_v34  ;;  %2926 = vmatprep.mubr.f32.mxu0 %v10629_v34 }
 0x678   :  { %2856 = vmatmul.mubr.f32.vlgmr.msra.gmra.mrb[36].mxu1 %v10631_v51  ;;  %2927 = vmatmul.mubr.f32.vlgmr.msra.gmra.mrb[36].mxu0 %v10631_v51 }
 0x679   :  { %7858 = vmatpush1.bf16.msra.mxu1 %v12485_v63  ;;  %7922 = vmatpush1.bf16.msra.mxu0 %v12486_v57 }
 0x67a   :  { %2997 = vmatprep.mubr.f32.mxu1 %v10629_v34  ;;  %3068 = vmatprep.mubr.f32.mxu0 %v10629_v34  ;;  %v12790_v34 = vld [vmem:[#allocation122_spill] sm:$0xff] }
 0x67b   :  { %7860 = vmatprep.subr.bf16.mxu1 %v12487_v21  ;;  %7924 = vmatprep.subr.bf16.mxu0 %v12488_v25 }
 0x67d   :  { %7862 = vmatpush1.bf16.msra.mxu1 %v12579_v62  ;;  %7926 = vmatpush1.bf16.msra.mxu0 %v12580_v11 }
 0x67e   :  { %7864 = vmatprep.subr.bf16.mxu1 %v12581_v31  ;;  %7928 = vmatprep.subr.bf16.mxu0 %v12582_v30 }
 0x681   :  { %7866 = vmatpush1.bf16.msra.mxu1 %v12583_v46  ;;  %7930 = vmatpush1.bf16.msra.mxu0 %v12584_v40 }
 0x682   :  { %7868 = vmatprep.subr.bf16.mxu1 %v12585_v22  ;;  %7932 = vmatprep.subr.bf16.mxu0 %v12586_v2 }
 0x685   :  { %7870 = vmatpush1.bf16.msra.mxu1 %v12587_v29  ;;  %7934 = vmatpush1.bf16.msra.mxu0 %v12588_v38 }
 0x686   :  { %7872 = vmatprep.subr.bf16.mxu1 %v12589_v14  ;;  %7936 = vmatprep.subr.bf16.mxu0 %v12590_v54 }
 0x689   :  { %7874 = vmatpush1.bf16.msra.mxu1 %v12501_v20  ;;  %7938 = vmatpush1.bf16.msra.mxu0 %v12591_v27 }
 0x68a   :  { %7876 = vmatprep.subr.bf16.mxu1 %v12676_v0  ;;  %7940 = vmatprep.subr.bf16.mxu0 %v12592_v13 }
 0x68d   :  { %7878 = vmatpush1.bf16.msra.mxu1 %v12677_v53  ;;  %7942 = vmatpush1.bf16.msra.mxu0 %v12593_v37 }
 0x68e   :  { %7880 = vmatprep.subr.bf16.mxu1 %v12678_v16  ;;  %7944 = vmatprep.subr.bf16.mxu0 %v12594_v42 }
 0x691   :  { %7882 = vmatpush1.bf16.msra.mxu1 %v12679_v12  ;;  %7946 = vmatpush1.bf16.msra.mxu0 %v12595_v44 }
 0x692   :  { %7884 = vmatprep.subr.bf16.mxu1 %v12680_v28  ;;  %7948 = vmatprep.subr.bf16.mxu0 %v12596_v18 }
 0x695   :  { %7886 = vmatpush1.bf16.msra.mxu1 %v12681_v55  ;;  %7950 = vmatpush1.bf16.msra.mxu0 %v12597_v24 }
 0x696   :  { %7888 = vmatprep.subr.bf16.mxu1 %v12682_v60  ;;  %7952 = vmatprep.subr.bf16.mxu0 %v12598_v9 }
 0x699   :  { %7890 = vmatpush1.bf16.msra.mxu1 %v12514_v58  ;;  %7954 = vmatpush1.bf16.msra.mxu0 %v12599_v52 }
 0x69a   :  { %7892 = vmatprep.subr.bf16.mxu1 %v12515_v1  ;;  %7956 = vmatprep.subr.bf16.mxu0 %v12600_v35 }
 0x69d   :  { %7894 = vmatpush1.bf16.msra.mxu1 %v12516_v45  ;;  %7958 = vmatpush1.bf16.msra.mxu0 %v12773_v7 }
 0x69e   :  { %7896 = vmatprep.subr.bf16.mxu1 %v12774_v10  ;;  %7960 = vmatprep.subr.bf16.mxu0 %v12775_v39 }
 0x6a1   :  { %7898 = vmatpush1.bf16.msra.mxu1 %v12776_v47  ;;  %7962 = vmatpush1.bf16.msra.mxu0 %v12777_v59 }
 0x6a2   :  { %7900 = vmatprep.subr.bf16.mxu1 %v12778_v3  ;;  %7964 = vmatprep.subr.bf16.mxu0 %v12779_v5  ;;  %v12867_v5 = vld [vmem:[#allocation149_spill] sm:$0xff] }
 0x6a5   :  { %7902 = vmatpush1.bf16.msra.mxu1 %v12780_v19  ;;  %7966 = vmatpush1.bf16.msra.mxu0 %v12781_v33  ;;  %v12791_v19 = vld [vmem:[#allocation138_spill] sm:$0xff]  ;;  %v12792_v33 = vld [vmem:[#allocation124_spill] sm:$0xff] }
 0x6a6   :  { %7904 = vmatprep.subr.bf16.mxu1 %v12782_v50  ;;  %7968 = vmatprep.subr.bf16.mxu0 %v12783_v15  ;;  %v12793_v50 = vld [vmem:[#allocation139_spill] sm:$0xff]  ;;  %v12794_v15 = vld [vmem:[#allocation126_spill] sm:$0xff] }
 0x6a9   :  { %7906 = vmatpush1.bf16.msra.mxu1 %v12784_v6  ;;  %7970 = vmatpush1.bf16.msra.mxu0 %v12785_v56  ;;  %v12795_v6 = vld [vmem:[#allocation140_spill] sm:$0xff] }
 0x6aa   :  { %7908 = vmatprep.subr.bf16.mxu1 %v12786_v61  ;;  %7972 = vmatprep.subr.bf16.mxu0 %v12787_v32  ;;  %v12796_v56 = vld [vmem:[#allocation128_spill] sm:$0xff]  ;;  %v12797_v61 = vld [vmem:[#allocation141_spill] sm:$0xff]  ;;  %v12798_v32 = vld [vmem:[#allocation14_spill] sm:$0xff] }
 0x6ad   :  { %7910 = vmatpush1.bf16.msra.mxu1 %v12788_v48  ;;  %7974 = vmatpush1.bf16.msra.mxu0 %v12789_v23  ;;  %v12799_v48 = vld [vmem:[#allocation17_spill] sm:$0xff] }
 0x6ae   :  { %7912 = vmatprep.subr.bf16.mxu1 %v12790_v34  ;;  %7976 = vmatprep.subr.bf16.mxu0 %v12791_v19  ;;  %v12800_v19 = vld [vmem:[#allocation15_spill] sm:$0xff]  ;;  %v12809_v34 = vld [vmem:[#allocation37_spill] sm:$0xff] }
 0x6b1   :  { %7914 = vmatpush1.bf16.msra.mxu1 %v12792_v33  ;;  %7978 = vmatpush1.bf16.msra.mxu0 %v12793_v50  ;;  %v12801_v33 = vld [vmem:[#allocation29_spill] sm:$0xff]  ;;  %v12802_v50 = vld [vmem:[#allocation16_spill] sm:$0xff] }
 0x6b2   :  { %7916 = vmatprep.subr.bf16.mxu1 %v12794_v15  ;;  %7980 = vmatprep.subr.bf16.mxu0 %v12795_v6  ;;  %v12803_v15 = vld [vmem:[#allocation31_spill] sm:$0xff]  ;;  %v12804_v6 = vld [vmem:[#allocation18_spill] sm:$0xff] }
 0x6b5   :  { %7918 = vmatpush1.bf16.msra.mxu1 %v12796_v56  ;;  %7982 = vmatpush1.bf16.msra.mxu0 %v12797_v61  ;;  %v12805_v56 = vld [vmem:[#allocation33_spill] sm:$0xff]  ;;  %v12806_v61 = vld [vmem:[#allocation19_spill] sm:$0xff] }
 0x6b6   :  { %7984 = vmatprep.subr.bf16.mxu1 %v12798_v32  ;;  %8048 = vmatprep.subr.bf16.mxu0 %v12799_v48  ;;  %v12807_v32 = vld [vmem:[#allocation35_spill] sm:$0xff]  ;;  %v12808_v48 = vld [vmem:[#allocation20_spill] sm:$0xff] }
 0x6b8   :  { %2998 = vmatmul.mubr.f32.vlgmr.msra.gmra.mrb[18].mxu1 %v10631_v51  ;;  %3069 = vmatmul.mubr.f32.vlgmr.msra.gmra.mrb[50].mxu0 %v10631_v51  ;;  %v12810_v51 = vld [vmem:[#allocation21_spill] sm:$0xff] }
 0x6b9   :  { %7986 = vmatpush1.bf16.msra.mxu1 %v12800_v19  ;;  %8050 = vmatpush1.bf16.msra.mxu0 %v12801_v33  ;;  %v12811_v19 = vld [vmem:[#allocation39_spill] sm:$0xff]  ;;  %v12812_v33 = vld [vmem:[#allocation22_spill] sm:$0xff] }
 0x6ba   :  { %7988 = vmatprep.subr.bf16.mxu1 %v12802_v50  ;;  %8052 = vmatprep.subr.bf16.mxu0 %v12803_v15  ;;  %v12813_v50 = vld [vmem:[#allocation41_spill] sm:$0xff]  ;;  %v12814_v15 = vld [vmem:[#allocation23_spill] sm:$0xff] }
 0x6bd   :  { %7990 = vmatpush1.bf16.msra.mxu1 %v12804_v6  ;;  %8054 = vmatpush1.bf16.msra.mxu0 %v12805_v56  ;;  %v12815_v6 = vld [vmem:[#allocation43_spill] sm:$0xff]  ;;  %v12816_v56 = vld [vmem:[#allocation24_spill] sm:$0xff] }
 0x6be   :  { %7992 = vmatprep.subr.bf16.mxu1 %v12806_v61  ;;  %8056 = vmatprep.subr.bf16.mxu0 %v12807_v32  ;;  %v12817_v61 = vld [vmem:[#allocation45_spill] sm:$0xff] }
 0x6bf   :  { %v12818_v32 = vld [vmem:[#allocation25_spill] sm:$0xff] }
 0x6c1   :  { %7994 = vmatpush1.bf16.msra.mxu1 %v12808_v48  ;;  %8058 = vmatpush1.bf16.msra.mxu0 %v12809_v34  ;;  %v12819_v48 = vld [vmem:[#allocation47_spill] sm:$0xff]  ;;  %v12820_v34 = vld [vmem:[#allocation26_spill] sm:$0xff] }
 0x6c2   :  { %7996 = vmatprep.subr.bf16.mxu1 %v12810_v51  ;;  %8060 = vmatprep.subr.bf16.mxu0 %v12811_v19  ;;  %v12821_v51 = vld [vmem:[#allocation49_spill] sm:$0xff]  ;;  %v12822_v19 = vld [vmem:[#allocation27_spill] sm:$0xff] }
 0x6c5   :  { %7998 = vmatpush1.bf16.msra.mxu1 %v12812_v33  ;;  %8062 = vmatpush1.bf16.msra.mxu0 %v12813_v50  ;;  %v12823_v33 = vld [vmem:[#allocation51_spill] sm:$0xff]  ;;  %v12824_v50 = vld [vmem:[#allocation28_spill] sm:$0xff] }
 0x6c6   :  { %8000 = vmatprep.subr.bf16.mxu1 %v12814_v15  ;;  %8064 = vmatprep.subr.bf16.mxu0 %v12815_v6  ;;  %v12825_v15 = vld [vmem:[#allocation53_spill] sm:$0xff]  ;;  %v12826_v6 = vld [vmem:[#allocation30_spill] sm:$0xff] }
 0x6c9   :  { %8002 = vmatpush1.bf16.msra.mxu1 %v12816_v56  ;;  %8066 = vmatpush1.bf16.msra.mxu0 %v12817_v61  ;;  %v12827_v56 = vld [vmem:[#allocation55_spill] sm:$0xff]  ;;  %v12828_v61 = vld [vmem:[#allocation32_spill] sm:$0xff] }
 0x6ca   :  { %8004 = vmatprep.subr.bf16.mxu1 %v12818_v32  ;;  %8068 = vmatprep.subr.bf16.mxu0 %v12819_v48  ;;  %v12829_v32 = vld [vmem:[#allocation57_spill] sm:$0xff]  ;;  %v12830_v48 = vld [vmem:[#allocation34_spill] sm:$0xff] }
 0x6cd   :  { %8006 = vmatpush1.bf16.msra.mxu1 %v12820_v34  ;;  %8070 = vmatpush1.bf16.msra.mxu0 %v12821_v51  ;;  %v12831_v34 = vld [vmem:[#allocation59_spill] sm:$0xff]  ;;  %v12832_v51 = vld [vmem:[#allocation36_spill] sm:$0xff] }
 0x6ce   :  { %8008 = vmatprep.subr.bf16.mxu1 %v12822_v19  ;;  %8072 = vmatprep.subr.bf16.mxu0 %v12823_v33  ;;  %v12833_v19 = vld [vmem:[#allocation61_spill] sm:$0xff]  ;;  %v12834_v33 = vld [vmem:[#allocation38_spill] sm:$0xff] }
 0x6d1   :  { %8010 = vmatpush1.bf16.msra.mxu1 %v12824_v50  ;;  %8074 = vmatpush1.bf16.msra.mxu0 %v12825_v15  ;;  %v12835_v50 = vld [vmem:[#allocation63_spill] sm:$0xff]  ;;  %v12836_v15 = vld [vmem:[#allocation40_spill] sm:$0xff] }
 0x6d2   :  { %8012 = vmatprep.subr.bf16.mxu1 %v12826_v6  ;;  %8076 = vmatprep.subr.bf16.mxu0 %v12827_v56  ;;  %v12837_v6 = vld [vmem:[#allocation65_spill] sm:$0xff]  ;;  %v12838_v56 = vld [vmem:[#allocation42_spill] sm:$0xff] }
 0x6d5   :  { %8014 = vmatpush1.bf16.msra.mxu1 %v12828_v61  ;;  %8078 = vmatpush1.bf16.msra.mxu0 %v12829_v32  ;;  %v12839_v61 = vld [vmem:[#allocation66_spill] sm:$0xff]  ;;  %v12840_v32 = vld [vmem:[#allocation44_spill] sm:$0xff] }
 0x6d6   :  { %8016 = vmatprep.subr.bf16.mxu1 %v12830_v48  ;;  %8080 = vmatprep.subr.bf16.mxu0 %v12831_v34  ;;  %v12841_v48 = vld [vmem:[#allocation68_spill] sm:$0xff]  ;;  %v12842_v34 = vld [vmem:[#allocation46_spill] sm:$0xff] }
 0x6d9   :  { %8018 = vmatpush1.bf16.msra.mxu1 %v12832_v51  ;;  %8082 = vmatpush1.bf16.msra.mxu0 %v12833_v19  ;;  %v12843_v51 = vld [vmem:[#allocation70_spill] sm:$0xff]  ;;  %v12844_v19 = vld [vmem:[#allocation48_spill] sm:$0xff] }
 0x6da   :  { %8020 = vmatprep.subr.bf16.mxu1 %v12834_v33  ;;  %8084 = vmatprep.subr.bf16.mxu0 %v12835_v50  ;;  %v12845_v33 = vld [vmem:[#allocation72_spill] sm:$0xff]  ;;  %v12846_v50 = vld [vmem:[#allocation50_spill] sm:$0xff] }
 0x6dd   :  { %8022 = vmatpush1.bf16.msra.mxu1 %v12836_v15  ;;  %8086 = vmatpush1.bf16.msra.mxu0 %v12837_v6  ;;  %v12847_v15 = vld [vmem:[#allocation74_spill] sm:$0xff]  ;;  %v12848_v6 = vld [vmem:[#allocation52_spill] sm:$0xff] }
 0x6de   :  { %8024 = vmatprep.subr.bf16.mxu1 %v12838_v56  ;;  %8088 = vmatprep.subr.bf16.mxu0 %v12839_v61  ;;  %v12849_v56 = vld [vmem:[#allocation76_spill] sm:$0xff]  ;;  %v12850_v61 = vld [vmem:[#allocation54_spill] sm:$0xff] }
 0x6e1   :  { %8026 = vmatpush1.bf16.msra.mxu1 %v12840_v32  ;;  %8090 = vmatpush1.bf16.msra.mxu0 %v12841_v48  ;;  %v12851_v32 = vld [vmem:[#allocation78_spill] sm:$0xff]  ;;  %v12852_v48 = vld [vmem:[#allocation56_spill] sm:$0xff] }
 0x6e2   :  { %8028 = vmatprep.subr.bf16.mxu1 %v12842_v34  ;;  %8092 = vmatprep.subr.bf16.mxu0 %v12843_v51  ;;  %v12853_v34 = vld [vmem:[#allocation80_spill] sm:$0xff]  ;;  %v12854_v51 = vld [vmem:[#allocation58_spill] sm:$0xff] }
 0x6e5   :  { %8030 = vmatpush1.bf16.msra.mxu1 %v12844_v19  ;;  %8094 = vmatpush1.bf16.msra.mxu0 %v12845_v33  ;;  %v12855_v19 = vld [vmem:[#allocation82_spill] sm:$0xff]  ;;  %v12856_v33 = vld [vmem:[#allocation60_spill] sm:$0xff] }
 0x6e6   :  { %8032 = vmatprep.subr.bf16.mxu1 %v12846_v50  ;;  %8096 = vmatprep.subr.bf16.mxu0 %v12847_v15  ;;  %v12857_v50 = vld [vmem:[#allocation84_spill] sm:$0xff]  ;;  %v12858_v15 = vld [vmem:[#allocation62_spill] sm:$0xff] }
 0x6e9   :  { %8034 = vmatpush1.bf16.msra.mxu1 %v12848_v6  ;;  %8098 = vmatpush1.bf16.msra.mxu0 %v12849_v56  ;;  %v12859_v6 = vld [vmem:[#allocation86_spill] sm:$0xff]  ;;  %v12860_v56 = vld [vmem:[#allocation64_spill] sm:$0xff] }
 0x6ea   :  { %8036 = vmatprep.subr.bf16.mxu1 %v12850_v61  ;;  %8100 = vmatprep.subr.bf16.mxu0 %v12851_v32  ;;  %v12861_v61 = vld [vmem:[#allocation88_spill] sm:$0xff]  ;;  %v12862_v32 = vld [vmem:[#allocation67_spill] sm:$0xff] }
 0x6ed   :  { %8038 = vmatpush1.bf16.msra.mxu1 %v12852_v48  ;;  %8102 = vmatpush1.bf16.msra.mxu0 %v12853_v34  ;;  %v12863_v48 = vld [vmem:[#allocation91_spill] sm:$0xff]  ;;  %v12864_v34 = vld [vmem:[#allocation154_spill] sm:$0xff] }
 0x6ee   :  { %8040 = vmatprep.subr.bf16.mxu1 %v12854_v51  ;;  %8104 = vmatprep.subr.bf16.mxu0 %v12855_v19  ;;  %v12865_v51 = vld [vmem:[#allocation148_spill] sm:$0xff]  ;;  %v12866_v19 = vld [vmem:[#allocation155_spill] sm:$0xff] }
 0x6ef   :  { %v597_v23 = vadd.f32 %v12865_v51, %v12864_v34 }
 0x6f1   :  { %8042 = vmatpush1.bf16.msra.mxu1 %v12856_v33  ;;  %8106 = vmatpush1.bf16.msra.mxu0 %v12857_v50  ;;  %v599_v33 = vadd.f32 %v12867_v5, %v12866_v19 }
 0x6f2   :  { %8044 = vmatprep.subr.bf16.mxu1 %v12858_v15  ;;  %8108 = vmatprep.subr.bf16.mxu0 %v12859_v6 }
 0x6f5   :  { %8046 = vmatpush1.bf16.msra.mxu1 %v12860_v56  ;;  %8110 = vmatpush1.bf16.msra.mxu0 %v12861_v61 }
 0x6f6   :  { %8112 = vmatprep.subr.bf16.mxu1 %v12862_v32  ;;  %8176 = vmatprep.subr.bf16.mxu0 %v12863_v48 }
 0x74b   :  { %v2857_v3 = vpop.f32.mrb[36].mxu1  ;;  %v2928_v50 = vpop.f32.mrb[36].mxu0 }
 0x74c   :  { %v3075_v59 = vadd.f32 %v2857_v3, %v597_v23  ;;  %v2859_v15 = vpop.f32.mrb[37].mxu1  ;;  %v2930_v47 = vpop.f32.mrb[37].mxu0  ;;  %v8823_v61 = vadd.f32 %v2928_v50, %v12673_v43 }
 0x74d   :  { %v3076_v6 = vadd.f32 %v2859_v15, %v599_v33 }
 0x74e   :  { %v3083_v39 = vmul.f32 0.5, %v3075_v59 }
 0x74f   :  { %v3084_v56 = vmul.f32 0.5, %v3076_v6 }
 0x750   :  { %9010 = vtanh.f32 %v3083_v39 }
 0x751   :  { %9012 = vtanh.f32 %v3084_v56 }
 0x752   :  { %9014 = vtanh.f32 %v8823_v61 }
 0x75a   :  { %v9011_v48 = vpop.eup %9010 }
 0x75b   :  { %v9013_v32 = vpop.eup %9012  ;;  %v3107_v10 = vmul.f32 0.5, %v9011_v48 }
 0x75c   :  { %v3108_v51 = vmul.f32 0.5, %v9013_v32  ;;  %v9015_v7 = vpop.eup %9014 }
 0x75d   :  { %v3115_v34 = vadd.f32 0.5, %v3107_v10 }
 0x75e   :  { %v3116_v5 = vadd.f32 0.5, %v3108_v51 }
 0x75f   :  { %v3132_v19 = vmul.f32 %v9015_v7, %v3115_v34 }
 0x760   :  { %v3131_v3 = vmul.f32 %v3116_v5, %v10617_v41  ;;  %v8824_v41 = vadd.f32 %v2930_v47, %v10146_v4 }
 0x762   :  { %v10775_v23 = vadd.f32 %v3132_v19, %v3131_v3  ;;  %v3086_v19 = vmul.f32 0.5, %v8824_v41 }
 0x78b   :  { %v2999_v33 = vpop.f32.mrb[18].mxu1  ;;  %v3070_v59 = vpop.f32.mrb[50].mxu0 }
 0x78c   :  { %v8837_v39 = vadd.f32 %v2999_v33, %v12575_v17  ;;  %v3001_v15 = vpop.f32.mrb[19].mxu1  ;;  %v3072_v50 = vpop.f32.mrb[51].mxu0  ;;  %v8853_v10 = vadd.f32 %v3070_v59, %v10142_v26 }
 0x78d   :  { %v8838_v6 = vadd.f32 %v3001_v15, %v12576_v36  ;;  %v8854_v34 = vadd.f32 %v3072_v50, %v10144_v49 }
 0x78e   :  { %v3087_v56 = vmul.f32 0.5, %v8837_v39 }
 0x78f   :  { %v3088_v61 = vmul.f32 0.5, %v8838_v6  ;;  %v3090_v7 = vmul.f32 0.5, %v8854_v34 }
 0x790   :  { %9016 = vtanh.f32 %v3087_v56 }
 0x791   :  { %9018 = vtanh.f32 %v3088_v61 }
 0x792   :  { %9020 = vtanh.f32 %v8853_v10 }
 0x793   :  { %9022 = vtanh.f32 %v3090_v7 }
 0x794   :  { %9024 = vtanh.f32 %v3086_v19 }
 0x795   :  { %9026 = vtanh.f32 %v10775_v23 }
 0x79a   :  { %v9017_v32 = vpop.eup %9016 }
 0x79b   :  { %v9019_v48 = vpop.eup %9018  ;;  %v3111_v51 = vmul.f32 0.5, %v9017_v32 }
 0x79c   :  { %v3112_v5 = vmul.f32 0.5, %v9019_v48  ;;  %v9021_v33 = vpop.eup %9020  ;;  %v12871_v48 = vld [vmem:[#allocation106_spill] sm:$0xff] }
 0x79d   :  { %v3119_v3 = vadd.f32 0.5, %v3111_v51  ;;  %v9023_v47 = vpop.eup %9022  ;;  %v12872_v51 = vld [vmem:[#allocation130_spill] sm:$0xff] }
 0x79e   :  { %v3120_v39 = vadd.f32 0.5, %v3112_v5  ;;  %v9025_v50 = vpop.eup %9024  ;;  %v3114_v56 = vmul.f32 0.5, %v9023_v47  ;;  %v12873_v5 = vld [vmem:[#allocation108_spill] sm:$0xff]  ;;  %v12879_v47 = vld [vmem:[#allocation114_spill] sm:$0xff] }
 0x79f   :  { %v3137_v15 = vmul.f32 %v9021_v33, %v3119_v3  ;;  %v3110_v61 = vmul.f32 0.5, %v9025_v50  ;;  %v9027_v10 = vpop.eup %9026  ;;  %v12874_v3 = vld [vmem:[#allocation131_spill] sm:$0xff]  ;;  %v12875_v33 = vld [vmem:[#allocation110_spill] sm:$0xff] }
 0x7a0   :  { %v3136_v59 = vmul.f32 %v3120_v39, %v10625_v8  ;;  %v3122_v34 = vadd.f32 0.5, %v3114_v56  ;;  %v12870_v8 = vld [vmem:[#allocation129_spill] sm:$0xff]  ;;  %v12876_v39 = vld [vmem:[#allocation132_spill] sm:$0xff]  ;;  %v12880_v50 = vld [vmem:[#allocation134_spill] sm:$0xff] }
 0x7a1   :  { %v3118_v7 = vadd.f32 0.5, %v3110_v61  ;;  %v12881_v56 = vld [vmem:[#allocation116_spill] sm:$0xff]  ;;  %v12882_v61 = vld [vmem:[#allocation135_spill] sm:$0xff] }
 0x7a2   :  { %v10783_v6 = vadd.f32 %v3137_v15, %v3136_v59  ;;  %v12877_v15 = vld [vmem:[#allocation112_spill] sm:$0xff]  ;;  %v12878_v59 = vld [vmem:[#allocation133_spill] sm:$0xff] }
 0x7a3   :  { %v10789_v32 = vmul.f32 %v9027_v10, %v3118_v7  ;;  %v12883_v10 = vld [vmem:[#allocation118_spill] sm:$0xff]  ;;  %v12886_v7 = vld [vmem:[#allocation137_spill] sm:$0xff] }
 0x7a4   :  { %9028 = vtanh.f32 %v10783_v6 }
 0x7a5   :  { %12869 = vst [vmem:[#allocation104_spill] sm:$0xff] %v10789_v32 }
 0x7ae   :  { %v9029_v41 = vpop.eup %9028 }
 0x7af   :  { %v10787_v19 = vmul.f32 %v9029_v41, %v3122_v34  ;;  %v12884_v34 = vld [vmem:[#allocation136_spill] sm:$0xff] }
 0x7b0   :  { %v12885_v41 = vld [vmem:[#allocation120_spill] sm:$0xff] }
 0x7b1   :  { %12868 = vst [vmem:[#allocation102_spill] sm:$0xff] %v10787_v19  ;;  %3215 = vmatprep.mubr.f32.mxu1 %v10787_v19  ;;  %3286 = vmatprep.mubr.f32.mxu0 %v10787_v19 }
 0x7b2   :  { %3216 = vmatmul.mubr.f32.vlgmr.msra.gmra.mrb[38].mxu1 %v10789_v32  ;;  %3287 = vmatmul.mubr.f32.vlgmr.msra.gmra.mrb[38].mxu0 %v10789_v32 }
 0x7b3   :  { %8114 = vmatpush1.bf16.msra.mxu1 %v12485_v63  ;;  %8178 = vmatpush1.bf16.msra.mxu0 %v12486_v57 }
 0x7b4   :  { %3357 = vmatprep.mubr.f32.mxu1 %v10787_v19  ;;  %3428 = vmatprep.mubr.f32.mxu0 %v10787_v19  ;;  %v12887_v19 = vld [vmem:[#allocation122_spill] sm:$0xff] }
 0x7b5   :  { %8116 = vmatprep.subr.bf16.mxu1 %v12487_v21  ;;  %8180 = vmatprep.subr.bf16.mxu0 %v12488_v25 }
 0x7b7   :  { %8118 = vmatpush1.bf16.msra.mxu1 %v12579_v62  ;;  %8182 = vmatpush1.bf16.msra.mxu0 %v12580_v11 }
 0x7b8   :  { %8120 = vmatprep.subr.bf16.mxu1 %v12581_v31  ;;  %8184 = vmatprep.subr.bf16.mxu0 %v12582_v30 }
 0x7bb   :  { %8122 = vmatpush1.bf16.msra.mxu1 %v12583_v46  ;;  %8186 = vmatpush1.bf16.msra.mxu0 %v12584_v40 }
 0x7bc   :  { %8124 = vmatprep.subr.bf16.mxu1 %v12585_v22  ;;  %8188 = vmatprep.subr.bf16.mxu0 %v12586_v2 }
 0x7bf   :  { %8126 = vmatpush1.bf16.msra.mxu1 %v12587_v29  ;;  %8190 = vmatpush1.bf16.msra.mxu0 %v12588_v38 }
 0x7c0   :  { %8128 = vmatprep.subr.bf16.mxu1 %v12589_v14  ;;  %8192 = vmatprep.subr.bf16.mxu0 %v12590_v54 }
 0x7c3   :  { %8130 = vmatpush1.bf16.msra.mxu1 %v12501_v20  ;;  %8194 = vmatpush1.bf16.msra.mxu0 %v12591_v27 }
 0x7c4   :  { %8132 = vmatprep.subr.bf16.mxu1 %v12676_v0  ;;  %8196 = vmatprep.subr.bf16.mxu0 %v12592_v13 }
 0x7c7   :  { %8134 = vmatpush1.bf16.msra.mxu1 %v12677_v53  ;;  %8198 = vmatpush1.bf16.msra.mxu0 %v12593_v37 }
 0x7c8   :  { %8136 = vmatprep.subr.bf16.mxu1 %v12678_v16  ;;  %8200 = vmatprep.subr.bf16.mxu0 %v12594_v42 }
 0x7cb   :  { %8138 = vmatpush1.bf16.msra.mxu1 %v12679_v12  ;;  %8202 = vmatpush1.bf16.msra.mxu0 %v12595_v44 }
 0x7cc   :  { %8140 = vmatprep.subr.bf16.mxu1 %v12680_v28  ;;  %8204 = vmatprep.subr.bf16.mxu0 %v12596_v18 }
 0x7cf   :  { %8142 = vmatpush1.bf16.msra.mxu1 %v12681_v55  ;;  %8206 = vmatpush1.bf16.msra.mxu0 %v12597_v24 }
 0x7d0   :  { %8144 = vmatprep.subr.bf16.mxu1 %v12682_v60  ;;  %8208 = vmatprep.subr.bf16.mxu0 %v12598_v9 }
 0x7d3   :  { %8146 = vmatpush1.bf16.msra.mxu1 %v12514_v58  ;;  %8210 = vmatpush1.bf16.msra.mxu0 %v12599_v52 }
 0x7d4   :  { %8148 = vmatprep.subr.bf16.mxu1 %v12515_v1  ;;  %8212 = vmatprep.subr.bf16.mxu0 %v12600_v35 }
 0x7d7   :  { %8150 = vmatpush1.bf16.msra.mxu1 %v12516_v45  ;;  %8214 = vmatpush1.bf16.msra.mxu0 %v12870_v8 }
 0x7d8   :  { %8152 = vmatprep.subr.bf16.mxu1 %v12871_v48  ;;  %8216 = vmatprep.subr.bf16.mxu0 %v12872_v51 }
 0x7db   :  { %8154 = vmatpush1.bf16.msra.mxu1 %v12873_v5  ;;  %8218 = vmatpush1.bf16.msra.mxu0 %v12874_v3 }
 0x7dc   :  { %8156 = vmatprep.subr.bf16.mxu1 %v12875_v33  ;;  %8220 = vmatprep.subr.bf16.mxu0 %v12876_v39  ;;  %v12964_v39 = vld [vmem:[#allocation151_spill] sm:$0xff] }
 0x7df   :  { %8158 = vmatpush1.bf16.msra.mxu1 %v12877_v15  ;;  %8222 = vmatpush1.bf16.msra.mxu0 %v12878_v59  ;;  %v12888_v15 = vld [vmem:[#allocation138_spill] sm:$0xff]  ;;  %v12889_v59 = vld [vmem:[#allocation124_spill] sm:$0xff] }
 0x7e0   :  { %8160 = vmatprep.subr.bf16.mxu1 %v12879_v47  ;;  %8224 = vmatprep.subr.bf16.mxu0 %v12880_v50  ;;  %v12890_v47 = vld [vmem:[#allocation139_spill] sm:$0xff]  ;;  %v12891_v50 = vld [vmem:[#allocation126_spill] sm:$0xff] }
 0x7e3   :  { %8162 = vmatpush1.bf16.msra.mxu1 %v12881_v56  ;;  %8226 = vmatpush1.bf16.msra.mxu0 %v12882_v61  ;;  %v12892_v56 = vld [vmem:[#allocation140_spill] sm:$0xff] }
 0x7e4   :  { %8164 = vmatprep.subr.bf16.mxu1 %v12883_v10  ;;  %8228 = vmatprep.subr.bf16.mxu0 %v12884_v34  ;;  %v12893_v61 = vld [vmem:[#allocation128_spill] sm:$0xff]  ;;  %v12894_v10 = vld [vmem:[#allocation141_spill] sm:$0xff]  ;;  %v12895_v34 = vld [vmem:[#allocation14_spill] sm:$0xff] }
 0x7e7   :  { %8166 = vmatpush1.bf16.msra.mxu1 %v12885_v41  ;;  %8230 = vmatpush1.bf16.msra.mxu0 %v12886_v7  ;;  %v12896_v41 = vld [vmem:[#allocation17_spill] sm:$0xff] }
 0x7e8   :  { %8168 = vmatprep.subr.bf16.mxu1 %v12887_v19  ;;  %8232 = vmatprep.subr.bf16.mxu0 %v12888_v15  ;;  %v12897_v15 = vld [vmem:[#allocation15_spill] sm:$0xff]  ;;  %v12906_v19 = vld [vmem:[#allocation37_spill] sm:$0xff] }
 0x7eb   :  { %8170 = vmatpush1.bf16.msra.mxu1 %v12889_v59  ;;  %8234 = vmatpush1.bf16.msra.mxu0 %v12890_v47  ;;  %v12898_v59 = vld [vmem:[#allocation29_spill] sm:$0xff]  ;;  %v12899_v47 = vld [vmem:[#allocation16_spill] sm:$0xff] }
 0x7ec   :  { %8172 = vmatprep.subr.bf16.mxu1 %v12891_v50  ;;  %8236 = vmatprep.subr.bf16.mxu0 %v12892_v56  ;;  %v12900_v50 = vld [vmem:[#allocation31_spill] sm:$0xff]  ;;  %v12901_v56 = vld [vmem:[#allocation18_spill] sm:$0xff] }
 0x7ef   :  { %8174 = vmatpush1.bf16.msra.mxu1 %v12893_v61  ;;  %8238 = vmatpush1.bf16.msra.mxu0 %v12894_v10  ;;  %v12902_v61 = vld [vmem:[#allocation33_spill] sm:$0xff]  ;;  %v12903_v10 = vld [vmem:[#allocation19_spill] sm:$0xff] }
 0x7f0   :  { %8240 = vmatprep.subr.bf16.mxu1 %v12895_v34  ;;  %8304 = vmatprep.subr.bf16.mxu0 %v12896_v41  ;;  %v12904_v34 = vld [vmem:[#allocation35_spill] sm:$0xff]  ;;  %v12905_v41 = vld [vmem:[#allocation20_spill] sm:$0xff] }
 0x7f2   :  { %3358 = vmatmul.mubr.f32.vlgmr.msra.gmra.mrb[16].mxu1 %v10789_v32  ;;  %3429 = vmatmul.mubr.f32.vlgmr.msra.gmra.mrb[48].mxu0 %v10789_v32  ;;  %v12907_v32 = vld [vmem:[#allocation21_spill] sm:$0xff] }
 0x7f3   :  { %8242 = vmatpush1.bf16.msra.mxu1 %v12897_v15  ;;  %8306 = vmatpush1.bf16.msra.mxu0 %v12898_v59  ;;  %v12908_v15 = vld [vmem:[#allocation39_spill] sm:$0xff]  ;;  %v12909_v59 = vld [vmem:[#allocation22_spill] sm:$0xff] }
 0x7f4   :  { %8244 = vmatprep.subr.bf16.mxu1 %v12899_v47  ;;  %8308 = vmatprep.subr.bf16.mxu0 %v12900_v50  ;;  %v12910_v47 = vld [vmem:[#allocation41_spill] sm:$0xff]  ;;  %v12911_v50 = vld [vmem:[#allocation23_spill] sm:$0xff] }
 0x7f7   :  { %8246 = vmatpush1.bf16.msra.mxu1 %v12901_v56  ;;  %8310 = vmatpush1.bf16.msra.mxu0 %v12902_v61  ;;  %v12912_v56 = vld [vmem:[#allocation43_spill] sm:$0xff]  ;;  %v12913_v61 = vld [vmem:[#allocation24_spill] sm:$0xff] }
 0x7f8   :  { %8248 = vmatprep.subr.bf16.mxu1 %v12903_v10  ;;  %8312 = vmatprep.subr.bf16.mxu0 %v12904_v34  ;;  %v12914_v10 = vld [vmem:[#allocation45_spill] sm:$0xff] }
 0x7f9   :  { %v12915_v34 = vld [vmem:[#allocation25_spill] sm:$0xff] }
 0x7fb   :  { %8250 = vmatpush1.bf16.msra.mxu1 %v12905_v41  ;;  %8314 = vmatpush1.bf16.msra.mxu0 %v12906_v19  ;;  %v12916_v41 = vld [vmem:[#allocation47_spill] sm:$0xff]  ;;  %v12917_v19 = vld [vmem:[#allocation26_spill] sm:$0xff] }
 0x7fc   :  { %8252 = vmatprep.subr.bf16.mxu1 %v12907_v32  ;;  %8316 = vmatprep.subr.bf16.mxu0 %v12908_v15  ;;  %v12918_v32 = vld [vmem:[#allocation49_spill] sm:$0xff]  ;;  %v12919_v15 = vld [vmem:[#allocation27_spill] sm:$0xff] }
 0x7ff   :  { %8254 = vmatpush1.bf16.msra.mxu1 %v12909_v59  ;;  %8318 = vmatpush1.bf16.msra.mxu0 %v12910_v47  ;;  %v12920_v59 = vld [vmem:[#allocation51_spill] sm:$0xff]  ;;  %v12921_v47 = vld [vmem:[#allocation28_spill] sm:$0xff] }
 0x800   :  { %8256 = vmatprep.subr.bf16.mxu1 %v12911_v50  ;;  %8320 = vmatprep.subr.bf16.mxu0 %v12912_v56  ;;  %v12922_v50 = vld [vmem:[#allocation53_spill] sm:$0xff]  ;;  %v12923_v56 = vld [vmem:[#allocation30_spill] sm:$0xff] }
 0x803   :  { %8258 = vmatpush1.bf16.msra.mxu1 %v12913_v61  ;;  %8322 = vmatpush1.bf16.msra.mxu0 %v12914_v10  ;;  %v12924_v61 = vld [vmem:[#allocation55_spill] sm:$0xff]  ;;  %v12925_v10 = vld [vmem:[#allocation32_spill] sm:$0xff] }
 0x804   :  { %8260 = vmatprep.subr.bf16.mxu1 %v12915_v34  ;;  %8324 = vmatprep.subr.bf16.mxu0 %v12916_v41  ;;  %v12926_v34 = vld [vmem:[#allocation57_spill] sm:$0xff]  ;;  %v12927_v41 = vld [vmem:[#allocation34_spill] sm:$0xff] }
 0x807   :  { %8262 = vmatpush1.bf16.msra.mxu1 %v12917_v19  ;;  %8326 = vmatpush1.bf16.msra.mxu0 %v12918_v32  ;;  %v12928_v19 = vld [vmem:[#allocation59_spill] sm:$0xff]  ;;  %v12929_v32 = vld [vmem:[#allocation36_spill] sm:$0xff] }
 0x808   :  { %8264 = vmatprep.subr.bf16.mxu1 %v12919_v15  ;;  %8328 = vmatprep.subr.bf16.mxu0 %v12920_v59  ;;  %v12930_v15 = vld [vmem:[#allocation61_spill] sm:$0xff]  ;;  %v12931_v59 = vld [vmem:[#allocation38_spill] sm:$0xff] }
 0x80b   :  { %8266 = vmatpush1.bf16.msra.mxu1 %v12921_v47  ;;  %8330 = vmatpush1.bf16.msra.mxu0 %v12922_v50  ;;  %v12932_v47 = vld [vmem:[#allocation63_spill] sm:$0xff]  ;;  %v12933_v50 = vld [vmem:[#allocation40_spill] sm:$0xff] }
 0x80c   :  { %8268 = vmatprep.subr.bf16.mxu1 %v12923_v56  ;;  %8332 = vmatprep.subr.bf16.mxu0 %v12924_v61  ;;  %v12934_v56 = vld [vmem:[#allocation65_spill] sm:$0xff]  ;;  %v12935_v61 = vld [vmem:[#allocation42_spill] sm:$0xff] }
 0x80f   :  { %8270 = vmatpush1.bf16.msra.mxu1 %v12925_v10  ;;  %8334 = vmatpush1.bf16.msra.mxu0 %v12926_v34  ;;  %v12936_v10 = vld [vmem:[#allocation66_spill] sm:$0xff]  ;;  %v12937_v34 = vld [vmem:[#allocation44_spill] sm:$0xff] }
 0x810   :  { %8272 = vmatprep.subr.bf16.mxu1 %v12927_v41  ;;  %8336 = vmatprep.subr.bf16.mxu0 %v12928_v19  ;;  %v12938_v41 = vld [vmem:[#allocation68_spill] sm:$0xff]  ;;  %v12939_v19 = vld [vmem:[#allocation46_spill] sm:$0xff] }
 0x813   :  { %8274 = vmatpush1.bf16.msra.mxu1 %v12929_v32  ;;  %8338 = vmatpush1.bf16.msra.mxu0 %v12930_v15  ;;  %v12940_v32 = vld [vmem:[#allocation70_spill] sm:$0xff]  ;;  %v12941_v15 = vld [vmem:[#allocation48_spill] sm:$0xff] }
 0x814   :  { %8276 = vmatprep.subr.bf16.mxu1 %v12931_v59  ;;  %8340 = vmatprep.subr.bf16.mxu0 %v12932_v47  ;;  %v12942_v59 = vld [vmem:[#allocation72_spill] sm:$0xff]  ;;  %v12943_v47 = vld [vmem:[#allocation50_spill] sm:$0xff] }
 0x817   :  { %8278 = vmatpush1.bf16.msra.mxu1 %v12933_v50  ;;  %8342 = vmatpush1.bf16.msra.mxu0 %v12934_v56  ;;  %v12944_v50 = vld [vmem:[#allocation74_spill] sm:$0xff]  ;;  %v12945_v56 = vld [vmem:[#allocation52_spill] sm:$0xff] }
 0x818   :  { %8280 = vmatprep.subr.bf16.mxu1 %v12935_v61  ;;  %8344 = vmatprep.subr.bf16.mxu0 %v12936_v10  ;;  %v12946_v61 = vld [vmem:[#allocation76_spill] sm:$0xff]  ;;  %v12947_v10 = vld [vmem:[#allocation54_spill] sm:$0xff] }
 0x81b   :  { %8282 = vmatpush1.bf16.msra.mxu1 %v12937_v34  ;;  %8346 = vmatpush1.bf16.msra.mxu0 %v12938_v41  ;;  %v12948_v34 = vld [vmem:[#allocation78_spill] sm:$0xff]  ;;  %v12949_v41 = vld [vmem:[#allocation56_spill] sm:$0xff] }
 0x81c   :  { %8284 = vmatprep.subr.bf16.mxu1 %v12939_v19  ;;  %8348 = vmatprep.subr.bf16.mxu0 %v12940_v32  ;;  %v12950_v19 = vld [vmem:[#allocation80_spill] sm:$0xff]  ;;  %v12951_v32 = vld [vmem:[#allocation58_spill] sm:$0xff] }
 0x81f   :  { %8286 = vmatpush1.bf16.msra.mxu1 %v12941_v15  ;;  %8350 = vmatpush1.bf16.msra.mxu0 %v12942_v59  ;;  %v12952_v15 = vld [vmem:[#allocation82_spill] sm:$0xff]  ;;  %v12953_v59 = vld [vmem:[#allocation60_spill] sm:$0xff] }
 0x820   :  { %8288 = vmatprep.subr.bf16.mxu1 %v12943_v47  ;;  %8352 = vmatprep.subr.bf16.mxu0 %v12944_v50  ;;  %v12954_v47 = vld [vmem:[#allocation84_spill] sm:$0xff]  ;;  %v12955_v50 = vld [vmem:[#allocation62_spill] sm:$0xff] }
 0x823   :  { %8290 = vmatpush1.bf16.msra.mxu1 %v12945_v56  ;;  %8354 = vmatpush1.bf16.msra.mxu0 %v12946_v61  ;;  %v12956_v56 = vld [vmem:[#allocation86_spill] sm:$0xff]  ;;  %v12957_v61 = vld [vmem:[#allocation64_spill] sm:$0xff] }
 0x824   :  { %8292 = vmatprep.subr.bf16.mxu1 %v12947_v10  ;;  %8356 = vmatprep.subr.bf16.mxu0 %v12948_v34  ;;  %v12958_v10 = vld [vmem:[#allocation88_spill] sm:$0xff]  ;;  %v12959_v34 = vld [vmem:[#allocation67_spill] sm:$0xff] }
 0x827   :  { %8294 = vmatpush1.bf16.msra.mxu1 %v12949_v41  ;;  %8358 = vmatpush1.bf16.msra.mxu0 %v12950_v19  ;;  %v12960_v41 = vld [vmem:[#allocation91_spill] sm:$0xff]  ;;  %v12961_v19 = vld [vmem:[#allocation154_spill] sm:$0xff] }
 0x828   :  { %8296 = vmatprep.subr.bf16.mxu1 %v12951_v32  ;;  %8360 = vmatprep.subr.bf16.mxu0 %v12952_v15  ;;  %v12962_v32 = vld [vmem:[#allocation150_spill] sm:$0xff]  ;;  %v12963_v15 = vld [vmem:[#allocation155_spill] sm:$0xff] }
 0x829   :  { %v603_v7 = vadd.f32 %v12962_v32, %v12961_v19 }
 0x82b   :  { %8298 = vmatpush1.bf16.msra.mxu1 %v12953_v59  ;;  %8362 = vmatpush1.bf16.msra.mxu0 %v12954_v47  ;;  %v605_v59 = vadd.f32 %v12964_v39, %v12963_v15 }
 0x82c   :  { %8300 = vmatprep.subr.bf16.mxu1 %v12955_v50  ;;  %8364 = vmatprep.subr.bf16.mxu0 %v12956_v56 }
 0x82f   :  { %8302 = vmatpush1.bf16.msra.mxu1 %v12957_v61  ;;  %8366 = vmatpush1.bf16.msra.mxu0 %v12958_v10 }
 0x830   :  { %8368 = vmatprep.subr.bf16.mxu1 %v12959_v34  ;;  %8432 = vmatprep.subr.bf16.mxu0 %v12960_v41 }
 0x885   :  { %v3217_v33 = vpop.f32.mrb[38].mxu1  ;;  %v3288_v47 = vpop.f32.mrb[38].mxu0 }
 0x886   :  { %v3435_v3 = vadd.f32 %v3217_v33, %v603_v7  ;;  %v3219_v50 = vpop.f32.mrb[39].mxu1  ;;  %v3290_v5 = vpop.f32.mrb[39].mxu0  ;;  %v8825_v10 = vadd.f32 %v3288_v47, %v12673_v43 }
 0x887   :  { %v3436_v56 = vadd.f32 %v3219_v50, %v605_v59 }
 0x888   :  { %v3443_v51 = vmul.f32 0.5, %v3435_v3 }
 0x889   :  { %v3444_v61 = vmul.f32 0.5, %v3436_v56 }
 0x88a   :  { %9030 = vtanh.f32 %v3443_v51 }
 0x88b   :  { %9032 = vtanh.f32 %v3444_v61 }
 0x88c   :  { %9034 = vtanh.f32 %v8825_v10 }
 0x894   :  { %v9031_v41 = vpop.eup %9030 }
 0x895   :  { %v9033_v34 = vpop.eup %9032  ;;  %v3467_v48 = vmul.f32 0.5, %v9031_v41 }
 0x896   :  { %v3468_v32 = vmul.f32 0.5, %v9033_v34  ;;  %v9035_v8 = vpop.eup %9034 }
 0x897   :  { %v3475_v19 = vadd.f32 0.5, %v3467_v48 }
 0x898   :  { %v3476_v39 = vadd.f32 0.5, %v3468_v32 }
 0x899   :  { %v3492_v15 = vmul.f32 %v9035_v8, %v3475_v19 }
 0x89a   :  { %v3491_v33 = vmul.f32 %v3476_v39, %v10775_v23  ;;  %v8826_v23 = vadd.f32 %v3290_v5, %v10146_v4 }
 0x89c   :  { %v10933_v7 = vadd.f32 %v3492_v15, %v3491_v33  ;;  %v3446_v15 = vmul.f32 0.5, %v8826_v23 }
 0x8c5   :  { %v3359_v59 = vpop.f32.mrb[16].mxu1  ;;  %v3430_v3 = vpop.f32.mrb[48].mxu0 }
 0x8c6   :  { %v8835_v51 = vadd.f32 %v3359_v59, %v12575_v17  ;;  %v3361_v50 = vpop.f32.mrb[17].mxu1  ;;  %v3432_v47 = vpop.f32.mrb[49].mxu0  ;;  %v8851_v48 = vadd.f32 %v3430_v3, %v10142_v26 }
 0x8c7   :  { %v8836_v56 = vadd.f32 %v3361_v50, %v12576_v36  ;;  %v8852_v19 = vadd.f32 %v3432_v47, %v10144_v49 }
 0x8c8   :  { %v3447_v61 = vmul.f32 0.5, %v8835_v51 }
 0x8c9   :  { %v3448_v10 = vmul.f32 0.5, %v8836_v56  ;;  %v3450_v8 = vmul.f32 0.5, %v8852_v19 }
 0x8ca   :  { %9036 = vtanh.f32 %v3447_v61 }
 0x8cb   :  { %9038 = vtanh.f32 %v3448_v10 }
 0x8cc   :  { %9040 = vtanh.f32 %v8851_v48 }
 0x8cd   :  { %9042 = vtanh.f32 %v3450_v8 }
 0x8ce   :  { %9044 = vtanh.f32 %v3446_v15 }
 0x8cf   :  { %9046 = vtanh.f32 %v10933_v7 }
 0x8d4   :  { %v9037_v34 = vpop.eup %9036 }
 0x8d5   :  { %v9039_v41 = vpop.eup %9038  ;;  %v3471_v32 = vmul.f32 0.5, %v9037_v34 }
 0x8d6   :  { %v3472_v39 = vmul.f32 0.5, %v9039_v41  ;;  %v9041_v59 = vpop.eup %9040  ;;  %v12968_v41 = vld [vmem:[#allocation106_spill] sm:$0xff] }
 0x8d7   :  { %v3479_v33 = vadd.f32 0.5, %v3471_v32  ;;  %v9043_v5 = vpop.eup %9042  ;;  %v12969_v32 = vld [vmem:[#allocation130_spill] sm:$0xff] }
 0x8d8   :  { %v3480_v51 = vadd.f32 0.5, %v3472_v39  ;;  %v9045_v47 = vpop.eup %9044  ;;  %v3474_v61 = vmul.f32 0.5, %v9043_v5  ;;  %v12970_v39 = vld [vmem:[#allocation108_spill] sm:$0xff]  ;;  %v12976_v5 = vld [vmem:[#allocation114_spill] sm:$0xff] }
 0x8d9   :  { %v3497_v50 = vmul.f32 %v9041_v59, %v3479_v33  ;;  %v3470_v10 = vmul.f32 0.5, %v9045_v47  ;;  %v9047_v48 = vpop.eup %9046  ;;  %v12971_v33 = vld [vmem:[#allocation131_spill] sm:$0xff]  ;;  %v12972_v59 = vld [vmem:[#allocation110_spill] sm:$0xff] }
 0x8da   :  { %v3496_v3 = vmul.f32 %v3480_v51, %v10783_v6  ;;  %v3482_v19 = vadd.f32 0.5, %v3474_v61  ;;  %v12967_v6 = vld [vmem:[#allocation129_spill] sm:$0xff]  ;;  %v12973_v51 = vld [vmem:[#allocation132_spill] sm:$0xff]  ;;  %v12977_v47 = vld [vmem:[#allocation134_spill] sm:$0xff] }
 0x8db   :  { %v3478_v8 = vadd.f32 0.5, %v3470_v10  ;;  %v12978_v61 = vld [vmem:[#allocation116_spill] sm:$0xff]  ;;  %v12979_v10 = vld [vmem:[#allocation135_spill] sm:$0xff] }
 0x8dc   :  { %v10941_v56 = vadd.f32 %v3497_v50, %v3496_v3  ;;  %v12974_v50 = vld [vmem:[#allocation112_spill] sm:$0xff]  ;;  %v12975_v3 = vld [vmem:[#allocation133_spill] sm:$0xff] }
 0x8dd   :  { %v10947_v34 = vmul.f32 %v9047_v48, %v3478_v8  ;;  %v12980_v48 = vld [vmem:[#allocation118_spill] sm:$0xff]  ;;  %v12983_v8 = vld [vmem:[#allocation137_spill] sm:$0xff] }
 0x8de   :  { %9048 = vtanh.f32 %v10941_v56 }
 0x8df   :  { %12966 = vst [vmem:[#allocation143_spill] sm:$0xff] %v10947_v34 }
 0x8e8   :  { %v9049_v23 = vpop.eup %9048 }
 0x8e9   :  { %v10945_v15 = vmul.f32 %v9049_v23, %v3482_v19  ;;  %v12981_v19 = vld [vmem:[#allocation136_spill] sm:$0xff] }
 0x8ea   :  { %v12982_v23 = vld [vmem:[#allocation120_spill] sm:$0xff] }
 0x8eb   :  { %12965 = vst [vmem:[#allocation142_spill] sm:$0xff] %v10945_v15  ;;  %3575 = vmatprep.mubr.f32.mxu1 %v10945_v15  ;;  %3646 = vmatprep.mubr.f32.mxu0 %v10945_v15 }
 0x8ec   :  { %3576 = vmatmul.mubr.f32.vlgmr.msra.gmra.mrb[8].mxu1 %v10947_v34  ;;  %3647 = vmatmul.mubr.f32.vlgmr.msra.gmra.mrb[40].mxu0 %v10947_v34 }
 0x8ed   :  { %8370 = vmatpush1.bf16.msra.mxu1 %v12485_v63  ;;  %8434 = vmatpush1.bf16.msra.mxu0 %v12486_v57 }
 0x8ee   :  { %3717 = vmatprep.mubr.f32.mxu1 %v10945_v15  ;;  %3788 = vmatprep.mubr.f32.mxu0 %v10945_v15  ;;  %v12984_v15 = vld [vmem:[#allocation122_spill] sm:$0xff] }
 0x8ef   :  { %8372 = vmatprep.subr.bf16.mxu1 %v12487_v21  ;;  %8436 = vmatprep.subr.bf16.mxu0 %v12488_v25 }
 0x8f1   :  { %8374 = vmatpush1.bf16.msra.mxu1 %v12579_v62  ;;  %8438 = vmatpush1.bf16.msra.mxu0 %v12580_v11 }
 0x8f2   :  { %8376 = vmatprep.subr.bf16.mxu1 %v12581_v31  ;;  %8440 = vmatprep.subr.bf16.mxu0 %v12582_v30 }
 0x8f5   :  { %8378 = vmatpush1.bf16.msra.mxu1 %v12583_v46  ;;  %8442 = vmatpush1.bf16.msra.mxu0 %v12584_v40 }
 0x8f6   :  { %8380 = vmatprep.subr.bf16.mxu1 %v12585_v22  ;;  %8444 = vmatprep.subr.bf16.mxu0 %v12586_v2 }
 0x8f9   :  { %8382 = vmatpush1.bf16.msra.mxu1 %v12587_v29  ;;  %8446 = vmatpush1.bf16.msra.mxu0 %v12588_v38 }
 0x8fa   :  { %8384 = vmatprep.subr.bf16.mxu1 %v12589_v14  ;;  %8448 = vmatprep.subr.bf16.mxu0 %v12590_v54 }
 0x8fd   :  { %8386 = vmatpush1.bf16.msra.mxu1 %v12501_v20  ;;  %8450 = vmatpush1.bf16.msra.mxu0 %v12591_v27 }
 0x8fe   :  { %8388 = vmatprep.subr.bf16.mxu1 %v12676_v0  ;;  %8452 = vmatprep.subr.bf16.mxu0 %v12592_v13 }
 0x901   :  { %8390 = vmatpush1.bf16.msra.mxu1 %v12677_v53  ;;  %8454 = vmatpush1.bf16.msra.mxu0 %v12593_v37 }
 0x902   :  { %8392 = vmatprep.subr.bf16.mxu1 %v12678_v16  ;;  %8456 = vmatprep.subr.bf16.mxu0 %v12594_v42 }
 0x905   :  { %8394 = vmatpush1.bf16.msra.mxu1 %v12679_v12  ;;  %8458 = vmatpush1.bf16.msra.mxu0 %v12595_v44 }
 0x906   :  { %8396 = vmatprep.subr.bf16.mxu1 %v12680_v28  ;;  %8460 = vmatprep.subr.bf16.mxu0 %v12596_v18 }
 0x909   :  { %8398 = vmatpush1.bf16.msra.mxu1 %v12681_v55  ;;  %8462 = vmatpush1.bf16.msra.mxu0 %v12597_v24 }
 0x90a   :  { %8400 = vmatprep.subr.bf16.mxu1 %v12682_v60  ;;  %8464 = vmatprep.subr.bf16.mxu0 %v12598_v9 }
 0x90d   :  { %8402 = vmatpush1.bf16.msra.mxu1 %v12514_v58  ;;  %8466 = vmatpush1.bf16.msra.mxu0 %v12599_v52 }
 0x90e   :  { %8404 = vmatprep.subr.bf16.mxu1 %v12515_v1  ;;  %8468 = vmatprep.subr.bf16.mxu0 %v12600_v35 }
 0x911   :  { %8406 = vmatpush1.bf16.msra.mxu1 %v12516_v45  ;;  %8470 = vmatpush1.bf16.msra.mxu0 %v12967_v6 }
 0x912   :  { %8408 = vmatprep.subr.bf16.mxu1 %v12968_v41  ;;  %8472 = vmatprep.subr.bf16.mxu0 %v12969_v32 }
 0x915   :  { %8410 = vmatpush1.bf16.msra.mxu1 %v12970_v39  ;;  %8474 = vmatpush1.bf16.msra.mxu0 %v12971_v33 }
 0x916   :  { %8412 = vmatprep.subr.bf16.mxu1 %v12972_v59  ;;  %8476 = vmatprep.subr.bf16.mxu0 %v12973_v51  ;;  %v13059_v59 = vld [vmem:[#allocation155_spill] sm:$0xff] }
 0x919   :  { %8414 = vmatpush1.bf16.msra.mxu1 %v12974_v50  ;;  %8478 = vmatpush1.bf16.msra.mxu0 %v12975_v3  ;;  %v12985_v50 = vld [vmem:[#allocation138_spill] sm:$0xff]  ;;  %v12986_v3 = vld [vmem:[#allocation124_spill] sm:$0xff] }
 0x91a   :  { %8416 = vmatprep.subr.bf16.mxu1 %v12976_v5  ;;  %8480 = vmatprep.subr.bf16.mxu0 %v12977_v47  ;;  %v12987_v5 = vld [vmem:[#allocation139_spill] sm:$0xff]  ;;  %v12988_v47 = vld [vmem:[#allocation126_spill] sm:$0xff] }
 0x91d   :  { %8418 = vmatpush1.bf16.msra.mxu1 %v12978_v61  ;;  %8482 = vmatpush1.bf16.msra.mxu0 %v12979_v10  ;;  %v12989_v61 = vld [vmem:[#allocation140_spill] sm:$0xff] }
 0x91e   :  { %8420 = vmatprep.subr.bf16.mxu1 %v12980_v48  ;;  %8484 = vmatprep.subr.bf16.mxu0 %v12981_v19  ;;  %v12990_v10 = vld [vmem:[#allocation128_spill] sm:$0xff]  ;;  %v12991_v48 = vld [vmem:[#allocation141_spill] sm:$0xff]  ;;  %v12992_v19 = vld [vmem:[#allocation14_spill] sm:$0xff] }
 0x921   :  { %8422 = vmatpush1.bf16.msra.mxu1 %v12982_v23  ;;  %8486 = vmatpush1.bf16.msra.mxu0 %v12983_v8  ;;  %v12993_v23 = vld [vmem:[#allocation17_spill] sm:$0xff]  ;;  %v13058_v8 = vld [vmem:[#allocation154_spill] sm:$0xff] }
 0x922   :  { %8424 = vmatprep.subr.bf16.mxu1 %v12984_v15  ;;  %8488 = vmatprep.subr.bf16.mxu0 %v12985_v50  ;;  %v12994_v50 = vld [vmem:[#allocation15_spill] sm:$0xff]  ;;  %v13003_v15 = vld [vmem:[#allocation37_spill] sm:$0xff] }
 0x925   :  { %8426 = vmatpush1.bf16.msra.mxu1 %v12986_v3  ;;  %8490 = vmatpush1.bf16.msra.mxu0 %v12987_v5  ;;  %v12995_v3 = vld [vmem:[#allocation29_spill] sm:$0xff]  ;;  %v12996_v5 = vld [vmem:[#allocation16_spill] sm:$0xff] }
 0x926   :  { %8428 = vmatprep.subr.bf16.mxu1 %v12988_v47  ;;  %8492 = vmatprep.subr.bf16.mxu0 %v12989_v61  ;;  %v12997_v47 = vld [vmem:[#allocation31_spill] sm:$0xff]  ;;  %v12998_v61 = vld [vmem:[#allocation18_spill] sm:$0xff] }
 0x929   :  { %8430 = vmatpush1.bf16.msra.mxu1 %v12990_v10  ;;  %8494 = vmatpush1.bf16.msra.mxu0 %v12991_v48  ;;  %v12999_v10 = vld [vmem:[#allocation33_spill] sm:$0xff]  ;;  %v13000_v48 = vld [vmem:[#allocation19_spill] sm:$0xff] }
 0x92a   :  { %8496 = vmatprep.subr.bf16.mxu1 %v12992_v19  ;;  %8560 = vmatprep.subr.bf16.mxu0 %v12993_v23  ;;  %v13001_v19 = vld [vmem:[#allocation35_spill] sm:$0xff]  ;;  %v13002_v23 = vld [vmem:[#allocation20_spill] sm:$0xff] }
 0x92c   :  { %3718 = vmatmul.mubr.f32.vlgmr.msra.gmra.mrb[14].mxu1 %v10947_v34  ;;  %3789 = vmatmul.mubr.f32.vlgmr.msra.gmra.mrb[46].mxu0 %v10947_v34  ;;  %v13004_v34 = vld [vmem:[#allocation21_spill] sm:$0xff] }
 0x92d   :  { %8498 = vmatpush1.bf16.msra.mxu1 %v12994_v50  ;;  %8562 = vmatpush1.bf16.msra.mxu0 %v12995_v3  ;;  %v13005_v50 = vld [vmem:[#allocation39_spill] sm:$0xff]  ;;  %v13006_v3 = vld [vmem:[#allocation22_spill] sm:$0xff] }
 0x92e   :  { %8500 = vmatprep.subr.bf16.mxu1 %v12996_v5  ;;  %8564 = vmatprep.subr.bf16.mxu0 %v12997_v47  ;;  %v13007_v5 = vld [vmem:[#allocation41_spill] sm:$0xff]  ;;  %v13008_v47 = vld [vmem:[#allocation23_spill] sm:$0xff] }
 0x931   :  { %8502 = vmatpush1.bf16.msra.mxu1 %v12998_v61  ;;  %8566 = vmatpush1.bf16.msra.mxu0 %v12999_v10  ;;  %v13009_v61 = vld [vmem:[#allocation43_spill] sm:$0xff]  ;;  %v13010_v10 = vld [vmem:[#allocation24_spill] sm:$0xff] }
 0x932   :  { %8504 = vmatprep.subr.bf16.mxu1 %v13000_v48  ;;  %8568 = vmatprep.subr.bf16.mxu0 %v13001_v19  ;;  %v13011_v48 = vld [vmem:[#allocation45_spill] sm:$0xff] }
 0x933   :  { %v13012_v19 = vld [vmem:[#allocation25_spill] sm:$0xff] }
 0x935   :  { %8506 = vmatpush1.bf16.msra.mxu1 %v13002_v23  ;;  %8570 = vmatpush1.bf16.msra.mxu0 %v13003_v15  ;;  %v13013_v23 = vld [vmem:[#allocation47_spill] sm:$0xff]  ;;  %v13014_v15 = vld [vmem:[#allocation26_spill] sm:$0xff] }
 0x936   :  { %8508 = vmatprep.subr.bf16.mxu1 %v13004_v34  ;;  %8572 = vmatprep.subr.bf16.mxu0 %v13005_v50  ;;  %v13015_v34 = vld [vmem:[#allocation49_spill] sm:$0xff]  ;;  %v13016_v50 = vld [vmem:[#allocation27_spill] sm:$0xff] }
 0x939   :  { %8510 = vmatpush1.bf16.msra.mxu1 %v13006_v3  ;;  %8574 = vmatpush1.bf16.msra.mxu0 %v13007_v5  ;;  %v13017_v3 = vld [vmem:[#allocation51_spill] sm:$0xff]  ;;  %v13018_v5 = vld [vmem:[#allocation28_spill] sm:$0xff] }
 0x93a   :  { %8512 = vmatprep.subr.bf16.mxu1 %v13008_v47  ;;  %8576 = vmatprep.subr.bf16.mxu0 %v13009_v61  ;;  %v13019_v47 = vld [vmem:[#allocation53_spill] sm:$0xff]  ;;  %v13020_v61 = vld [vmem:[#allocation30_spill] sm:$0xff] }
 0x93d   :  { %8514 = vmatpush1.bf16.msra.mxu1 %v13010_v10  ;;  %8578 = vmatpush1.bf16.msra.mxu0 %v13011_v48  ;;  %v13021_v10 = vld [vmem:[#allocation55_spill] sm:$0xff]  ;;  %v13022_v48 = vld [vmem:[#allocation32_spill] sm:$0xff] }
 0x93e   :  { %8516 = vmatprep.subr.bf16.mxu1 %v13012_v19  ;;  %8580 = vmatprep.subr.bf16.mxu0 %v13013_v23  ;;  %v13023_v19 = vld [vmem:[#allocation57_spill] sm:$0xff]  ;;  %v13024_v23 = vld [vmem:[#allocation34_spill] sm:$0xff] }
 0x941   :  { %8518 = vmatpush1.bf16.msra.mxu1 %v13014_v15  ;;  %8582 = vmatpush1.bf16.msra.mxu0 %v13015_v34  ;;  %v13025_v15 = vld [vmem:[#allocation59_spill] sm:$0xff]  ;;  %v13026_v34 = vld [vmem:[#allocation36_spill] sm:$0xff] }
 0x942   :  { %8520 = vmatprep.subr.bf16.mxu1 %v13016_v50  ;;  %8584 = vmatprep.subr.bf16.mxu0 %v13017_v3  ;;  %v13027_v50 = vld [vmem:[#allocation61_spill] sm:$0xff]  ;;  %v13028_v3 = vld [vmem:[#allocation38_spill] sm:$0xff] }
 0x945   :  { %8522 = vmatpush1.bf16.msra.mxu1 %v13018_v5  ;;  %8586 = vmatpush1.bf16.msra.mxu0 %v13019_v47  ;;  %v13029_v5 = vld [vmem:[#allocation63_spill] sm:$0xff]  ;;  %v13030_v47 = vld [vmem:[#allocation40_spill] sm:$0xff] }
 0x946   :  { %8524 = vmatprep.subr.bf16.mxu1 %v13020_v61  ;;  %8588 = vmatprep.subr.bf16.mxu0 %v13021_v10  ;;  %v13031_v61 = vld [vmem:[#allocation65_spill] sm:$0xff]  ;;  %v13032_v10 = vld [vmem:[#allocation42_spill] sm:$0xff] }
 0x949   :  { %8526 = vmatpush1.bf16.msra.mxu1 %v13022_v48  ;;  %8590 = vmatpush1.bf16.msra.mxu0 %v13023_v19  ;;  %v13033_v48 = vld [vmem:[#allocation66_spill] sm:$0xff]  ;;  %v13034_v19 = vld [vmem:[#allocation44_spill] sm:$0xff] }
 0x94a   :  { %8528 = vmatprep.subr.bf16.mxu1 %v13024_v23  ;;  %8592 = vmatprep.subr.bf16.mxu0 %v13025_v15  ;;  %v13035_v23 = vld [vmem:[#allocation68_spill] sm:$0xff]  ;;  %v13036_v15 = vld [vmem:[#allocation46_spill] sm:$0xff] }
 0x94d   :  { %8530 = vmatpush1.bf16.msra.mxu1 %v13026_v34  ;;  %8594 = vmatpush1.bf16.msra.mxu0 %v13027_v50  ;;  %v13037_v34 = vld [vmem:[#allocation70_spill] sm:$0xff]  ;;  %v13038_v50 = vld [vmem:[#allocation48_spill] sm:$0xff] }
 0x94e   :  { %8532 = vmatprep.subr.bf16.mxu1 %v13028_v3  ;;  %8596 = vmatprep.subr.bf16.mxu0 %v13029_v5  ;;  %v13039_v3 = vld [vmem:[#allocation72_spill] sm:$0xff]  ;;  %v13040_v5 = vld [vmem:[#allocation50_spill] sm:$0xff] }
 0x951   :  { %8534 = vmatpush1.bf16.msra.mxu1 %v13030_v47  ;;  %8598 = vmatpush1.bf16.msra.mxu0 %v13031_v61  ;;  %v13041_v47 = vld [vmem:[#allocation74_spill] sm:$0xff]  ;;  %v13042_v61 = vld [vmem:[#allocation52_spill] sm:$0xff] }
 0x952   :  { %8536 = vmatprep.subr.bf16.mxu1 %v13032_v10  ;;  %8600 = vmatprep.subr.bf16.mxu0 %v13033_v48  ;;  %v13043_v10 = vld [vmem:[#allocation76_spill] sm:$0xff]  ;;  %v13044_v48 = vld [vmem:[#allocation54_spill] sm:$0xff] }
 0x955   :  { %8538 = vmatpush1.bf16.msra.mxu1 %v13034_v19  ;;  %8602 = vmatpush1.bf16.msra.mxu0 %v13035_v23  ;;  %v13045_v19 = vld [vmem:[#allocation78_spill] sm:$0xff]  ;;  %v13046_v23 = vld [vmem:[#allocation56_spill] sm:$0xff] }
 0x956   :  { %8540 = vmatprep.subr.bf16.mxu1 %v13036_v15  ;;  %8604 = vmatprep.subr.bf16.mxu0 %v13037_v34  ;;  %v13047_v15 = vld [vmem:[#allocation80_spill] sm:$0xff]  ;;  %v13048_v34 = vld [vmem:[#allocation58_spill] sm:$0xff] }
 0x959   :  { %8542 = vmatpush1.bf16.msra.mxu1 %v13038_v50  ;;  %8606 = vmatpush1.bf16.msra.mxu0 %v13039_v3  ;;  %v13049_v50 = vld [vmem:[#allocation82_spill] sm:$0xff]  ;;  %v13050_v3 = vld [vmem:[#allocation60_spill] sm:$0xff] }
 0x95a   :  { %8544 = vmatprep.subr.bf16.mxu1 %v13040_v5  ;;  %8608 = vmatprep.subr.bf16.mxu0 %v13041_v47  ;;  %v13051_v5 = vld [vmem:[#allocation84_spill] sm:$0xff]  ;;  %v13052_v47 = vld [vmem:[#allocation62_spill] sm:$0xff] }
 0x95d   :  { %8546 = vmatpush1.bf16.msra.mxu1 %v13042_v61  ;;  %8610 = vmatpush1.bf16.msra.mxu0 %v13043_v10  ;;  %v13053_v61 = vld [vmem:[#allocation86_spill] sm:$0xff]  ;;  %v13054_v10 = vld [vmem:[#allocation64_spill] sm:$0xff] }
 0x95e   :  { %8548 = vmatprep.subr.bf16.mxu1 %v13044_v48  ;;  %8612 = vmatprep.subr.bf16.mxu0 %v13045_v19  ;;  %v13055_v48 = vld [vmem:[#allocation88_spill] sm:$0xff]  ;;  %v13056_v19 = vld [vmem:[#allocation67_spill] sm:$0xff] }
 0x961   :  { %8550 = vmatpush1.bf16.msra.mxu1 %v13046_v23  ;;  %8614 = vmatpush1.bf16.msra.mxu0 %v13047_v15  ;;  %v13057_v23 = vld [vmem:[#allocation91_spill] sm:$0xff] }
 0x962   :  { %8552 = vmatprep.subr.bf16.mxu1 %v13048_v34  ;;  %8616 = vmatprep.subr.bf16.mxu0 %v13049_v50 }
 0x965   :  { %8554 = vmatpush1.bf16.msra.mxu1 %v13050_v3  ;;  %8618 = vmatpush1.bf16.msra.mxu0 %v13051_v5 }
 0x966   :  { %8556 = vmatprep.subr.bf16.mxu1 %v13052_v47  ;;  %8620 = vmatprep.subr.bf16.mxu0 %v13053_v61 }
 0x969   :  { %8558 = vmatpush1.bf16.msra.mxu1 %v13054_v10  ;;  %8622 = vmatpush1.bf16.msra.mxu0 %v13055_v48 }
 0x96a   :  { %8624 = vmatprep.subr.bf16.mxu1 %v13056_v19  ;;  %8688 = vmatprep.subr.bf16.mxu0 %v13057_v23 }
 0x9bf   :  { %v3577_v15 = vpop.f32.mrb[8].mxu1  ;;  %v3648_v34 = vpop.f32.mrb[40].mxu0 }
 0x9c0   :  { %v8811_v50 = vadd.f32 %v3577_v15, %v13058_v8  ;;  %v3579_v51 = vpop.f32.mrb[9].mxu1  ;;  %v3650_v3 = vpop.f32.mrb[41].mxu0  ;;  %v8827_v61 = vadd.f32 %v3648_v34, %v12673_v43 }
 0x9c1   :  { %v8812_v5 = vadd.f32 %v3579_v51, %v13059_v59 }
 0x9c2   :  { %v3803_v33 = vmul.f32 0.5, %v8811_v50 }
 0x9c3   :  { %v3804_v47 = vmul.f32 0.5, %v8812_v5 }
 0x9c4   :  { %9050 = vtanh.f32 %v3803_v33 }
 0x9c5   :  { %9052 = vtanh.f32 %v3804_v47 }
 0x9c6   :  { %9054 = vtanh.f32 %v8827_v61 }
 0x9ce   :  { %v9051_v10 = vpop.eup %9050 }
 0x9cf   :  { %v9053_v48 = vpop.eup %9052  ;;  %v3827_v19 = vmul.f32 0.5, %v9051_v10 }
 0x9d0   :  { %v3828_v39 = vmul.f32 0.5, %v9053_v48  ;;  %v9055_v32 = vpop.eup %9054 }
 0x9d1   :  { %v3835_v23 = vadd.f32 0.5, %v3827_v19 }
 0x9d2   :  { %v3836_v41 = vadd.f32 0.5, %v3828_v39 }
 0x9d3   :  { %v3852_v6 = vmul.f32 %v9055_v32, %v3835_v23 }
 0x9d4   :  { %v3851_v15 = vmul.f32 %v3836_v41, %v10933_v7  ;;  %v8828_v7 = vadd.f32 %v3650_v3, %v10146_v4 }
 0x9d6   :  { %v11089_v8 = vadd.f32 %v3852_v6, %v3851_v15  ;;  %v3806_v41 = vmul.f32 0.5, %v8828_v7 }
 0x9ff   :  { %v3719_v51 = vpop.f32.mrb[14].mxu1  ;;  %v3790_v50 = vpop.f32.mrb[46].mxu0 }
 0xa00   :  { %v8833_v33 = vadd.f32 %v3719_v51, %v12575_v17  ;;  %v3721_v5 = vpop.f32.mrb[15].mxu1  ;;  %v3792_v34 = vpop.f32.mrb[47].mxu0  ;;  %v8849_v10 = vadd.f32 %v3790_v50, %v10142_v26 }
 0xa01   :  { %v8834_v47 = vadd.f32 %v3721_v5, %v12576_v36  ;;  %v8850_v32 = vadd.f32 %v3792_v34, %v10144_v49 }
 0xa02   :  { %v3807_v61 = vmul.f32 0.5, %v8833_v33 }
 0xa03   :  { %v3808_v43 = vmul.f32 0.5, %v8834_v47  ;;  %v3810_v6 = vmul.f32 0.5, %v8850_v32 }
 0xa04   :  { %9056 = vtanh.f32 %v3807_v61 }
 0xa05   :  { %9058 = vtanh.f32 %v3808_v43 }
 0xa06   :  { %9060 = vtanh.f32 %v8849_v10 }
 0xa07   :  { %9062 = vtanh.f32 %v3810_v6 }
 0xa08   :  { %9064 = vtanh.f32 %v3806_v41 }
 0xa09   :  { %9066 = vtanh.f32 %v11089_v8 }
 0xa0e   :  { %v9057_v39 = vpop.eup %9056 }
 0xa0f   :  { %v9059_v48 = vpop.eup %9058  ;;  %v3831_v19 = vmul.f32 0.5, %v9057_v39 }
 0xa10   :  { %v3832_v23 = vmul.f32 0.5, %v9059_v48  ;;  %v9061_v51 = vpop.eup %9060  ;;  %v4244_v48 = vld [vmem:[#allocation9 + $0xa8] sm:$0xff] }
 0xa11   :  { %v3839_v15 = vadd.f32 0.5, %v3831_v19  ;;  %v9063_v3 = vpop.eup %9062 }
 0xa12   :  { %v3840_v33 = vadd.f32 0.5, %v3832_v23  ;;  %v9065_v34 = vpop.eup %9064  ;;  %v3834_v47 = vmul.f32 0.5, %v9063_v3  ;;  %v4227_v23 = vld [vmem:[#allocation9 + $0x20] sm:$0xff]  ;;  %v4229_v3 = vld [vmem:[#allocation9 + $0x30] sm:$0xff] }
 0xa13   :  { %v3857_v5 = vmul.f32 %v9061_v51, %v3839_v15  ;;  %v3830_v61 = vmul.f32 0.5, %v9065_v34  ;;  %v9067_v10 = vpop.eup %9066  ;;  %v4228_v15 = vld [vmem:[#allocation9 + $0x28] sm:$0xff]  ;;  %v4230_v34 = vld [vmem:[#allocation9 + $0x38] sm:$0xff] }
 0xa14   :  { %v3856_v50 = vmul.f32 %v3840_v33, %v10941_v56  ;;  %v3842_v32 = vadd.f32 0.5, %v3834_v47  ;;  %v4243_v56 = vld [vmem:[#allocation9 + $0xa0] sm:$0xff]  ;;  %v8761_v51 = vpack.c.bf16 %v4228_v15, %v4227_v23  ;;  %v4245_v33 = vld [vmem:[#allocation9 + $0xb0] sm:$0xff]  ;;  %v8765_v47 = vpack.c.bf16 %v4230_v34, %v4229_v3 }
 0xa15   :  { %v3838_v6 = vadd.f32 0.5, %v3830_v61  ;;  %v8759_v19 = vpack.c.bf16 %v4244_v48, %v4243_v56  ;;  %v4247_v61 = vld [vmem:[#allocation9 + $0xc0] sm:$0xff] }
 0xa16   :  { %v11097_v43 = vadd.f32 %v3857_v5, %v3856_v50  ;;  %v4246_v5 = vld [vmem:[#allocation9 + $0xb8] sm:$0xff] }
 0xa17   :  { %v11103_v39 = vmul.f32 %v9067_v10, %v3838_v6  ;;  %v8763_v50 = vpack.c.bf16 %v4246_v5, %v4245_v33  ;;  %v4248_v10 = vld [vmem:[#allocation9 + $0xc8] sm:$0xff] }
 0xa18   :  { %9068 = vtanh.f32 %v11097_v43  ;;  %v4232_v6 = vld [vmem:[#allocation9 + $0x48] sm:$0xff] }
 0xa22   :  { %v9069_v7 = vpop.eup %9068 }
 0xa23   :  { %v11101_v41 = vmul.f32 %v9069_v7, %v3842_v32  ;;  %v8767_v32 = vpack.c.bf16 %v4248_v10, %v4247_v61  ;;  %v4231_v7 = vld [vmem:[#allocation9 + $0x40] sm:$0xff] }
 0xa25   :  { %3935 = vmatprep.mubr.f32.mxu1 %v11101_v41  ;;  %4006 = vmatprep.mubr.f32.mxu0 %v11101_v41 }
 0xa26   :  { %3936 = vmatmul.mubr.f32.vlgmr.msra.gmra.mrb[10].mxu1 %v11103_v39  ;;  %4007 = vmatmul.mubr.f32.vlgmr.msra.gmra.mrb[42].mxu0 %v11103_v39 }
 0xa27   :  { %8626 = vmatpush1.bf16.msra.mxu1 %v12485_v63  ;;  %8690 = vmatpush1.bf16.msra.mxu0 %v12486_v57  ;;  %v13060_v63 = vld [vmem:[#allocation129_spill] sm:$0xff]  ;;  %v13061_v57 = vld [vmem:[#allocation106_spill] sm:$0xff] }
 0xa28   :  { %4077 = vmatprep.mubr.f32.mxu1 %v11101_v41  ;;  %4148 = vmatprep.mubr.f32.mxu0 %v11101_v41 }
 0xa29   :  { %8628 = vmatprep.subr.bf16.mxu1 %v12487_v21  ;;  %8692 = vmatprep.subr.bf16.mxu0 %v12488_v25  ;;  %v13062_v21 = vld [vmem:[#allocation130_spill] sm:$0xff]  ;;  %v13063_v25 = vld [vmem:[#allocation108_spill] sm:$0xff] }
 0xa2b   :  { %8630 = vmatpush1.bf16.msra.mxu1 %v12579_v62  ;;  %8694 = vmatpush1.bf16.msra.mxu0 %v12580_v11  ;;  %v13073_v62 = vld [vmem:[#allocation118_spill] sm:$0xff]  ;;  %v13074_v11 = vld [vmem:[#allocation136_spill] sm:$0xff] }
 0xa2c   :  { %8632 = vmatprep.subr.bf16.mxu1 %v12581_v31  ;;  %8696 = vmatprep.subr.bf16.mxu0 %v12582_v30  ;;  %v13075_v31 = vld [vmem:[#allocation120_spill] sm:$0xff]  ;;  %v13076_v30 = vld [vmem:[#allocation137_spill] sm:$0xff] }
 0xa2f   :  { %8634 = vmatpush1.bf16.msra.mxu1 %v12583_v46  ;;  %8698 = vmatpush1.bf16.msra.mxu0 %v12584_v40  ;;  %v13077_v46 = vld [vmem:[#allocation122_spill] sm:$0xff] }
 0xa30   :  { %8636 = vmatprep.subr.bf16.mxu1 %v12585_v22  ;;  %8700 = vmatprep.subr.bf16.mxu0 %v12586_v2  ;;  %v13078_v40 = vld [vmem:[#allocation138_spill] sm:$0xff]  ;;  %v13079_v22 = vld [vmem:[#allocation124_spill] sm:$0xff]  ;;  %v13080_v2 = vld [vmem:[#allocation139_spill] sm:$0xff] }
 0xa33   :  { %8638 = vmatpush1.bf16.msra.mxu1 %v12587_v29  ;;  %8702 = vmatpush1.bf16.msra.mxu0 %v12588_v38  ;;  %v13081_v29 = vld [vmem:[#allocation126_spill] sm:$0xff]  ;;  %v13082_v38 = vld [vmem:[#allocation140_spill] sm:$0xff] }
 0xa34   :  { %8640 = vmatprep.subr.bf16.mxu1 %v12589_v14  ;;  %8704 = vmatprep.subr.bf16.mxu0 %v12590_v54  ;;  %v13083_v14 = vld [vmem:[#allocation128_spill] sm:$0xff]  ;;  %v13084_v54 = vld [vmem:[#allocation141_spill] sm:$0xff] }
 0xa37   :  { %8642 = vmatpush1.bf16.msra.mxu1 %v12501_v20  ;;  %8706 = vmatpush1.bf16.msra.mxu0 %v12591_v27  ;;  %v13064_v20 = vld [vmem:[#allocation131_spill] sm:$0xff]  ;;  %v4239_v27 = vld [vmem:[#allocation9 + $0x80] sm:$0xff] }
 0xa38   :  { %8644 = vmatprep.subr.bf16.mxu1 %v12676_v0  ;;  %8708 = vmatprep.subr.bf16.mxu0 %v12592_v13  ;;  %v4240_v13 = vld [vmem:[#allocation9 + $0x88] sm:$0xff] }
 0xa3b   :  { %8646 = vmatpush1.bf16.msra.mxu1 %v12677_v53  ;;  %8710 = vmatpush1.bf16.msra.mxu0 %v12593_v37  ;;  %v8751_v37 = vpack.c.bf16 %v4240_v13, %v4239_v27  ;;  %v4241_v53 = vld [vmem:[#allocation9 + $0x90] sm:$0xff] }
 0xa3c   :  { %8648 = vmatprep.subr.bf16.mxu1 %v12678_v16  ;;  %8712 = vmatprep.subr.bf16.mxu0 %v12594_v42  ;;  %v4223_v42 = vld [vmem:[#allocation9] sm:$0xff]  ;;  %v4242_v16 = vld [vmem:[#allocation9 + $0x98] sm:$0xff] }
 0xa3f   :  { %8650 = vmatpush1.bf16.msra.mxu1 %v12679_v12  ;;  %8714 = vmatpush1.bf16.msra.mxu0 %v12595_v44  ;;  %v4224_v44 = vld [vmem:[#allocation9 + $0x8] sm:$0xff]  ;;  %v8755_v12 = vpack.c.bf16 %v4242_v16, %v4241_v53 }
 0xa40   :  { %8652 = vmatprep.subr.bf16.mxu1 %v12680_v28  ;;  %8716 = vmatprep.subr.bf16.mxu0 %v12596_v18  ;;  %v13072_v18 = vld [vmem:[#allocation135_spill] sm:$0xff]  ;;  %v8753_v0 = vpack.c.bf16 %v4224_v44, %v4223_v42  ;;  %v13086_v42 = vld [vmem:[#allocation156_spill] sm:$0xff] }
 0xa41   :  { %v4225_v28 = vld [vmem:[#allocation9 + $0x10] sm:$0xff] }
 0xa43   :  { %8654 = vmatpush1.bf16.msra.mxu1 %v12681_v55  ;;  %8718 = vmatpush1.bf16.msra.mxu0 %v12597_v24  ;;  %v13065_v24 = vld [vmem:[#allocation110_spill] sm:$0xff]  ;;  %v4226_v55 = vld [vmem:[#allocation9 + $0x18] sm:$0xff] }
 0xa44   :  { %8656 = vmatprep.subr.bf16.mxu1 %v12682_v60  ;;  %8720 = vmatprep.subr.bf16.mxu0 %v12598_v9  ;;  %v13066_v9 = vld [vmem:[#allocation132_spill] sm:$0xff]  ;;  %v8757_v60 = vpack.c.bf16 %v4226_v55, %v4225_v28 }
 0xa47   :  { %8658 = vmatpush1.bf16.msra.mxu1 %v12514_v58  ;;  %8722 = vmatpush1.bf16.msra.mxu0 %v12599_v52  ;;  %v13067_v58 = vld [vmem:[#allocation112_spill] sm:$0xff]  ;;  %v13068_v52 = vld [vmem:[#allocation133_spill] sm:$0xff] }
 0xa48   :  { %8660 = vmatprep.subr.bf16.mxu1 %v12515_v1  ;;  %8724 = vmatprep.subr.bf16.mxu0 %v12600_v35  ;;  %v13069_v1 = vld [vmem:[#allocation114_spill] sm:$0xff]  ;;  %v13071_v35 = vld [vmem:[#allocation116_spill] sm:$0xff] }
 0xa4b   :  { %8662 = vmatpush1.bf16.msra.mxu1 %v12516_v45  ;;  %8726 = vmatpush1.bf16.msra.mxu0 %v13060_v63  ;;  %v13070_v45 = vld [vmem:[#allocation134_spill] sm:$0xff]  ;;  %v8769_v63 = vpack.c.bf16 %v4232_v6, %v4231_v7 }
 0xa4c   :  { %8664 = vmatprep.subr.bf16.mxu1 %v13061_v57  ;;  %8728 = vmatprep.subr.bf16.mxu0 %v13062_v21  ;;  %v4249_v57 = vld [vmem:[#allocation9 + $0xd0] sm:$0xff]  ;;  %v4250_v21 = vld [vmem:[#allocation9 + $0xd8] sm:$0xff] }
 0xa4f   :  { %8666 = vmatpush1.bf16.msra.mxu1 %v13063_v25  ;;  %8730 = vmatpush1.bf16.msra.mxu0 %v13064_v20  ;;  %v4233_v25 = vld [vmem:[#allocation9 + $0x50] sm:$0xff]  ;;  %v8771_v20 = vpack.c.bf16 %v4250_v21, %v4249_v57 }
 0xa50   :  { %8668 = vmatprep.subr.bf16.mxu1 %v13065_v24  ;;  %8732 = vmatprep.subr.bf16.mxu0 %v13066_v9  ;;  %v4234_v24 = vld [vmem:[#allocation9 + $0x58] sm:$0xff]  ;;  %v4251_v9 = vld [vmem:[#allocation9 + $0xe0] sm:$0xff] }
 0xa53   :  { %8670 = vmatpush1.bf16.msra.mxu1 %v13067_v58  ;;  %8734 = vmatpush1.bf16.msra.mxu0 %v13068_v52  ;;  %v4252_v58 = vld [vmem:[#allocation9 + $0xe8] sm:$0xff]  ;;  %v8773_v52 = vpack.c.bf16 %v4234_v24, %v4233_v25 }
 0xa54   :  { %8672 = vmatprep.subr.bf16.mxu1 %v13069_v1  ;;  %8736 = vmatprep.subr.bf16.mxu0 %v13070_v45  ;;  %v8775_v1 = vpack.c.bf16 %v4252_v58, %v4251_v9  ;;  %v4235_v45 = vld [vmem:[#allocation9 + $0x60] sm:$0xff] }
 0xa57   :  { %8674 = vmatpush1.bf16.msra.mxu1 %v13071_v35  ;;  %8738 = vmatpush1.bf16.msra.mxu0 %v13072_v18  ;;  %v4236_v35 = vld [vmem:[#allocation9 + $0x68] sm:$0xff]  ;;  %v4253_v18 = vld [vmem:[#allocation9 + $0xf0] sm:$0xff] }
 0xa58   :  { %8676 = vmatprep.subr.bf16.mxu1 %v13073_v62  ;;  %8740 = vmatprep.subr.bf16.mxu0 %v13074_v11  ;;  %v4254_v62 = vld [vmem:[#allocation9 + $0xf8] sm:$0xff]  ;;  %v8777_v11 = vpack.c.bf16 %v4236_v35, %v4235_v45 }
 0xa5b   :  { %8678 = vmatpush1.bf16.msra.mxu1 %v13075_v31  ;;  %8742 = vmatpush1.bf16.msra.mxu0 %v13076_v30  ;;  %v8779_v31 = vpack.c.bf16 %v4254_v62, %v4253_v18  ;;  %v4237_v30 = vld [vmem:[#allocation9 + $0x70] sm:$0xff]  ;;  %v13088_v62 = vld [vmem:[#allocation93_spill] sm:$0xff] }
 0xa5c   :  { %8680 = vmatprep.subr.bf16.mxu1 %v13077_v46  ;;  %8744 = vmatprep.subr.bf16.mxu0 %v13078_v40  ;;  %v4238_v46 = vld [vmem:[#allocation9 + $0x78] sm:$0xff] }
 0xa5d   :  { %v8781_v40 = vpack.c.bf16 %v4238_v46, %v4237_v30  ;;  %v13091_v30 = vld [vmem:[#allocation102_spill] sm:$0xff]  ;;  %v13093_v46 = vld [vmem:[#allocation85_spill] sm:$0xff] }
 0xa5f   :  { %8682 = vmatpush1.bf16.msra.mxu1 %v13079_v22  ;;  %8746 = vmatpush1.bf16.msra.mxu0 %v13080_v2 }
 0xa60   :  { %8684 = vmatprep.subr.bf16.mxu1 %v13081_v29  ;;  %8748 = vmatprep.subr.bf16.mxu0 %v13082_v38  ;;  %v13085_v29 = vld [vmem:[#allocation154_spill] sm:$0xff] }
 0xa63   :  { %8686 = vmatpush1.bf16.msra.mxu1 %v13083_v14  ;;  %8750 = vmatpush1.bf16.msra.mxu0 %v13084_v54 }
 0xa64   :  { %8752 = vmatprep.subr.bf16.mxu1 %v8751_v37 }
 0xa66   :  { %4078 = vmatmul.mubr.f32.vlgmr.msra.gmra.mrb[12].mxu1 %v11103_v39  ;;  %4149 = vmatmul.mubr.f32.vlgmr.msra.gmra.mrb[44].mxu0 %v11103_v39 }
 0xa67   :  { %8754 = vmatpush3.bf16.msra.mxu1 %v8753_v0 }
 0xa68   :  { %8756 = vmatprep.subr.bf16.mxu1 %v8755_v12 }
 0xa6b   :  { %8758 = vmatpush3.bf16.msra.mxu1 %v8757_v60 }
 0xa6c   :  { %8760 = vmatprep.subr.bf16.mxu1 %v8759_v19 }
 0xa6f   :  { %8762 = vmatpush3.bf16.msra.mxu1 %v8761_v51 }
 0xa70   :  { %8764 = vmatprep.subr.bf16.mxu1 %v8763_v50 }
 0xa73   :  { %8766 = vmatpush3.bf16.msra.mxu1 %v8765_v47 }
 0xa74   :  { %8768 = vmatprep.subr.bf16.mxu1 %v8767_v32 }
 0xa77   :  { %8770 = vmatpush3.bf16.msra.mxu1 %v8769_v63 }
 0xa78   :  { %8772 = vmatprep.subr.bf16.mxu1 %v8771_v20 }
 0xa7b   :  { %8774 = vmatpush3.bf16.msra.mxu1 %v8773_v52 }
 0xa7c   :  { %8776 = vmatprep.subr.bf16.mxu1 %v8775_v1 }
 0xa7f   :  { %8778 = vmatpush3.bf16.msra.mxu1 %v8777_v11  ;;  %v13089_v11 = vld [vmem:[#allocation142_spill] sm:$0xff] }
 0xa80   :  { %8780 = vmatprep.subr.bf16.mxu1 %v8779_v31  ;;  %v13090_v31 = vld [vmem:[#allocation95_spill] sm:$0xff] }
 0xa83   :  { %8782 = vmatpush3.bf16.msra.mxu1 %v8781_v40  ;;  %v13094_v40 = vld [vmem:[#allocation104_spill] sm:$0xff] }
 0xaf9   :  { %v3937_v22 = vpop.f32.mrb[10].mxu1  ;;  %v4008_v2 = vpop.f32.mrb[42].mxu0 }
 0xafa   :  { %v8813_v38 = vadd.f32 %v3937_v22, %v13085_v29  ;;  %v3939_v14 = vpop.f32.mrb[11].mxu1  ;;  %v4010_v54 = vpop.f32.mrb[43].mxu0  ;;  %v8829_v44 = vadd.f32 %v4008_v2, %v13086_v42  ;;  %v13095_v22 = vld [vmem:[#allocation71_spill] sm:$0xff]  ;;  %v13097_v29 = vld [vmem:[#allocation69_spill] sm:$0xff] }
 0xafb   :  { %v8814_v27 = vadd.f32 %v3939_v14, %v13059_v59  ;;  %v8830_v0 = vadd.f32 %v4010_v54, %v10146_v4  ;;  %v13096_v2 = vld [vmem:[#allocation143_spill] sm:$0xff] }
 0xafc   :  { %v4163_v13 = vmul.f32 0.5, %v8813_v38  ;;  %v9428_v38 = vmov 1966171168  }
 0xafd   :  { %v4164_v37 = vmul.f32 0.5, %v8814_v27  ;;  %v4166_v53 = vmul.f32 0.5, %v8830_v0  ;;  %v4489_v14 = vunpack.c.l.s4 %v9428_v38  ;;  %v13099_v0 = vld [vmem:[#allocation152_spill] sm:$0xff] }
 0xafe   :  { %9070 = vtanh.f32 %v4163_v13  ;;  %v11199_v13 = vld [vmem:[#allocation9 + $0x108] ss:$0 sm:$0xff] }
 0xaff   :  { %9072 = vtanh.f32 %v4164_v37  ;;  %v4490_v54 = vunpack.c.0.s8 %v4489_v14 }
 0xb00   :  { %9074 = vtanh.f32 %v8829_v44  ;;  %v6565_v44 = vld [vmem:[#allocation9 + $0x110] ss:$0 sm:$0xff] }
 0xb01   :  { %9076 = vtanh.f32 %v4166_v53  ;;  %v11202_v53 = vsub.s32 %v4490_v54, %v13099_v0 }
 0xb08   :  { %v9071_v16 = vpop.eup %9070 }
 0xb09   :  { %v9073_v12 = vpop.eup %9072  ;;  %v4187_v28 = vmul.f32 0.5, %v9071_v16 }
 0xb0a   :  { %v4188_v55 = vmul.f32 0.5, %v9073_v12  ;;  %v9075_v56 = vpop.eup %9074 }
 0xb0b   :  { %v4195_v60 = vadd.f32 0.5, %v4187_v28  ;;  %v9077_v15 = vpop.eup %9076 }
 0xb0c   :  { %v4196_v48 = vadd.f32 0.5, %v4188_v55  ;;  %v4190_v51 = vmul.f32 0.5, %v9077_v15 }
 0xb0d   :  { %v4212_v19 = vmul.f32 %v9075_v56, %v4195_v60 }
 0xb0e   :  { %v4211_v59 = vmul.f32 %v4196_v48, %v11089_v8  ;;  %v4198_v33 = vadd.f32 0.5, %v4190_v51 }
 0xb10   :  { %v4213_v23 = vadd.f32 %v4212_v19, %v4211_v59 }
 0xb12   :  { %9078 = vtanh.f32 %v4213_v23 }
 0xb1c   :  { %v9079_v5 = vpop.eup %9078 }
 0xb1d   :  { %v4215_v50 = vmul.f32 %v9079_v5, %v4198_v33  ;;  %v11219_v5 = vld [vmem:[#allocation9 + $0x120] sm:$0x1f] }
 0xb39   :  { %v4079_v4 = vpop.f32.mrb[12].mxu1  ;;  %v4150_v3 = vpop.f32.mrb[44].mxu0 }
 0xb3a   :  { %v8831_v34 = vadd.f32 %v4079_v4, %v12575_v17  ;;  %v4081_v47 = vpop.f32.mrb[13].mxu1  ;;  %v4152_v61 = vpop.f32.mrb[45].mxu0  ;;  %v8847_v8 = vadd.f32 %v4150_v3, %v10142_v26  ;;  %v13100_v3 = vld [vmem:[#allocation153_spill] sm:$0xff] }
 0xb3b   :  { %v8832_v10 = vadd.f32 %v4081_v47, %v12576_v36  ;;  %v8848_v6 = vadd.f32 %v4152_v61, %v10144_v49  ;;  %v13087_v49 = vld [vmem:[#allocation160_spill] sm:$0xff] }
 0xb3c   :  { %v4167_v32 = vmul.f32 0.5, %v8831_v34 }
 0xb3d   :  { %v4168_v7 = vmul.f32 0.5, %v8832_v10  ;;  %v4170_v63 = vmul.f32 0.5, %v8848_v6 }
 0xb3e   :  { %9080 = vtanh.f32 %v4167_v32 }
 0xb3f   :  { %9082 = vtanh.f32 %v4168_v7 }
 0xb40   :  { %9084 = vtanh.f32 %v8847_v8 }
 0xb41   :  { %9086 = vtanh.f32 %v4170_v63 }
 0xb48   :  { %v9081_v57 = vpop.eup %9080 }
 0xb49   :  { %v9083_v21 = vpop.eup %9082  ;;  %v4191_v25 = vmul.f32 0.5, %v9081_v57 }
 0xb4a   :  { %v4192_v20 = vmul.f32 0.5, %v9083_v21  ;;  %v9085_v24 = vpop.eup %9084 }
 0xb4b   :  { %v4199_v17 = vadd.f32 0.5, %v4191_v25  ;;  %v9087_v1 = vpop.eup %9086 }
 0xb4c   :  { %v4200_v9 = vadd.f32 0.5, %v4192_v20  ;;  %v4194_v26 = vmul.f32 0.5, %v9087_v1 }
 0xb4d   :  { %v4217_v58 = vmul.f32 %v9085_v24, %v4199_v17 }
 0xb4e   :  { %v4216_v36 = vmul.f32 %v4200_v9, %v11097_v43  ;;  %v4202_v45 = vadd.f32 0.5, %v4194_v26  ;;  %v13092_v43 = vld [vmem:[#allocation100_spill] sm:$0xff] }
 0xb50   :  { %v4218_v52 = vadd.f32 %v4217_v58, %v4216_v36 }
 0xb52   :  { %9088 = vtanh.f32 %v4218_v52 }
 0xb5c   :  { %v9089_v35 = vpop.eup %9088 }
 0xb5d   :  { %v4220_v18 = vmul.f32 %v9089_v35, %v4202_v45 }
 0xb5f   :  { %4340 = vmatprep.mubr.f32.mxu1 %v4220_v18 }
 0xb60   :  { %4341 = vmatmul.mubr.f32.vlgmr.msra.gmra.mrb[40].mxu1 %v13087_v49 }
 0xb61   :  { %4345 = vmatprep.mubr.f32.mxu1 %v11101_v41  ;;  %v13098_v41 = vld [vmem:[#allocation159_spill] sm:$0xff] }
 0xb64   :  { %4346 = vmatmul.mubr.f32.gmra.mrb[42].mxu1 %v13088_v62 }
 0xb65   :  { %4350 = vmatprep.mubr.f32.mxu1 %v13089_v11 }
 0xb68   :  { %4351 = vmatmul.mubr.f32.gmra.mrb[44].mxu1 %v13090_v31 }
 0xb69   :  { %4355 = vmatprep.mubr.f32.mxu1 %v13091_v30 }
 0xb6c   :  { %4356 = vmatmul.mubr.f32.gmra.mrb[46].mxu1 %v13092_v43 }
 0xb6d   :  { %4360 = vmatprep.mubr.f32.mxu1 %v13093_v46 }
 0xb70   :  { %4361 = vmatmul.mubr.f32.gmra.mrb[48].mxu1 %v13094_v40 }
 0xb71   :  { %4365 = vmatprep.mubr.f32.mxu1 %v13095_v22 }
 0xb74   :  { %4366 = vmatmul.mubr.f32.gmra.mrb[50].mxu1 %v13096_v2 }
 0xb75   :  { %4370 = vmatprep.mubr.f32.mxu1 %v13097_v29 }
 0xb78   :  { %4371 = vmatmul.mubr.f32.gmra.mrb[52].mxu1 %v11103_v39 }
 0xb79   :  { %4375 = vmatprep.mubr.f32.mxu1 %v13098_v41 }
 0xb7c   :  { %4376 = vmatmul.mubr.f32.gmra.mrb[54].mxu1 %v4215_v50 }
 0xc33   :  { %v6611_v27 = vpop.f32.mrb[40].mxu1 }
 0xc34   :  { %v6612_v37 = vpop.f32.mrb[41].mxu1 }
 0xc35   :  { %v6613_v42 = vadd.f32 %v6612_v37, %v6611_v27 }
 0xc37   :  { %v11205_v16 = vadd.f32 %v6613_v42, %v11199_v13  ;;  %v6614_v12 = vpop.f32.mrb[42].mxu1 }
 0xc38   :  { %v6615_v39 = vpop.f32.mrb[43].mxu1 }
 0xc39   :  { %v11208_v28 = vadd.f32 %v6565_v44, %v11205_v16  ;;  %v6616_v55 = vadd.f32 %v6615_v39, %v6614_v12 }
 0xc3b   :  { %v4487_v60 = vcombine.high %v11208_v28, %v11208_v28  ;;  %v11213_v56 = vadd.f32 %v6616_v55, %v11199_v13  ;;  %v6617_v48 = vpop.f32.mrb[44].mxu1  ;;  %v4494_v19 = vrot.slane %v11208_v28, %v11202_v53 }
 0xc3c   :  { %v6618_v59 = vpop.f32.mrb[45].mxu1 }
 0xc3d   :  { %v6619_v23 = vadd.f32 %v6618_v59, %v6617_v48  ;;  %v4510_v15 = vrot.slane %v4494_v19, %v11202_v53  ;;  %v4502_v51 = vcombine.high %v4494_v19, %v4494_v19  ;;  %v4501_v33 = vrot.slane %v4487_v60, %v11202_v53 }
 0xc3f   :  { %v11222_v50 = vadd.f32 %v6619_v23, %v11199_v13  ;;  %v6620_v4 = vpop.f32.mrb[46].mxu1  ;;  %v4539_v34 = vrot.slane %v4510_v15, %v13100_v3  ;;  %v4532_v47 = vcombine.high %v4510_v15, %v4510_v15  ;;  %v4524_v61 = vrot.slane %v4502_v51, %v11202_v53 }
 0xc40   :  { %v6621_v10 = vpop.f32.mrb[47].mxu1  ;;  %v4517_v32 = vrot.slane %v4501_v33, %v11202_v53  ;;  %v4503_v7 = vcombine.high %v4501_v33, %v4501_v33  ;;  %v9429_v15 = vmov 0  }
 0xc41   :  { %v6622_v8 = vadd.f32 %v6621_v10, %v6620_v4  ;;  %v4576_v6 = vadd.f32 %v4539_v34, %v11219_v5  ;;  %v4547_v63 = vrot.slane %v4532_v47, %v13100_v3  ;;  %v4543_v57 = vrot.slane %v4524_v61, %v13100_v3  ;;  %8928 = vset.pattern.permute.xlu0 %v9429_v15 }
 0xc42   :  { %v4534_v21 = vcombine.high %v4524_v61, %v4524_v61  ;;  %v4555_v25 = vrot.slane %v4517_v32, %v13100_v3  ;;  %v4531_v20 = vrot.slane %v4503_v7, %v11202_v53  ;;  %v4533_v17 = vcombine.high %v4517_v32, %v4517_v32  ;;  %8929 = vset.pattern.permute.xlu1 %v9429_v15 }
 0xc43   :  { %v11233_v24 = vadd.f32 %v6622_v8, %v11199_v13  ;;  %v6623_v9 = vpop.f32.mrb[48].mxu1  ;;  %v4585_v58 = vsel %vm4584_vm1, %v4576_v6, -inf  ;;  %v4578_v36 = vadd.f32 %v4547_v63, %v11219_v5  ;;  %v4577_v52 = vadd.f32 %v4543_v57, %v11219_v5 }
 0xc44   :  { %v6624_v1 = vpop.f32.mrb[49].mxu1  ;;  %4586 = vmax.xlane.f32.xlu0 %v4585_v58  ;;  %v4551_v26 = vrot.slane %v4534_v21, %v13100_v3  ;;  %v4559_v18 = vrot.slane %v4531_v20, %v13100_v3  ;;  %v4535_v49 = vcombine.high %v4531_v20, %v4531_v20  ;;  %v4580_v43 = vadd.f32 %v4555_v25, %v11219_v5 }
 0xc45   :  { %v6625_v45 = vadd.f32 %v6624_v1, %v6623_v9  ;;  %v4591_v35 = vsel %vm4584_vm1, %v4578_v36, -inf  ;;  %v4588_v30 = vsel %vm4584_vm1, %v4577_v52, -inf  ;;  %v4563_v46 = vrot.slane %v4533_v17, %v13100_v3 }
 0xc46   :  { %4592 = vmax.xlane.f32.xlu1 %v4591_v35  ;;  %v4579_v62 = vadd.f32 %v4551_v26, %v11219_v5  ;;  %v4581_v29 = vadd.f32 %v4559_v18, %v11219_v5  ;;  %v4567_v41 = vrot.slane %v4535_v49, %v13100_v3  ;;  %v4597_v54 = vsel %vm4584_vm1, %v4580_v43, -inf }
 0xc47   :  { %v11243_v11 = vadd.f32 %v6625_v45, %v11199_v13  ;;  %v6626_v31 = vpop.f32.mrb[50].mxu1  ;;  %v4582_v27 = vadd.f32 %v4563_v46, %v11219_v5 }
 0xc48   :  { %v6627_v40 = vpop.f32.mrb[51].mxu1  ;;  %4589 = vmax.xlane.f32.xlu0 %v4588_v30  ;;  %v4594_v2 = vsel %vm4584_vm1, %v4579_v62, -inf  ;;  %v4600_v44 = vsel %vm4584_vm1, %v4581_v29, -inf  ;;  %v4583_v12 = vadd.f32 %v4567_v41, %v11219_v5 }
 0xc49   :  { %v6628_v22 = vadd.f32 %v6627_v40, %v6626_v31  ;;  %v4603_v60 = vsel %vm4584_vm1, %v4582_v27, -inf }
 0xc4a   :  { %4595 = vmax.xlane.f32.xlu1 %v4594_v2  ;;  %v4606_v59 = vsel %vm4584_vm1, %v4583_v12, -inf }
 0xc4b   :  { %v11252_v38 = vadd.f32 %v6628_v22, %v11199_v13  ;;  %v6629_v14 = vpop.f32.mrb[52].mxu1 }
 0xc4c   :  { %v6630_v37 = vpop.f32.mrb[53].mxu1  ;;  %4598 = vmax.xlane.f32.xlu0 %v4597_v54 }
 0xc4d   :  { %v6631_v42 = vadd.f32 %v6630_v37, %v6629_v14 }
 0xc4e   :  { %4601 = vmax.xlane.f32.xlu1 %v4600_v44 }
 0xc4f   :  { %v11259_v39 = vadd.f32 %v6631_v42, %v11199_v13  ;;  %v6632_v55 = vpop.f32.mrb[54].mxu1 }
 0xc50   :  { %v6633_v48 = vpop.f32.mrb[55].mxu1  ;;  %4604 = vmax.xlane.f32.xlu0 %v4603_v60 }
 0xc51   :  { %v6634_v19 = vadd.f32 %v6633_v48, %v6632_v55  ;;  %v13101_v55 = vlaneseq }
 0xc52   :  { %4607 = vmax.xlane.f32.xlu1 %v4606_v59 }
 0xc53   :  { %v11264_v23 = vadd.f32 %v6634_v19, %v11199_v13  ;;  %v1279_v60 = vand.u32 127, %v13101_v55 }
 0xc55   :  { %vm4478_vm3 = vcmp.eq.s32.totalorder %v13099_v0, %v1279_v60 }
 0xcd1   :  { %v11268_v51 = vpop.xlane.xlu0 %4586 }
 0xcd2   :  { %v4609_v33 = vsub.f32 %v4576_v6, %v11268_v51 }
 0xcd3   :  { %v11271_v4 = vpop.xlane.xlu1 %4592 }
 0xcd4   :  { %v4617_v34 = vmul.f32 1.442695, %v4609_v33  ;;  %v4611_v47 = vsub.f32 %v4578_v36, %v11271_v4 }
 0xcd5   :  { %v11274_v61 = vpop.xlane.xlu0 %4589 }
 0xcd6   :  { %9090 = vpow2.f32 %v4617_v34  ;;  %v4621_v10 = vmul.f32 1.442695, %v4611_v47  ;;  %v4610_v13 = vsub.f32 %v4577_v52, %v11274_v61 }
 0xcd7   :  { %v11277_v32 = vpop.xlane.xlu1 %4595 }
 0xcd8   :  { %9092 = vpow2.f32 %v4621_v10  ;;  %v4619_v7 = vmul.f32 1.442695, %v4610_v13  ;;  %v4612_v8 = vsub.f32 %v4579_v62, %v11277_v32  ;;  %v13102_v10 = vmov 0.0  }
 0xcd9   :  { %v11280_v63 = vpop.xlane.xlu0 %4598  ;;  %v11304_v13 = vsel %vm4478_vm3, 1.0, %v13102_v10 }
 0xcda   :  { %9094 = vpow2.f32 %v4619_v7  ;;  %v4623_v6 = vmul.f32 1.442695, %v4612_v8  ;;  %v4613_v57 = vsub.f32 %v4580_v43, %v11280_v63 }
 0xcdb   :  { %v11283_v21 = vpop.xlane.xlu1 %4601 }
 0xcdc   :  { %9096 = vpow2.f32 %v4623_v6  ;;  %v4625_v25 = vmul.f32 1.442695, %v4613_v57  ;;  %v4614_v20 = vsub.f32 %v4581_v29, %v11283_v21 }
 0xcdd   :  { %v11286_v17 = vpop.xlane.xlu0 %4604 }
 0xcde   :  { %9098 = vpow2.f32 %v4625_v25  ;;  %v4627_v9 = vmul.f32 1.442695, %v4614_v20  ;;  %v4615_v58 = vsub.f32 %v4582_v27, %v11286_v17  ;;  %v73_v27 = vld [vmem:[#allocation4 + $0x28] sm:$0xff] }
 0xcdf   :  { %v11289_v36 = vpop.xlane.xlu1 %4607  ;;  %vm4745_vm2 = vcmp.gt.f32.partialorder %v73_v27, 0.0 }
 0xce0   :  { %v9091_v52 = vpop.eup %9090  ;;  %9100 = vpow2.f32 %v4627_v9  ;;  %v4629_v1 = vmul.f32 1.442695, %v4615_v58  ;;  %v4616_v26 = vsub.f32 %v4583_v12, %v11289_v36  ;;  %v4770_v37 = vsel %vm4745_vm2, 1, %v9429_v15 }
 0xce1   :  { %v4633_v45 = vsel %vm4584_vm1, %v9091_v52, 0.0 }
 0xce2   :  { %v9093_v35 = vpop.eup %9092  ;;  %9102 = vpow2.f32 %v4629_v1  ;;  %v4631_v18 = vmul.f32 1.442695, %v4616_v26  ;;  %4634 = vadd.xlane.f32.xlu0 %v4633_v45 }
 0xce3   :  { %v4639_v62 = vsel %vm4584_vm1, %v9093_v35, 0.0 }
 0xce4   :  { %v9095_v49 = vpop.eup %9094  ;;  %9104 = vpow2.f32 %v4631_v18 }
 0xce5   :  { %v4636_v31 = vsel %vm4584_vm1, %v9095_v49, 0.0 }
 0xce6   :  { %v9097_v30 = vpop.eup %9096  ;;  %4640 = vadd.xlane.f32.xlu0 %v4639_v62  ;;  %4637 = vadd.xlane.f32.xlu1 %v4636_v31 }
 0xce7   :  { %v4642_v40 = vsel %vm4584_vm1, %v9097_v30, 0.0 }
 0xce8   :  { %v9099_v43 = vpop.eup %9098 }
 0xce9   :  { %v4645_v46 = vsel %vm4584_vm1, %v9099_v43, 0.0 }
 0xcea   :  { %v9101_v22 = vpop.eup %9100  ;;  %4646 = vadd.xlane.f32.xlu0 %v4645_v46  ;;  %4643 = vadd.xlane.f32.xlu1 %v4642_v40 }
 0xceb   :  { %v4648_v41 = vsel %vm4584_vm1, %v9101_v22, 0.0 }
 0xcec   :  { %v9103_v2 = vpop.eup %9102 }
 0xced   :  { %v4651_v29 = vsel %vm4584_vm1, %v9103_v2, 0.0 }
 0xcee   :  { %v9105_v14 = vpop.eup %9104  ;;  %4652 = vadd.xlane.f32.xlu0 %v4651_v29  ;;  %4649 = vadd.xlane.f32.xlu1 %v4648_v41 }
 0xcef   :  { %v4654_v54 = vsel %vm4584_vm1, %v9105_v14, 0.0 }
 0xcf2   :  { %4655 = vadd.xlane.f32.xlu1 %v4654_v54 }
 0xd04   :  { %4772 = vperm.xlu0 %8928, %v4770_v37  }
 0xd6f   :  { %v4635_v42 = vpop.xlane.xlu0 %4634 }
 0xd70   :  { %9106 = vlog2.f32 %v4635_v42 }
 0xd73   :  { %v4641_v44 = vpop.xlane.xlu0 %4640  ;;  %v4638_v12 = vpop.xlane.xlu1 %4637 }
 0xd74   :  { %9108 = vlog2.f32 %v4641_v44 }
 0xd75   :  { %9110 = vlog2.f32 %v4638_v12 }
 0xd77   :  { %v4647_v48 = vpop.xlane.xlu0 %4646  ;;  %v4644_v19 = vpop.xlane.xlu1 %4643 }
 0xd78   :  { %9112 = vlog2.f32 %v4647_v48 }
 0xd79   :  { %9114 = vlog2.f32 %v4644_v19 }
 0xd7a   :  { %v9107_v59 = vpop.eup %9106 }
 0xd7b   :  { %v4658_v33 = vmul.f32 0.6931472, %v9107_v59  ;;  %v4653_v34 = vpop.xlane.xlu0 %4652  ;;  %v4650_v47 = vpop.xlane.xlu1 %4649 }
 0xd7c   :  { %9116 = vlog2.f32 %v4653_v34 }
 0xd7d   :  { %v4673_v7 = vadd.f32 %v4658_v33, %v11268_v51  ;;  %9118 = vlog2.f32 %v4650_v47 }
 0xd7e   :  { %v9109_v8 = vpop.eup %9108 }
 0xd7f   :  { %v9111_v6 = vpop.eup %9110  ;;  %v4681_v57 = vmul.f32 %v11304_v13, %v4673_v7  ;;  %v4662_v25 = vmul.f32 0.6931472, %v9109_v8  ;;  %v4656_v20 = vpop.xlane.xlu1 %4655 }
 0xd80   :  { %v4660_v9 = vmul.f32 0.6931472, %v9111_v6  ;;  %9120 = vlog2.f32 %v4656_v20 }
 0xd81   :  { %v4689_v0 = vsel %vm4584_vm1, %v4681_v57, 0.0  ;;  %v4675_v58 = vadd.f32 %v4662_v25, %v11271_v4 }
 0xd82   :  { %v9113_v52 = vpop.eup %9112  ;;  %v4690_v1 = vrot.slane %v4689_v0, 4  ;;  %v4674_v26 = vadd.f32 %v4660_v9, %v11274_v61 }
 0xd83   :  { %v9115_v45 = vpop.eup %9114  ;;  %v4683_v51 = vmul.f32 %v11304_v13, %v4675_v58  ;;  %v4666_v35 = vmul.f32 0.6931472, %v9113_v52 }
 0xd84   :  { %v4691_v18 = vadd.f32 %v4690_v1, %v4689_v0  ;;  %v4682_v49 = vmul.f32 %v11304_v13, %v4674_v26  ;;  %v4664_v62 = vmul.f32 0.6931472, %v9115_v45 }
 0xd85   :  { %v4703_v31 = vsel %vm4584_vm1, %v4683_v51, 0.0  ;;  %v4677_v30 = vadd.f32 %v4666_v35, %v11280_v63 }
 0xd86   :  { %v9117_v43 = vpop.eup %9116  ;;  %v4692_v46 = vrot.slane %v4691_v18, 2  ;;  %v4704_v40 = vrot.slane %v4703_v31, 4  ;;  %v4696_v4 = vsel %vm4584_vm1, %v4682_v49, 0.0  ;;  %v4676_v22 = vadd.f32 %v4664_v62, %v11277_v32 }
 0xd87   :  { %v9119_v61 = vpop.eup %9118  ;;  %v4697_v2 = vrot.slane %v4696_v4, 4  ;;  %v4685_v29 = vmul.f32 %v11304_v13, %v4677_v30  ;;  %v4670_v41 = vmul.f32 0.6931472, %v9117_v43 }
 0xd88   :  { %v4705_v14 = vadd.f32 %v4704_v40, %v4703_v31  ;;  %v4684_v54 = vmul.f32 %v11304_v13, %v4676_v22  ;;  %v4668_v27 = vmul.f32 0.6931472, %v9119_v61  ;;  %v4693_v12 = vadd.f32 %v4692_v46, %v4691_v18 }
 0xd89   :  { %v4698_v37 = vadd.f32 %v4697_v2, %v4696_v4  ;;  %v4717_v42 = vsel %vm4584_vm1, %v4685_v29, 0.0  ;;  %v4679_v63 = vadd.f32 %v4670_v41, %v11286_v17 }
 0xd8a   :  { %v9121_v44 = vpop.eup %9120  ;;  %v4706_v55 = vrot.slane %v4705_v14, 2  ;;  %v4718_v60 = vrot.slane %v4717_v42, 4  ;;  %v4710_v32 = vsel %vm4584_vm1, %v4684_v54, 0.0  ;;  %v4678_v33 = vadd.f32 %v4668_v27, %v11283_v21 }
 0xd8b   :  { %v4699_v48 = vrot.slane %v4698_v37, 2  ;;  %v4711_v19 = vrot.slane %v4710_v32, 4  ;;  %v4687_v59 = vmul.f32 %v11304_v13, %v4679_v63  ;;  %v4672_v10 = vmul.f32 0.6931472, %v9121_v44 }
 0xd8c   :  { %v4707_v34 = vadd.f32 %v4706_v55, %v4705_v14  ;;  %v4719_v47 = vadd.f32 %v4718_v60, %v4717_v42  ;;  %v4686_v17 = vmul.f32 %v11304_v13, %v4678_v33  ;;  %v4694_v57 = vrot.slane %v4693_v12, 1 }
 0xd8d   :  { %v4700_v7 = vadd.f32 %v4699_v48, %v4698_v37  ;;  %v4712_v8 = vadd.f32 %v4711_v19, %v4710_v32  ;;  %v4731_v6 = vsel %vm4584_vm1, %v4687_v59, 0.0  ;;  %v4680_v9 = vadd.f32 %v4672_v10, %v11289_v36  ;;  %v4773_v19 = vpop.permute.xlu0 %4772 }
 0xd8e   :  { %v4720_v25 = vrot.slane %v4719_v47, 2  ;;  %v4732_v20 = vrot.slane %v4731_v6, 4  ;;  %v4708_v0 = vrot.slane %v4707_v34, 1  ;;  %v4724_v1 = vsel %vm4584_vm1, %v4686_v17, 0.0 }
 0xd8f   :  { %v4701_v58 = vrot.slane %v4700_v7, 1  ;;  %v4713_v52 = vrot.slane %v4712_v8, 2  ;;  %v4725_v45 = vrot.slane %v4724_v1, 4  ;;  %v4688_v18 = vmul.f32 %v11304_v13, %v4680_v9 }
 0xd90   :  { %v4721_v21 = vadd.f32 %v4720_v25, %v4719_v47  ;;  %v4733_v26 = vadd.f32 %v4732_v20, %v4731_v6  ;;  %v4695_v49 = vadd.f32 %v4694_v57, %v4693_v12  ;;  %v4709_v30 = vadd.f32 %v4708_v0, %v4707_v34 }
 0xd91   :  { %v4702_v51 = vadd.f32 %v4701_v58, %v4700_v7  ;;  %v4714_v35 = vadd.f32 %v4713_v52, %v4712_v8  ;;  %v4726_v31 = vadd.f32 %v4725_v45, %v4724_v1  ;;  %v4738_v46 = vsel %vm4584_vm1, %v4688_v18, 0.0 }
 0xd92   :  { %v4734_v62 = vrot.slane %v4733_v26, 2  ;;  %v4722_v43 = vrot.slane %v4721_v21, 1  ;;  %v4739_v61 = vrot.slane %v4738_v46, 4  ;;  %vm4774_vm11 = vcmp.eq.s32.totalorder %v4773_v19, 1 }
 0xd93   :  { %v4715_v36 = vrot.slane %v4714_v35, 1  ;;  %v4755_v40 = vsel %vm4754_vm4, %v4702_v51, %v4695_v49  ;;  %v4727_v22 = vrot.slane %v4726_v31, 2 }
 0xd94   :  { %v4735_v4 = vadd.f32 %v4734_v62, %v4733_v26  ;;  %v4740_v41 = vadd.f32 %v4739_v61, %v4738_v46  ;;  %v4723_v14 = vadd.f32 %v4722_v43, %v4721_v21  ;;  %v4757_v27 = vsel %vm4756_vm5, %v4709_v30, %v4755_v40 }
 0xd95   :  { %v4716_v2 = vadd.f32 %v4715_v36, %v4714_v35  ;;  %v4728_v29 = vadd.f32 %v4727_v22, %v4726_v31 }
 0xd96   :  { %v4736_v54 = vrot.slane %v4735_v4, 1  ;;  %v4741_v42 = vrot.slane %v4740_v41, 2 }
 0xd97   :  { %v4729_v37 = vrot.slane %v4728_v29, 1  ;;  %v4759_v63 = vsel %vm4758_vm6, %v4716_v2, %v4757_v27 }
 0xd98   :  { %v4742_v12 = vadd.f32 %v4741_v42, %v4740_v41  ;;  %v4737_v55 = vadd.f32 %v4736_v54, %v4735_v4  ;;  %v4761_v60 = vsel %vm4760_vm7, %v4723_v14, %v4759_v63 }
 0xd99   :  { %v4730_v44 = vadd.f32 %v4729_v37, %v4728_v29 }
 0xd9a   :  { %v4743_v32 = vrot.slane %v4742_v12, 1 }
 0xd9b   :  { %v4763_v48 = vsel %vm4762_vm8, %v4730_v44, %v4761_v60 }
 0xd9c   :  { %v4744_v59 = vadd.f32 %v4743_v32, %v4742_v12  ;;  %v4765_v33 = vsel %vm4764_vm9, %v4737_v55, %v4763_v48 }
 0xd9e   :  { %v4767_v34 = vsel %vm4766_vm10, %v4744_v59, %v4765_v33 }
 0xd9f   :  { %v4769_v47 = vadd.f32 %v4767_v34, %v11213_v56 }
 0xda1   :  { %v11339_v10 = vsel %vm4774_vm11, %v4769_v47, %v11208_v28 }
 0xda2   :  { %v4777_v7 = vcombine.high %v11339_v10, %v11339_v10  ;;  %v4784_v8 = vrot.slane %v11339_v10, %v11202_v53 }
 0xda4   :  { %v4792_v6 = vcombine.high %v4784_v8, %v4784_v8  ;;  %v4800_v17 = vrot.slane %v4784_v8, %v11202_v53  ;;  %v4791_v57 = vrot.slane %v4777_v7, %v11202_v53 }
 0xda6   :  { %v4829_v25 = vrot.slane %v4800_v17, %v13100_v3  ;;  %v4814_v20 = vrot.slane %v4792_v6, %v11202_v53  ;;  %v4822_v9 = vcombine.high %v4800_v17, %v4800_v17  ;;  %v4807_v21 = vrot.slane %v4791_v57, %v11202_v53 }
 0xda7   :  { %v4793_v26 = vcombine.high %v4791_v57, %v4791_v57 }
 0xda8   :  { %v4866_v0 = vadd.f32 %v4829_v25, %v11219_v5  ;;  %v4833_v28 = vrot.slane %v4814_v20, %v13100_v3  ;;  %v4837_v1 = vrot.slane %v4822_v9, %v13100_v3  ;;  %v4845_v35 = vrot.slane %v4807_v21, %v13100_v3 }
 0xda9   :  { %v4824_v18 = vcombine.high %v4814_v20, %v4814_v20  ;;  %v4821_v30 = vrot.slane %v4793_v26, %v11202_v53  ;;  %v4823_v40 = vcombine.high %v4807_v21, %v4807_v21 }
 0xdaa   :  { %v4874_v58 = vsel %vm4584_vm1, %v4866_v0, -inf  ;;  %v4867_v52 = vadd.f32 %v4833_v28, %v11219_v5  ;;  %v4868_v51 = vadd.f32 %v4837_v1, %v11219_v5  ;;  %v4870_v62 = vadd.f32 %v4845_v35, %v11219_v5 }
 0xdab   :  { %4875 = vmax.xlane.f32.xlu1 %v4874_v58  ;;  %v4841_v31 = vrot.slane %v4824_v18, %v13100_v3  ;;  %v4849_v46 = vrot.slane %v4821_v30, %v13100_v3  ;;  %v4853_v61 = vrot.slane %v4823_v40, %v13100_v3  ;;  %v4825_v2 = vcombine.high %v4821_v30, %v4821_v30 }
 0xdac   :  { %v4877_v45 = vsel %vm4584_vm1, %v4867_v52, -inf  ;;  %v4880_v49 = vsel %vm4584_vm1, %v4868_v51, -inf  ;;  %v4886_v43 = vsel %vm4584_vm1, %v4870_v62, -inf }
 0xdad   :  { %v4869_v36 = vadd.f32 %v4841_v31, %v11219_v5  ;;  %v4871_v22 = vadd.f32 %v4849_v46, %v11219_v5  ;;  %v4872_v41 = vadd.f32 %v4853_v61, %v11219_v5  ;;  %v4857_v14 = vrot.slane %v4825_v2, %v13100_v3 }
 0xdaf   :  { %4878 = vmax.xlane.f32.xlu1 %v4877_v45  ;;  %v4883_v4 = vsel %vm4584_vm1, %v4869_v36, -inf  ;;  %v4889_v29 = vsel %vm4584_vm1, %v4871_v22, -inf  ;;  %v4892_v54 = vsel %vm4584_vm1, %v4872_v41, -inf  ;;  %v4873_v27 = vadd.f32 %v4857_v14, %v11219_v5 }
 0xdb1   :  { %v4895_v37 = vsel %vm4584_vm1, %v4873_v27, -inf }
 0xdb3   :  { %4881 = vmax.xlane.f32.xlu1 %v4880_v49 }
 0xdb7   :  { %4887 = vmax.xlane.f32.xlu1 %v4886_v43 }
 0xdbb   :  { %4884 = vmax.xlane.f32.xlu1 %v4883_v4  ;;  %v74_v4 = vld [vmem:[#allocation4 + $0x40] sm:$0xff] }
 0xdbc   :  { %vm5034_vm12 = vcmp.gt.f32.partialorder %v74_v4, 0.0 }
 0xdbf   :  { %4890 = vmax.xlane.f32.xlu1 %v4889_v29 }
 0xdc3   :  { %4893 = vmax.xlane.f32.xlu1 %v4892_v54 }
 0xdc7   :  { %4896 = vmax.xlane.f32.xlu1 %v4895_v37 }
 0xe38   :  { %v11374_v42 = vpop.xlane.xlu1 %4875 }
 0xe39   :  { %v4898_v63 = vsub.f32 %v4866_v0, %v11374_v42 }
 0xe3b   :  { %v4906_v44 = vmul.f32 1.442695, %v4898_v63 }
 0xe3c   :  { %v11377_v12 = vpop.xlane.xlu1 %4878 }
 0xe3d   :  { %9122 = vpow2.f32 %v4906_v44  ;;  %v4899_v55 = vsub.f32 %v4867_v52, %v11377_v12 }
 0xe3f   :  { %v4908_v60 = vmul.f32 1.442695, %v4899_v55 }
 0xe40   :  { %v11380_v32 = vpop.xlane.xlu1 %4881 }
 0xe41   :  { %9124 = vpow2.f32 %v4908_v60  ;;  %v4900_v48 = vsub.f32 %v4868_v51, %v11380_v32 }
 0xe43   :  { %v4910_v19 = vmul.f32 1.442695, %v4900_v48 }
 0xe44   :  { %v11383_v59 = vpop.xlane.xlu1 %4887 }
 0xe45   :  { %9126 = vpow2.f32 %v4910_v19  ;;  %v4902_v33 = vsub.f32 %v4870_v62, %v11383_v59 }
 0xe47   :  { %v9123_v34 = vpop.eup %9122  ;;  %v4914_v47 = vmul.f32 1.442695, %v4902_v33 }
 0xe48   :  { %v11386_v7 = vpop.xlane.xlu1 %4884  ;;  %v4922_v8 = vsel %vm4584_vm1, %v9123_v34, 0.0 }
 0xe49   :  { %9128 = vpow2.f32 %v4914_v47  ;;  %v4901_v6 = vsub.f32 %v4869_v36, %v11386_v7  ;;  %4923 = vadd.xlane.f32.xlu1 %v4922_v8 }
 0xe4b   :  { %v9125_v17 = vpop.eup %9124  ;;  %v4912_v57 = vmul.f32 1.442695, %v4901_v6 }
 0xe4c   :  { %v11390_v25 = vpop.xlane.xlu1 %4890  ;;  %v4925_v20 = vsel %vm4584_vm1, %v9125_v17, 0.0 }
 0xe4d   :  { %9130 = vpow2.f32 %v4912_v57  ;;  %v4903_v9 = vsub.f32 %v4871_v22, %v11390_v25  ;;  %4926 = vadd.xlane.f32.xlu1 %v4925_v20  ;;  %v5052_v22 = vsel %vm5034_vm12, 1, %v9429_v15 }
 0xe4f   :  { %v9127_v0 = vpop.eup %9126  ;;  %v4916_v28 = vmul.f32 1.442695, %v4903_v9 }
 0xe50   :  { %v11394_v58 = vpop.xlane.xlu1 %4893  ;;  %v4928_v52 = vsel %vm4584_vm1, %v9127_v0, 0.0 }
 0xe51   :  { %9132 = vpow2.f32 %v4916_v28  ;;  %v4904_v1 = vsub.f32 %v4872_v41, %v11394_v58  ;;  %4929 = vadd.xlane.f32.xlu1 %v4928_v52 }
 0xe53   :  { %v9129_v21 = vpop.eup %9128  ;;  %v4918_v26 = vmul.f32 1.442695, %v4904_v1 }
 0xe54   :  { %v11398_v45 = vpop.xlane.xlu1 %4896  ;;  %v4934_v51 = vsel %vm4584_vm1, %v9129_v21, 0.0 }
 0xe55   :  { %9134 = vpow2.f32 %v4918_v26  ;;  %v4905_v35 = vsub.f32 %v4873_v27, %v11398_v45  ;;  %4935 = vadd.xlane.f32.xlu1 %v4934_v51 }
 0xe57   :  { %v9131_v18 = vpop.eup %9130  ;;  %v4920_v49 = vmul.f32 1.442695, %v4905_v35 }
 0xe58   :  { %v4931_v62 = vsel %vm4584_vm1, %v9131_v18, 0.0 }
 0xe59   :  { %9136 = vpow2.f32 %v4920_v49  ;;  %4932 = vadd.xlane.f32.xlu0 %v4931_v62 }
 0xe5b   :  { %v9133_v31 = vpop.eup %9132 }
 0xe5c   :  { %v4937_v30 = vsel %vm4584_vm1, %v9133_v31, 0.0 }
 0xe5d   :  { %4938 = vadd.xlane.f32.xlu1 %v4937_v30 }
 0xe5f   :  { %v9135_v43 = vpop.eup %9134 }
 0xe60   :  { %v4940_v36 = vsel %vm4584_vm1, %v9135_v43, 0.0 }
 0xe61   :  { %4941 = vadd.xlane.f32.xlu1 %v4940_v36 }
 0xe63   :  { %v9137_v46 = vpop.eup %9136 }
 0xe64   :  { %v4943_v40 = vsel %vm4584_vm1, %v9137_v46, 0.0 }
 0xe65   :  { %4944 = vadd.xlane.f32.xlu1 %v4943_v40 }
 0xe76   :  { %5054 = vperm.xlu1 %8929, %v5052_v22  }
 0xed6   :  { %v4924_v61 = vpop.xlane.xlu1 %4923 }
 0xed7   :  { %9138 = vlog2.f32 %v4924_v61 }
 0xeda   :  { %v4927_v2 = vpop.xlane.xlu1 %4926 }
 0xedb   :  { %9140 = vlog2.f32 %v4927_v2 }
 0xede   :  { %v4930_v29 = vpop.xlane.xlu1 %4929 }
 0xedf   :  { %9142 = vlog2.f32 %v4930_v29 }
 0xee1   :  { %v9139_v41 = vpop.eup %9138 }
 0xee2   :  { %v4936_v14 = vpop.xlane.xlu1 %4935  ;;  %v4947_v54 = vmul.f32 0.6931472, %v9139_v41 }
 0xee3   :  { %9144 = vlog2.f32 %v4936_v14 }
 0xee4   :  { %v4962_v44 = vadd.f32 %v4947_v54, %v11374_v42 }
 0xee5   :  { %v9141_v27 = vpop.eup %9140 }
 0xee6   :  { %v4949_v37 = vmul.f32 0.6931472, %v9141_v27  ;;  %v4933_v63 = vpop.xlane.xlu0 %4932  ;;  %v4970_v34 = vmul.f32 %v11304_v13, %v4962_v44 }
 0xee7   :  { %9146 = vlog2.f32 %v4933_v63 }
 0xee8   :  { %v4963_v55 = vadd.f32 %v4949_v37, %v11377_v12  ;;  %v4978_v20 = vsel %vm4584_vm1, %v4970_v34, 0.0 }
 0xee9   :  { %v9143_v60 = vpop.eup %9142  ;;  %v4979_v52 = vrot.slane %v4978_v20, 4 }
 0xeea   :  { %v4971_v48 = vmul.f32 %v11304_v13, %v4963_v55  ;;  %v4951_v19 = vmul.f32 0.6931472, %v9143_v60  ;;  %v4939_v33 = vpop.xlane.xlu1 %4938 }
 0xeeb   :  { %9148 = vlog2.f32 %v4939_v33  ;;  %v4980_v62 = vadd.f32 %v4979_v52, %v4978_v20 }
 0xeec   :  { %v4964_v47 = vadd.f32 %v4951_v19, %v11380_v32  ;;  %v4985_v6 = vsel %vm4584_vm1, %v4971_v48, 0.0 }
 0xeed   :  { %v9145_v8 = vpop.eup %9144  ;;  %v4986_v28 = vrot.slane %v4985_v6, 4  ;;  %v4981_v61 = vrot.slane %v4980_v62, 2 }
 0xeee   :  { %v4972_v17 = vmul.f32 %v11304_v13, %v4964_v47  ;;  %v4955_v57 = vmul.f32 0.6931472, %v9145_v8  ;;  %v4942_v42 = vpop.xlane.xlu1 %4941 }
 0xeef   :  { %9150 = vlog2.f32 %v4942_v42  ;;  %v4987_v18 = vadd.f32 %v4986_v28, %v4985_v6  ;;  %v4982_v60 = vadd.f32 %v4981_v61, %v4980_v62 }
 0xef0   :  { %v4992_v12 = vsel %vm4584_vm1, %v4972_v17, 0.0  ;;  %v4966_v9 = vadd.f32 %v4955_v57, %v11383_v59 }
 0xef1   :  { %v9147_v0 = vpop.eup %9146  ;;  %v4993_v1 = vrot.slane %v4992_v12, 4  ;;  %v4988_v4 = vrot.slane %v4987_v18, 2 }
 0xef2   :  { %v4974_v32 = vmul.f32 %v11304_v13, %v4966_v9  ;;  %v4953_v21 = vmul.f32 0.6931472, %v9147_v0  ;;  %v4945_v26 = vpop.xlane.xlu1 %4944 }
 0xef3   :  { %9152 = vlog2.f32 %v4945_v26  ;;  %v4994_v31 = vadd.f32 %v4993_v1, %v4992_v12  ;;  %v4989_v63 = vadd.f32 %v4988_v4, %v4987_v18 }
 0xef4   :  { %v4965_v51 = vadd.f32 %v4953_v21, %v11386_v7  ;;  %v5006_v49 = vsel %vm4584_vm1, %v4974_v32, 0.0 }
 0xef5   :  { %v9149_v35 = vpop.eup %9148  ;;  %v5007_v43 = vrot.slane %v5006_v49, 4  ;;  %v4995_v2 = vrot.slane %v4994_v31, 2  ;;  %v4990_v17 = vrot.slane %v4989_v63, 1 }
 0xef6   :  { %v4973_v30 = vmul.f32 %v11304_v13, %v4965_v51  ;;  %v4957_v59 = vmul.f32 0.6931472, %v9149_v35 }
 0xef7   :  { %v5008_v14 = vadd.f32 %v5007_v43, %v5006_v49  ;;  %v4991_v32 = vadd.f32 %v4990_v17, %v4989_v63 }
 0xef8   :  { %v4999_v36 = vsel %vm4584_vm1, %v4973_v30, 0.0  ;;  %v4967_v46 = vadd.f32 %v4957_v59, %v11390_v25  ;;  %v4996_v25 = vadd.f32 %v4995_v2, %v4994_v31 }
 0xef9   :  { %v9151_v40 = vpop.eup %9150  ;;  %v5000_v22 = vrot.slane %v4999_v36, 4  ;;  %v5009_v47 = vrot.slane %v5008_v14, 2 }
 0xefa   :  { %v4975_v7 = vmul.f32 %v11304_v13, %v4967_v46  ;;  %v4959_v29 = vmul.f32 0.6931472, %v9151_v40  ;;  %v4997_v20 = vrot.slane %v4996_v25, 1 }
 0xefb   :  { %v5001_v41 = vadd.f32 %v5000_v22, %v4999_v36  ;;  %v5010_v52 = vadd.f32 %v5009_v47, %v5008_v14 }
 0xefc   :  { %v5013_v54 = vsel %vm4584_vm1, %v4975_v7, 0.0  ;;  %v4968_v27 = vadd.f32 %v4959_v29, %v11394_v58  ;;  %v4983_v58 = vrot.slane %v4982_v60, 1  ;;  %v4998_v35 = vadd.f32 %v4997_v20, %v4996_v25  ;;  %v5055_v29 = vpop.permute.xlu1 %5054 }
 0xefd   :  { %v9153_v37 = vpop.eup %9152  ;;  %v5002_v44 = vrot.slane %v5001_v41, 2  ;;  %v5014_v55 = vrot.slane %v5013_v54, 4  ;;  %v5011_v31 = vrot.slane %v5010_v52, 1  ;;  %vm5056_vm13 = vcmp.eq.s32.totalorder %v5055_v29, 1 }
 0xefe   :  { %v4976_v48 = vmul.f32 %v11304_v13, %v4968_v27  ;;  %v4961_v19 = vmul.f32 0.6931472, %v9153_v37  ;;  %v4984_v51 = vadd.f32 %v4983_v58, %v4982_v60 }
 0xeff   :  { %v5003_v33 = vadd.f32 %v5002_v44, %v5001_v41  ;;  %v5015_v34 = vadd.f32 %v5014_v55, %v5013_v54  ;;  %v5012_v22 = vadd.f32 %v5011_v31, %v5010_v52 }
 0xf00   :  { %v5020_v8 = vsel %vm4584_vm1, %v4976_v48, 0.0  ;;  %v4969_v6 = vadd.f32 %v4961_v19, %v11398_v45  ;;  %v5043_v30 = vsel %vm4754_vm4, %v4991_v32, %v4984_v51 }
 0xf01   :  { %v5016_v57 = vrot.slane %v5015_v34, 2  ;;  %v5021_v42 = vrot.slane %v5020_v8, 4  ;;  %v5004_v9 = vrot.slane %v5003_v33, 1  ;;  %v5044_v36 = vsel %vm4756_vm5, %v4998_v35, %v5043_v30 }
 0xf02   :  { %v4977_v12 = vmul.f32 %v11304_v13, %v4969_v6 }
 0xf03   :  { %v5017_v0 = vadd.f32 %v5016_v57, %v5015_v34  ;;  %v5022_v28 = vadd.f32 %v5021_v42, %v5020_v8  ;;  %v5005_v18 = vadd.f32 %v5004_v9, %v5003_v33 }
 0xf04   :  { %v5027_v1 = vsel %vm4584_vm1, %v4977_v12, 0.0 }
 0xf05   :  { %v5023_v21 = vrot.slane %v5022_v28, 2  ;;  %v5028_v26 = vrot.slane %v5027_v1, 4  ;;  %v5018_v45 = vrot.slane %v5017_v0, 1  ;;  %v5045_v4 = vsel %vm4758_vm6, %v5005_v18, %v5044_v36 }
 0xf06   :  { %v5046_v7 = vsel %vm4760_vm7, %v5012_v22, %v5045_v4 }
 0xf07   :  { %v5024_v49 = vadd.f32 %v5023_v21, %v5022_v28  ;;  %v5029_v62 = vadd.f32 %v5028_v26, %v5027_v1  ;;  %v5019_v46 = vadd.f32 %v5018_v45, %v5017_v0 }
 0xf09   :  { %v5025_v59 = vrot.slane %v5024_v49, 1  ;;  %v5030_v43 = vrot.slane %v5029_v62, 2  ;;  %v5047_v14 = vsel %vm4762_vm8, %v5019_v46, %v5046_v7 }
 0xf0b   :  { %v5031_v40 = vadd.f32 %v5030_v43, %v5029_v62  ;;  %v5026_v61 = vadd.f32 %v5025_v59, %v5024_v49  ;;  %v11473_v43 = vld [vmem:[#allocation9 + $0x120] sm:$0x1f] }
 0xf0d   :  { %v5032_v2 = vrot.slane %v5031_v40, 1  ;;  %v5048_v54 = vsel %vm4764_vm9, %v5026_v61, %v5047_v14 }
 0xf0f   :  { %v5033_v41 = vadd.f32 %v5032_v2, %v5031_v40 }
 0xf11   :  { %v5049_v27 = vsel %vm4766_vm10, %v5033_v41, %v5048_v54 }
 0xf12   :  { %v5051_v37 = vadd.f32 %v5049_v27, %v11222_v50 }
 0xf14   :  { %v11440_v63 = vsel %vm5056_vm13, %v5051_v37, %v11339_v10 }
 0xf15   :  { %v5059_v44 = vcombine.high %v11440_v63, %v11440_v63  ;;  %v5066_v55 = vrot.slane %v11440_v63, %v11202_v53 }
 0xf17   :  { %v5073_v60 = vrot.slane %v5059_v44, %v11202_v53  ;;  %v5074_v25 = vcombine.high %v5066_v55, %v5066_v55  ;;  %v5082_v48 = vrot.slane %v5066_v55, %v11202_v53 }
 0xf19   :  { %v5111_v19 = vrot.slane %v5082_v48, %v13100_v3  ;;  %v5096_v33 = vrot.slane %v5074_v25, %v11202_v53  ;;  %v5104_v34 = vcombine.high %v5082_v48, %v5082_v48  ;;  %v5089_v47 = vrot.slane %v5073_v60, %v11202_v53 }
 0xf1a   :  { %v5075_v57 = vcombine.high %v5073_v60, %v5073_v60 }
 0xf1b   :  { %v5148_v10 = vadd.f32 %v5111_v19, %v11219_v5  ;;  %v5115_v8 = vrot.slane %v5096_v33, %v13100_v3  ;;  %v5119_v6 = vrot.slane %v5104_v34, %v13100_v3  ;;  %v5127_v17 = vrot.slane %v5089_v47, %v13100_v3 }
 0xf1c   :  { %v5106_v12 = vcombine.high %v5096_v33, %v5096_v33  ;;  %v5103_v1 = vrot.slane %v5075_v57, %v11202_v53  ;;  %v5105_v51 = vcombine.high %v5089_v47, %v5089_v47 }
 0xf1d   :  { %v5156_v42 = vsel %vm4584_vm1, %v5148_v10, -inf  ;;  %v5149_v58 = vadd.f32 %v5115_v8, %v11219_v5  ;;  %v5150_v20 = vadd.f32 %v5119_v6, %v11219_v5  ;;  %v5152_v28 = vadd.f32 %v5127_v17, %v11219_v5 }
 0xf1e   :  { %5157 = vmax.xlane.f32.xlu0 %v5156_v42  ;;  %v5123_v52 = vrot.slane %v5106_v12, %v13100_v3  ;;  %v5131_v26 = vrot.slane %v5103_v1, %v13100_v3  ;;  %v5135_v45 = vrot.slane %v5105_v51, %v13100_v3  ;;  %v5107_v49 = vcombine.high %v5103_v1, %v5103_v1 }
 0xf1f   :  { %v5159_v9 = vsel %vm4584_vm1, %v5149_v58, -inf  ;;  %v5162_v0 = vsel %vm4584_vm1, %v5150_v20, -inf  ;;  %v5168_v32 = vsel %vm4584_vm1, %v5152_v28, -inf }
 0xf20   :  { %5160 = vmax.xlane.f32.xlu1 %v5159_v9  ;;  %v5151_v21 = vadd.f32 %v5123_v52, %v11219_v5  ;;  %v5153_v18 = vadd.f32 %v5131_v26, %v11219_v5  ;;  %v5154_v31 = vadd.f32 %v5135_v45, %v11219_v5  ;;  %v5139_v30 = vrot.slane %v5107_v49, %v13100_v3 }
 0xf22   :  { %5163 = vmax.xlane.f32.xlu0 %v5162_v0  ;;  %v5165_v35 = vsel %vm4584_vm1, %v5151_v21, -inf  ;;  %v5171_v62 = vsel %vm4584_vm1, %v5153_v18, -inf  ;;  %v5174_v59 = vsel %vm4584_vm1, %v5154_v31, -inf  ;;  %v5155_v36 = vadd.f32 %v11473_v43, %v5139_v30 }
 0xf24   :  { %v5177_v46 = vsel %vm4584_vm1, %v5155_v36, -inf }
 0xf26   :  { %5169 = vmax.xlane.f32.xlu0 %v5168_v32 }
 0xf2a   :  { %5166 = vmax.xlane.f32.xlu0 %v5165_v35  ;;  %v75_v35 = vld [vmem:[#allocation4 + $0x58] sm:$0xff] }
 0xf2b   :  { %vm5316_vm14 = vcmp.gt.f32.partialorder %v75_v35, 0.0 }
 0xf2e   :  { %5172 = vmax.xlane.f32.xlu0 %v5171_v62 }
 0xf32   :  { %5175 = vmax.xlane.f32.xlu0 %v5174_v59 }
 0xf36   :  { %5178 = vmax.xlane.f32.xlu0 %v5177_v46 }
 0xfab   :  { %v11477_v40 = vpop.xlane.xlu0 %5157 }
 0xfac   :  { %v5180_v4 = vsub.f32 %v5148_v10, %v11477_v40 }
 0xfad   :  { %v11480_v22 = vpop.xlane.xlu1 %5160 }
 0xfae   :  { %v5188_v5 = vmul.f32 1.442695, %v5180_v4  ;;  %v5181_v61 = vsub.f32 %v5149_v58, %v11480_v22 }
 0xfaf   :  { %v11483_v2 = vpop.xlane.xlu0 %5163 }
 0xfb0   :  { %9154 = vpow2.f32 %v5188_v5  ;;  %v5190_v7 = vmul.f32 1.442695, %v5181_v61  ;;  %v5182_v29 = vsub.f32 %v5150_v20, %v11483_v2 }
 0xfb2   :  { %9156 = vpow2.f32 %v5190_v7  ;;  %v5192_v41 = vmul.f32 1.442695, %v5182_v29 }
 0xfb3   :  { %v11486_v14 = vpop.xlane.xlu0 %5169 }
 0xfb4   :  { %v5184_v54 = vsub.f32 %v5152_v28, %v11486_v14  ;;  %9158 = vpow2.f32 %v5192_v41 }
 0xfb6   :  { %v5196_v27 = vmul.f32 1.442695, %v5184_v54 }
 0xfb7   :  { %v11489_v37 = vpop.xlane.xlu0 %5166 }
 0xfb8   :  { %v5183_v44 = vsub.f32 %v5151_v21, %v11489_v37  ;;  %9160 = vpow2.f32 %v5196_v27 }
 0xfba   :  { %v9155_v55 = vpop.eup %9154  ;;  %v5194_v60 = vmul.f32 1.442695, %v5183_v44 }
 0xfbb   :  { %v11492_v25 = vpop.xlane.xlu0 %5172  ;;  %v5204_v48 = vsel %vm4584_vm1, %v9155_v55, 0.0 }
 0xfbc   :  { %v9157_v19 = vpop.eup %9156  ;;  %9162 = vpow2.f32 %v5194_v60  ;;  %v5185_v33 = vsub.f32 %v5153_v18, %v11492_v25  ;;  %5205 = vadd.xlane.f32.xlu0 %v5204_v48  ;;  %v5334_v18 = vsel %vm5316_vm14, 1, %v9429_v15 }
 0xfbd   :  { %v5207_v10 = vsel %vm4584_vm1, %v9157_v19, 0.0 }
 0xfbe   :  { %v5198_v34 = vmul.f32 1.442695, %v5185_v33  ;;  %v9159_v8 = vpop.eup %9158 }
 0xfbf   :  { %v11496_v47 = vpop.xlane.xlu0 %5175  ;;  %v5210_v42 = vsel %vm4584_vm1, %v9159_v8, 0.0 }
 0xfc0   :  { %9164 = vpow2.f32 %v5198_v34  ;;  %v5186_v6 = vsub.f32 %v5154_v31, %v11496_v47  ;;  %5208 = vadd.xlane.f32.xlu0 %v5207_v10 }
 0xfc2   :  { %v5200_v17 = vmul.f32 1.442695, %v5186_v6  ;;  %v9161_v58 = vpop.eup %9160 }
 0xfc3   :  { %v11500_v57 = vpop.xlane.xlu0 %5178  ;;  %v5216_v28 = vsel %vm4584_vm1, %v9161_v58, 0.0 }
 0xfc4   :  { %9166 = vpow2.f32 %v5200_v17  ;;  %v5187_v20 = vsub.f32 %v5155_v36, %v11500_v57  ;;  %5211 = vadd.xlane.f32.xlu0 %v5210_v42 }
 0xfc6   :  { %v9163_v12 = vpop.eup %9162  ;;  %v5202_v9 = vmul.f32 1.442695, %v5187_v20 }
 0xfc7   :  { %v5213_v0 = vsel %vm4584_vm1, %v9163_v12, 0.0 }
 0xfc8   :  { %9168 = vpow2.f32 %v5202_v9  ;;  %5214 = vadd.xlane.f32.xlu1 %v5213_v0  ;;  %5217 = vadd.xlane.f32.xlu0 %v5216_v28 }
 0xfca   :  { %v9165_v52 = vpop.eup %9164 }
 0xfcb   :  { %v5219_v1 = vsel %vm4584_vm1, %v9165_v52, 0.0 }
 0xfcc   :  { %5220 = vadd.xlane.f32.xlu1 %v5219_v1 }
 0xfce   :  { %v9167_v32 = vpop.eup %9166 }
 0xfcf   :  { %v5222_v21 = vsel %vm4584_vm1, %v9167_v32, 0.0 }
 0xfd0   :  { %5223 = vadd.xlane.f32.xlu0 %v5222_v21 }
 0xfd2   :  { %v9169_v26 = vpop.eup %9168 }
 0xfd3   :  { %v5225_v51 = vsel %vm4584_vm1, %v9169_v26, 0.0 }
 0xfd4   :  { %5226 = vadd.xlane.f32.xlu1 %v5225_v51 }
 0xfe6   :  { %5336 = vperm.xlu0 %8928, %v5334_v18  }
0x1049   :  { %v5206_v45 = vpop.xlane.xlu0 %5205 }
0x104a   :  { %9170 = vlog2.f32 %v5206_v45 }
0x104d   :  { %v5209_v49 = vpop.xlane.xlu0 %5208 }
0x104e   :  { %9172 = vlog2.f32 %v5209_v49 }
0x1051   :  { %v5212_v62 = vpop.xlane.xlu0 %5211 }
0x1052   :  { %9174 = vlog2.f32 %v5212_v62 }
0x1054   :  { %v9171_v31 = vpop.eup %9170 }
0x1055   :  { %v5229_v30 = vmul.f32 0.6931472, %v9171_v31  ;;  %v5215_v59 = vpop.xlane.xlu1 %5214  ;;  %v5218_v36 = vpop.xlane.xlu0 %5217 }
0x1056   :  { %9176 = vlog2.f32 %v5215_v59 }
0x1057   :  { %v5244_v46 = vadd.f32 %v5229_v30, %v11477_v40  ;;  %9178 = vlog2.f32 %v5218_v36 }
0x1058   :  { %v9173_v4 = vpop.eup %9172 }
0x1059   :  { %v5252_v5 = vmul.f32 %v11304_v13, %v5244_v46  ;;  %v5231_v61 = vmul.f32 0.6931472, %v9173_v4  ;;  %v5221_v7 = vpop.xlane.xlu1 %5220 }
0x105a   :  { %9180 = vlog2.f32 %v5221_v7 }
0x105b   :  { %v5245_v29 = vadd.f32 %v5231_v61, %v11480_v22  ;;  %v5260_v54 = vsel %vm4584_vm1, %v5252_v5, 0.0 }
0x105c   :  { %v9175_v41 = vpop.eup %9174  ;;  %v5261_v19 = vrot.slane %v5260_v54, 4 }
0x105d   :  { %v5253_v27 = vmul.f32 %v11304_v13, %v5245_v29  ;;  %v5233_v44 = vmul.f32 0.6931472, %v9175_v41  ;;  %v5224_v55 = vpop.xlane.xlu0 %5223 }
0x105e   :  { %9182 = vlog2.f32 %v5224_v55  ;;  %v5262_v20 = vadd.f32 %v5261_v19, %v5260_v54 }
0x105f   :  { %v5267_v60 = vsel %vm4584_vm1, %v5253_v27, 0.0  ;;  %v5246_v40 = vadd.f32 %v5233_v44, %v11483_v2 }
0x1060   :  { %v9177_v48 = vpop.eup %9176  ;;  %v5268_v33 = vrot.slane %v5267_v60, 4  ;;  %v5263_v51 = vrot.slane %v5262_v20, 2 }
0x1061   :  { %v9179_v34 = vpop.eup %9178  ;;  %v5254_v10 = vmul.f32 %v11304_v13, %v5246_v40  ;;  %v5235_v8 = vmul.f32 0.6931472, %v9177_v48  ;;  %v5227_v22 = vpop.xlane.xlu1 %5226 }
0x1062   :  { %v5237_v6 = vmul.f32 0.6931472, %v9179_v34  ;;  %9184 = vlog2.f32 %v5227_v22  ;;  %v5269_v12 = vadd.f32 %v5268_v33, %v5267_v60  ;;  %v5264_v4 = vadd.f32 %v5263_v51, %v5262_v20 }
0x1063   :  { %v5274_v17 = vsel %vm4584_vm1, %v5254_v10, 0.0  ;;  %v5247_v42 = vadd.f32 %v5235_v8, %v11489_v37 }
0x1064   :  { %v9181_v58 = vpop.eup %9180  ;;  %v5275_v9 = vrot.slane %v5274_v17, 4  ;;  %v5248_v2 = vadd.f32 %v5237_v6, %v11486_v14  ;;  %v5270_v35 = vrot.slane %v5269_v12, 2 }
0x1065   :  { %v5255_v0 = vmul.f32 %v11304_v13, %v5247_v42  ;;  %v5239_v28 = vmul.f32 0.6931472, %v9181_v58 }
0x1066   :  { %v5276_v52 = vadd.f32 %v5275_v9, %v5274_v17  ;;  %v5256_v1 = vmul.f32 %v11304_v13, %v5248_v2 }
0x1067   :  { %v5281_v32 = vsel %vm4584_vm1, %v5255_v0, 0.0  ;;  %v5249_v21 = vadd.f32 %v5239_v28, %v11492_v25  ;;  %v5271_v25 = vadd.f32 %v5270_v35, %v5269_v12 }
0x1068   :  { %v9183_v26 = vpop.eup %9182  ;;  %v5282_v37 = vrot.slane %v5281_v32, 4  ;;  %v5288_v18 = vsel %vm4584_vm1, %v5256_v1, 0.0  ;;  %v5277_v45 = vrot.slane %v5276_v52, 2 }
0x1069   :  { %v5289_v49 = vrot.slane %v5288_v18, 4  ;;  %v5257_v14 = vmul.f32 %v11304_v13, %v5249_v21  ;;  %v5241_v62 = vmul.f32 0.6931472, %v9183_v26  ;;  %v5272_v40 = vrot.slane %v5271_v25, 1 }
0x106a   :  { %v5283_v31 = vadd.f32 %v5282_v37, %v5281_v32  ;;  %v5278_v7 = vadd.f32 %v5277_v45, %v5276_v52 }
0x106b   :  { %v5290_v30 = vadd.f32 %v5289_v49, %v5288_v18  ;;  %v5295_v59 = vsel %vm4584_vm1, %v5257_v14, 0.0  ;;  %v5250_v36 = vadd.f32 %v5241_v62, %v11496_v47  ;;  %v5265_v47 = vrot.slane %v5264_v4, 1 }
0x106c   :  { %v9185_v46 = vpop.eup %9184  ;;  %v5284_v5 = vrot.slane %v5283_v31, 2  ;;  %v5296_v61 = vrot.slane %v5295_v59, 4  ;;  %v5279_v33 = vrot.slane %v5278_v7, 1  ;;  %v5273_v42 = vadd.f32 %v5272_v40, %v5271_v25 }
0x106d   :  { %v5291_v29 = vrot.slane %v5290_v30, 2  ;;  %v5258_v41 = vmul.f32 %v11304_v13, %v5250_v36  ;;  %v5243_v54 = vmul.f32 0.6931472, %v9185_v46  ;;  %v5266_v12 = vadd.f32 %v5265_v47, %v5264_v4 }
0x106e   :  { %v5285_v27 = vadd.f32 %v5284_v5, %v5283_v31  ;;  %v5297_v44 = vadd.f32 %v5296_v61, %v5295_v59  ;;  %v5280_v9 = vadd.f32 %v5279_v33, %v5278_v7  ;;  %v5337_v59 = vpop.permute.xlu0 %5336 }
0x106f   :  { %v5302_v55 = vsel %vm4584_vm1, %v5258_v41, 0.0  ;;  %v5251_v60 = vadd.f32 %v5243_v54, %v11500_v57  ;;  %v5292_v34 = vadd.f32 %v5291_v29, %v5290_v30  ;;  %v5325_v1 = vsel %vm4754_vm4, %v5273_v42, %v5266_v12 }
0x1070   :  { %v5298_v48 = vrot.slane %v5297_v44, 2  ;;  %v5303_v19 = vrot.slane %v5302_v55, 4  ;;  %v5286_v8 = vrot.slane %v5285_v27, 1  ;;  %v5326_v26 = vsel %vm4756_vm5, %v5280_v9, %v5325_v1 }
0x1071   :  { %v5259_v10 = vmul.f32 %v11304_v13, %v5251_v60  ;;  %v5293_v2 = vrot.slane %v5292_v34, 1  ;;  %vm5338_vm15 = vcmp.eq.s32.totalorder %v5337_v59, 1 }
0x1072   :  { %v5299_v22 = vadd.f32 %v5298_v48, %v5297_v44  ;;  %v5304_v6 = vadd.f32 %v5303_v19, %v5302_v55  ;;  %v5287_v57 = vadd.f32 %v5286_v8, %v5285_v27 }
0x1073   :  { %v5309_v17 = vsel %vm4584_vm1, %v5259_v10, 0.0  ;;  %v5294_v51 = vadd.f32 %v5293_v2, %v5292_v34 }
0x1074   :  { %v5305_v58 = vrot.slane %v5304_v6, 2  ;;  %v5310_v20 = vrot.slane %v5309_v17, 4  ;;  %v5300_v0 = vrot.slane %v5299_v22, 1  ;;  %v5327_v18 = vsel %vm4758_vm6, %v5287_v57, %v5326_v26 }
0x1075   :  { %v5328_v14 = vsel %vm4760_vm7, %v5294_v51, %v5327_v18 }
0x1076   :  { %v5306_v28 = vadd.f32 %v5305_v58, %v5304_v6  ;;  %v5311_v52 = vadd.f32 %v5310_v20, %v5309_v17  ;;  %v5301_v35 = vadd.f32 %v5300_v0, %v5299_v22 }
0x1078   :  { %v5307_v32 = vrot.slane %v5306_v28, 1  ;;  %v5312_v21 = vrot.slane %v5311_v52, 2  ;;  %v5329_v31 = vsel %vm4762_vm8, %v5301_v35, %v5328_v14 }
0x107a   :  { %v5313_v37 = vadd.f32 %v5312_v21, %v5311_v52  ;;  %v5308_v45 = vadd.f32 %v5307_v32, %v5306_v28 }
0x107c   :  { %v5314_v49 = vrot.slane %v5313_v37, 1  ;;  %v5330_v30 = vsel %vm4764_vm9, %v5308_v45, %v5329_v31 }
0x107e   :  { %v5315_v62 = vadd.f32 %v5314_v49, %v5313_v37 }
0x1080   :  { %v5331_v36 = vsel %vm4766_vm10, %v5315_v62, %v5330_v30 }
0x1081   :  { %v5333_v46 = vadd.f32 %v5331_v36, %v11233_v24 }
0x1083   :  { %v11543_v4 = vsel %vm5338_vm15, %v5333_v46, %v11440_v63  ;;  %vm4437_vm15 = vcmask 39936  }
0x1084   :  { %v5341_v25 = vcombine.high %v11543_v4, %v11543_v4  ;;  %v5348_v5 = vrot.slane %v11543_v4, %v11202_v53 }
0x1086   :  { %v5355_v61 = vrot.slane %v5341_v25, %v11202_v53  ;;  %v5356_v7 = vcombine.high %v5348_v5, %v5348_v5  ;;  %v5364_v29 = vrot.slane %v5348_v5, %v11202_v53 }
0x1088   :  { %v5393_v41 = vrot.slane %v5364_v29, %v13100_v3  ;;  %v5378_v54 = vrot.slane %v5356_v7, %v11202_v53  ;;  %v5357_v27 = vcombine.high %v5355_v61, %v5355_v61  ;;  %v5386_v44 = vcombine.high %v5364_v29, %v5364_v29 }
0x1089   :  { %v5371_v40 = vrot.slane %v5355_v61, %v11202_v53 }
0x108a   :  { %v5430_v63 = vadd.f32 %v11473_v43, %v5393_v41  ;;  %v5397_v55 = vrot.slane %v5378_v54, %v13100_v3  ;;  %v5385_v60 = vrot.slane %v5357_v27, %v11202_v53  ;;  %v5401_v33 = vrot.slane %v5386_v44, %v13100_v3 }
0x108b   :  { %v5409_v10 = vrot.slane %v5371_v40, %v13100_v3  ;;  %v5388_v17 = vcombine.high %v5378_v54, %v5378_v54  ;;  %v5387_v12 = vcombine.high %v5371_v40, %v5371_v40 }
0x108c   :  { %v5438_v48 = vsel %vm4584_vm1, %v5430_v63, -inf  ;;  %v5431_v19 = vadd.f32 %v11473_v43, %v5397_v55  ;;  %v5413_v47 = vrot.slane %v5385_v60, %v13100_v3  ;;  %v5432_v6 = vadd.f32 %v11473_v43, %v5401_v33 }
0x108d   :  { %5439 = vmax.xlane.f32.xlu1 %v5438_v48  ;;  %v5434_v58 = vadd.f32 %v11473_v43, %v5409_v10  ;;  %v5405_v20 = vrot.slane %v5388_v17, %v13100_v3  ;;  %v5417_v57 = vrot.slane %v5387_v12, %v13100_v3  ;;  %v5389_v0 = vcombine.high %v5385_v60, %v5385_v60 }
0x108e   :  { %v5435_v34 = vadd.f32 %v11473_v43, %v5413_v47  ;;  %v5441_v8 = vsel %vm4584_vm1, %v5431_v19, -inf  ;;  %v5444_v42 = vsel %vm4584_vm1, %v5432_v6, -inf }
0x108f   :  { %v5450_v9 = vsel %vm4584_vm1, %v5434_v58, -inf  ;;  %v5433_v2 = vadd.f32 %v11473_v43, %v5405_v20  ;;  %v5436_v52 = vadd.f32 %v11473_v43, %v5417_v57  ;;  %v5421_v1 = vrot.slane %v5389_v0, %v13100_v3 }
0x1090   :  { %v5453_v22 = vsel %vm4584_vm1, %v5435_v34, -inf }
0x1091   :  { %5442 = vmax.xlane.f32.xlu1 %v5441_v8  ;;  %5454 = vmax.xlane.f32.xlu0 %v5453_v22  ;;  %v5447_v28 = vsel %vm4584_vm1, %v5433_v2, -inf  ;;  %v5456_v32 = vsel %vm4584_vm1, %v5436_v52, -inf  ;;  %v5437_v21 = vadd.f32 %v11473_v43, %v5421_v1 }
0x1093   :  { %v5459_v26 = vsel %vm4584_vm1, %v5437_v21, -inf }
0x1095   :  { %5445 = vmax.xlane.f32.xlu1 %v5444_v42 }
0x1099   :  { %5451 = vmax.xlane.f32.xlu1 %v5450_v9  ;;  %v76_v9 = vld [vmem:[#allocation4 + $0x70] sm:$0xff] }
0x109a   :  { %vm5598_vm0 = vcmp.gt.f32.partialorder %v76_v9, 0.0 }
0x109d   :  { %5448 = vmax.xlane.f32.xlu1 %v5447_v28 }
0x10a1   :  { %5457 = vmax.xlane.f32.xlu1 %v5456_v32 }
0x10a5   :  { %5460 = vmax.xlane.f32.xlu1 %v5459_v26 }
0x111a   :  { %v11578_v51 = vpop.xlane.xlu1 %5439 }
0x111b   :  { %v5462_v35 = vsub.f32 %v5430_v63, %v11578_v51 }
0x111d   :  { %v5470_v37 = vmul.f32 1.442695, %v5462_v35 }
0x111e   :  { %v11581_v18 = vpop.xlane.xlu1 %5442  ;;  %v11587_v30 = vpop.xlane.xlu0 %5454 }
0x111f   :  { %9186 = vpow2.f32 %v5470_v37  ;;  %v5463_v45 = vsub.f32 %v5431_v19, %v11581_v18  ;;  %v5467_v25 = vsub.f32 %v5435_v34, %v11587_v30 }
0x1121   :  { %v5472_v49 = vmul.f32 1.442695, %v5463_v45  ;;  %v5480_v54 = vmul.f32 1.442695, %v5467_v25 }
0x1122   :  { %v11584_v14 = vpop.xlane.xlu1 %5445 }
0x1123   :  { %9188 = vpow2.f32 %v5472_v49  ;;  %v5464_v62 = vsub.f32 %v5432_v6, %v11584_v14 }
0x1125   :  { %v5474_v31 = vmul.f32 1.442695, %v5464_v62 }
0x1126   :  { %v11589_v59 = vpop.xlane.xlu1 %5451 }
0x1127   :  { %9190 = vpow2.f32 %v5474_v31  ;;  %v5466_v36 = vsub.f32 %v5434_v58, %v11589_v59 }
0x1129   :  { %v9187_v46 = vpop.eup %9186  ;;  %v5478_v5 = vmul.f32 1.442695, %v5466_v36 }
0x112a   :  { %v11593_v61 = vpop.xlane.xlu1 %5448  ;;  %v5486_v7 = vsel %vm4584_vm1, %v9187_v46, 0.0 }
0x112b   :  { %9192 = vpow2.f32 %v5478_v5  ;;  %v5465_v29 = vsub.f32 %v5433_v2, %v11593_v61  ;;  %5487 = vadd.xlane.f32.xlu1 %v5486_v7  ;;  %v5616_v2 = vsel %vm5598_vm0, 1, %v9429_v15 }
0x112d   :  { %v9189_v41 = vpop.eup %9188  ;;  %v5476_v27 = vmul.f32 1.442695, %v5465_v29 }
0x112e   :  { %v11597_v44 = vpop.xlane.xlu1 %5457  ;;  %v5489_v63 = vsel %vm4584_vm1, %v9189_v41, 0.0 }
0x112f   :  { %9194 = vpow2.f32 %v5476_v27  ;;  %v5468_v55 = vsub.f32 %v5436_v52, %v11597_v44  ;;  %5490 = vadd.xlane.f32.xlu1 %v5489_v63 }
0x1130   :  { %9196 = vpow2.f32 %v5480_v54 }
0x1131   :  { %v9191_v60 = vpop.eup %9190  ;;  %v5482_v40 = vmul.f32 1.442695, %v5468_v55 }
0x1132   :  { %v11601_v48 = vpop.xlane.xlu1 %5460  ;;  %v5492_v19 = vsel %vm4584_vm1, %v9191_v60, 0.0 }
0x1133   :  { %9198 = vpow2.f32 %v5482_v40  ;;  %v5469_v47 = vsub.f32 %v5437_v21, %v11601_v48  ;;  %5493 = vadd.xlane.f32.xlu1 %v5492_v19 }
0x1135   :  { %v9193_v33 = vpop.eup %9192  ;;  %v5484_v34 = vmul.f32 1.442695, %v5469_v47 }
0x1136   :  { %v5498_v10 = vsel %vm4584_vm1, %v9193_v33, 0.0 }
0x1137   :  { %9200 = vpow2.f32 %v5484_v34  ;;  %5499 = vadd.xlane.f32.xlu1 %v5498_v10 }
0x1139   :  { %v9195_v8 = vpop.eup %9194 }
0x113a   :  { %v5495_v22 = vsel %vm4584_vm1, %v9195_v8, 0.0  ;;  %v9197_v6 = vpop.eup %9196 }
0x113b   :  { %5496 = vadd.xlane.f32.xlu1 %v5495_v22  ;;  %v5501_v58 = vsel %vm4584_vm1, %v9197_v6, 0.0 }
0x113d   :  { %v9199_v17 = vpop.eup %9198 }
0x113e   :  { %v5504_v42 = vsel %vm4584_vm1, %v9199_v17, 0.0 }
0x113f   :  { %5505 = vadd.xlane.f32.xlu0 %v5504_v42  ;;  %5502 = vadd.xlane.f32.xlu1 %v5501_v58 }
0x1141   :  { %v9201_v20 = vpop.eup %9200 }
0x1142   :  { %v5507_v12 = vsel %vm4584_vm1, %v9201_v20, 0.0 }
0x1143   :  { %5508 = vadd.xlane.f32.xlu1 %v5507_v12 }
0x1155   :  { %5618 = vperm.xlu0 %8928, %v5616_v2  }
0x11b8   :  { %v5488_v57 = vpop.xlane.xlu1 %5487 }
0x11b9   :  { %9202 = vlog2.f32 %v5488_v57 }
0x11bc   :  { %v5491_v0 = vpop.xlane.xlu1 %5490 }
0x11bd   :  { %9204 = vlog2.f32 %v5491_v0 }
0x11c0   :  { %v5494_v28 = vpop.xlane.xlu1 %5493 }
0x11c1   :  { %9206 = vlog2.f32 %v5494_v28 }
0x11c3   :  { %v9203_v52 = vpop.eup %9202 }
0x11c4   :  { %v5511_v1 = vmul.f32 0.6931472, %v9203_v52  ;;  %v5500_v32 = vpop.xlane.xlu1 %5499 }
0x11c5   :  { %9208 = vlog2.f32 %v5500_v32 }
0x11c6   :  { %v5526_v21 = vadd.f32 %v5511_v1, %v11578_v51 }
0x11c7   :  { %v9205_v26 = vpop.eup %9204 }
0x11c8   :  { %v5534_v35 = vmul.f32 %v11304_v13, %v5526_v21  ;;  %v5513_v37 = vmul.f32 0.6931472, %v9205_v26  ;;  %v5497_v45 = vpop.xlane.xlu1 %5496 }
0x11c9   :  { %9210 = vlog2.f32 %v5497_v45 }
0x11ca   :  { %v5527_v49 = vadd.f32 %v5513_v37, %v11581_v18  ;;  %v5542_v31 = vsel %vm4584_vm1, %v5534_v35, 0.0 }
0x11cb   :  { %v9207_v62 = vpop.eup %9206  ;;  %v5543_v41 = vrot.slane %v5542_v31, 4 }
0x11cc   :  { %v5535_v36 = vmul.f32 %v11304_v13, %v5527_v49  ;;  %v5515_v46 = vmul.f32 0.6931472, %v9207_v62  ;;  %v5506_v25 = vpop.xlane.xlu0 %5505  ;;  %v5503_v5 = vpop.xlane.xlu1 %5502 }
0x11cd   :  { %9212 = vlog2.f32 %v5506_v25  ;;  %v5544_v47 = vadd.f32 %v5543_v41, %v5542_v31 }
0x11ce   :  { %v5549_v7 = vsel %vm4584_vm1, %v5535_v36, 0.0  ;;  %v5528_v51 = vadd.f32 %v5515_v46, %v11584_v14  ;;  %9214 = vlog2.f32 %v5503_v5 }
0x11cf   :  { %v9209_v29 = vpop.eup %9208  ;;  %v5550_v54 = vrot.slane %v5549_v7, 4  ;;  %v5545_v42 = vrot.slane %v5544_v47, 2 }
0x11d0   :  { %v5536_v27 = vmul.f32 %v11304_v13, %v5528_v51  ;;  %v5519_v18 = vmul.f32 0.6931472, %v9209_v29  ;;  %v5509_v63 = vpop.xlane.xlu1 %5508 }
0x11d1   :  { %v5551_v55 = vadd.f32 %v5550_v54, %v5549_v7  ;;  %9216 = vlog2.f32 %v5509_v63  ;;  %v5546_v32 = vadd.f32 %v5545_v42, %v5544_v47 }
0x11d2   :  { %v5556_v60 = vsel %vm4584_vm1, %v5536_v27, 0.0  ;;  %v5530_v40 = vadd.f32 %v5519_v18, %v11589_v59 }
0x11d3   :  { %v9211_v19 = vpop.eup %9210  ;;  %v5557_v33 = vrot.slane %v5556_v60, 4  ;;  %v5552_v10 = vrot.slane %v5551_v55, 2  ;;  %v5547_v5 = vrot.slane %v5546_v32, 1 }
0x11d4   :  { %v5538_v34 = vmul.f32 %v11304_v13, %v5530_v40  ;;  %v5517_v14 = vmul.f32 0.6931472, %v9211_v19 }
0x11d5   :  { %v5558_v8 = vadd.f32 %v5557_v33, %v5556_v60  ;;  %v5553_v2 = vadd.f32 %v5552_v10, %v5551_v55 }
0x11d6   :  { %v5570_v22 = vsel %vm4584_vm1, %v5538_v34, 0.0  ;;  %v5529_v6 = vadd.f32 %v5517_v14, %v11593_v61 }
0x11d7   :  { %v9213_v17 = vpop.eup %9212  ;;  %v5571_v58 = vrot.slane %v5570_v22, 4  ;;  %v5559_v12 = vrot.slane %v5558_v8, 2  ;;  %v5554_v45 = vrot.slane %v5553_v2, 1 }
0x11d8   :  { %v9215_v20 = vpop.eup %9214  ;;  %v5537_v9 = vmul.f32 %v11304_v13, %v5529_v6  ;;  %v5523_v59 = vmul.f32 0.6931472, %v9213_v17 }
0x11d9   :  { %v5521_v57 = vmul.f32 0.6931472, %v9215_v20  ;;  %v5572_v0 = vadd.f32 %v5571_v58, %v5570_v22  ;;  %v5560_v26 = vadd.f32 %v5559_v12, %v5558_v8  ;;  %v5555_v27 = vadd.f32 %v5554_v45, %v5553_v2 }
0x11da   :  { %v5563_v28 = vsel %vm4584_vm1, %v5537_v9, 0.0  ;;  %v5532_v52 = vadd.f32 %v5523_v59, %v11597_v44 }
0x11db   :  { %v9217_v1 = vpop.eup %9216  ;;  %v5564_v21 = vrot.slane %v5563_v28, 4  ;;  %v5531_v35 = vadd.f32 %v5521_v57, %v11587_v30  ;;  %v5573_v62 = vrot.slane %v5572_v0, 2  ;;  %v5561_v7 = vrot.slane %v5560_v26, 1 }
0x11dc   :  { %v5540_v61 = vmul.f32 %v11304_v13, %v5532_v52  ;;  %v5525_v37 = vmul.f32 0.6931472, %v9217_v1 }
0x11dd   :  { %v5565_v49 = vadd.f32 %v5564_v21, %v5563_v28  ;;  %v5539_v36 = vmul.f32 %v11304_v13, %v5531_v35  ;;  %v5574_v18 = vadd.f32 %v5573_v62, %v5572_v0  ;;  %v5562_v47 = vadd.f32 %v5561_v7, %v5560_v26 }
0x11de   :  { %v5584_v31 = vsel %vm4584_vm1, %v5540_v61, 0.0  ;;  %v5533_v46 = vadd.f32 %v5525_v37, %v11601_v48  ;;  %v5548_v48 = vadd.f32 %v5547_v5, %v5546_v32  ;;  %v5619_v32 = vpop.permute.xlu0 %5618 }
0x11df   :  { %v5566_v25 = vrot.slane %v5565_v49, 2  ;;  %v5585_v44 = vrot.slane %v5584_v31, 4  ;;  %v5577_v51 = vsel %vm4584_vm1, %v5539_v36, 0.0  ;;  %v5575_v8 = vrot.slane %v5574_v18, 1 }
0x11e0   :  { %v5541_v29 = vmul.f32 %v11304_v13, %v5533_v46  ;;  %v5578_v54 = vrot.slane %v5577_v51, 4  ;;  %v5607_v22 = vsel %vm4754_vm4, %v5555_v27, %v5548_v48  ;;  %vm5620_vm2 = vcmp.eq.s32.totalorder %v5619_v32, 1 }
0x11e1   :  { %v5567_v41 = vadd.f32 %v5566_v25, %v5565_v49  ;;  %v5586_v30 = vadd.f32 %v5585_v44, %v5584_v31  ;;  %v5608_v58 = vsel %vm4756_vm5, %v5562_v47, %v5607_v22  ;;  %v5576_v59 = vadd.f32 %v5575_v8, %v5574_v18 }
0x11e2   :  { %v5591_v63 = vsel %vm4584_vm1, %v5541_v29, 0.0  ;;  %v5579_v40 = vadd.f32 %v5578_v54, %v5577_v51 }
0x11e3   :  { %v5568_v55 = vrot.slane %v5567_v41, 1  ;;  %v5587_v60 = vrot.slane %v5586_v30, 2  ;;  %v5592_v19 = vrot.slane %v5591_v63, 4 }
0x11e4   :  { %v5580_v14 = vrot.slane %v5579_v40, 2 }
0x11e5   :  { %v5569_v33 = vadd.f32 %v5568_v55, %v5567_v41  ;;  %v5588_v34 = vadd.f32 %v5587_v60, %v5586_v30  ;;  %v5593_v10 = vadd.f32 %v5592_v19, %v5591_v63 }
0x11e6   :  { %v5581_v17 = vadd.f32 %v5580_v14, %v5579_v40 }
0x11e7   :  { %v5589_v6 = vrot.slane %v5588_v34, 1  ;;  %v5594_v42 = vrot.slane %v5593_v10, 2  ;;  %v5609_v9 = vsel %vm4758_vm6, %v5569_v33, %v5608_v58 }
0x11e8   :  { %v5582_v20 = vrot.slane %v5581_v17, 1  ;;  %v5610_v28 = vsel %vm4760_vm7, %v5576_v59, %v5609_v9 }
0x11e9   :  { %v5595_v12 = vadd.f32 %v5594_v42, %v5593_v10  ;;  %v5590_v2 = vadd.f32 %v5589_v6, %v5588_v34 }
0x11ea   :  { %v5583_v57 = vadd.f32 %v5582_v20, %v5581_v17 }
0x11eb   :  { %v5596_v0 = vrot.slane %v5595_v12, 1 }
0x11ec   :  { %v5611_v1 = vsel %vm4762_vm8, %v5583_v57, %v5610_v28 }
0x11ed   :  { %v5597_v52 = vadd.f32 %v5596_v0, %v5595_v12  ;;  %v5612_v21 = vsel %vm4764_vm9, %v5590_v2, %v5611_v1 }
0x11ef   :  { %v5613_v26 = vsel %vm4766_vm10, %v5597_v52, %v5612_v21 }
0x11f0   :  { %v5615_v61 = vadd.f32 %v5613_v26, %v11243_v11 }
0x11f2   :  { %v11644_v35 = vsel %vm5620_vm2, %v5615_v61, %v11543_v4 }
0x11f3   :  { %v5623_v37 = vcombine.high %v11644_v35, %v11644_v35  ;;  %v5630_v45 = vrot.slane %v11644_v35, %v11202_v53 }
0x11f5   :  { %v5637_v49 = vrot.slane %v5623_v37, %v11202_v53  ;;  %v5638_v62 = vcombine.high %v5630_v45, %v5630_v45  ;;  %v5646_v31 = vrot.slane %v5630_v45, %v11202_v53 }
0x11f7   :  { %v5675_v36 = vrot.slane %v5646_v31, %v13100_v3  ;;  %v5660_v46 = vrot.slane %v5638_v62, %v11202_v53  ;;  %v5653_v25 = vrot.slane %v5637_v49, %v11202_v53  ;;  %v5668_v44 = vcombine.high %v5646_v31, %v5646_v31 }
0x11f8   :  { %v5639_v18 = vcombine.high %v5637_v49, %v5637_v49 }
0x11f9   :  { %v5712_v4 = vadd.f32 %v11473_v43, %v5675_v36  ;;  %v5679_v5 = vrot.slane %v5660_v46, %v13100_v3  ;;  %v5669_v7 = vcombine.high %v5653_v25, %v5653_v25  ;;  %v5683_v30 = vrot.slane %v5668_v44, %v13100_v3 }
0x11fa   :  { %v5691_v27 = vrot.slane %v5653_v25, %v13100_v3  ;;  %v5670_v40 = vcombine.high %v5660_v46, %v5660_v46  ;;  %v5667_v33 = vrot.slane %v5639_v18, %v11202_v53 }
0x11fb   :  { %v5720_v51 = vsel %vm4584_vm1, %v5712_v4, -inf  ;;  %v5713_v29 = vadd.f32 %v11473_v43, %v5679_v5  ;;  %v5699_v41 = vrot.slane %v5669_v7, %v13100_v3  ;;  %v5714_v60 = vadd.f32 %v11473_v43, %v5683_v30 }
0x11fc   :  { %5721 = vmax.xlane.f32.xlu1 %v5720_v51  ;;  %v5716_v48 = vadd.f32 %v11473_v43, %v5691_v27  ;;  %v5687_v47 = vrot.slane %v5670_v40, %v13100_v3  ;;  %v5695_v10 = vrot.slane %v5667_v33, %v13100_v3  ;;  %v5671_v8 = vcombine.high %v5667_v33, %v5667_v33 }
0x11fd   :  { %v5718_v54 = vadd.f32 %v11473_v43, %v5699_v41  ;;  %v5723_v63 = vsel %vm4584_vm1, %v5713_v29, -inf  ;;  %v5726_v19 = vsel %vm4584_vm1, %v5714_v60, -inf }
0x11fe   :  { %v5732_v34 = vsel %vm4584_vm1, %v5716_v48, -inf  ;;  %v5715_v14 = vadd.f32 %v11473_v43, %v5687_v47  ;;  %v5717_v6 = vadd.f32 %v11473_v43, %v5695_v10  ;;  %v5703_v17 = vrot.slane %v5671_v8, %v13100_v3 }
0x11ff   :  { %v5738_v55 = vsel %vm4584_vm1, %v5718_v54, -inf }
0x1200   :  { %5724 = vmax.xlane.f32.xlu1 %v5723_v63  ;;  %5739 = vmax.xlane.f32.xlu0 %v5738_v55  ;;  %v5729_v22 = vsel %vm4584_vm1, %v5715_v14, -inf  ;;  %v5735_v42 = vsel %vm4584_vm1, %v5717_v6, -inf  ;;  %v5719_v58 = vadd.f32 %v11473_v43, %v5703_v17 }
0x1202   :  { %v5741_v20 = vsel %vm4584_vm1, %v5719_v58, -inf }
0x1204   :  { %5727 = vmax.xlane.f32.xlu1 %v5726_v19  ;;  %v11709_v19 = vld [vmem:[#allocation4 + $0x88] sm:$0xff] }
0x1205   :  { %vm5880_vm3 = vcmp.gt.f32.partialorder %v11709_v19, 0.0 }
0x1208   :  { %5733 = vmax.xlane.f32.xlu1 %v5732_v34  ;;  %v5898_v34 = vsel %vm5880_vm3, 1, %v9429_v15 }
0x120c   :  { %5730 = vmax.xlane.f32.xlu1 %v5729_v22 }
0x1210   :  { %5736 = vmax.xlane.f32.xlu1 %v5735_v42 }
0x1214   :  { %5742 = vmax.xlane.f32.xlu1 %v5741_v20 }
0x1289   :  { %v11679_v12 = vpop.xlane.xlu1 %5721 }
0x128a   :  { %v5744_v9 = vsub.f32 %v5712_v4, %v11679_v12 }
0x128c   :  { %v5752_v59 = vmul.f32 1.442695, %v5744_v9 }
0x128d   :  { %v11682_v2 = vpop.xlane.xlu1 %5724  ;;  %v11684_v57 = vpop.xlane.xlu0 %5739 }
0x128e   :  { %9218 = vpow2.f32 %v5752_v59  ;;  %v5745_v0 = vsub.f32 %v5713_v29, %v11682_v2  ;;  %v5750_v28 = vsub.f32 %v5718_v54, %v11684_v57 }
0x1290   :  { %v5754_v52 = vmul.f32 1.442695, %v5745_v0  ;;  %v5764_v43 = vmul.f32 1.442695, %v5750_v28 }
0x1291   :  { %v11688_v1 = vpop.xlane.xlu1 %5727 }
0x1292   :  { %9220 = vpow2.f32 %v5754_v52  ;;  %v5746_v32 = vsub.f32 %v5714_v60, %v11688_v1 }
0x1293   :  { %9222 = vpow2.f32 %v5764_v43 }
0x1294   :  { %v5756_v21 = vmul.f32 1.442695, %v5746_v32 }
0x1295   :  { %v11691_v26 = vpop.xlane.xlu1 %5733 }
0x1296   :  { %9224 = vpow2.f32 %v5756_v21  ;;  %v5748_v61 = vsub.f32 %v5716_v48, %v11691_v26 }
0x1298   :  { %v9219_v37 = vpop.eup %9218  ;;  %v5760_v45 = vmul.f32 1.442695, %v5748_v61 }
0x1299   :  { %v11694_v49 = vpop.xlane.xlu1 %5730  ;;  %v5768_v62 = vsel %vm4584_vm1, %v9219_v37, 0.0 }
0x129a   :  { %9226 = vpow2.f32 %v5760_v45  ;;  %v5747_v31 = vsub.f32 %v5715_v14, %v11694_v49  ;;  %5769 = vadd.xlane.f32.xlu1 %v5768_v62 }
0x129c   :  { %v9221_v36 = vpop.eup %9220  ;;  %v5758_v46 = vmul.f32 1.442695, %v5747_v31 }
0x129d   :  { %v9223_v25 = vpop.eup %9222  ;;  %v11698_v44 = vpop.xlane.xlu1 %5736  ;;  %v5771_v4 = vsel %vm4584_vm1, %v9221_v36, 0.0 }
0x129e   :  { %9228 = vpow2.f32 %v5758_v46  ;;  %v5749_v5 = vsub.f32 %v5717_v6, %v11698_v44  ;;  %v5786_v7 = vsel %vm4584_vm1, %v9223_v25, 0.0  ;;  %5772 = vadd.xlane.f32.xlu1 %v5771_v4 }
0x129f   :  { %5787 = vadd.xlane.f32.xlu0 %v5786_v7 }
0x12a0   :  { %v9225_v51 = vpop.eup %9224  ;;  %v5762_v29 = vmul.f32 1.442695, %v5749_v5 }
0x12a1   :  { %v11703_v41 = vpop.xlane.xlu1 %5742  ;;  %v5774_v30 = vsel %vm4584_vm1, %v9225_v51, 0.0 }
0x12a2   :  { %9230 = vpow2.f32 %v5762_v29  ;;  %v5751_v54 = vsub.f32 %v5719_v58, %v11703_v41  ;;  %5775 = vadd.xlane.f32.xlu1 %v5774_v30 }
0x12a4   :  { %v9227_v27 = vpop.eup %9226  ;;  %v5766_v18 = vmul.f32 1.442695, %v5751_v54 }
0x12a5   :  { %v5780_v63 = vsel %vm4584_vm1, %v9227_v27, 0.0 }
0x12a6   :  { %9232 = vpow2.f32 %v5766_v18  ;;  %5781 = vadd.xlane.f32.xlu1 %v5780_v63 }
0x12a8   :  { %v9229_v55 = vpop.eup %9228 }
0x12a9   :  { %v5777_v60 = vsel %vm4584_vm1, %v9229_v55, 0.0 }
0x12aa   :  { %5778 = vadd.xlane.f32.xlu1 %v5777_v60 }
0x12ac   :  { %v9231_v40 = vpop.eup %9230 }
0x12ad   :  { %v5783_v48 = vsel %vm4584_vm1, %v9231_v40, 0.0 }
0x12ae   :  { %5784 = vadd.xlane.f32.xlu1 %v5783_v48 }
0x12b0   :  { %v9233_v47 = vpop.eup %9232 }
0x12b1   :  { %v5789_v33 = vsel %vm4584_vm1, %v9233_v47, 0.0 }
0x12b2   :  { %5790 = vadd.xlane.f32.xlu1 %v5789_v33 }
0x12b5   :  { %5900 = vperm.xlu0 %8928, %v5898_v34  }
0x1327   :  { %v5770_v14 = vpop.xlane.xlu1 %5769 }
0x1328   :  { %9234 = vlog2.f32 %v5770_v14 }
0x132b   :  { %v5773_v10 = vpop.xlane.xlu1 %5772 }
0x132c   :  { %v5788_v8 = vpop.xlane.xlu0 %5787  ;;  %9236 = vlog2.f32 %v5773_v10 }
0x132d   :  { %9238 = vlog2.f32 %v5788_v8 }
0x132f   :  { %v5776_v22 = vpop.xlane.xlu1 %5775 }
0x1330   :  { %9240 = vlog2.f32 %v5776_v22 }
0x1332   :  { %v9235_v6 = vpop.eup %9234 }
0x1333   :  { %v5793_v17 = vmul.f32 0.6931472, %v9235_v6  ;;  %v5782_v42 = vpop.xlane.xlu1 %5781 }
0x1334   :  { %9242 = vlog2.f32 %v5782_v42 }
0x1335   :  { %v5808_v58 = vadd.f32 %v5793_v17, %v11679_v12 }
0x1336   :  { %v9237_v20 = vpop.eup %9236 }
0x1337   :  { %v9239_v9 = vpop.eup %9238  ;;  %v5816_v59 = vmul.f32 %v11304_v13, %v5808_v58  ;;  %v5795_v0 = vmul.f32 0.6931472, %v9237_v20  ;;  %v5779_v28 = vpop.xlane.xlu1 %5778 }
0x1338   :  { %v5805_v52 = vmul.f32 0.6931472, %v9239_v9  ;;  %9244 = vlog2.f32 %v5779_v28 }
0x1339   :  { %v5809_v43 = vadd.f32 %v5795_v0, %v11682_v2  ;;  %v5824_v21 = vsel %vm4584_vm1, %v5816_v59, 0.0 }
0x133a   :  { %v9241_v32 = vpop.eup %9240  ;;  %v5814_v62 = vadd.f32 %v5805_v52, %v11684_v57  ;;  %v5825_v46 = vrot.slane %v5824_v21, 4 }
0x133b   :  { %v5817_v61 = vmul.f32 %v11304_v13, %v5809_v43  ;;  %v5797_v37 = vmul.f32 0.6931472, %v9241_v32  ;;  %v5785_v45 = vpop.xlane.xlu1 %5784 }
0x133c   :  { %9246 = vlog2.f32 %v5785_v45  ;;  %v5822_v7 = vmul.f32 %v11304_v13, %v5814_v62  ;;  %v5826_v54 = vadd.f32 %v5825_v46, %v5824_v21 }
0x133d   :  { %v5831_v12 = vsel %vm4584_vm1, %v5817_v61, 0.0  ;;  %v5810_v31 = vadd.f32 %v5797_v37, %v11688_v1 }
0x133e   :  { %v9243_v36 = vpop.eup %9242  ;;  %v5832_v25 = vrot.slane %v5831_v12, 4  ;;  %v5866_v63 = vsel %vm4584_vm1, %v5822_v7, 0.0  ;;  %v5827_v33 = vrot.slane %v5826_v54, 2 }
0x133f   :  { %v5818_v4 = vmul.f32 %v11304_v13, %v5810_v31  ;;  %v5801_v2 = vmul.f32 0.6931472, %v9243_v36  ;;  %v5791_v5 = vpop.xlane.xlu1 %5790  ;;  %v5867_v10 = vrot.slane %v5866_v63, 4 }
0x1340   :  { %v5833_v51 = vadd.f32 %v5832_v25, %v5831_v12  ;;  %9248 = vlog2.f32 %v5791_v5  ;;  %v5828_v9 = vadd.f32 %v5827_v33, %v5826_v54 }
0x1341   :  { %v5838_v29 = vsel %vm4584_vm1, %v5818_v4, 0.0  ;;  %v5812_v57 = vadd.f32 %v5801_v2, %v11691_v26  ;;  %v5868_v0 = vadd.f32 %v5867_v10, %v5866_v63 }
0x1342   :  { %v9245_v30 = vpop.eup %9244  ;;  %v5839_v27 = vrot.slane %v5838_v29, 4  ;;  %v5834_v55 = vrot.slane %v5833_v51, 2  ;;  %v5829_v45 = vrot.slane %v5828_v9, 1 }
0x1343   :  { %v5820_v1 = vmul.f32 %v11304_v13, %v5812_v57  ;;  %v5799_v18 = vmul.f32 0.6931472, %v9245_v30  ;;  %v5869_v31 = vrot.slane %v5868_v0, 2 }
0x1344   :  { %v5840_v60 = vadd.f32 %v5839_v27, %v5838_v29  ;;  %v5835_v22 = vadd.f32 %v5834_v55, %v5833_v51  ;;  %v5830_v7 = vadd.f32 %v5829_v45, %v5828_v9 }
0x1345   :  { %v5852_v40 = vsel %vm4584_vm1, %v5820_v1, 0.0  ;;  %v5811_v48 = vadd.f32 %v5799_v18, %v11694_v49  ;;  %v5870_v30 = vadd.f32 %v5869_v31, %v5868_v0 }
0x1346   :  { %v9247_v47 = vpop.eup %9246  ;;  %v5841_v34 = vrot.slane %v5840_v60, 2  ;;  %v5853_v14 = vrot.slane %v5852_v40, 4  ;;  %v5836_v43 = vrot.slane %v5835_v22, 1 }
0x1347   :  { %v5819_v26 = vmul.f32 %v11304_v13, %v5811_v48  ;;  %v5803_v8 = vmul.f32 0.6931472, %v9247_v47  ;;  %v5871_v48 = vrot.slane %v5870_v30, 1 }
0x1348   :  { %v5854_v6 = vadd.f32 %v5853_v14, %v5852_v40  ;;  %v5842_v17 = vadd.f32 %v5841_v34, %v5840_v60  ;;  %v5837_v46 = vadd.f32 %v5836_v43, %v5835_v22 }
0x1349   :  { %v5845_v42 = vsel %vm4584_vm1, %v5819_v26, 0.0  ;;  %v5813_v58 = vadd.f32 %v5803_v8, %v11698_v44  ;;  %v5872_v8 = vadd.f32 %v5871_v48, %v5870_v30 }
0x134a   :  { %v9249_v20 = vpop.eup %9248  ;;  %v5846_v59 = vrot.slane %v5845_v42, 4  ;;  %v5855_v49 = vrot.slane %v5854_v6, 2  ;;  %v5843_v21 = vrot.slane %v5842_v17, 1 }
0x134b   :  { %v5821_v28 = vmul.f32 %v11304_v13, %v5813_v58  ;;  %v5807_v52 = vmul.f32 0.6931472, %v9249_v20 }
0x134c   :  { %v5847_v32 = vadd.f32 %v5846_v59, %v5845_v42  ;;  %v5856_v44 = vadd.f32 %v5855_v49, %v5854_v6  ;;  %v5844_v2 = vadd.f32 %v5843_v21, %v5842_v17  ;;  %v5901_v6 = vpop.permute.xlu0 %5900 }
0x134d   :  { %v5859_v61 = vsel %vm4584_vm1, %v5821_v28, 0.0  ;;  %v5815_v37 = vadd.f32 %v5807_v52, %v11703_v41  ;;  %v5889_v41 = vsel %vm4754_vm4, %v5837_v46, %v5830_v7  ;;  %vm5902_vm11 = vcmp.eq.s32.totalorder %v5901_v6, 1 }
0x134e   :  { %v5848_v62 = vrot.slane %v5847_v32, 2  ;;  %v5860_v12 = vrot.slane %v5859_v61, 4  ;;  %v5857_v54 = vrot.slane %v5856_v44, 1  ;;  %v5890_v63 = vsel %vm4756_vm5, %v5844_v2, %v5889_v41 }
0x134f   :  { %v5823_v36 = vmul.f32 %v11304_v13, %v5815_v37 }
0x1350   :  { %v5849_v25 = vadd.f32 %v5848_v62, %v5847_v32  ;;  %v5861_v4 = vadd.f32 %v5860_v12, %v5859_v61  ;;  %v5858_v47 = vadd.f32 %v5857_v54, %v5856_v44 }
0x1351   :  { %v5873_v5 = vsel %vm4584_vm1, %v5823_v36, 0.0 }
0x1352   :  { %v5850_v51 = vrot.slane %v5849_v25, 1  ;;  %v5862_v29 = vrot.slane %v5861_v4, 2  ;;  %v5874_v57 = vrot.slane %v5873_v5, 4 }
0x1354   :  { %v5851_v27 = vadd.f32 %v5850_v51, %v5849_v25  ;;  %v5863_v1 = vadd.f32 %v5862_v29, %v5861_v4  ;;  %v5875_v18 = vadd.f32 %v5874_v57, %v5873_v5 }
0x1356   :  { %v5891_v55 = vsel %vm4758_vm6, %v5851_v27, %v5890_v63  ;;  %v5864_v60 = vrot.slane %v5863_v1, 1  ;;  %v5876_v40 = vrot.slane %v5875_v18, 2 }
0x1357   :  { %v5892_v14 = vsel %vm4760_vm7, %v5858_v47, %v5891_v55 }
0x1358   :  { %v5865_v33 = vadd.f32 %v5864_v60, %v5863_v1  ;;  %v5877_v34 = vadd.f32 %v5876_v40, %v5875_v18 }
0x135a   :  { %v5893_v10 = vsel %vm4762_vm8, %v5865_v33, %v5892_v14  ;;  %v5878_v26 = vrot.slane %v5877_v34, 1 }
0x135b   :  { %v5894_v17 = vsel %vm4764_vm9, %v5872_v8, %v5893_v10 }
0x135c   :  { %v5879_v22 = vadd.f32 %v5878_v26, %v5877_v34 }
0x135e   :  { %v5895_v42 = vsel %vm4766_vm10, %v5879_v22, %v5894_v17 }
0x135f   :  { %v5897_v58 = vadd.f32 %v5895_v42, %v11252_v38 }
0x1361   :  { %v11748_v20 = vsel %vm5902_vm11, %v5897_v58, %v11644_v35  ;;  %v11759_v35 = vld [vmem:[#allocation9 + $0x120] sm:$0x1f] }
0x1362   :  { %v5912_v9 = vrot.slane %v11748_v20, %v11202_v53  ;;  %v5905_v59 = vcombine.high %v11748_v20, %v11748_v20 }
0x1364   :  { %v5928_v0 = vrot.slane %v5912_v9, %v11202_v53  ;;  %v5920_v49 = vcombine.high %v5912_v9, %v5912_v9  ;;  %v5919_v28 = vrot.slane %v5905_v59, %v11202_v53 }
0x1366   :  { %v5957_v52 = vrot.slane %v5928_v0, %v13100_v3  ;;  %v5942_v43 = vrot.slane %v5920_v49, %v11202_v53  ;;  %v5935_v32 = vrot.slane %v5919_v28, %v11202_v53  ;;  %v5950_v21 = vcombine.high %v5928_v0, %v5928_v0 }
0x1367   :  { %v5921_v25 = vcombine.high %v5919_v28, %v5919_v28 }
0x1368   :  { %v5994_v61 = vadd.f32 %v11759_v35, %v5957_v52  ;;  %v5961_v37 = vrot.slane %v5942_v43, %v13100_v3  ;;  %v5951_v45 = vcombine.high %v5935_v32, %v5935_v32  ;;  %v5965_v44 = vrot.slane %v5950_v21, %v13100_v3 }
0x1369   :  { %v5973_v46 = vrot.slane %v5935_v32, %v13100_v3  ;;  %v5952_v7 = vcombine.high %v5942_v43, %v5942_v43  ;;  %v5949_v30 = vrot.slane %v5921_v25, %v11202_v53 }
0x136a   :  { %v6002_v62 = vsel %vm4584_vm1, %v5994_v61, -inf  ;;  %v5995_v12 = vadd.f32 %v11759_v35, %v5961_v37  ;;  %v5981_v31 = vrot.slane %v5951_v45, %v13100_v3  ;;  %v5996_v5 = vadd.f32 %v11759_v35, %v5965_v44 }
0x136b   :  { %6003 = vmax.xlane.f32.xlu1 %v6002_v62  ;;  %v5998_v29 = vadd.f32 %v11759_v35, %v5973_v46  ;;  %v5969_v57 = vrot.slane %v5952_v7, %v13100_v3  ;;  %v5977_v27 = vrot.slane %v5949_v30, %v13100_v3  ;;  %v5953_v1 = vcombine.high %v5949_v30, %v5949_v30 }
0x136c   :  { %v6000_v36 = vadd.f32 %v11759_v35, %v5981_v31  ;;  %v6005_v4 = vsel %vm4584_vm1, %v5995_v12, -inf  ;;  %v6008_v51 = vsel %vm4584_vm1, %v5996_v5, -inf }
0x136d   :  { %v6014_v54 = vsel %vm4584_vm1, %v5998_v29, -inf  ;;  %v5997_v41 = vadd.f32 %v11759_v35, %v5969_v57  ;;  %v5999_v63 = vadd.f32 %v11759_v35, %v5977_v27  ;;  %v5985_v55 = vrot.slane %v5953_v1, %v13100_v3 }
0x136e   :  { %v6020_v2 = vsel %vm4584_vm1, %v6000_v36, -inf }
0x136f   :  { %6006 = vmax.xlane.f32.xlu1 %v6005_v4  ;;  %6021 = vmax.xlane.f32.xlu0 %v6020_v2  ;;  %v6011_v18 = vsel %vm4584_vm1, %v5997_v41, -inf  ;;  %v6017_v60 = vsel %vm4584_vm1, %v5999_v63, -inf  ;;  %v6001_v40 = vadd.f32 %v11759_v35, %v5985_v55 }
0x1371   :  { %v6023_v48 = vsel %vm4584_vm1, %v6001_v40, -inf }
0x1373   :  { %6009 = vmax.xlane.f32.xlu1 %v6008_v51 }
0x1377   :  { %6015 = vmax.xlane.f32.xlu1 %v6014_v54 }
0x137b   :  { %6012 = vmax.xlane.f32.xlu1 %v6011_v18 }
0x137f   :  { %6018 = vmax.xlane.f32.xlu1 %v6017_v60 }
0x1383   :  { %6024 = vmax.xlane.f32.xlu1 %v6023_v48 }
0x13f8   :  { %v11785_v47 = vpop.xlane.xlu1 %6003 }
0x13f9   :  { %v6026_v33 = vsub.f32 %v5994_v61, %v11785_v47 }
0x13fb   :  { %v6034_v34 = vmul.f32 1.442695, %v6026_v33 }
0x13fc   :  { %v11788_v14 = vpop.xlane.xlu1 %6006  ;;  %v11797_v59 = vpop.xlane.xlu0 %6021 }
0x13fd   :  { %9250 = vpow2.f32 %v6034_v34  ;;  %v6027_v10 = vsub.f32 %v5995_v12, %v11788_v14  ;;  %v6032_v43 = vsub.f32 %v6000_v36, %v11797_v59 }
0x13ff   :  { %v6036_v26 = vmul.f32 1.442695, %v6027_v10  ;;  %v6046_v62 = vmul.f32 1.442695, %v6032_v43 }
0x1400   :  { %v11791_v8 = vpop.xlane.xlu1 %6009 }
0x1401   :  { %9252 = vpow2.f32 %v6036_v26  ;;  %v6028_v22 = vsub.f32 %v5996_v5, %v11791_v8 }
0x1403   :  { %v6038_v6 = vmul.f32 1.442695, %v6028_v22 }
0x1404   :  { %v11794_v17 = vpop.xlane.xlu1 %6015 }
0x1405   :  { %9254 = vpow2.f32 %v6038_v6  ;;  %v6030_v42 = vsub.f32 %v5998_v29, %v11794_v17 }
0x1407   :  { %v9251_v58 = vpop.eup %9250  ;;  %v6042_v9 = vmul.f32 1.442695, %v6030_v42 }
0x1408   :  { %v11799_v0 = vpop.xlane.xlu1 %6012  ;;  %v6050_v49 = vsel %vm4584_vm1, %v9251_v58, 0.0 }
0x1409   :  { %9256 = vpow2.f32 %v6042_v9  ;;  %v6029_v28 = vsub.f32 %v5997_v41, %v11799_v0  ;;  %6051 = vadd.xlane.f32.xlu1 %v6050_v49  ;;  %v11817_v41 = vld [vmem:[#allocation4 + $0xa0] sm:$0xff] }
0x140a   :  { %vm6162_vm12 = vcmp.gt.f32.partialorder %v11817_v41, 0.0 }
0x140b   :  { %v9253_v52 = vpop.eup %9252  ;;  %v6040_v32 = vmul.f32 1.442695, %v6029_v28  ;;  %v6180_v27 = vsel %vm6162_vm12, 1, %v9429_v15 }
0x140c   :  { %v11804_v21 = vpop.xlane.xlu1 %6018  ;;  %v6053_v61 = vsel %vm4584_vm1, %v9253_v52, 0.0 }
0x140d   :  { %9258 = vpow2.f32 %v6040_v32  ;;  %v6031_v37 = vsub.f32 %v5999_v63, %v11804_v21  ;;  %6054 = vadd.xlane.f32.xlu1 %v6053_v61 }
0x140f   :  { %v9255_v45 = vpop.eup %9254  ;;  %v6044_v12 = vmul.f32 1.442695, %v6031_v37 }
0x1410   :  { %v11808_v31 = vpop.xlane.xlu1 %6024  ;;  %v6056_v44 = vsel %vm4584_vm1, %v9255_v45, 0.0 }
0x1411   :  { %9260 = vpow2.f32 %v6044_v12  ;;  %v6033_v46 = vsub.f32 %v6001_v40, %v11808_v31  ;;  %6057 = vadd.xlane.f32.xlu1 %v6056_v44 }
0x1412   :  { %9262 = vpow2.f32 %v6046_v62 }
0x1413   :  { %v9257_v36 = vpop.eup %9256  ;;  %v6048_v25 = vmul.f32 1.442695, %v6033_v46 }
0x1414   :  { %v6062_v4 = vsel %vm4584_vm1, %v9257_v36, 0.0 }
0x1415   :  { %9264 = vpow2.f32 %v6048_v25  ;;  %6063 = vadd.xlane.f32.xlu1 %v6062_v4 }
0x1417   :  { %v9259_v2 = vpop.eup %9258 }
0x1418   :  { %v6059_v5 = vsel %vm4584_vm1, %v9259_v2, 0.0 }
0x1419   :  { %6060 = vadd.xlane.f32.xlu1 %v6059_v5 }
0x141b   :  { %v9261_v7 = vpop.eup %9260 }
0x141c   :  { %v6065_v51 = vsel %vm4584_vm1, %v9261_v7, 0.0  ;;  %v9263_v29 = vpop.eup %9262 }
0x141d   :  { %6066 = vadd.xlane.f32.xlu1 %v6065_v51  ;;  %v6068_v30 = vsel %vm4584_vm1, %v9263_v29, 0.0 }
0x141f   :  { %v9265_v57 = vpop.eup %9264 }
0x1420   :  { %v6071_v54 = vsel %vm4584_vm1, %v9265_v57, 0.0 }
0x1421   :  { %6069 = vadd.xlane.f32.xlu1 %v6068_v30  ;;  %6072 = vadd.xlane.f32.xlu0 %v6071_v54 }
0x1432   :  { %6182 = vperm.xlu1 %8929, %v6180_v27  }
0x1496   :  { %v6052_v1 = vpop.xlane.xlu1 %6051 }
0x1497   :  { %9266 = vlog2.f32 %v6052_v1 }
0x149a   :  { %v6055_v18 = vpop.xlane.xlu1 %6054 }
0x149b   :  { %9268 = vlog2.f32 %v6055_v18 }
0x149e   :  { %v6058_v63 = vpop.xlane.xlu1 %6057 }
0x149f   :  { %9270 = vlog2.f32 %v6058_v63 }
0x14a1   :  { %v9267_v55 = vpop.eup %9266 }
0x14a2   :  { %v6064_v60 = vpop.xlane.xlu1 %6063  ;;  %v6075_v40 = vmul.f32 0.6931472, %v9267_v55 }
0x14a3   :  { %9272 = vlog2.f32 %v6064_v60 }
0x14a4   :  { %v6090_v10 = vadd.f32 %v6075_v40, %v11785_v47 }
0x14a5   :  { %v9269_v48 = vpop.eup %9268 }
0x14a6   :  { %v6077_v33 = vmul.f32 0.6931472, %v9269_v48  ;;  %v6061_v34 = vpop.xlane.xlu1 %6060  ;;  %v6098_v9 = vmul.f32 %v11304_v13, %v6090_v10 }
0x14a7   :  { %9274 = vlog2.f32 %v6061_v34 }
0x14a8   :  { %v6091_v26 = vadd.f32 %v6077_v33, %v11788_v14  ;;  %v6106_v14 = vsel %vm4584_vm1, %v6098_v9, 0.0 }
0x14a9   :  { %v9271_v22 = vpop.eup %9270 }
0x14aa   :  { %v6099_v6 = vmul.f32 %v11304_v13, %v6091_v26  ;;  %v6079_v42 = vmul.f32 0.6931472, %v9271_v22  ;;  %v6067_v58 = vpop.xlane.xlu1 %6066 }
0x14ab   :  { %9276 = vlog2.f32 %v6067_v58 }
0x14ac   :  { %v6092_v49 = vadd.f32 %v6079_v42, %v11791_v8  ;;  %v6113_v52 = vsel %vm4584_vm1, %v6099_v6, 0.0  ;;  %v6107_v8 = vrot.slane %v6106_v14, 4 }
0x14ad   :  { %v9273_v28 = vpop.eup %9272  ;;  %v6114_v37 = vrot.slane %v6113_v52, 4 }
0x14ae   :  { %v6100_v43 = vmul.f32 %v11304_v13, %v6092_v49  ;;  %v6083_v32 = vmul.f32 0.6931472, %v9273_v28  ;;  %v6073_v47 = vpop.xlane.xlu0 %6072  ;;  %v6070_v61 = vpop.xlane.xlu1 %6069  ;;  %v6108_v51 = vadd.f32 %v6107_v8, %v6106_v14 }
0x14af   :  { %9278 = vlog2.f32 %v6073_v47  ;;  %v6115_v25 = vadd.f32 %v6114_v37, %v6113_v52 }
0x14b0   :  { %v6120_v45 = vsel %vm4584_vm1, %v6100_v43, 0.0  ;;  %v6094_v62 = vadd.f32 %v6083_v32, %v11794_v17  ;;  %9280 = vlog2.f32 %v6070_v61  ;;  %v6109_v60 = vrot.slane %v6108_v51, 2 }
0x14b1   :  { %v9275_v12 = vpop.eup %9274  ;;  %v6121_v44 = vrot.slane %v6120_v45, 4  ;;  %v6116_v17 = vrot.slane %v6115_v25, 2 }
0x14b2   :  { %v6102_v46 = vmul.f32 %v11304_v13, %v6094_v62  ;;  %v6081_v36 = vmul.f32 0.6931472, %v9275_v12 }
0x14b3   :  { %v6122_v7 = vadd.f32 %v6121_v44, %v6120_v45  ;;  %v6117_v10 = vadd.f32 %v6116_v17, %v6115_v25 }
0x14b4   :  { %v6134_v4 = vsel %vm4584_vm1, %v6102_v46, 0.0  ;;  %v6093_v2 = vadd.f32 %v6081_v36, %v11799_v0 }
0x14b5   :  { %v9277_v5 = vpop.eup %9276  ;;  %v6135_v30 = vrot.slane %v6134_v4, 4  ;;  %v6123_v18 = vrot.slane %v6122_v7, 2  ;;  %v6118_v32 = vrot.slane %v6117_v10, 1 }
0x14b6   :  { %v6101_v29 = vmul.f32 %v11304_v13, %v6093_v2  ;;  %v6085_v57 = vmul.f32 0.6931472, %v9277_v5 }
0x14b7   :  { %v6136_v48 = vadd.f32 %v6135_v30, %v6134_v4  ;;  %v6124_v6 = vadd.f32 %v6123_v18, %v6122_v7 }
0x14b8   :  { %v6127_v54 = vsel %vm4584_vm1, %v6101_v29, 0.0  ;;  %v6095_v27 = vadd.f32 %v6085_v57, %v11804_v21  ;;  %v6110_v21 = vadd.f32 %v6109_v60, %v6108_v51 }
0x14b9   :  { %v9279_v1 = vpop.eup %9278  ;;  %v6128_v63 = vrot.slane %v6127_v54, 4  ;;  %v6137_v28 = vrot.slane %v6136_v48, 2  ;;  %v6125_v14 = vrot.slane %v6124_v6, 1 }
0x14ba   :  { %v9281_v55 = vpop.eup %9280  ;;  %v6103_v40 = vmul.f32 %v11304_v13, %v6095_v27  ;;  %v6089_v0 = vmul.f32 0.6931472, %v9279_v1 }
0x14bb   :  { %v6129_v33 = vadd.f32 %v6128_v63, %v6127_v54  ;;  %v6087_v34 = vmul.f32 0.6931472, %v9281_v55  ;;  %v6138_v44 = vadd.f32 %v6137_v28, %v6136_v48  ;;  %v6126_v25 = vadd.f32 %v6125_v14, %v6124_v6 }
0x14bc   :  { %v6141_v26 = vsel %vm4584_vm1, %v6103_v40, 0.0  ;;  %v6097_v22 = vadd.f32 %v6089_v0, %v11808_v31  ;;  %v6111_v31 = vrot.slane %v6110_v21, 1 }
0x14bd   :  { %v6130_v42 = vrot.slane %v6129_v33, 2  ;;  %v6142_v58 = vrot.slane %v6141_v26, 4  ;;  %v6096_v49 = vadd.f32 %v6087_v34, %v11797_v59  ;;  %v6119_v59 = vadd.f32 %v6118_v32, %v6117_v10  ;;  %v6183_v10 = vpop.permute.xlu1 %6182 }
0x14be   :  { %v6105_v9 = vmul.f32 %v11304_v13, %v6097_v22  ;;  %v6112_v5 = vadd.f32 %v6111_v31, %v6110_v21  ;;  %v6139_v29 = vrot.slane %v6138_v44, 1  ;;  %vm6184_vm13 = vcmp.eq.s32.totalorder %v6183_v10, 1 }
0x14bf   :  { %v6131_v52 = vadd.f32 %v6130_v42, %v6129_v33  ;;  %v6143_v43 = vadd.f32 %v6142_v58, %v6141_v26  ;;  %v6104_v61 = vmul.f32 %v11304_v13, %v6096_v49 }
0x14c0   :  { %v6155_v47 = vsel %vm4584_vm1, %v6105_v9, 0.0  ;;  %v6171_v17 = vsel %vm4754_vm4, %v6119_v59, %v6112_v5  ;;  %v6140_v55 = vadd.f32 %v6139_v29, %v6138_v44 }
0x14c1   :  { %v6144_v37 = vrot.slane %v6143_v43, 2  ;;  %v6156_v45 = vrot.slane %v6155_v47, 4  ;;  %v6132_v62 = vrot.slane %v6131_v52, 1  ;;  %v6148_v12 = vsel %vm4584_vm1, %v6104_v61, 0.0 }
0x14c2   :  { %v6149_v36 = vrot.slane %v6148_v12, 4  ;;  %v6172_v54 = vsel %vm4756_vm5, %v6126_v25, %v6171_v17 }
0x14c3   :  { %v6145_v8 = vadd.f32 %v6144_v37, %v6143_v43  ;;  %v6157_v46 = vadd.f32 %v6156_v45, %v6155_v47  ;;  %v6133_v7 = vadd.f32 %v6132_v62, %v6131_v52 }
0x14c4   :  { %v6150_v2 = vadd.f32 %v6149_v36, %v6148_v12 }
0x14c5   :  { %v6158_v4 = vrot.slane %v6157_v46, 2  ;;  %v6146_v51 = vrot.slane %v6145_v8, 1  ;;  %v6173_v63 = vsel %vm4758_vm6, %v6133_v7, %v6172_v54 }
0x14c6   :  { %v6151_v30 = vrot.slane %v6150_v2, 2  ;;  %v6174_v48 = vsel %vm4760_vm7, %v6140_v55, %v6173_v63 }
0x14c7   :  { %v6159_v57 = vadd.f32 %v6158_v4, %v6157_v46  ;;  %v6147_v18 = vadd.f32 %v6146_v51, %v6145_v8 }
0x14c8   :  { %v6152_v1 = vadd.f32 %v6151_v30, %v6150_v2 }
0x14c9   :  { %v6160_v27 = vrot.slane %v6159_v57, 1  ;;  %v6175_v33 = vsel %vm4762_vm8, %v6147_v18, %v6174_v48 }
0x14ca   :  { %v6153_v60 = vrot.slane %v6152_v1, 1 }
0x14cb   :  { %v6161_v40 = vadd.f32 %v6160_v27, %v6159_v57 }
0x14cc   :  { %v6154_v0 = vadd.f32 %v6153_v60, %v6152_v1 }
0x14ce   :  { %v6176_v34 = vsel %vm4764_vm9, %v6154_v0, %v6175_v33 }
0x14cf   :  { %v6177_v26 = vsel %vm4766_vm10, %v6161_v40, %v6176_v34 }
0x14d0   :  { %v6179_v22 = vadd.f32 %v6177_v26, %v11259_v39 }
0x14d2   :  { %v11854_v6 = vsel %vm6184_vm13, %v6179_v22, %v11748_v20 }
0x14d3   :  { %v6187_v42 = vcombine.high %v11854_v6, %v11854_v6  ;;  %v6194_v58 = vrot.slane %v11854_v6, %v11202_v53 }
0x14d5   :  { %v6201_v21 = vrot.slane %v6187_v42, %v11202_v53  ;;  %v6202_v9 = vcombine.high %v6194_v58, %v6194_v58  ;;  %v6210_v49 = vrot.slane %v6194_v58, %v11202_v53 }
0x14d7   :  { %v6203_v28 = vcombine.high %v6201_v21, %v6201_v21  ;;  %v6239_v52 = vrot.slane %v6210_v49, %v13100_v3  ;;  %v6224_v43 = vrot.slane %v6202_v9, %v11202_v53  ;;  %v6232_v32 = vcombine.high %v6210_v49, %v6210_v49 }
0x14d8   :  { %v6217_v14 = vrot.slane %v6201_v21, %v11202_v53 }
0x14d9   :  { %v6276_v20 = vadd.f32 %v11759_v35, %v6239_v52  ;;  %v6243_v47 = vrot.slane %v6224_v43, %v13100_v3  ;;  %v6231_v61 = vrot.slane %v6203_v28, %v11202_v53  ;;  %v6247_v62 = vrot.slane %v6232_v32, %v13100_v3 }
0x14da   :  { %v6255_v44 = vrot.slane %v6217_v14, %v13100_v3  ;;  %v6234_v53 = vcombine.high %v6224_v43, %v6224_v43  ;;  %v6233_v2 = vcombine.high %v6217_v14, %v6217_v14 }
0x14db   :  { %v6284_v37 = vsel %vm4584_vm1, %v6276_v20, -inf  ;;  %v6277_v45 = vadd.f32 %v11759_v35, %v6243_v47  ;;  %v6259_v31 = vrot.slane %v6231_v61, %v13100_v3  ;;  %v6278_v36 = vadd.f32 %v11759_v35, %v6247_v62 }
0x14dc   :  { %6285 = vmax.xlane.f32.xlu0 %v6284_v37  ;;  %v6280_v25 = vadd.f32 %v11759_v35, %v6255_v44  ;;  %v6251_v4 = vrot.slane %v6234_v53, %v13100_v3  ;;  %v6263_v51 = vrot.slane %v6233_v2, %v13100_v3  ;;  %v6235_v29 = vcombine.high %v6231_v61, %v6231_v61  ;;  %v11921_v2 = vld [vmem:[#allocation4 + $0xb8] sm:$0xff] }
0x14dd   :  { %v6281_v12 = vadd.f32 %v11759_v35, %v6259_v31  ;;  %v6287_v8 = vsel %vm4584_vm1, %v6277_v45, -inf  ;;  %v6290_v59 = vsel %vm4584_vm1, %v6278_v36, -inf  ;;  %vm6444_vm14 = vcmp.gt.f32.partialorder %v11921_v2, 0.0 }
0x14de   :  { %v6296_v5 = vsel %vm4584_vm1, %v6280_v25, -inf  ;;  %v6279_v7 = vadd.f32 %v11759_v35, %v6251_v4  ;;  %v6282_v30 = vadd.f32 %v11759_v35, %v6263_v51  ;;  %v6267_v17 = vrot.slane %v6235_v29, %v13100_v3  ;;  %v9320_v51 = vld [vmem:[#allocation4 + $0x28] sm:$0xff]  ;;  %v9321_v29 = vld [vmem:[#allocation4 + $0x58] sm:$0xff] }
0x14df   :  { %v6299_v46 = vsel %vm4584_vm1, %v6281_v12, -inf }
0x14e0   :  { %6288 = vmax.xlane.f32.xlu0 %v6287_v8  ;;  %6300 = vmax.xlane.f32.xlu1 %v6299_v46  ;;  %v6293_v57 = vsel %vm4584_vm1, %v6279_v7, -inf  ;;  %v6302_v54 = vsel %vm4584_vm1, %v6282_v30, -inf  ;;  %v6283_v27 = vadd.f32 %v11759_v35, %v6267_v17 }
0x14e2   :  { %v6305_v1 = vsel %vm4584_vm1, %v6283_v27, -inf }
0x14e4   :  { %6291 = vmax.xlane.f32.xlu0 %v6290_v59 }
0x14e8   :  { %6297 = vmax.xlane.f32.xlu0 %v6296_v5  ;;  %v11923_v5 = vld [vmem:[#allocation4 + $0x10] sm:$0xff] }
0x14ec   :  { %6294 = vmax.xlane.f32.xlu0 %v6293_v57  ;;  %v9322_v57 = vld [vmem:[#allocation4 + $0x40] sm:$0xff] }
0x14f0   :  { %6303 = vmax.xlane.f32.xlu0 %v6302_v54 }
0x14f4   :  { %6306 = vmax.xlane.f32.xlu0 %v6305_v1 }
0x1569   :  { %v11889_v18 = vpop.xlane.xlu0 %6285 }
0x156a   :  { %v6308_v63 = vsub.f32 %v6276_v20, %v11889_v18 }
0x156c   :  { %v6316_v55 = vmul.f32 1.442695, %v6308_v63 }
0x156d   :  { %v11892_v60 = vpop.xlane.xlu0 %6288  ;;  %v11898_v33 = vpop.xlane.xlu1 %6300 }
0x156e   :  { %9282 = vpow2.f32 %v6316_v55  ;;  %v6309_v40 = vsub.f32 %v6277_v45, %v11892_v60  ;;  %v6313_v22 = vsub.f32 %v6281_v12, %v11898_v33 }
0x1570   :  { %v6318_v3 = vmul.f32 1.442695, %v6309_v40  ;;  %v6326_v28 = vmul.f32 1.442695, %v6313_v22 }
0x1571   :  { %v11895_v0 = vpop.xlane.xlu0 %6291 }
0x1572   :  { %9284 = vpow2.f32 %v6318_v3  ;;  %v6310_v35 = vsub.f32 %v6278_v36, %v11895_v0 }
0x1574   :  { %v6320_v48 = vmul.f32 1.442695, %v6310_v35 }
0x1575   :  { %v11900_v34 = vpop.xlane.xlu0 %6297 }
0x1576   :  { %9286 = vpow2.f32 %v6320_v48  ;;  %v6312_v10 = vsub.f32 %v6280_v25, %v11900_v34 }
0x1578   :  { %v9283_v26 = vpop.eup %9282  ;;  %v6324_v42 = vmul.f32 1.442695, %v6312_v10 }
0x1579   :  { %v11904_v58 = vpop.xlane.xlu0 %6294  ;;  %v6332_v21 = vsel %vm4584_vm1, %v9283_v26, 0.0 }
0x157a   :  { %9288 = vpow2.f32 %v6324_v42  ;;  %v6311_v9 = vsub.f32 %v6279_v7, %v11904_v58  ;;  %6333 = vadd.xlane.f32.xlu0 %v6332_v21  ;;  %v6462_v7 = vsel %vm6444_vm14, 1, %v9429_v15 }
0x157c   :  { %v9285_v49 = vpop.eup %9284  ;;  %v6322_v52 = vmul.f32 1.442695, %v6311_v9 }
0x157d   :  { %v11908_v43 = vpop.xlane.xlu0 %6303  ;;  %v6335_v32 = vsel %vm4584_vm1, %v9285_v49, 0.0 }
0x157e   :  { %9290 = vpow2.f32 %v6322_v52  ;;  %v6314_v20 = vsub.f32 %v6282_v30, %v11908_v43  ;;  %6336 = vadd.xlane.f32.xlu0 %v6335_v32  ;;  %v9323_v30 = vld [vmem:[#allocation4 + $0x70] sm:$0xff]  ;;  %v64_v32 = vld [vmem:[#allocation4 + $0x8] sm:$0xff] }
0x157f   :  { %9292 = vpow2.f32 %v6326_v28 }
0x1580   :  { %v9287_v47 = vpop.eup %9286  ;;  %v6328_v61 = vmul.f32 1.442695, %v6314_v20 }
0x1581   :  { %v11912_v14 = vpop.xlane.xlu0 %6306  ;;  %v6338_v37 = vsel %vm4584_vm1, %v9287_v47, 0.0 }
0x1582   :  { %v6315_v45 = vsub.f32 %v6283_v27, %v11912_v14  ;;  %6339 = vadd.xlane.f32.xlu0 %v6338_v37  ;;  %9294 = vpow2.f32 %v6328_v61 }
0x1584   :  { %v9289_v31 = vpop.eup %9288  ;;  %v6330_v62 = vmul.f32 1.442695, %v6315_v45  ;;  %v4381_v45 = vmul.f32 %v11205_v16, %v64_v32 }
0x1585   :  { %v6344_v12 = vsel %vm4584_vm1, %v9289_v31, 0.0 }
0x1586   :  { %9296 = vpow2.f32 %v6330_v62  ;;  %6345 = vadd.xlane.f32.xlu0 %v6344_v12 }
0x1588   :  { %v9291_v44 = vpop.eup %9290 }
0x1589   :  { %v6341_v8 = vsel %vm4584_vm1, %v9291_v44, 0.0  ;;  %v9293_v46 = vpop.eup %9292 }
0x158a   :  { %6342 = vadd.xlane.f32.xlu0 %v6341_v8  ;;  %v6347_v36 = vsel %vm4584_vm1, %v9293_v46, 0.0  ;;  %v65_v8 = vld [vmem:[#allocation4 + $0x20] sm:$0xff] }
0x158c   :  { %v9295_v53 = vpop.eup %9294 }
0x158d   :  { %v6350_v25 = vsel %vm4584_vm1, %v9295_v53, 0.0 }
0x158e   :  { %6348 = vadd.xlane.f32.xlu0 %v6347_v36 }
0x1590   :  { %v9297_v59 = vpop.eup %9296 }
0x1591   :  { %v6353_v4 = vsel %vm4584_vm1, %v9297_v59, 0.0 }
0x1592   :  { %6351 = vadd.xlane.f32.xlu0 %v6350_v25  ;;  %6354 = vadd.xlane.f32.xlu1 %v6353_v4  ;;  %v4382_v4 = vmul.f32 %v11213_v56, %v65_v8 }
0x15a3   :  { %4391 = vperm.xlu1 %8929, %v11923_v5  }
0x15a7   :  { %4396 = vperm.xlu1 %8929, %v9320_v51  }
0x15a8   :  { %6464 = vperm.xlu0 %8928, %v6462_v7  }
0x15ab   :  { %4406 = vperm.xlu1 %8929, %v9321_v29  }
0x15ac   :  { %4401 = vperm.xlu0 %8928, %v9322_v57  }
0x15af   :  { %4416 = vperm.xlu1 %8929, %v11709_v19  }
0x15b0   :  { %4411 = vperm.xlu0 %8928, %v9323_v30  }
0x15b4   :  { %4421 = vperm.xlu0 %8928, %v11817_v41  }
0x1607   :  { %v6334_v17 = vpop.xlane.xlu0 %6333 }
0x1608   :  { %9298 = vlog2.f32 %v6334_v17 }
0x160b   :  { %v6337_v54 = vpop.xlane.xlu0 %6336 }
0x160c   :  { %9300 = vlog2.f32 %v6337_v54 }
0x160f   :  { %v6340_v27 = vpop.xlane.xlu0 %6339 }
0x1610   :  { %9302 = vlog2.f32 %v6340_v27 }
0x1612   :  { %v9299_v15 = vpop.eup %9298 }
0x1613   :  { %v6346_v1 = vpop.xlane.xlu0 %6345  ;;  %v6357_v63 = vmul.f32 0.6931472, %v9299_v15 }
0x1614   :  { %9304 = vlog2.f32 %v6346_v1 }
0x1615   :  { %v6372_v35 = vadd.f32 %v6357_v63, %v11889_v18 }
0x1616   :  { %v9301_v55 = vpop.eup %9300 }
0x1617   :  { %v6359_v40 = vmul.f32 0.6931472, %v9301_v55  ;;  %v6343_v3 = vpop.xlane.xlu0 %6342  ;;  %v6380_v22 = vmul.f32 %v11304_v13, %v6372_v35 }
0x1618   :  { %9306 = vlog2.f32 %v6343_v3 }
0x1619   :  { %v6373_v19 = vadd.f32 %v6359_v40, %v11892_v60  ;;  %v6388_v60 = vsel %vm4584_vm1, %v6380_v22, 0.0 }
0x161a   :  { %v9303_v48 = vpop.eup %9302  ;;  %v6389_v31 = vrot.slane %v6388_v60, 4 }
0x161b   :  { %v6381_v41 = vmul.f32 %v11304_v13, %v6373_v19  ;;  %v6361_v10 = vmul.f32 0.6931472, %v9303_v48  ;;  %v6349_v26 = vpop.xlane.xlu0 %6348 }
0x161c   :  { %9308 = vlog2.f32 %v6349_v26  ;;  %v6390_v7 = vadd.f32 %v6389_v31, %v6388_v60 }
0x161d   :  { %v6374_v42 = vadd.f32 %v6361_v10, %v11895_v0  ;;  %v6395_v9 = vsel %vm4584_vm1, %v6381_v41, 0.0 }
0x161e   :  { %v9305_v21 = vpop.eup %9304  ;;  %v6396_v20 = vrot.slane %v6395_v9, 4  ;;  %v6391_v55 = vrot.slane %v6390_v7, 2 }
0x161f   :  { %v6382_v49 = vmul.f32 %v11304_v13, %v6374_v42  ;;  %v6365_v28 = vmul.f32 0.6931472, %v9305_v21  ;;  %v6355_v18 = vpop.xlane.xlu1 %6354  ;;  %v6352_v52 = vpop.xlane.xlu0 %6351 }
0x1620   :  { %9310 = vlog2.f32 %v6355_v18  ;;  %v6397_v36 = vadd.f32 %v6396_v20, %v6395_v9  ;;  %v6392_v21 = vadd.f32 %v6391_v55, %v6390_v7 }
0x1621   :  { %v6402_v47 = vsel %vm4584_vm1, %v6382_v49, 0.0  ;;  %v6376_v61 = vadd.f32 %v6365_v28, %v11900_v34  ;;  %9312 = vlog2.f32 %v6352_v52 }
0x1622   :  { %v9307_v37 = vpop.eup %9306  ;;  %v6403_v0 = vrot.slane %v6402_v47, 4  ;;  %v6398_v17 = vrot.slane %v6397_v36, 2 }
0x1623   :  { %v6384_v62 = vmul.f32 %v11304_v13, %v6376_v61  ;;  %v6363_v12 = vmul.f32 0.6931472, %v9307_v37  ;;  %v4392_v44 = vpop.permute.xlu1 %4391 }
0x1624   :  { %v11942_v46 = vmul.f32 %v4392_v44, %v4381_v45  ;;  %v6404_v34 = vadd.f32 %v6403_v0, %v6402_v47  ;;  %v6399_v41 = vadd.f32 %v6398_v17, %v6397_v36 }
0x1625   :  { %v6416_v53 = vsel %vm4584_vm1, %v6384_v62, 0.0  ;;  %v6375_v59 = vadd.f32 %v6363_v12, %v11904_v58 }
0x1626   :  { %v9309_v25 = vpop.eup %9308  ;;  %v6417_v57 = vrot.slane %v6416_v53, 4  ;;  %v6405_v1 = vrot.slane %v6404_v34, 2  ;;  %v6400_v32 = vrot.slane %v6399_v41, 1 }
0x1627   :  { %v6383_v16 = vmul.f32 %v11304_v13, %v6375_v59  ;;  %v6367_v51 = vmul.f32 0.6931472, %v9309_v25  ;;  %v4397_v29 = vpop.permute.xlu1 %4396 }
0x1628   :  { %v4430_v30 = vmul.f32 %v4397_v29, %v4382_v4  ;;  %v6418_v35 = vadd.f32 %v6417_v57, %v6416_v53  ;;  %v6406_v26 = vadd.f32 %v6405_v1, %v6404_v34 }
0x1629   :  { %v6409_v54 = vsel %vm4584_vm1, %v6383_v16, 0.0  ;;  %v6377_v27 = vadd.f32 %v6367_v51, %v11898_v33 }
0x162a   :  { %v9311_v15 = vpop.eup %9310  ;;  %v6410_v63 = vrot.slane %v6409_v54, 4  ;;  %v4441_v3 = vsel %vm4437_vm15, %v4430_v30, 0.0  ;;  %v6419_v28 = vrot.slane %v6418_v35, 2  ;;  %v6407_v47 = vrot.slane %v6406_v26, 1 }
0x162b   :  { %v9313_v58 = vpop.eup %9312  ;;  %v6385_v56 = vmul.f32 %v11304_v13, %v6377_v27  ;;  %v6371_v40 = vmul.f32 0.6931472, %v9311_v15  ;;  %4442 = vadd.xlane.f32.xlu0 %v4441_v3 }
0x162c   :  { %v6411_v19 = vadd.f32 %v6410_v63, %v6409_v54  ;;  %v6369_v48 = vmul.f32 0.6931472, %v9313_v58  ;;  %v6420_v31 = vadd.f32 %v6419_v28, %v6418_v35  ;;  %v6408_v8 = vadd.f32 %v6407_v47, %v6406_v26  ;;  %v6566_v35 = vld [vmem:[#allocation9 + $0x118] ss:$0 sm:$0xff] }
0x162d   :  { %v6423_v10 = vsel %vm4584_vm1, %v6385_v56, 0.0  ;;  %v6379_v33 = vadd.f32 %v6371_v40, %v11912_v14  ;;  %v6393_v14 = vrot.slane %v6392_v21, 1  ;;  %v6465_v56 = vpop.permute.xlu0 %6464  ;;  %v66_v47 = vld [vmem:[#allocation4 + $0x38] sm:$0xff] }
0x162e   :  { %v6412_v22 = vrot.slane %v6411_v19, 2  ;;  %v6424_v42 = vrot.slane %v6423_v10, 4  ;;  %v6378_v49 = vadd.f32 %v6369_v48, %v11908_v43  ;;  %v6401_v43 = vadd.f32 %v6400_v32, %v6399_v41 }
0x162f   :  { %v6387_v9 = vmul.f32 %v11304_v13, %v6379_v33  ;;  %v6394_v59 = vadd.f32 %v6393_v14, %v6392_v21  ;;  %v6421_v4 = vrot.slane %v6420_v31, 1  ;;  %v68_v33 = vld [vmem:[#allocation4 + $0x68] sm:$0xff] }
0x1630   :  { %v6413_v18 = vadd.f32 %v6412_v22, %v6411_v19  ;;  %v6425_v52 = vadd.f32 %v6424_v42, %v6423_v10  ;;  %v6386_v20 = vmul.f32 %v11304_v13, %v6378_v49  ;;  %v4385_v22 = vmul.f32 %v11243_v11, %v68_v33  ;;  %v70_v42 = vld [vmem:[#allocation4 + $0x98] sm:$0xff] }
0x1631   :  { %v6437_v60 = vsel %vm4584_vm1, %v6387_v9, 0.0  ;;  %v6453_v16 = vsel %vm4754_vm4, %v6401_v43, %v6394_v59  ;;  %v6422_v54 = vadd.f32 %v6421_v4, %v6420_v31  ;;  %v4402_v10 = vpop.permute.xlu0 %4401  ;;  %v4438_v9 = vsel %vm4437_vm15, %v11942_v46, 0.0 }
0x1632   :  { %v6426_v61 = vrot.slane %v6425_v52, 2  ;;  %v6438_v37 = vrot.slane %v6437_v60, 4  ;;  %v6414_v0 = vrot.slane %v6413_v18, 1  ;;  %v6430_v45 = vsel %vm4584_vm1, %v6386_v20, 0.0 }
0x1633   :  { %v6431_v44 = vrot.slane %v6430_v45, 4  ;;  %v6454_v51 = vsel %vm4756_vm5, %v6408_v8, %v6453_v16  ;;  %vm6466_vm1 = vcmp.eq.s32.totalorder %v6465_v56, 1  ;;  %v4383_v46 = vmul.f32 %v11222_v50, %v66_v47 }
0x1634   :  { %v6427_v62 = vadd.f32 %v6426_v61, %v6425_v52  ;;  %v6439_v12 = vadd.f32 %v6438_v37, %v6437_v60  ;;  %v6415_v25 = vadd.f32 %v6414_v0, %v6413_v18  ;;  %v4407_v52 = vpop.permute.xlu1 %4406  ;;  %v67_v37 = vld [vmem:[#allocation4 + $0x50] sm:$0xff]  ;;  %vm6486_vm4 = vcmask 7168  }
0x1635   :  { %v6432_v53 = vadd.f32 %v6431_v44, %v6430_v45  ;;  %v4412_v26 = vpop.permute.xlu0 %4411  ;;  %v4431_v14 = vmul.f32 %v4402_v10, %v4383_v46  ;;  %v4384_v0 = vmul.f32 %v11233_v24, %v67_v37  ;;  %v69_v45 = vld [vmem:[#allocation4 + $0x80] sm:$0xff]  ;;  %v71_v44 = vld [vmem:[#allocation4 + $0xb0] sm:$0xff]  ;;  %vm6496_vm5 = vcmask 0  }
0x1636   :  { %v6440_v36 = vrot.slane %v6439_v12, 2  ;;  %v6428_v34 = vrot.slane %v6427_v62, 1  ;;  %v6455_v17 = vsel %vm4758_vm6, %v6415_v25, %v6454_v51  ;;  %v4433_v21 = vmul.f32 %v4412_v26, %v4385_v22 }
0x1637   :  { %v6433_v7 = vrot.slane %v6432_v53, 2  ;;  %v6456_v63 = vsel %vm4760_vm7, %v6422_v54, %v6455_v17  ;;  %v4432_v31 = vmul.f32 %v4407_v52, %v4384_v0 }
0x1638   :  { %v6441_v13 = vadd.f32 %v6440_v36, %v6439_v12  ;;  %v6429_v30 = vadd.f32 %v6428_v34, %v6427_v62  ;;  %v4450_v18 = vsel %vm4437_vm15, %v4433_v21, 0.0  ;;  %v4417_v32 = vpop.permute.xlu1 %4416  ;;  %v4444_v62 = vsel %vm4437_vm15, %v4431_v14, 0.0 }
0x1639   :  { %v6434_v57 = vadd.f32 %v6433_v7, %v6432_v53  ;;  %v4422_v49 = vpop.permute.xlu0 %4421  ;;  %v4386_v12 = vmul.f32 %v11252_v38, %v69_v45  ;;  %v4447_v8 = vsel %vm4437_vm15, %v4432_v31, 0.0  ;;  %v4388_v36 = vmul.f32 %v11264_v23, %v71_v44 }
0x163a   :  { %v6442_v29 = vrot.slane %v6441_v13, 1  ;;  %v6457_v58 = vsel %vm4762_vm8, %v6429_v30, %v6456_v63 }
0x163b   :  { %v6435_v27 = vrot.slane %v6434_v57, 1  ;;  %v4434_v43 = vmul.f32 %v4417_v32, %v4386_v12 }
0x163c   :  { %v6443_v15 = vadd.f32 %v6442_v29, %v6441_v13 }
0x163d   :  { %v6436_v1 = vadd.f32 %v6435_v27, %v6434_v57  ;;  %v4453_v59 = vsel %vm4437_vm15, %v4434_v43, 0.0 }
0x163f   :  { %v6458_v55 = vsel %vm4764_vm9, %v6436_v1, %v6457_v58 }
0x1640   :  { %v6459_v40 = vsel %vm4766_vm10, %v6443_v15, %v6458_v55 }
0x1641   :  { %v6461_v3 = vadd.f32 %v6459_v40, %v11264_v23 }
0x1643   :  { %v6467_v19 = vsel %vm6466_vm1, %v6461_v3, %v11854_v6  ;;  %v4387_v6 = vmul.f32 %v11259_v39, %v70_v42 }
0x1644   :  { %v6472_v48 = vadd.f32 %v6566_v35, %v6467_v19 }
0x1645   :  { %v4435_v28 = vmul.f32 %v4422_v49, %v4387_v6 }
0x1646   :  { %v6473_v41 = vsel %vm4437_vm15, %v6472_v48, -inf }
0x1647   :  { %6474 = vmax.xlane.f32.xlu1 %v6473_v41 }
0x1658   :  { %4426 = vperm.xlu1 %8929, %v11921_v2   ;;  %v4456_v2 = vsel %vm4437_vm15, %v4435_v28, 0.0 }
0x167c   :  { %4439 = vadd.xlane.f32.xlu1 %v4438_v9 }
0x1680   :  { %4451 = vadd.xlane.f32.xlu1 %v4450_v18 }
0x1684   :  { %4457 = vadd.xlane.f32.xlu1 %v4456_v2 }
0x16b8   :  { %v4443_v25 = vpop.xlane.xlu0 %4442 }
0x16d4   :  { %v6475_v60 = vpop.xlane.xlu1 %6474 }
0x16d5   :  { %v6476_v11 = vsub.f32 %v6472_v48, %v6475_v60 }
0x16d7   :  { %v6477_v20 = vmul.f32 1.442695, %v6476_v11 }
0x16d8   :  { %v4427_v50 = vpop.permute.xlu1 %4426 }
0x16d9   :  { %9314 = vpow2.f32 %v6477_v20  ;;  %v4436_v53 = vmul.f32 %v4427_v50, %v4388_v36 }
0x16db   :  { %v4459_v24 = vsel %vm4437_vm15, %v4436_v53, 0.0 }
0x16e3   :  { %v9315_v61 = vpop.eup %9314 }
0x16e4   :  { %v6479_v39 = vsel %vm4437_vm15, %v9315_v61, 0.0 }
0x16e5   :  { %6480 = vadd.xlane.f32.xlu0 %v6479_v39 }
0x16e9   :  { %4445 = vadd.xlane.f32.xlu0 %v4444_v62 }
0x16ed   :  { %4448 = vadd.xlane.f32.xlu0 %v4447_v8 }
0x16f1   :  { %4454 = vadd.xlane.f32.xlu0 %v4453_v59 }
0x16f5   :  { %4460 = vadd.xlane.f32.xlu0 %v4459_v24 }
0x1709   :  { %v4440_v4 = vpop.xlane.xlu1 %4439 }
0x170a   :  { %v4462_v13 = vadd.f32 %v4443_v25, %v4440_v4 }
0x170d   :  { %v4452_v16 = vpop.xlane.xlu1 %4451 }
0x1711   :  { %v4458_v27 = vpop.xlane.xlu1 %4457 }
0x1772   :  { %v6481_v34 = vpop.xlane.xlu0 %6480 }
0x1773   :  { %9316 = vlog2.f32 %v6481_v34 }
0x1776   :  { %v4446_v38 = vpop.xlane.xlu0 %4445 }
0x1777   :  { %v4463_v7 = vadd.f32 %v4462_v13, %v4446_v38 }
0x177a   :  { %v4449_v51 = vpop.xlane.xlu0 %4448 }
0x177b   :  { %v4464_v29 = vadd.f32 %v4463_v7, %v4449_v51 }
0x177d   :  { %v9317_v57 = vpop.eup %9316  ;;  %v4465_v30 = vadd.f32 %v4464_v29, %v4452_v16 }
0x177e   :  { %v6483_v23 = vmul.f32 0.6931472, %v9317_v57  ;;  %v4455_v17 = vpop.xlane.xlu0 %4454 }
0x177f   :  { %v4466_v54 = vadd.f32 %v4465_v30, %v4455_v17 }
0x1780   :  { %v6484_v15 = vadd.f32 %v6483_v23, %v6475_v60 }
0x1781   :  { %v4467_v1 = vadd.f32 %v4466_v54, %v4458_v27 }
0x1782   :  { %v6485_v63 = vmul.f32 %v6484_v15, %v11923_v5  ;;  %v4461_v58 = vpop.xlane.xlu0 %4460 }
0x1783   :  { %v4468_v55 = vadd.f32 %v4467_v1, %v4461_v58 }
0x1784   :  { %v6487_v56 = vsel %vm6486_vm4, %v6485_v63, 0.0 }
0x1785   :  { %v6488_v40 = vrot.slane %v6487_v56, 4  ;;  %v4469_v3 = vrot.slane %v4468_v55, 4 }
0x1787   :  { %v6489_v35 = vadd.f32 %v6488_v40, %v6487_v56  ;;  %v4470_v19 = vadd.f32 %v4469_v3, %v4468_v55 }
0x1789   :  { %v6490_v48 = vrot.slane %v6489_v35, 2  ;;  %v4471_v41 = vrot.slane %v4470_v19, 2 }
0x178b   :  { %v4472_v10 = vadd.f32 %v4471_v41, %v4470_v19  ;;  %v6491_v33 = vadd.f32 %v6490_v48, %v6489_v35 }
0x178d   :  { %v4473_v26 = vrot.slane %v4472_v10, 1  ;;  %v6492_v22 = vrot.slane %v6491_v33, 1 }
0x178f   :  { %v4474_v42 = vadd.f32 %v4473_v26, %v4472_v10  ;;  %v6493_v21 = vadd.f32 %v6492_v22, %v6491_v33 }
0x1791   :  { %v6494_v9 = vsub.f32 %v6493_v21, %v4474_v42 }
0x1793   :  { %v6495_v5 = vmul.f32 0.5, %v6494_v9 }
0x1795   :  { %6497 = vst.msk [vmem:[#allocation10] sm:$0x1] %vm6496_vm5, %v6495_v5 }
0x1796   :  { %9401 = shalt.err (!%p9398_p0)
}
0x1797   :  { %s9402_s30 = scalar_lea.hbm %s12001_s3, 16 }
0x1798   :  { %p9403_p1 = scmp.ne.s32.totalorder %s12001_s3, %s9402_s30  ;;  %p9406_p2 = scmp.lt.u32.totalorder %s9402_s30, %s12001_s3 }
0x179a   :  { %p9408_p3 = pnand %p9406_p2, %p9403_p1 }
0x179c   :  { %9411 = shalt.err (!%p9408_p3)
}
0x179d   :  { %6507 = dma.vmem_to_hbm [thread:$0]  %s6505_s25, 16, %s12001_s3, [#allocation6]  }
0x179e   :  { %9416 = dma.done.wait [#allocation6], 16  }
0x179f   :  { %9417 = vsyncadd [#allocation6], 4294967280 }
0x17a0   :  { %6511 = vsyncpa [#allocation5], 1 }
0x17a1   :  { %6512 = vsyncpa [#allocation8], 1 }
0x17a2   :  { %6513 = vsyncpa [#allocation6], 1 }

</bundles_post_ra>
